<compile_context>
chip_gen: v7x
topology: tpu7x:2x2x1
jax: 0.10.0
libtpu: 0.0.40
codegen_flags: <defaults>
</compile_context>

<pallas_src>
import functools

import jax
import jax.numpy as jnp
from jax.experimental import pallas as pl
from jax.experimental.pallas import tpu as pltpu

F32 = jnp.float32
COMPUTE_DTYPE = jnp.bfloat16   # MXU operand dtype (f32 accumulation)
MAX_BM = 512                   # row-tile cap (well under VMEM on v5e/v6e/v7x)
EPS = 1e-5


def _cdiv(a, b):
    return (a + b - 1) // b


def _bn_fold(ssum, ssq, m, gamma, beta):
    """Fold training-mode BatchNorm (batch stats, biased var) into scale/shift."""
    mean = ssum / m
    var = ssq / m - mean * mean          # biased variance, matches torch BN(train)
    scale = gamma * jax.lax.rsqrt(var + EPS)
    shift = beta - mean * scale
    return scale, shift


# ----------------------------------------------------------------------------
# Pallas kernel 1: fused  relu?(A*scale+shift) @ B (+bias)  [+ output BN stats]
# ----------------------------------------------------------------------------
def _fused_mm_kernel(*refs, transform, relu, has_bias, stats, bm, m_total,
                     need_mask):
    idx = 0
    if transform:
        scale_ref, shift_ref = refs[0], refs[1]
        idx = 2
    a_ref, b_ref = refs[idx], refs[idx + 1]
    idx += 2
    if has_bias:
        bias_ref = refs[idx]
        idx += 1
    o_ref = refs[idx]
    idx += 1

    a = a_ref[...]
    if transform:
        a = a * scale_ref[...] + shift_ref[...]
        if relu:
            a = jnp.maximum(a, 0.0)
    out = jnp.dot(a.astype(COMPUTE_DTYPE), b_ref[...],
                  preferred_element_type=jnp.float32)
    if has_bias:
        out = out + bias_ref[...]
    o_ref[...] = out.astype(o_ref.dtype)

    if stats:
        sum_ref, sq_ref = refs[idx], refs[idx + 1]
        i = pl.program_id(0)

        @pl.when(i == 0)
        def _():
            sum_ref[...] = jnp.zeros_like(sum_ref)
            sq_ref[...] = jnp.zeros_like(sq_ref)

        o = out
        if need_mask:
            rows = jax.lax.broadcasted_iota(jnp.int32, o.shape, 0) + i * bm
            o = jnp.where(rows < m_total, o, 0.0)
        sum_ref[...] += jnp.sum(o, axis=0, keepdims=True)
        sq_ref[...] += jnp.sum(o * o, axis=0, keepdims=True)


def fused_matmul(a, b, *, scale=None, shift=None, bias=None, relu=False,
                 stats=False):
    """out = relu?(a*scale+shift) @ b (+bias); optional per-out-channel sum/sumsq."""
    M, K = a.shape
    Kb, N = b.shape
    assert K == Kb
    transform = scale is not None
    has_bias = bias is not None
    bm = M if M <= MAX_BM else MAX_BM
    grid_m = _cdiv(M, bm)
    need_mask = stats and (grid_m * bm != M)

    inputs, in_specs = [], []
    if transform:
        inputs += [scale.reshape(1, K).astype(F32),
                   shift.reshape(1, K).astype(F32)]
        in_specs += [pl.BlockSpec((1, K), lambda i: (0, 0)),
                     pl.BlockSpec((1, K), lambda i: (0, 0))]
    inputs += [a.astype(F32), b.astype(COMPUTE_DTYPE)]
    in_specs += [pl.BlockSpec((bm, K), lambda i: (i, 0)),
                 pl.BlockSpec((K, N), lambda i: (0, 0))]
    if has_bias:
        inputs.append(bias.reshape(1, N).astype(F32))
        in_specs.append(pl.BlockSpec((1, N), lambda i: (0, 0)))

    if stats:
        out_shape = (jax.ShapeDtypeStruct((M, N), F32),
                     jax.ShapeDtypeStruct((1, N), F32),
                     jax.ShapeDtypeStruct((1, N), F32))
        out_specs = (pl.BlockSpec((bm, N), lambda i: (i, 0)),
                     pl.BlockSpec((1, N), lambda i: (0, 0)),
                     pl.BlockSpec((1, N), lambda i: (0, 0)))
        sem = ("arbitrary",)     # stats outputs are resident accumulators
    else:
        out_shape = jax.ShapeDtypeStruct((M, N), F32)
        out_specs = pl.BlockSpec((bm, N), lambda i: (i, 0))
        sem = ("parallel",)

    kernel = functools.partial(_fused_mm_kernel, transform=transform, relu=relu,
                               has_bias=has_bias, stats=stats, bm=bm,
                               m_total=M, need_mask=need_mask)
    res = pl.pallas_call(
        kernel,
        out_shape=out_shape,
        grid_spec=pltpu.PrefetchScalarGridSpec(
            num_scalar_prefetch=0, grid=(grid_m,),
            in_specs=in_specs, out_specs=out_specs),
        compiler_params=pltpu.CompilerParams(dimension_semantics=sem),
    )(*inputs)
    if stats:
        out, s, q = res
        return out, s[0], q[0]
    return res


# ----------------------------------------------------------------------------
# Pallas kernel 2: window reduction (max/mean) [+ optional BN+ReLU, + stats]
# ----------------------------------------------------------------------------
def _window_reduce_kernel(*refs, op, bn, stats, bm, m_total, need_mask):
    idx = 0
    if bn:
        scale_ref, shift_ref = refs[0], refs[1]
        idx = 2
    x_ref, o_ref = refs[idx], refs[idx + 1]

    x = x_ref[...]                              # (Wn, bm, C)
    if bn:
        x = jnp.maximum(x * scale_ref[...] + shift_ref[...], 0.0)
    if op == "max":
        out = jnp.max(x, axis=0)
    else:
        out = jnp.mean(x, axis=0)
    o_ref[...] = out.astype(o_ref.dtype)

    if stats:
        sum_ref, sq_ref = refs[idx + 2], refs[idx + 3]
        i = pl.program_id(0)

        @pl.when(i == 0)
        def _():
            sum_ref[...] = jnp.zeros_like(sum_ref)
            sq_ref[...] = jnp.zeros_like(sq_ref)

        o = out
        if need_mask:
            rows = jax.lax.broadcasted_iota(jnp.int32, o.shape, 0) + i * bm
            o = jnp.where(rows < m_total, o, 0.0)
        sum_ref[...] += jnp.sum(o, axis=0, keepdims=True)
        sq_ref[...] += jnp.sum(o * o, axis=0, keepdims=True)


def window_reduce(stacked, op, *, scale=None, shift=None, stats=False):
    """stacked: (W, M, C) -> (M, C) reducing over W; optional BN+ReLU first."""
    Wn, M, C = stacked.shape
    bn = scale is not None
    bm = M if M <= MAX_BM else MAX_BM
    grid_m = _cdiv(M, bm)
    need_mask = stats and (grid_m * bm != M)

    inputs, in_specs = [], []
    if bn:
        inputs += [scale.reshape(1, 1, C).astype(F32),
                   shift.reshape(1, 1, C).astype(F32)]
        in_specs += [pl.BlockSpec((1, 1, C), lambda i: (0, 0, 0)),
                     pl.BlockSpec((1, 1, C), lambda i: (0, 0, 0))]
    inputs.append(stacked.astype(F32))
    in_specs.append(pl.BlockSpec((Wn, bm, C), lambda i: (0, i, 0)))

    if stats:
        out_shape = (jax.ShapeDtypeStruct((M, C), F32),
                     jax.ShapeDtypeStruct((1, C), F32),
                     jax.ShapeDtypeStruct((1, C), F32))
        out_specs = (pl.BlockSpec((bm, C), lambda i: (i, 0)),
                     pl.BlockSpec((1, C), lambda i: (0, 0)),
                     pl.BlockSpec((1, C), lambda i: (0, 0)))
        sem = ("arbitrary",)
    else:
        out_shape = jax.ShapeDtypeStruct((M, C), F32)
        out_specs = pl.BlockSpec((bm, C), lambda i: (i, 0))
        sem = ("parallel",)

    kernel = functools.partial(_window_reduce_kernel, op=op, bn=bn, stats=stats,
                               bm=bm, m_total=M, need_mask=need_mask)
    res = pl.pallas_call(
        kernel,
        out_shape=out_shape,
        grid_spec=pltpu.PrefetchScalarGridSpec(
            num_scalar_prefetch=0, grid=(grid_m,),
            in_specs=in_specs, out_specs=out_specs),
        compiler_params=pltpu.CompilerParams(dimension_semantics=sem),
    )(*inputs)
    if stats:
        out, s, q = res
        return out, s[0], q[0]
    return res


# ----------------------------------------------------------------------------
# Pallas kernel 3: standalone fused BN + ReLU (needed before spatial padding)
# ----------------------------------------------------------------------------
def _bn_relu_kernel(scale_ref, shift_ref, x_ref, o_ref):
    o_ref[...] = jnp.maximum(x_ref[...] * scale_ref[...] + shift_ref[...], 0.0)


def bn_relu(x_nhwc, scale, shift):
    N, H, W, C = x_nhwc.shape
    M = N * H * W
    bm = M if M <= MAX_BM else MAX_BM
    grid_m = _cdiv(M, bm)
    out = pl.pallas_call(
        _bn_relu_kernel,
        out_shape=jax.ShapeDtypeStruct((M, C), F32),
        grid_spec=pltpu.PrefetchScalarGridSpec(
            num_scalar_prefetch=0, grid=(grid_m,),
            in_specs=[pl.BlockSpec((1, C), lambda i: (0, 0)),
                      pl.BlockSpec((1, C), lambda i: (0, 0)),
                      pl.BlockSpec((bm, C), lambda i: (i, 0))],
            out_specs=pl.BlockSpec((bm, C), lambda i: (i, 0))),
        compiler_params=pltpu.CompilerParams(dimension_semantics=("parallel",)),
    )(scale.reshape(1, C).astype(F32), shift.reshape(1, C).astype(F32),
      x_nhwc.reshape(M, C).astype(F32))
    return out.reshape(N, H, W, C)


# ----------------------------------------------------------------------------
# JAX glue: im2col and pooling-window extraction (pad / slice / stack only)
# ----------------------------------------------------------------------------
def im2col(x, k, s, p):
    N, H, W, C = x.shape
    Ho = (H + 2 * p - k) // s + 1
    Wo = (W + 2 * p - k) // s + 1
    xp = jnp.pad(x, ((0, 0), (p, p), (p, p), (0, 0)))
    cols = []
    for dh in range(k):
        for dw in range(k):
            cols.append(xp[:, dh:dh + s * (Ho - 1) + 1:s,
                           dw:dw + s * (Wo - 1) + 1:s, :])
    patches = jnp.concatenate(cols, axis=-1)          # (N, Ho, Wo, k*k*C)
    return patches.reshape(N * Ho * Wo, k * k * C), (N, Ho, Wo)


def maxpool_3x3_s2_p1(x, stats=False):
    N, H, W, C = x.shape
    Ho, Wo = (H + 2 - 3) // 2 + 1, (W + 2 - 3) // 2 + 1
    xp = jnp.pad(x, ((0, 0), (1, 1), (1, 1), (0, 0)), constant_values=-jnp.inf)
    slices = []
    for dh in range(3):
        for dw in range(3):
            slices.append(xp[:, dh:dh + 2 * (Ho - 1) + 1:2,
                             dw:dw + 2 * (Wo - 1) + 1:2, :])
    stacked = jnp.stack(slices, axis=0).reshape(9, N * Ho * Wo, C)
    res = window_reduce(stacked, "max", stats=stats)
    if stats:
        out, s, q = res
        return out.reshape(N, Ho, Wo, C), s, q
    return res.reshape(N, Ho, Wo, C)


def avgpool_2x2_s2(x, stats=False):
    N, H, W, C = x.shape
    Ho, Wo = H // 2, W // 2
    slices = []
    for dh in range(2):
        for dw in range(2):
            slices.append(x[:, dh::2, dw::2, :])
    stacked = jnp.stack(slices, axis=0).reshape(4, N * Ho * Wo, C)
    res = window_reduce(stacked, "mean", stats=stats)
    if stats:
        out, s, q = res
        return out.reshape(N, Ho, Wo, C), s, q
    return res.reshape(N, Ho, Wo, C)


def global_avgpool_bn_relu(x, scale, shift):
    """AdaptiveAvgPool2d(1) with norm5+relu5 fused into the reduction kernel."""
    N, H, W, C = x.shape
    stacked = jnp.transpose(x.reshape(N, H * W, C), (1, 0, 2))   # (H*W, N, C)
    return window_reduce(stacked, "mean", scale=scale, shift=shift)  # (N, C)


# ----------------------------------------------------------------------------
# DenseNet building blocks
# ----------------------------------------------------------------------------
def dense_layer_forward(x_cat, cat_sum, cat_sq, lp):
    N, H, W, C = x_cat.shape
    M = N * H * W
    flat = x_cat.reshape(M, C)
    # norm1 + relu1 + conv1 (1x1, no bias): BN/ReLU folded into the matmul
    # operand; the kernel also emits per-channel stats of its output for norm2.
    sc1, sh1 = _bn_fold(cat_sum, cat_sq, M, lp['gamma1'], lp['beta1'])
    bott, bsum, bsq = fused_matmul(flat, lp['conv1_w'], scale=sc1, shift=sh1,
                                   relu=True, stats=True)
    cb = lp['conv1_w'].shape[1]
    # norm2 + relu2 must be applied BEFORE the zero-padding of conv2, so run
    # the fused BN+ReLU elementwise kernel, then im2col + plain matmul (which
    # emits the stats consumed by the next layer's / transition's BN).
    sc2, sh2 = _bn_fold(bsum, bsq, M, lp['gamma2'], lp['beta2'])
    act = bn_relu(bott.reshape(N, H, W, cb), sc2, sh2)
    # TODO(synk): replace im2col with in-kernel shifted-tap accumulation to
    # avoid the 9x HBM patch materialization at real model scale.
    patches, _ = im2col(act, 3, 1, 1)
    growth = lp['conv2_w'].shape[-1]
    w2 = lp['conv2_w'].reshape(-1, growth)
    out, osum, osq = fused_matmul(patches, w2, stats=True)
    # TODO(synk): drop_rate > 0 (F.dropout) not implemented; module built with drop_rate=0.
    return out.reshape(N, H, W, growth), osum, osq


def densenet_forward(x_nchw, params):
    x = jnp.transpose(x_nchw.astype(F32), (0, 2, 3, 1))        # NCHW -> NHWC
    # conv0: 7x7 stride 2 pad 3, no bias; norm0 stats fused into the matmul.
    patches, (N, Ho, Wo) = im2col(x, 7, 2, 3)
    c0 = params['conv0_w'].shape[-1]
    w0 = params['conv0_w'].reshape(-1, c0)
    y, s0, q0 = fused_matmul(patches, w0, stats=True)
    M0 = N * Ho * Wo
    g0, b0 = params['norm0']
    sc0, sh0 = _bn_fold(s0, q0, M0, g0, b0)
    # norm0 + relu0 (standalone: the -inf padded maxpool follows).
    x = bn_relu(y.reshape(N, Ho, Wo, c0), sc0, sh0)
    # max_pool0: 3x3 stride 2 pad 1; output stats fused (feed first norm1).
    x, xsum, xsq = maxpool_3x3_s2_p1(x, stats=True)

    # dense blocks (+ transitions between them). Per-feature channel stats are
    # carried alongside features so BN of any concat never re-reads activations.
    for bi, block in enumerate(params['blocks']):
        feats, fsums, fsqs = [x], [xsum], [xsq]
        for lp in block:
            inp = feats[0] if len(feats) == 1 else jnp.concatenate(feats, axis=-1)
            csum = fsums[0] if len(fsums) == 1 else jnp.concatenate(fsums)
            csq = fsqs[0] if len(fsqs) == 1 else jnp.concatenate(fsqs)
            f, s, q = dense_layer_forward(inp, csum, csq, lp)
            feats.append(f); fsums.append(s); fsqs.append(q)
        x = jnp.concatenate(feats, axis=-1)
        xsum = jnp.concatenate(fsums)
        xsq = jnp.concatenate(fsqs)
        if bi < len(params['blocks']) - 1:
            tp = params['transitions'][bi]
            Nn, Hh, Ww, Cc = x.shape
            M = Nn * Hh * Ww
            sc, sh = _bn_fold(xsum, xsq, M, tp['gamma'], tp['beta'])
            y = fused_matmul(x.reshape(M, Cc), tp['conv_w'], scale=sc, shift=sh,
                             bias=tp['conv_b'], relu=True)
            cout = tp['conv_w'].shape[1]
            x, xsum, xsq = avgpool_2x2_s2(y.reshape(Nn, Hh, Ww, cout), stats=True)

    # final: norm5 + relu5 fused into the global average pool, then Linear.
    fp = params['final']
    Nn, Hh, Ww, Cc = x.shape
    M = Nn * Hh * Ww
    sc, sh = _bn_fold(xsum, xsq, M, fp['gamma'], fp['beta'])
    pooled = global_avgpool_bn_relu(x, sc, sh)                   # (N, C)
    logits = fused_matmul(pooled, fp['lin_w'], bias=fp['lin_b'])
    return logits


# ----------------------------------------------------------------------------
# Deterministic parameter initialization
# ----------------------------------------------------------------------------
def init_params(key, num_init_features=16, block_config=(2, 2), growth_rate=8,
                bn_size=4, num_classes=10):
    keys = iter(jax.random.split(key, 256))

    def nk():
        return next(keys)

    def conv_w(k, cin, cout):
        std = (2.0 / (k * k * cin)) ** 0.5
        return jax.random.normal(nk(), (k, k, cin, cout), F32) * std

    def bn_p(c):
        return (1.0 + 0.1 * jax.random.normal(nk(), (c,), F32),
                0.05 * jax.random.normal(nk(), (c,), F32))

    params = {}
    params['conv0_w'] = conv_w(7, 3, num_init_features)
    params['norm0'] = bn_p(num_init_features)

    nf = num_init_features
    blocks, transitions = [], []
    for i, num_layer in enumerate(block_config):
        block = []
        for l in range(num_layer):
            cin = nf + l * growth_rate
            g1, b1 = bn_p(cin)
            g2, b2 = bn_p(bn_size * growth_rate)
            block.append({
                'gamma1': g1, 'beta1': b1,
                'conv1_w': conv_w(1, cin, bn_size * growth_rate
                                  ).reshape(cin, bn_size * growth_rate),
                'gamma2': g2, 'beta2': b2,
                'conv2_w': conv_w(3, bn_size * growth_rate, growth_rate),
            })
        blocks.append(block)
        nf = nf + num_layer * growth_rate
        if i != len(block_config) - 1:
            g, b = bn_p(nf)
            transitions.append({
                'gamma': g, 'beta': b,
                'conv_w': conv_w(1, nf, nf // 2).reshape(nf, nf // 2),
                'conv_b': 0.05 * jax.random.normal(nk(), (nf // 2,), F32),
            })
            nf = nf // 2

    gf, bf = bn_p(nf)
    params['blocks'] = blocks
    params['transitions'] = transitions
    params['final'] = {
        'gamma': gf, 'beta': bf,
        'lin_w': jax.random.normal(nk(), (nf, num_classes), F32) * (1.0 / nf ** 0.5),
        'lin_b': 0.05 * jax.random.normal(nk(), (num_classes,), F32),
    }
    return params


if __name__ == "__main__":
    key = jax.random.PRNGKey(0)
    pkey, xkey = jax.random.split(key)
    params = init_params(pkey, num_init_features=16, block_config=(2, 2),
                         growth_rate=8, bn_size=4, num_classes=10)
    x = jax.random.normal(xkey, (2, 3, 32, 32), F32)  # NCHW, like PyTorch
    logits = jax.jit(densenet_forward)(x, params)
    logits = jax.block_until_ready(logits)
    assert logits.shape == (2, 10), logits.shape
    assert bool(jnp.all(jnp.isfinite(logits)))
    print("KERNEL_OK")
</pallas_src>

<mosaic_0001>
module attributes {stable_mosaic.version = 11 : i64} {
  func.func @_fused_mm_kernel(%arg0: i32, %arg1: memref<512x147xf32, #tpu.memory_space<vmem>>, %arg2: memref<147x16xbf16, #tpu.memory_space<vmem>>, %arg3: memref<512x16xf32, #tpu.memory_space<vmem>>, %arg4: memref<1x16xf32, #tpu.memory_space<vmem>>, %arg5: memref<1x16xf32, #tpu.memory_space<vmem>>) attributes {dimension_semantics = [#tpu.dimension_semantics<arbitrary>], iteration_bounds = array<i64: 1>, scalar_prefetch = 0 : i64, scratch_operands = 0 : i64, tpu.core_type = #tpu.core_type<tc>, window_params = [{transform_indices = @transform_0, window_bounds = array<i64: 512, 147>}, {pipeline_mode = #tpu.pipeline_mode<synchronous>, transform_indices = @transform_1, window_bounds = array<i64: 147, 16>}, {transform_indices = @transform_2, window_bounds = array<i64: 512, 16>}, {pipeline_mode = #tpu.pipeline_mode<synchronous>, transform_indices = @transform_3, window_bounds = array<i64: 1, 16>}, {pipeline_mode = #tpu.pipeline_mode<synchronous>, transform_indices = @transform_4, window_bounds = array<i64: 1, 16>}]} {
    %c0 = arith.constant 0 : index
    %c0_0 = arith.constant 0 : index
    %0 = vector.load %arg1[%c0, %c0_0] : memref<512x147xf32, #tpu.memory_space<vmem>>, vector<512x147xf32>
    %1 = arith.truncf %0 : vector<512x147xf32> to vector<512x147xbf16>
    %c0_1 = arith.constant 0 : index
    %c0_2 = arith.constant 0 : index
    %2 = vector.load %arg2[%c0_1, %c0_2] : memref<147x16xbf16, #tpu.memory_space<vmem>>, vector<147x16xbf16>
    %cst = arith.constant dense<0.000000e+00> : vector<512x16xf32>
    %3 = tpu.matmul %1, %2, %cst {dimension_numbers = #tpu.dot_dimension_numbers<[1], [0], [0], [1], [0, 0, 1, 1], [], []>} : vector<512x147xbf16>, vector<147x16xbf16>, vector<512x16xf32> -> vector<512x16xf32>
    %c0_3 = arith.constant 0 : index
    %c0_4 = arith.constant 0 : index
    %4 = vector.load %arg3[%c0_3, %c0_4] : memref<512x16xf32, #tpu.memory_space<vmem>>, vector<512x16xf32>
    tpu.vector_store %arg3[%c0_3, %c0_4], %3 {strides = array<i32>} : memref<512x16xf32, #tpu.memory_space<vmem>>, vector<512x16xf32>,
    %c0_i32 = arith.constant 0 : i32
    %5 = arith.cmpi eq, %arg0, %c0_i32 : i32
    %6 = arith.extui %5 : i1 to i32
    %c0_i32_5 = arith.constant 0 : i32
    %7 = arith.cmpi ne, %6, %c0_i32_5 : i32
    scf.if %7 {
      %cst_16 = arith.constant 0.000000e+00 : f32
      %19 = vector.broadcast %cst_16 : f32 to vector<1x16xf32>
      %c0_17 = arith.constant 0 : index
      %c0_18 = arith.constant 0 : index
      %20 = vector.load %arg4[%c0_17, %c0_18] : memref<1x16xf32, #tpu.memory_space<vmem>>, vector<1x16xf32>
      tpu.vector_store %arg4[%c0_17, %c0_18], %19 {strides = array<i32>} : memref<1x16xf32, #tpu.memory_space<vmem>>, vector<1x16xf32>,
      %cst_19 = arith.constant 0.000000e+00 : f32
      %21 = vector.broadcast %cst_19 : f32 to vector<1x16xf32>
      %c0_20 = arith.constant 0 : index
      %c0_21 = arith.constant 0 : index
      %22 = vector.load %arg5[%c0_20, %c0_21] : memref<1x16xf32, #tpu.memory_space<vmem>>, vector<1x16xf32>
      tpu.vector_store %arg5[%c0_20, %c0_21], %21 {strides = array<i32>} : memref<1x16xf32, #tpu.memory_space<vmem>>, vector<1x16xf32>,
    } else {
    }
    %c0_6 = arith.constant 0 : index
    %c0_7 = arith.constant 0 : index
    %8 = vector.load %arg4[%c0_6, %c0_7] : memref<1x16xf32, #tpu.memory_space<vmem>>, vector<1x16xf32>
    %cst_8 = arith.constant dense<0.000000e+00> : vector<16xf32>
    %9 = vector.multi_reduction <add>, %3, %cst_8 [0] : vector<512x16xf32> to vector<16xf32>
    %10 = vector.shape_cast %9 : vector<16xf32> to vector<1x16xf32>
    %11 = arith.addf %8, %10 : vector<1x16xf32>
    %c0_9 = arith.constant 0 : index
    %c0_10 = arith.constant 0 : index
    %12 = vector.load %arg4[%c0_9, %c0_10] : memref<1x16xf32, #tpu.memory_space<vmem>>, vector<1x16xf32>
    tpu.vector_store %arg4[%c0_9, %c0_10], %11 {strides = array<i32>} : memref<1x16xf32, #tpu.memory_space<vmem>>, vector<1x16xf32>,
    %c0_11 = arith.constant 0 : index
    %c0_12 = arith.constant 0 : index
    %13 = vector.load %arg5[%c0_11, %c0_12] : memref<1x16xf32, #tpu.memory_space<vmem>>, vector<1x16xf32>
    %14 = arith.mulf %3, %3 : vector<512x16xf32>
    %cst_13 = arith.constant dense<0.000000e+00> : vector<16xf32>
    %15 = vector.multi_reduction <add>, %14, %cst_13 [0] : vector<512x16xf32> to vector<16xf32>
    %16 = vector.shape_cast %15 : vector<16xf32> to vector<1x16xf32>
    %17 = arith.addf %13, %16 : vector<1x16xf32>
    %c0_14 = arith.constant 0 : index
    %c0_15 = arith.constant 0 : index
    %18 = vector.load %arg5[%c0_14, %c0_15] : memref<1x16xf32, #tpu.memory_space<vmem>>, vector<1x16xf32>
    tpu.vector_store %arg5[%c0_14, %c0_15], %17 {strides = array<i32>} : memref<1x16xf32, #tpu.memory_space<vmem>>, vector<1x16xf32>,
    return
  }
  func.func @transform_0(%arg0: i32) -> (i32, i32) {
    %c0_i32 = arith.constant 0 : i32
    %c0_i32_0 = arith.constant 0 : i32
    return %arg0, %c0_i32 : i32, i32
  }
  func.func @transform_1(%arg0: i32) -> (i32, i32) {
    %c0_i32 = arith.constant 0 : i32
    %c0_i32_0 = arith.constant 0 : i32
    %c0_i32_1 = arith.constant 0 : i32
    return %c0_i32, %c0_i32_0 : i32, i32
  }
  func.func @transform_2(%arg0: i32) -> (i32, i32) {
    %c0_i32 = arith.constant 0 : i32
    %c0_i32_0 = arith.constant 0 : i32
    return %arg0, %c0_i32 : i32, i32
  }
  func.func @transform_3(%arg0: i32) -> (i32, i32) {
    %c0_i32 = arith.constant 0 : i32
    %c0_i32_0 = arith.constant 0 : i32
    %c0_i32_1 = arith.constant 0 : i32
    return %c0_i32, %c0_i32_0 : i32, i32
  }
  func.func @transform_4(%arg0: i32) -> (i32, i32) {
    %c0_i32 = arith.constant 0 : i32
    %c0_i32_0 = arith.constant 0 : i32
    %c0_i32_1 = arith.constant 0 : i32
    return %c0_i32, %c0_i32_0 : i32, i32
  }
}

module attributes {stable_mosaic.version = 11 : i64} {
  func.func @_bn_relu_kernel(%arg0: i32, %arg1: memref<1x16xf32, #tpu.memory_space<vmem>>, %arg2: memref<1x16xf32, #tpu.memory_space<vmem>>, %arg3: memref<512x16xf32, #tpu.memory_space<vmem>>, %arg4: memref<512x16xf32, #tpu.memory_space<vmem>>) attributes {dimension_semantics = [#tpu.dimension_semantics<parallel>], iteration_bounds = array<i64: 1>, scalar_prefetch = 0 : i64, scratch_operands = 0 : i64, tpu.core_type = #tpu.core_type<tc>, window_params = [{pipeline_mode = #tpu.pipeline_mode<synchronous>, transform_indices = @transform_0, window_bounds = array<i64: 1, 16>}, {pipeline_mode = #tpu.pipeline_mode<synchronous>, transform_indices = @transform_1, window_bounds = array<i64: 1, 16>}, {transform_indices = @transform_2, window_bounds = array<i64: 512, 16>}, {transform_indices = @transform_3, window_bounds = array<i64: 512, 16>}]} {
    %c0 = arith.constant 0 : index
    %c0_0 = arith.constant 0 : index
    %0 = vector.load %arg3[%c0, %c0_0] : memref<512x16xf32, #tpu.memory_space<vmem>>, vector<512x16xf32>
    %c0_1 = arith.constant 0 : index
    %c0_2 = arith.constant 0 : index
    %1 = vector.load %arg1[%c0_1, %c0_2] : memref<1x16xf32, #tpu.memory_space<vmem>>, vector<1x16xf32>
    %2 = vector.broadcast %1 : vector<1x16xf32> to vector<512x16xf32>
    %3 = arith.mulf %0, %2 : vector<512x16xf32>
    %c0_3 = arith.constant 0 : index
    %c0_4 = arith.constant 0 : index
    %4 = vector.load %arg2[%c0_3, %c0_4] : memref<1x16xf32, #tpu.memory_space<vmem>>, vector<1x16xf32>
    %5 = vector.broadcast %4 : vector<1x16xf32> to vector<512x16xf32>
    %6 = arith.addf %3, %5 : vector<512x16xf32>
    %cst = arith.constant 0.000000e+00 : f32
    %7 = vector.broadcast %cst : f32 to vector<512x16xf32>
    %8 = arith.maximumf %6, %7 : vector<512x16xf32>
    %c0_5 = arith.constant 0 : index
    %c0_6 = arith.constant 0 : index
    %9 = vector.load %arg4[%c0_5, %c0_6] : memref<512x16xf32, #tpu.memory_space<vmem>>, vector<512x16xf32>
    tpu.vector_store %arg4[%c0_5, %c0_6], %8 {strides = array<i32>} : memref<512x16xf32, #tpu.memory_space<vmem>>, vector<512x16xf32>,
    return
  }
  func.func @transform_0(%arg0: i32) -> (i32, i32) {
    %c0_i32 = arith.constant 0 : i32
    %c0_i32_0 = arith.constant 0 : i32
    %c0_i32_1 = arith.constant 0 : i32
    return %c0_i32, %c0_i32_0 : i32, i32
  }
  func.func @transform_1(%arg0: i32) -> (i32, i32) {
    %c0_i32 = arith.constant 0 : i32
    %c0_i32_0 = arith.constant 0 : i32
    %c0_i32_1 = arith.constant 0 : i32
    return %c0_i32, %c0_i32_0 : i32, i32
  }
  func.func @transform_2(%arg0: i32) -> (i32, i32) {
    %c0_i32 = arith.constant 0 : i32
    %c0_i32_0 = arith.constant 0 : i32
    return %arg0, %c0_i32 : i32, i32
  }
  func.func @transform_3(%arg0: i32) -> (i32, i32) {
    %c0_i32 = arith.constant 0 : i32
    %c0_i32_0 = arith.constant 0 : i32
    return %arg0, %c0_i32 : i32, i32
  }
}

module attributes {stable_mosaic.version = 11 : i64} {
  func.func @_fused_mm_kernel(%arg0: i32, %arg1: memref<1x16xf32, #tpu.memory_space<vmem>>, %arg2: memref<1x16xf32, #tpu.memory_space<vmem>>, %arg3: memref<128x16xf32, #tpu.memory_space<vmem>>, %arg4: memref<16x32xbf16, #tpu.memory_space<vmem>>, %arg5: memref<128x32xf32, #tpu.memory_space<vmem>>, %arg6: memref<1x32xf32, #tpu.memory_space<vmem>>, %arg7: memref<1x32xf32, #tpu.memory_space<vmem>>) attributes {dimension_semantics = [#tpu.dimension_semantics<arbitrary>], iteration_bounds = array<i64: 1>, scalar_prefetch = 0 : i64, scratch_operands = 0 : i64, tpu.core_type = #tpu.core_type<tc>, window_params = [{pipeline_mode = #tpu.pipeline_mode<synchronous>, transform_indices = @transform_0, window_bounds = array<i64: 1, 16>}, {pipeline_mode = #tpu.pipeline_mode<synchronous>, transform_indices = @transform_1, window_bounds = array<i64: 1, 16>}, {transform_indices = @transform_2, window_bounds = array<i64: 128, 16>}, {pipeline_mode = #tpu.pipeline_mode<synchronous>, transform_indices = @transform_3, window_bounds = array<i64: 16, 32>}, {transform_indices = @transform_4, window_bounds = array<i64: 128, 32>}, {pipeline_mode = #tpu.pipeline_mode<synchronous>, transform_indices = @transform_5, window_bounds = array<i64: 1, 32>}, {pipeline_mode = #tpu.pipeline_mode<synchronous>, transform_indices = @transform_6, window_bounds = array<i64: 1, 32>}]} {
    %c0 = arith.constant 0 : index
    %c0_0 = arith.constant 0 : index
    %0 = vector.load %arg3[%c0, %c0_0] : memref<128x16xf32, #tpu.memory_space<vmem>>, vector<128x16xf32>
    %c0_1 = arith.constant 0 : index
    %c0_2 = arith.constant 0 : index
    %1 = vector.load %arg1[%c0_1, %c0_2] : memref<1x16xf32, #tpu.memory_space<vmem>>, vector<1x16xf32>
    %2 = vector.broadcast %1 : vector<1x16xf32> to vector<128x16xf32>
    %3 = arith.mulf %0, %2 : vector<128x16xf32>
    %c0_3 = arith.constant 0 : index
    %c0_4 = arith.constant 0 : index
    %4 = vector.load %arg2[%c0_3, %c0_4] : memref<1x16xf32, #tpu.memory_space<vmem>>, vector<1x16xf32>
    %5 = vector.broadcast %4 : vector<1x16xf32> to vector<128x16xf32>
    %6 = arith.addf %3, %5 : vector<128x16xf32>
    %cst = arith.constant 0.000000e+00 : f32
    %7 = vector.broadcast %cst : f32 to vector<128x16xf32>
    %8 = arith.maximumf %6, %7 : vector<128x16xf32>
    %9 = arith.truncf %8 : vector<128x16xf32> to vector<128x16xbf16>
    %c0_5 = arith.constant 0 : index
    %c0_6 = arith.constant 0 : index
    %10 = vector.load %arg4[%c0_5, %c0_6] : memref<16x32xbf16, #tpu.memory_space<vmem>>, vector<16x32xbf16>
    %cst_7 = arith.constant dense<0.000000e+00> : vector<128x32xf32>
    %11 = tpu.matmul %9, %10, %cst_7 {dimension_numbers = #tpu.dot_dimension_numbers<[1], [0], [0], [1], [0, 0, 1, 1], [], []>} : vector<128x16xbf16>, vector<16x32xbf16>, vector<128x32xf32> -> vector<128x32xf32>
    %c0_8 = arith.constant 0 : index
    %c0_9 = arith.constant 0 : index
    %12 = vector.load %arg5[%c0_8, %c0_9] : memref<128x32xf32, #tpu.memory_space<vmem>>, vector<128x32xf32>
    tpu.vector_store %arg5[%c0_8, %c0_9], %11 {strides = array<i32>} : memref<128x32xf32, #tpu.memory_space<vmem>>, vector<128x32xf32>,
    %c0_i32 = arith.constant 0 : i32
    %13 = arith.cmpi eq, %arg0, %c0_i32 : i32
    %14 = arith.extui %13 : i1 to i32
    %c0_i32_10 = arith.constant 0 : i32
    %15 = arith.cmpi ne, %14, %c0_i32_10 : i32
    scf.if %15 {
      %cst_21 = arith.constant 0.000000e+00 : f32
      %27 = vector.broadcast %cst_21 : f32 to vector<1x32xf32>
      %c0_22 = arith.constant 0 : index
      %c0_23 = arith.constant 0 : index
      %28 = vector.load %arg6[%c0_22, %c0_23] : memref<1x32xf32, #tpu.memory_space<vmem>>, vector<1x32xf32>
      tpu.vector_store %arg6[%c0_22, %c0_23], %27 {strides = array<i32>} : memref<1x32xf32, #tpu.memory_space<vmem>>, vector<1x32xf32>,
      %cst_24 = arith.constant 0.000000e+00 : f32
      %29 = vector.broadcast %cst_24 : f32 to vector<1x32xf32>
      %c0_25 = arith.constant 0 : index
      %c0_26 = arith.constant 0 : index
      %30 = vector.load %arg7[%c0_25, %c0_26] : memref<1x32xf32, #tpu.memory_space<vmem>>, vector<1x32xf32>
      tpu.vector_store %arg7[%c0_25, %c0_26], %29 {strides = array<i32>} : memref<1x32xf32, #tpu.memory_space<vmem>>, vector<1x32xf32>,
    } else {
    }
    %c0_11 = arith.constant 0 : index
    %c0_12 = arith.constant 0 : index
    %16 = vector.load %arg6[%c0_11, %c0_12] : memref<1x32xf32, #tpu.memory_space<vmem>>, vector<1x32xf32>
    %cst_13 = arith.constant dense<0.000000e+00> : vector<32xf32>
    %17 = vector.multi_reduction <add>, %11, %cst_13 [0] : vector<128x32xf32> to vector<32xf32>
    %18 = vector.shape_cast %17 : vector<32xf32> to vector<1x32xf32>
    %19 = arith.addf %16, %18 : vector<1x32xf32>
    %c0_14 = arith.constant 0 : index
    %c0_15 = arith.constant 0 : index
    %20 = vector.load %arg6[%c0_14, %c0_15] : memref<1x32xf32, #tpu.memory_space<vmem>>, vector<1x32xf32>
    tpu.vector_store %arg6[%c0_14, %c0_15], %19 {strides = array<i32>} : memref<1x32xf32, #tpu.memory_space<vmem>>, vector<1x32xf32>,
    %c0_16 = arith.constant 0 : index
    %c0_17 = arith.constant 0 : index
    %21 = vector.load %arg7[%c0_16, %c0_17] : memref<1x32xf32, #tpu.memory_space<vmem>>, vector<1x32xf32>
    %22 = arith.mulf %11, %11 : vector<128x32xf32>
    %cst_18 = arith.constant dense<0.000000e+00> : vector<32xf32>
    %23 = vector.multi_reduction <add>, %22, %cst_18 [0] : vector<128x32xf32> to vector<32xf32>
    %24 = vector.shape_cast %23 : vector<32xf32> to vector<1x32xf32>
    %25 = arith.addf %21, %24 : vector<1x32xf32>
    %c0_19 = arith.constant 0 : index
    %c0_20 = arith.constant 0 : index
    %26 = vector.load %arg7[%c0_19, %c0_20] : memref<1x32xf32, #tpu.memory_space<vmem>>, vector<1x32xf32>
    tpu.vector_store %arg7[%c0_19, %c0_20], %25 {strides = array<i32>} : memref<1x32xf32, #tpu.memory_space<vmem>>, vector<1x32xf32>,
    return
  }
  func.func @transform_0(%arg0: i32) -> (i32, i32) {
    %c0_i32 = arith.constant 0 : i32
    %c0_i32_0 = arith.constant 0 : i32
    %c0_i32_1 = arith.constant 0 : i32
    return %c0_i32, %c0_i32_0 : i32, i32
  }
  func.func @transform_1(%arg0: i32) -> (i32, i32) {
    %c0_i32 = arith.constant 0 : i32
    %c0_i32_0 = arith.constant 0 : i32
    %c0_i32_1 = arith.constant 0 : i32
    return %c0_i32, %c0_i32_0 : i32, i32
  }
  func.func @transform_2(%arg0: i32) -> (i32, i32) {
    %c0_i32 = arith.constant 0 : i32
    %c0_i32_0 = arith.constant 0 : i32
    return %arg0, %c0_i32 : i32, i32
  }
  func.func @transform_3(%arg0: i32) -> (i32, i32) {
    %c0_i32 = arith.constant 0 : i32
    %c0_i32_0 = arith.constant 0 : i32
    %c0_i32_1 = arith.constant 0 : i32
    return %c0_i32, %c0_i32_0 : i32, i32
  }
  func.func @transform_4(%arg0: i32) -> (i32, i32) {
    %c0_i32 = arith.constant 0 : i32
    %c0_i32_0 = arith.constant 0 : i32
    return %arg0, %c0_i32 : i32, i32
  }
  func.func @transform_5(%arg0: i32) -> (i32, i32) {
    %c0_i32 = arith.constant 0 : i32
    %c0_i32_0 = arith.constant 0 : i32
    %c0_i32_1 = arith.constant 0 : i32
    return %c0_i32, %c0_i32_0 : i32, i32
  }
  func.func @transform_6(%arg0: i32) -> (i32, i32) {
    %c0_i32 = arith.constant 0 : i32
    %c0_i32_0 = arith.constant 0 : i32
    %c0_i32_1 = arith.constant 0 : i32
    return %c0_i32, %c0_i32_0 : i32, i32
  }
}

module attributes {stable_mosaic.version = 11 : i64} {
  func.func @_window_reduce_kernel(%arg0: i32, %arg1: memref<9x128x16xf32, #tpu.memory_space<vmem>>, %arg2: memref<128x16xf32, #tpu.memory_space<vmem>>, %arg3: memref<1x16xf32, #tpu.memory_space<vmem>>, %arg4: memref<1x16xf32, #tpu.memory_space<vmem>>) attributes {dimension_semantics = [#tpu.dimension_semantics<arbitrary>], iteration_bounds = array<i64: 1>, scalar_prefetch = 0 : i64, scratch_operands = 0 : i64, tpu.core_type = #tpu.core_type<tc>, window_params = [{transform_indices = @transform_0, window_bounds = array<i64: 9, 128, 16>}, {transform_indices = @transform_1, window_bounds = array<i64: 128, 16>}, {pipeline_mode = #tpu.pipeline_mode<synchronous>, transform_indices = @transform_2, window_bounds = array<i64: 1, 16>}, {pipeline_mode = #tpu.pipeline_mode<synchronous>, transform_indices = @transform_3, window_bounds = array<i64: 1, 16>}]} {
    %c0 = arith.constant 0 : index
    %c0_0 = arith.constant 0 : index
    %c0_1 = arith.constant 0 : index
    %0 = vector.load %arg1[%c0, %c0_0, %c0_1] : memref<9x128x16xf32, #tpu.memory_space<vmem>>, vector<9x128x16xf32>
    %cst = arith.constant dense<0xFF800000> : vector<128x16xf32>
    %1 = vector.multi_reduction <maximumf>, %0, %cst [0] : vector<9x128x16xf32> to vector<128x16xf32>
    %c0_2 = arith.constant 0 : index
    %c0_3 = arith.constant 0 : index
    %2 = vector.load %arg2[%c0_2, %c0_3] : memref<128x16xf32, #tpu.memory_space<vmem>>, vector<128x16xf32>
    tpu.vector_store %arg2[%c0_2, %c0_3], %1 {strides = array<i32>} : memref<128x16xf32, #tpu.memory_space<vmem>>, vector<128x16xf32>,
    %c0_i32 = arith.constant 0 : i32
    %3 = arith.cmpi eq, %arg0, %c0_i32 : i32
    %4 = arith.extui %3 : i1 to i32
    %c0_i32_4 = arith.constant 0 : i32
    %5 = arith.cmpi ne, %4, %c0_i32_4 : i32
    scf.if %5 {
      %cst_15 = arith.constant 0.000000e+00 : f32
      %17 = vector.broadcast %cst_15 : f32 to vector<1x16xf32>
      %c0_16 = arith.constant 0 : index
      %c0_17 = arith.constant 0 : index
      %18 = vector.load %arg3[%c0_16, %c0_17] : memref<1x16xf32, #tpu.memory_space<vmem>>, vector<1x16xf32>
      tpu.vector_store %arg3[%c0_16, %c0_17], %17 {strides = array<i32>} : memref<1x16xf32, #tpu.memory_space<vmem>>, vector<1x16xf32>,
      %cst_18 = arith.constant 0.000000e+00 : f32
      %19 = vector.broadcast %cst_18 : f32 to vector<1x16xf32>
      %c0_19 = arith.constant 0 : index
      %c0_20 = arith.constant 0 : index
      %20 = vector.load %arg4[%c0_19, %c0_20] : memref<1x16xf32, #tpu.memory_space<vmem>>, vector<1x16xf32>
      tpu.vector_store %arg4[%c0_19, %c0_20], %19 {strides = array<i32>} : memref<1x16xf32, #tpu.memory_space<vmem>>, vector<1x16xf32>,
    } else {
    }
    %c0_5 = arith.constant 0 : index
    %c0_6 = arith.constant 0 : index
    %6 = vector.load %arg3[%c0_5, %c0_6] : memref<1x16xf32, #tpu.memory_space<vmem>>, vector<1x16xf32>
    %cst_7 = arith.constant dense<0.000000e+00> : vector<16xf32>
    %7 = vector.multi_reduction <add>, %1, %cst_7 [0] : vector<128x16xf32> to vector<16xf32>
    %8 = vector.shape_cast %7 : vector<16xf32> to vector<1x16xf32>
    %9 = arith.addf %6, %8 : vector<1x16xf32>
    %c0_8 = arith.constant 0 : index
    %c0_9 = arith.constant 0 : index
    %10 = vector.load %arg3[%c0_8, %c0_9] : memref<1x16xf32, #tpu.memory_space<vmem>>, vector<1x16xf32>
    tpu.vector_store %arg3[%c0_8, %c0_9], %9 {strides = array<i32>} : memref<1x16xf32, #tpu.memory_space<vmem>>, vector<1x16xf32>,
    %c0_10 = arith.constant 0 : index
    %c0_11 = arith.constant 0 : index
    %11 = vector.load %arg4[%c0_10, %c0_11] : memref<1x16xf32, #tpu.memory_space<vmem>>, vector<1x16xf32>
    %12 = arith.mulf %1, %1 : vector<128x16xf32>
    %cst_12 = arith.constant dense<0.000000e+00> : vector<16xf32>
    %13 = vector.multi_reduction <add>, %12, %cst_12 [0] : vector<128x16xf32> to vector<16xf32>
    %14 = vector.shape_cast %13 : vector<16xf32> to vector<1x16xf32>
    %15 = arith.addf %11, %14 : vector<1x16xf32>
    %c0_13 = arith.constant 0 : index
    %c0_14 = arith.constant 0 : index
    %16 = vector.load %arg4[%c0_13, %c0_14] : memref<1x16xf32, #tpu.memory_space<vmem>>, vector<1x16xf32>
    tpu.vector_store %arg4[%c0_13, %c0_14], %15 {strides = array<i32>} : memref<1x16xf32, #tpu.memory_space<vmem>>, vector<1x16xf32>,
    return
  }
  func.func @transform_0(%arg0: i32) -> (i32, i32, i32) {
    %c0_i32 = arith.constant 0 : i32
    %c0_i32_0 = arith.constant 0 : i32
    %c0_i32_1 = arith.constant 0 : i32
    return %c0_i32, %arg0, %c0_i32_0 : i32, i32, i32
  }
  func.func @transform_1(%arg0: i32) -> (i32, i32) {
    %c0_i32 = arith.constant 0 : i32
    %c0_i32_0 = arith.constant 0 : i32
    return %arg0, %c0_i32 : i32, i32
  }
  func.func @transform_2(%arg0: i32) -> (i32, i32) {
    %c0_i32 = arith.constant 0 : i32
    %c0_i32_0 = arith.constant 0 : i32
    %c0_i32_1 = arith.constant 0 : i32
    return %c0_i32, %c0_i32_0 : i32, i32
  }
  func.func @transform_3(%arg0: i32) -> (i32, i32) {
    %c0_i32 = arith.constant 0 : i32
    %c0_i32_0 = arith.constant 0 : i32
    %c0_i32_1 = arith.constant 0 : i32
    return %c0_i32, %c0_i32_0 : i32, i32
  }
}

module attributes {stable_mosaic.version = 11 : i64} {
  func.func @_bn_relu_kernel(%arg0: i32, %arg1: memref<1x32xf32, #tpu.memory_space<vmem>>, %arg2: memref<1x32xf32, #tpu.memory_space<vmem>>, %arg3: memref<128x32xf32, #tpu.memory_space<vmem>>, %arg4: memref<128x32xf32, #tpu.memory_space<vmem>>) attributes {dimension_semantics = [#tpu.dimension_semantics<parallel>], iteration_bounds = array<i64: 1>, scalar_prefetch = 0 : i64, scratch_operands = 0 : i64, tpu.core_type = #tpu.core_type<tc>, window_params = [{pipeline_mode = #tpu.pipeline_mode<synchronous>, transform_indices = @transform_0, window_bounds = array<i64: 1, 32>}, {pipeline_mode = #tpu.pipeline_mode<synchronous>, transform_indices = @transform_1, window_bounds = array<i64: 1, 32>}, {transform_indices = @transform_2, window_bounds = array<i64: 128, 32>}, {transform_indices = @transform_3, window_bounds = array<i64: 128, 32>}]} {
    %c0 = arith.constant 0 : index
    %c0_0 = arith.constant 0 : index
    %0 = vector.load %arg3[%c0, %c0_0] : memref<128x32xf32, #tpu.memory_space<vmem>>, vector<128x32xf32>
    %c0_1 = arith.constant 0 : index
    %c0_2 = arith.constant 0 : index
    %1 = vector.load %arg1[%c0_1, %c0_2] : memref<1x32xf32, #tpu.memory_space<vmem>>, vector<1x32xf32>
    %2 = vector.broadcast %1 : vector<1x32xf32> to vector<128x32xf32>
    %3 = arith.mulf %0, %2 : vector<128x32xf32>
    %c0_3 = arith.constant 0 : index
    %c0_4 = arith.constant 0 : index
    %4 = vector.load %arg2[%c0_3, %c0_4] : memref<1x32xf32, #tpu.memory_space<vmem>>, vector<1x32xf32>
    %5 = vector.broadcast %4 : vector<1x32xf32> to vector<128x32xf32>
    %6 = arith.addf %3, %5 : vector<128x32xf32>
    %cst = arith.constant 0.000000e+00 : f32
    %7 = vector.broadcast %cst : f32 to vector<128x32xf32>
    %8 = arith.maximumf %6, %7 : vector<128x32xf32>
    %c0_5 = arith.constant 0 : index
    %c0_6 = arith.constant 0 : index
    %9 = vector.load %arg4[%c0_5, %c0_6] : memref<128x32xf32, #tpu.memory_space<vmem>>, vector<128x32xf32>
    tpu.vector_store %arg4[%c0_5, %c0_6], %8 {strides = array<i32>} : memref<128x32xf32, #tpu.memory_space<vmem>>, vector<128x32xf32>,
    return
  }
  func.func @transform_0(%arg0: i32) -> (i32, i32) {
    %c0_i32 = arith.constant 0 : i32
    %c0_i32_0 = arith.constant 0 : i32
    %c0_i32_1 = arith.constant 0 : i32
    return %c0_i32, %c0_i32_0 : i32, i32
  }
  func.func @transform_1(%arg0: i32) -> (i32, i32) {
    %c0_i32 = arith.constant 0 : i32
    %c0_i32_0 = arith.constant 0 : i32
    %c0_i32_1 = arith.constant 0 : i32
    return %c0_i32, %c0_i32_0 : i32, i32
  }
  func.func @transform_2(%arg0: i32) -> (i32, i32) {
    %c0_i32 = arith.constant 0 : i32
    %c0_i32_0 = arith.constant 0 : i32
    return %arg0, %c0_i32 : i32, i32
  }
  func.func @transform_3(%arg0: i32) -> (i32, i32) {
    %c0_i32 = arith.constant 0 : i32
    %c0_i32_0 = arith.constant 0 : i32
    return %arg0, %c0_i32 : i32, i32
  }
}

module attributes {stable_mosaic.version = 11 : i64} {
  func.func @_fused_mm_kernel(%arg0: i32, %arg1: memref<128x288xf32, #tpu.memory_space<vmem>>, %arg2: memref<288x8xbf16, #tpu.memory_space<vmem>>, %arg3: memref<128x8xf32, #tpu.memory_space<vmem>>, %arg4: memref<1x8xf32, #tpu.memory_space<vmem>>, %arg5: memref<1x8xf32, #tpu.memory_space<vmem>>) attributes {dimension_semantics = [#tpu.dimension_semantics<arbitrary>], iteration_bounds = array<i64: 1>, scalar_prefetch = 0 : i64, scratch_operands = 0 : i64, tpu.core_type = #tpu.core_type<tc>, window_params = [{transform_indices = @transform_0, window_bounds = array<i64: 128, 288>}, {pipeline_mode = #tpu.pipeline_mode<synchronous>, transform_indices = @transform_1, window_bounds = array<i64: 288, 8>}, {transform_indices = @transform_2, window_bounds = array<i64: 128, 8>}, {pipeline_mode = #tpu.pipeline_mode<synchronous>, transform_indices = @transform_3, window_bounds = array<i64: 1, 8>}, {pipeline_mode = #tpu.pipeline_mode<synchronous>, transform_indices = @transform_4, window_bounds = array<i64: 1, 8>}]} {
    %c0 = arith.constant 0 : index
    %c0_0 = arith.constant 0 : index
    %0 = vector.load %arg1[%c0, %c0_0] : memref<128x288xf32, #tpu.memory_space<vmem>>, vector<128x288xf32>
    %1 = arith.truncf %0 : vector<128x288xf32> to vector<128x288xbf16>
    %c0_1 = arith.constant 0 : index
    %c0_2 = arith.constant 0 : index
    %2 = vector.load %arg2[%c0_1, %c0_2] : memref<288x8xbf16, #tpu.memory_space<vmem>>, vector<288x8xbf16>
    %cst = arith.constant dense<0.000000e+00> : vector<128x8xf32>
    %3 = tpu.matmul %1, %2, %cst {dimension_numbers = #tpu.dot_dimension_numbers<[1], [0], [0], [1], [0, 0, 1, 1], [], []>} : vector<128x288xbf16>, vector<288x8xbf16>, vector<128x8xf32> -> vector<128x8xf32>
    %c0_3 = arith.constant 0 : index
    %c0_4 = arith.constant 0 : index
    %4 = vector.load %arg3[%c0_3, %c0_4] : memref<128x8xf32, #tpu.memory_space<vmem>>, vector<128x8xf32>
    tpu.vector_store %arg3[%c0_3, %c0_4], %3 {strides = array<i32>} : memref<128x8xf32, #tpu.memory_space<vmem>>, vector<128x8xf32>,
    %c0_i32 = arith.constant 0 : i32
    %5 = arith.cmpi eq, %arg0, %c0_i32 : i32
    %6 = arith.extui %5 : i1 to i32
    %c0_i32_5 = arith.constant 0 : i32
    %7 = arith.cmpi ne, %6, %c0_i32_5 : i32
    scf.if %7 {
      %cst_16 = arith.constant 0.000000e+00 : f32
      %19 = vector.broadcast %cst_16 : f32 to vector<1x8xf32>
      %c0_17 = arith.constant 0 : index
      %c0_18 = arith.constant 0 : index
      %20 = vector.load %arg4[%c0_17, %c0_18] : memref<1x8xf32, #tpu.memory_space<vmem>>, vector<1x8xf32>
      tpu.vector_store %arg4[%c0_17, %c0_18], %19 {strides = array<i32>} : memref<1x8xf32, #tpu.memory_space<vmem>>, vector<1x8xf32>,
      %cst_19 = arith.constant 0.000000e+00 : f32
      %21 = vector.broadcast %cst_19 : f32 to vector<1x8xf32>
      %c0_20 = arith.constant 0 : index
      %c0_21 = arith.constant 0 : index
      %22 = vector.load %arg5[%c0_20, %c0_21] : memref<1x8xf32, #tpu.memory_space<vmem>>, vector<1x8xf32>
      tpu.vector_store %arg5[%c0_20, %c0_21], %21 {strides = array<i32>} : memref<1x8xf32, #tpu.memory_space<vmem>>, vector<1x8xf32>,
    } else {
    }
    %c0_6 = arith.constant 0 : index
    %c0_7 = arith.constant 0 : index
    %8 = vector.load %arg4[%c0_6, %c0_7] : memref<1x8xf32, #tpu.memory_space<vmem>>, vector<1x8xf32>
    %cst_8 = arith.constant dense<0.000000e+00> : vector<8xf32>
    %9 = vector.multi_reduction <add>, %3, %cst_8 [0] : vector<128x8xf32> to vector<8xf32>
    %10 = vector.shape_cast %9 : vector<8xf32> to vector<1x8xf32>
    %11 = arith.addf %8, %10 : vector<1x8xf32>
    %c0_9 = arith.constant 0 : index
    %c0_10 = arith.constant 0 : index
    %12 = vector.load %arg4[%c0_9, %c0_10] : memref<1x8xf32, #tpu.memory_space<vmem>>, vector<1x8xf32>
    tpu.vector_store %arg4[%c0_9, %c0_10], %11 {strides = array<i32>} : memref<1x8xf32, #tpu.memory_space<vmem>>, vector<1x8xf32>,
    %c0_11 = arith.constant 0 : index
    %c0_12 = arith.constant 0 : index
    %13 = vector.load %arg5[%c0_11, %c0_12] : memref<1x8xf32, #tpu.memory_space<vmem>>, vector<1x8xf32>
    %14 = arith.mulf %3, %3 : vector<128x8xf32>
    %cst_13 = arith.constant dense<0.000000e+00> : vector<8xf32>
    %15 = vector.multi_reduction <add>, %14, %cst_13 [0] : vector<128x8xf32> to vector<8xf32>
    %16 = vector.shape_cast %15 : vector<8xf32> to vector<1x8xf32>
    %17 = arith.addf %13, %16 : vector<1x8xf32>
    %c0_14 = arith.constant 0 : index
    %c0_15 = arith.constant 0 : index
    %18 = vector.load %arg5[%c0_14, %c0_15] : memref<1x8xf32, #tpu.memory_space<vmem>>, vector<1x8xf32>
    tpu.vector_store %arg5[%c0_14, %c0_15], %17 {strides = array<i32>} : memref<1x8xf32, #tpu.memory_space<vmem>>, vector<1x8xf32>,
    return
  }
  func.func @transform_0(%arg0: i32) -> (i32, i32) {
    %c0_i32 = arith.constant 0 : i32
    %c0_i32_0 = arith.constant 0 : i32
    return %arg0, %c0_i32 : i32, i32
  }
  func.func @transform_1(%arg0: i32) -> (i32, i32) {
    %c0_i32 = arith.constant 0 : i32
    %c0_i32_0 = arith.constant 0 : i32
    %c0_i32_1 = arith.constant 0 : i32
    return %c0_i32, %c0_i32_0 : i32, i32
  }
  func.func @transform_2(%arg0: i32) -> (i32, i32) {
    %c0_i32 = arith.constant 0 : i32
    %c0_i32_0 = arith.constant 0 : i32
    return %arg0, %c0_i32 : i32, i32
  }
  func.func @transform_3(%arg0: i32) -> (i32, i32) {
    %c0_i32 = arith.constant 0 : i32
    %c0_i32_0 = arith.constant 0 : i32
    %c0_i32_1 = arith.constant 0 : i32
    return %c0_i32, %c0_i32_0 : i32, i32
  }
  func.func @transform_4(%arg0: i32) -> (i32, i32) {
    %c0_i32 = arith.constant 0 : i32
    %c0_i32_0 = arith.constant 0 : i32
    %c0_i32_1 = arith.constant 0 : i32
    return %c0_i32, %c0_i32_0 : i32, i32
  }
}

module attributes {stable_mosaic.version = 11 : i64} {
  func.func @_fused_mm_kernel(%arg0: i32, %arg1: memref<1x24xf32, #tpu.memory_space<vmem>>, %arg2: memref<1x24xf32, #tpu.memory_space<vmem>>, %arg3: memref<128x24xf32, #tpu.memory_space<vmem>>, %arg4: memref<24x32xbf16, #tpu.memory_space<vmem>>, %arg5: memref<128x32xf32, #tpu.memory_space<vmem>>, %arg6: memref<1x32xf32, #tpu.memory_space<vmem>>, %arg7: memref<1x32xf32, #tpu.memory_space<vmem>>) attributes {dimension_semantics = [#tpu.dimension_semantics<arbitrary>], iteration_bounds = array<i64: 1>, scalar_prefetch = 0 : i64, scratch_operands = 0 : i64, tpu.core_type = #tpu.core_type<tc>, window_params = [{pipeline_mode = #tpu.pipeline_mode<synchronous>, transform_indices = @transform_0, window_bounds = array<i64: 1, 24>}, {pipeline_mode = #tpu.pipeline_mode<synchronous>, transform_indices = @transform_1, window_bounds = array<i64: 1, 24>}, {transform_indices = @transform_2, window_bounds = array<i64: 128, 24>}, {pipeline_mode = #tpu.pipeline_mode<synchronous>, transform_indices = @transform_3, window_bounds = array<i64: 24, 32>}, {transform_indices = @transform_4, window_bounds = array<i64: 128, 32>}, {pipeline_mode = #tpu.pipeline_mode<synchronous>, transform_indices = @transform_5, window_bounds = array<i64: 1, 32>}, {pipeline_mode = #tpu.pipeline_mode<synchronous>, transform_indices = @transform_6, window_bounds = array<i64: 1, 32>}]} {
    %c0 = arith.constant 0 : index
    %c0_0 = arith.constant 0 : index
    %0 = vector.load %arg3[%c0, %c0_0] : memref<128x24xf32, #tpu.memory_space<vmem>>, vector<128x24xf32>
    %c0_1 = arith.constant 0 : index
    %c0_2 = arith.constant 0 : index
    %1 = vector.load %arg1[%c0_1, %c0_2] : memref<1x24xf32, #tpu.memory_space<vmem>>, vector<1x24xf32>
    %2 = vector.broadcast %1 : vector<1x24xf32> to vector<128x24xf32>
    %3 = arith.mulf %0, %2 : vector<128x24xf32>
    %c0_3 = arith.constant 0 : index
    %c0_4 = arith.constant 0 : index
    %4 = vector.load %arg2[%c0_3, %c0_4] : memref<1x24xf32, #tpu.memory_space<vmem>>, vector<1x24xf32>
    %5 = vector.broadcast %4 : vector<1x24xf32> to vector<128x24xf32>
    %6 = arith.addf %3, %5 : vector<128x24xf32>
    %cst = arith.constant 0.000000e+00 : f32
    %7 = vector.broadcast %cst : f32 to vector<128x24xf32>
    %8 = arith.maximumf %6, %7 : vector<128x24xf32>
    %9 = arith.truncf %8 : vector<128x24xf32> to vector<128x24xbf16>
    %c0_5 = arith.constant 0 : index
    %c0_6 = arith.constant 0 : index
    %10 = vector.load %arg4[%c0_5, %c0_6] : memref<24x32xbf16, #tpu.memory_space<vmem>>, vector<24x32xbf16>
    %cst_7 = arith.constant dense<0.000000e+00> : vector<128x32xf32>
    %11 = tpu.matmul %9, %10, %cst_7 {dimension_numbers = #tpu.dot_dimension_numbers<[1], [0], [0], [1], [0, 0, 1, 1], [], []>} : vector<128x24xbf16>, vector<24x32xbf16>, vector<128x32xf32> -> vector<128x32xf32>
    %c0_8 = arith.constant 0 : index
    %c0_9 = arith.constant 0 : index
    %12 = vector.load %arg5[%c0_8, %c0_9] : memref<128x32xf32, #tpu.memory_space<vmem>>, vector<128x32xf32>
    tpu.vector_store %arg5[%c0_8, %c0_9], %11 {strides = array<i32>} : memref<128x32xf32, #tpu.memory_space<vmem>>, vector<128x32xf32>,
    %c0_i32 = arith.constant 0 : i32
    %13 = arith.cmpi eq, %arg0, %c0_i32 : i32
    %14 = arith.extui %13 : i1 to i32
    %c0_i32_10 = arith.constant 0 : i32
    %15 = arith.cmpi ne, %14, %c0_i32_10 : i32
    scf.if %15 {
      %cst_21 = arith.constant 0.000000e+00 : f32
      %27 = vector.broadcast %cst_21 : f32 to vector<1x32xf32>
      %c0_22 = arith.constant 0 : index
      %c0_23 = arith.constant 0 : index
      %28 = vector.load %arg6[%c0_22, %c0_23] : memref<1x32xf32, #tpu.memory_space<vmem>>, vector<1x32xf32>
      tpu.vector_store %arg6[%c0_22, %c0_23], %27 {strides = array<i32>} : memref<1x32xf32, #tpu.memory_space<vmem>>, vector<1x32xf32>,
      %cst_24 = arith.constant 0.000000e+00 : f32
      %29 = vector.broadcast %cst_24 : f32 to vector<1x32xf32>
      %c0_25 = arith.constant 0 : index
      %c0_26 = arith.constant 0 : index
      %30 = vector.load %arg7[%c0_25, %c0_26] : memref<1x32xf32, #tpu.memory_space<vmem>>, vector<1x32xf32>
      tpu.vector_store %arg7[%c0_25, %c0_26], %29 {strides = array<i32>} : memref<1x32xf32, #tpu.memory_space<vmem>>, vector<1x32xf32>,
    } else {
    }
    %c0_11 = arith.constant 0 : index
    %c0_12 = arith.constant 0 : index
    %16 = vector.load %arg6[%c0_11, %c0_12] : memref<1x32xf32, #tpu.memory_space<vmem>>, vector<1x32xf32>
    %cst_13 = arith.constant dense<0.000000e+00> : vector<32xf32>
    %17 = vector.multi_reduction <add>, %11, %cst_13 [0] : vector<128x32xf32> to vector<32xf32>
    %18 = vector.shape_cast %17 : vector<32xf32> to vector<1x32xf32>
    %19 = arith.addf %16, %18 : vector<1x32xf32>
    %c0_14 = arith.constant 0 : index
    %c0_15 = arith.constant 0 : index
    %20 = vector.load %arg6[%c0_14, %c0_15] : memref<1x32xf32, #tpu.memory_space<vmem>>, vector<1x32xf32>
    tpu.vector_store %arg6[%c0_14, %c0_15], %19 {strides = array<i32>} : memref<1x32xf32, #tpu.memory_space<vmem>>, vector<1x32xf32>,
    %c0_16 = arith.constant 0 : index
    %c0_17 = arith.constant 0 : index
    %21 = vector.load %arg7[%c0_16, %c0_17] : memref<1x32xf32, #tpu.memory_space<vmem>>, vector<1x32xf32>
    %22 = arith.mulf %11, %11 : vector<128x32xf32>
    %cst_18 = arith.constant dense<0.000000e+00> : vector<32xf32>
    %23 = vector.multi_reduction <add>, %22, %cst_18 [0] : vector<128x32xf32> to vector<32xf32>
    %24 = vector.shape_cast %23 : vector<32xf32> to vector<1x32xf32>
    %25 = arith.addf %21, %24 : vector<1x32xf32>
    %c0_19 = arith.constant 0 : index
    %c0_20 = arith.constant 0 : index
    %26 = vector.load %arg7[%c0_19, %c0_20] : memref<1x32xf32, #tpu.memory_space<vmem>>, vector<1x32xf32>
    tpu.vector_store %arg7[%c0_19, %c0_20], %25 {strides = array<i32>} : memref<1x32xf32, #tpu.memory_space<vmem>>, vector<1x32xf32>,
    return
  }
  func.func @transform_0(%arg0: i32) -> (i32, i32) {
    %c0_i32 = arith.constant 0 : i32
    %c0_i32_0 = arith.constant 0 : i32
    %c0_i32_1 = arith.constant 0 : i32
    return %c0_i32, %c0_i32_0 : i32, i32
  }
  func.func @transform_1(%arg0: i32) -> (i32, i32) {
    %c0_i32 = arith.constant 0 : i32
    %c0_i32_0 = arith.constant 0 : i32
    %c0_i32_1 = arith.constant 0 : i32
    return %c0_i32, %c0_i32_0 : i32, i32
  }
  func.func @transform_2(%arg0: i32) -> (i32, i32) {
    %c0_i32 = arith.constant 0 : i32
    %c0_i32_0 = arith.constant 0 : i32
    return %arg0, %c0_i32 : i32, i32
  }
  func.func @transform_3(%arg0: i32) -> (i32, i32) {
    %c0_i32 = arith.constant 0 : i32
    %c0_i32_0 = arith.constant 0 : i32
    %c0_i32_1 = arith.constant 0 : i32
    return %c0_i32, %c0_i32_0 : i32, i32
  }
  func.func @transform_4(%arg0: i32) -> (i32, i32) {
    %c0_i32 = arith.constant 0 : i32
    %c0_i32_0 = arith.constant 0 : i32
    return %arg0, %c0_i32 : i32, i32
  }
  func.func @transform_5(%arg0: i32) -> (i32, i32) {
    %c0_i32 = arith.constant 0 : i32
    %c0_i32_0 = arith.constant 0 : i32
    %c0_i32_1 = arith.constant 0 : i32
    return %c0_i32, %c0_i32_0 : i32, i32
  }
  func.func @transform_6(%arg0: i32) -> (i32, i32) {
    %c0_i32 = arith.constant 0 : i32
    %c0_i32_0 = arith.constant 0 : i32
    %c0_i32_1 = arith.constant 0 : i32
    return %c0_i32, %c0_i32_0 : i32, i32
  }
}

module attributes {stable_mosaic.version = 11 : i64} {
  func.func @_fused_mm_kernel(%arg0: i32, %arg1: memref<1x32xf32, #tpu.memory_space<vmem>>, %arg2: memref<1x32xf32, #tpu.memory_space<vmem>>, %arg3: memref<128x32xf32, #tpu.memory_space<vmem>>, %arg4: memref<32x16xbf16, #tpu.memory_space<vmem>>, %arg5: memref<1x16xf32, #tpu.memory_space<vmem>>, %arg6: memref<128x16xf32, #tpu.memory_space<vmem>>) attributes {dimension_semantics = [#tpu.dimension_semantics<parallel>], iteration_bounds = array<i64: 1>, scalar_prefetch = 0 : i64, scratch_operands = 0 : i64, tpu.core_type = #tpu.core_type<tc>, window_params = [{pipeline_mode = #tpu.pipeline_mode<synchronous>, transform_indices = @transform_0, window_bounds = array<i64: 1, 32>}, {pipeline_mode = #tpu.pipeline_mode<synchronous>, transform_indices = @transform_1, window_bounds = array<i64: 1, 32>}, {transform_indices = @transform_2, window_bounds = array<i64: 128, 32>}, {pipeline_mode = #tpu.pipeline_mode<synchronous>, transform_indices = @transform_3, window_bounds = array<i64: 32, 16>}, {pipeline_mode = #tpu.pipeline_mode<synchronous>, transform_indices = @transform_4, window_bounds = array<i64: 1, 16>}, {transform_indices = @transform_5, window_bounds = array<i64: 128, 16>}]} {
    %c0 = arith.constant 0 : index
    %c0_0 = arith.constant 0 : index
    %0 = vector.load %arg3[%c0, %c0_0] : memref<128x32xf32, #tpu.memory_space<vmem>>, vector<128x32xf32>
    %c0_1 = arith.constant 0 : index
    %c0_2 = arith.constant 0 : index
    %1 = vector.load %arg1[%c0_1, %c0_2] : memref<1x32xf32, #tpu.memory_space<vmem>>, vector<1x32xf32>
    %2 = vector.broadcast %1 : vector<1x32xf32> to vector<128x32xf32>
    %3 = arith.mulf %0, %2 : vector<128x32xf32>
    %c0_3 = arith.constant 0 : index
    %c0_4 = arith.constant 0 : index
    %4 = vector.load %arg2[%c0_3, %c0_4] : memref<1x32xf32, #tpu.memory_space<vmem>>, vector<1x32xf32>
    %5 = vector.broadcast %4 : vector<1x32xf32> to vector<128x32xf32>
    %6 = arith.addf %3, %5 : vector<128x32xf32>
    %cst = arith.constant 0.000000e+00 : f32
    %7 = vector.broadcast %cst : f32 to vector<128x32xf32>
    %8 = arith.maximumf %6, %7 : vector<128x32xf32>
    %9 = arith.truncf %8 : vector<128x32xf32> to vector<128x32xbf16>
    %c0_5 = arith.constant 0 : index
    %c0_6 = arith.constant 0 : index
    %10 = vector.load %arg4[%c0_5, %c0_6] : memref<32x16xbf16, #tpu.memory_space<vmem>>, vector<32x16xbf16>
    %cst_7 = arith.constant dense<0.000000e+00> : vector<128x16xf32>
    %11 = tpu.matmul %9, %10, %cst_7 {dimension_numbers = #tpu.dot_dimension_numbers<[1], [0], [0], [1], [0, 0, 1, 1], [], []>} : vector<128x32xbf16>, vector<32x16xbf16>, vector<128x16xf32> -> vector<128x16xf32>
    %c0_8 = arith.constant 0 : index
    %c0_9 = arith.constant 0 : index
    %12 = vector.load %arg5[%c0_8, %c0_9] : memref<1x16xf32, #tpu.memory_space<vmem>>, vector<1x16xf32>
    %13 = vector.broadcast %12 : vector<1x16xf32> to vector<128x16xf32>
    %14 = arith.addf %11, %13 : vector<128x16xf32>
    %c0_10 = arith.constant 0 : index
    %c0_11 = arith.constant 0 : index
    %15 = vector.load %arg6[%c0_10, %c0_11] : memref<128x16xf32, #tpu.memory_space<vmem>>, vector<128x16xf32>
    tpu.vector_store %arg6[%c0_10, %c0_11], %14 {strides = array<i32>} : memref<128x16xf32, #tpu.memory_space<vmem>>, vector<128x16xf32>,
    return
  }
  func.func @transform_0(%arg0: i32) -> (i32, i32) {
    %c0_i32 = arith.constant 0 : i32
    %c0_i32_0 = arith.constant 0 : i32
    %c0_i32_1 = arith.constant 0 : i32
    return %c0_i32, %c0_i32_0 : i32, i32
  }
  func.func @transform_1(%arg0: i32) -> (i32, i32) {
    %c0_i32 = arith.constant 0 : i32
    %c0_i32_0 = arith.constant 0 : i32
    %c0_i32_1 = arith.constant 0 : i32
    return %c0_i32, %c0_i32_0 : i32, i32
  }
  func.func @transform_2(%arg0: i32) -> (i32, i32) {
    %c0_i32 = arith.constant 0 : i32
    %c0_i32_0 = arith.constant 0 : i32
    return %arg0, %c0_i32 : i32, i32
  }
  func.func @transform_3(%arg0: i32) -> (i32, i32) {
    %c0_i32 = arith.constant 0 : i32
    %c0_i32_0 = arith.constant 0 : i32
    %c0_i32_1 = arith.constant 0 : i32
    return %c0_i32, %c0_i32_0 : i32, i32
  }
  func.func @transform_4(%arg0: i32) -> (i32, i32) {
    %c0_i32 = arith.constant 0 : i32
    %c0_i32_0 = arith.constant 0 : i32
    %c0_i32_1 = arith.constant 0 : i32
    return %c0_i32, %c0_i32_0 : i32, i32
  }
  func.func @transform_5(%arg0: i32) -> (i32, i32) {
    %c0_i32 = arith.constant 0 : i32
    %c0_i32_0 = arith.constant 0 : i32
    return %arg0, %c0_i32 : i32, i32
  }
}

module attributes {stable_mosaic.version = 11 : i64} {
  func.func @_window_reduce_kernel(%arg0: i32, %arg1: memref<4x32x16xf32, #tpu.memory_space<vmem>>, %arg2: memref<32x16xf32, #tpu.memory_space<vmem>>, %arg3: memref<1x16xf32, #tpu.memory_space<vmem>>, %arg4: memref<1x16xf32, #tpu.memory_space<vmem>>) attributes {dimension_semantics = [#tpu.dimension_semantics<arbitrary>], iteration_bounds = array<i64: 1>, scalar_prefetch = 0 : i64, scratch_operands = 0 : i64, tpu.core_type = #tpu.core_type<tc>, window_params = [{transform_indices = @transform_0, window_bounds = array<i64: 4, 32, 16>}, {transform_indices = @transform_1, window_bounds = array<i64: 32, 16>}, {pipeline_mode = #tpu.pipeline_mode<synchronous>, transform_indices = @transform_2, window_bounds = array<i64: 1, 16>}, {pipeline_mode = #tpu.pipeline_mode<synchronous>, transform_indices = @transform_3, window_bounds = array<i64: 1, 16>}]} {
    %c0 = arith.constant 0 : index
    %c0_0 = arith.constant 0 : index
    %c0_1 = arith.constant 0 : index
    %0 = vector.load %arg1[%c0, %c0_0, %c0_1] : memref<4x32x16xf32, #tpu.memory_space<vmem>>, vector<4x32x16xf32>
    %cst = arith.constant dense<0.000000e+00> : vector<32x16xf32>
    %1 = vector.multi_reduction <add>, %0, %cst [0] : vector<4x32x16xf32> to vector<32x16xf32>
    %cst_2 = arith.constant 4.000000e+00 : f32
    %2 = vector.broadcast %cst_2 : f32 to vector<32x16xf32>
    %3 = arith.divf %1, %2 : vector<32x16xf32>
    %c0_3 = arith.constant 0 : index
    %c0_4 = arith.constant 0 : index
    %4 = vector.load %arg2[%c0_3, %c0_4] : memref<32x16xf32, #tpu.memory_space<vmem>>, vector<32x16xf32>
    tpu.vector_store %arg2[%c0_3, %c0_4], %3 {strides = array<i32>} : memref<32x16xf32, #tpu.memory_space<vmem>>, vector<32x16xf32>,
    %c0_i32 = arith.constant 0 : i32
    %5 = arith.cmpi eq, %arg0, %c0_i32 : i32
    %6 = arith.extui %5 : i1 to i32
    %c0_i32_5 = arith.constant 0 : i32
    %7 = arith.cmpi ne, %6, %c0_i32_5 : i32
    scf.if %7 {
      %cst_16 = arith.constant 0.000000e+00 : f32
      %19 = vector.broadcast %cst_16 : f32 to vector<1x16xf32>
      %c0_17 = arith.constant 0 : index
      %c0_18 = arith.constant 0 : index
      %20 = vector.load %arg3[%c0_17, %c0_18] : memref<1x16xf32, #tpu.memory_space<vmem>>, vector<1x16xf32>
      tpu.vector_store %arg3[%c0_17, %c0_18], %19 {strides = array<i32>} : memref<1x16xf32, #tpu.memory_space<vmem>>, vector<1x16xf32>,
      %cst_19 = arith.constant 0.000000e+00 : f32
      %21 = vector.broadcast %cst_19 : f32 to vector<1x16xf32>
      %c0_20 = arith.constant 0 : index
      %c0_21 = arith.constant 0 : index
      %22 = vector.load %arg4[%c0_20, %c0_21] : memref<1x16xf32, #tpu.memory_space<vmem>>, vector<1x16xf32>
      tpu.vector_store %arg4[%c0_20, %c0_21], %21 {strides = array<i32>} : memref<1x16xf32, #tpu.memory_space<vmem>>, vector<1x16xf32>,
    } else {
    }
    %c0_6 = arith.constant 0 : index
    %c0_7 = arith.constant 0 : index
    %8 = vector.load %arg3[%c0_6, %c0_7] : memref<1x16xf32, #tpu.memory_space<vmem>>, vector<1x16xf32>
    %cst_8 = arith.constant dense<0.000000e+00> : vector<16xf32>
    %9 = vector.multi_reduction <add>, %3, %cst_8 [0] : vector<32x16xf32> to vector<16xf32>
    %10 = vector.shape_cast %9 : vector<16xf32> to vector<1x16xf32>
    %11 = arith.addf %8, %10 : vector<1x16xf32>
    %c0_9 = arith.constant 0 : index
    %c0_10 = arith.constant 0 : index
    %12 = vector.load %arg3[%c0_9, %c0_10] : memref<1x16xf32, #tpu.memory_space<vmem>>, vector<1x16xf32>
    tpu.vector_store %arg3[%c0_9, %c0_10], %11 {strides = array<i32>} : memref<1x16xf32, #tpu.memory_space<vmem>>, vector<1x16xf32>,
    %c0_11 = arith.constant 0 : index
    %c0_12 = arith.constant 0 : index
    %13 = vector.load %arg4[%c0_11, %c0_12] : memref<1x16xf32, #tpu.memory_space<vmem>>, vector<1x16xf32>
    %14 = arith.mulf %3, %3 : vector<32x16xf32>
    %cst_13 = arith.constant dense<0.000000e+00> : vector<16xf32>
    %15 = vector.multi_reduction <add>, %14, %cst_13 [0] : vector<32x16xf32> to vector<16xf32>
    %16 = vector.shape_cast %15 : vector<16xf32> to vector<1x16xf32>
    %17 = arith.addf %13, %16 : vector<1x16xf32>
    %c0_14 = arith.constant 0 : index
    %c0_15 = arith.constant 0 : index
    %18 = vector.load %arg4[%c0_14, %c0_15] : memref<1x16xf32, #tpu.memory_space<vmem>>, vector<1x16xf32>
    tpu.vector_store %arg4[%c0_14, %c0_15], %17 {strides = array<i32>} : memref<1x16xf32, #tpu.memory_space<vmem>>, vector<1x16xf32>,
    return
  }
  func.func @transform_0(%arg0: i32) -> (i32, i32, i32) {
    %c0_i32 = arith.constant 0 : i32
    %c0_i32_0 = arith.constant 0 : i32
    %c0_i32_1 = arith.constant 0 : i32
    return %c0_i32, %arg0, %c0_i32_0 : i32, i32, i32
  }
  func.func @transform_1(%arg0: i32) -> (i32, i32) {
    %c0_i32 = arith.constant 0 : i32
    %c0_i32_0 = arith.constant 0 : i32
    return %arg0, %c0_i32 : i32, i32
  }
  func.func @transform_2(%arg0: i32) -> (i32, i32) {
    %c0_i32 = arith.constant 0 : i32
    %c0_i32_0 = arith.constant 0 : i32
    %c0_i32_1 = arith.constant 0 : i32
    return %c0_i32, %c0_i32_0 : i32, i32
  }
  func.func @transform_3(%arg0: i32) -> (i32, i32) {
    %c0_i32 = arith.constant 0 : i32
    %c0_i32_0 = arith.constant 0 : i32
    %c0_i32_1 = arith.constant 0 : i32
    return %c0_i32, %c0_i32_0 : i32, i32
  }
}

module attributes {stable_mosaic.version = 11 : i64} {
  func.func @_fused_mm_kernel(%arg0: i32, %arg1: memref<1x16xf32, #tpu.memory_space<vmem>>, %arg2: memref<1x16xf32, #tpu.memory_space<vmem>>, %arg3: memref<32x16xf32, #tpu.memory_space<vmem>>, %arg4: memref<16x32xbf16, #tpu.memory_space<vmem>>, %arg5: memref<32x32xf32, #tpu.memory_space<vmem>>, %arg6: memref<1x32xf32, #tpu.memory_space<vmem>>, %arg7: memref<1x32xf32, #tpu.memory_space<vmem>>) attributes {dimension_semantics = [#tpu.dimension_semantics<arbitrary>], iteration_bounds = array<i64: 1>, scalar_prefetch = 0 : i64, scratch_operands = 0 : i64, tpu.core_type = #tpu.core_type<tc>, window_params = [{pipeline_mode = #tpu.pipeline_mode<synchronous>, transform_indices = @transform_0, window_bounds = array<i64: 1, 16>}, {pipeline_mode = #tpu.pipeline_mode<synchronous>, transform_indices = @transform_1, window_bounds = array<i64: 1, 16>}, {transform_indices = @transform_2, window_bounds = array<i64: 32, 16>}, {pipeline_mode = #tpu.pipeline_mode<synchronous>, transform_indices = @transform_3, window_bounds = array<i64: 16, 32>}, {transform_indices = @transform_4, window_bounds = array<i64: 32, 32>}, {pipeline_mode = #tpu.pipeline_mode<synchronous>, transform_indices = @transform_5, window_bounds = array<i64: 1, 32>}, {pipeline_mode = #tpu.pipeline_mode<synchronous>, transform_indices = @transform_6, window_bounds = array<i64: 1, 32>}]} {
    %c0 = arith.constant 0 : index
    %c0_0 = arith.constant 0 : index
    %0 = vector.load %arg3[%c0, %c0_0] : memref<32x16xf32, #tpu.memory_space<vmem>>, vector<32x16xf32>
    %c0_1 = arith.constant 0 : index
    %c0_2 = arith.constant 0 : index
    %1 = vector.load %arg1[%c0_1, %c0_2] : memref<1x16xf32, #tpu.memory_space<vmem>>, vector<1x16xf32>
    %2 = vector.broadcast %1 : vector<1x16xf32> to vector<32x16xf32>
    %3 = arith.mulf %0, %2 : vector<32x16xf32>
    %c0_3 = arith.constant 0 : index
    %c0_4 = arith.constant 0 : index
    %4 = vector.load %arg2[%c0_3, %c0_4] : memref<1x16xf32, #tpu.memory_space<vmem>>, vector<1x16xf32>
    %5 = vector.broadcast %4 : vector<1x16xf32> to vector<32x16xf32>
    %6 = arith.addf %3, %5 : vector<32x16xf32>
    %cst = arith.constant 0.000000e+00 : f32
    %7 = vector.broadcast %cst : f32 to vector<32x16xf32>
    %8 = arith.maximumf %6, %7 : vector<32x16xf32>
    %9 = arith.truncf %8 : vector<32x16xf32> to vector<32x16xbf16>
    %c0_5 = arith.constant 0 : index
    %c0_6 = arith.constant 0 : index
    %10 = vector.load %arg4[%c0_5, %c0_6] : memref<16x32xbf16, #tpu.memory_space<vmem>>, vector<16x32xbf16>
    %cst_7 = arith.constant dense<0.000000e+00> : vector<32x32xf32>
    %11 = tpu.matmul %9, %10, %cst_7 {dimension_numbers = #tpu.dot_dimension_numbers<[1], [0], [0], [1], [0, 0, 1, 1], [], []>} : vector<32x16xbf16>, vector<16x32xbf16>, vector<32x32xf32> -> vector<32x32xf32>
    %c0_8 = arith.constant 0 : index
    %c0_9 = arith.constant 0 : index
    %12 = vector.load %arg5[%c0_8, %c0_9] : memref<32x32xf32, #tpu.memory_space<vmem>>, vector<32x32xf32>
    tpu.vector_store %arg5[%c0_8, %c0_9], %11 {strides = array<i32>} : memref<32x32xf32, #tpu.memory_space<vmem>>, vector<32x32xf32>,
    %c0_i32 = arith.constant 0 : i32
    %13 = arith.cmpi eq, %arg0, %c0_i32 : i32
    %14 = arith.extui %13 : i1 to i32
    %c0_i32_10 = arith.constant 0 : i32
    %15 = arith.cmpi ne, %14, %c0_i32_10 : i32
    scf.if %15 {
      %cst_21 = arith.constant 0.000000e+00 : f32
      %27 = vector.broadcast %cst_21 : f32 to vector<1x32xf32>
      %c0_22 = arith.constant 0 : index
      %c0_23 = arith.constant 0 : index
      %28 = vector.load %arg6[%c0_22, %c0_23] : memref<1x32xf32, #tpu.memory_space<vmem>>, vector<1x32xf32>
      tpu.vector_store %arg6[%c0_22, %c0_23], %27 {strides = array<i32>} : memref<1x32xf32, #tpu.memory_space<vmem>>, vector<1x32xf32>,
      %cst_24 = arith.constant 0.000000e+00 : f32
      %29 = vector.broadcast %cst_24 : f32 to vector<1x32xf32>
      %c0_25 = arith.constant 0 : index
      %c0_26 = arith.constant 0 : index
      %30 = vector.load %arg7[%c0_25, %c0_26] : memref<1x32xf32, #tpu.memory_space<vmem>>, vector<1x32xf32>
      tpu.vector_store %arg7[%c0_25, %c0_26], %29 {strides = array<i32>} : memref<1x32xf32, #tpu.memory_space<vmem>>, vector<1x32xf32>,
    } else {
    }
    %c0_11 = arith.constant 0 : index
    %c0_12 = arith.constant 0 : index
    %16 = vector.load %arg6[%c0_11, %c0_12] : memref<1x32xf32, #tpu.memory_space<vmem>>, vector<1x32xf32>
    %cst_13 = arith.constant dense<0.000000e+00> : vector<32xf32>
    %17 = vector.multi_reduction <add>, %11, %cst_13 [0] : vector<32x32xf32> to vector<32xf32>
    %18 = vector.shape_cast %17 : vector<32xf32> to vector<1x32xf32>
    %19 = arith.addf %16, %18 : vector<1x32xf32>
    %c0_14 = arith.constant 0 : index
    %c0_15 = arith.constant 0 : index
    %20 = vector.load %arg6[%c0_14, %c0_15] : memref<1x32xf32, #tpu.memory_space<vmem>>, vector<1x32xf32>
    tpu.vector_store %arg6[%c0_14, %c0_15], %19 {strides = array<i32>} : memref<1x32xf32, #tpu.memory_space<vmem>>, vector<1x32xf32>,
    %c0_16 = arith.constant 0 : index
    %c0_17 = arith.constant 0 : index
    %21 = vector.load %arg7[%c0_16, %c0_17] : memref<1x32xf32, #tpu.memory_space<vmem>>, vector<1x32xf32>
    %22 = arith.mulf %11, %11 : vector<32x32xf32>
    %cst_18 = arith.constant dense<0.000000e+00> : vector<32xf32>
    %23 = vector.multi_reduction <add>, %22, %cst_18 [0] : vector<32x32xf32> to vector<32xf32>
    %24 = vector.shape_cast %23 : vector<32xf32> to vector<1x32xf32>
    %25 = arith.addf %21, %24 : vector<1x32xf32>
    %c0_19 = arith.constant 0 : index
    %c0_20 = arith.constant 0 : index
    %26 = vector.load %arg7[%c0_19, %c0_20] : memref<1x32xf32, #tpu.memory_space<vmem>>, vector<1x32xf32>
    tpu.vector_store %arg7[%c0_19, %c0_20], %25 {strides = array<i32>} : memref<1x32xf32, #tpu.memory_space<vmem>>, vector<1x32xf32>,
    return
  }
  func.func @transform_0(%arg0: i32) -> (i32, i32) {
    %c0_i32 = arith.constant 0 : i32
    %c0_i32_0 = arith.constant 0 : i32
    %c0_i32_1 = arith.constant 0 : i32
    return %c0_i32, %c0_i32_0 : i32, i32
  }
  func.func @transform_1(%arg0: i32) -> (i32, i32) {
    %c0_i32 = arith.constant 0 : i32
    %c0_i32_0 = arith.constant 0 : i32
    %c0_i32_1 = arith.constant 0 : i32
    return %c0_i32, %c0_i32_0 : i32, i32
  }
  func.func @transform_2(%arg0: i32) -> (i32, i32) {
    %c0_i32 = arith.constant 0 : i32
    %c0_i32_0 = arith.constant 0 : i32
    return %arg0, %c0_i32 : i32, i32
  }
  func.func @transform_3(%arg0: i32) -> (i32, i32) {
    %c0_i32 = arith.constant 0 : i32
    %c0_i32_0 = arith.constant 0 : i32
    %c0_i32_1 = arith.constant 0 : i32
    return %c0_i32, %c0_i32_0 : i32, i32
  }
  func.func @transform_4(%arg0: i32) -> (i32, i32) {
    %c0_i32 = arith.constant 0 : i32
    %c0_i32_0 = arith.constant 0 : i32
    return %arg0, %c0_i32 : i32, i32
  }
  func.func @transform_5(%arg0: i32) -> (i32, i32) {
    %c0_i32 = arith.constant 0 : i32
    %c0_i32_0 = arith.constant 0 : i32
    %c0_i32_1 = arith.constant 0 : i32
    return %c0_i32, %c0_i32_0 : i32, i32
  }
  func.func @transform_6(%arg0: i32) -> (i32, i32) {
    %c0_i32 = arith.constant 0 : i32
    %c0_i32_0 = arith.constant 0 : i32
    %c0_i32_1 = arith.constant 0 : i32
    return %c0_i32, %c0_i32_0 : i32, i32
  }
}

module attributes {stable_mosaic.version = 11 : i64} {
  func.func @_bn_relu_kernel(%arg0: i32, %arg1: memref<1x32xf32, #tpu.memory_space<vmem>>, %arg2: memref<1x32xf32, #tpu.memory_space<vmem>>, %arg3: memref<32x32xf32, #tpu.memory_space<vmem>>, %arg4: memref<32x32xf32, #tpu.memory_space<vmem>>) attributes {dimension_semantics = [#tpu.dimension_semantics<parallel>], iteration_bounds = array<i64: 1>, scalar_prefetch = 0 : i64, scratch_operands = 0 : i64, tpu.core_type = #tpu.core_type<tc>, window_params = [{pipeline_mode = #tpu.pipeline_mode<synchronous>, transform_indices = @transform_0, window_bounds = array<i64: 1, 32>}, {pipeline_mode = #tpu.pipeline_mode<synchronous>, transform_indices = @transform_1, window_bounds = array<i64: 1, 32>}, {transform_indices = @transform_2, window_bounds = array<i64: 32, 32>}, {transform_indices = @transform_3, window_bounds = array<i64: 32, 32>}]} {
    %c0 = arith.constant 0 : index
    %c0_0 = arith.constant 0 : index
    %0 = vector.load %arg3[%c0, %c0_0] : memref<32x32xf32, #tpu.memory_space<vmem>>, vector<32x32xf32>
    %c0_1 = arith.constant 0 : index
    %c0_2 = arith.constant 0 : index
    %1 = vector.load %arg1[%c0_1, %c0_2] : memref<1x32xf32, #tpu.memory_space<vmem>>, vector<1x32xf32>
    %2 = vector.broadcast %1 : vector<1x32xf32> to vector<32x32xf32>
    %3 = arith.mulf %0, %2 : vector<32x32xf32>
    %c0_3 = arith.constant 0 : index
    %c0_4 = arith.constant 0 : index
    %4 = vector.load %arg2[%c0_3, %c0_4] : memref<1x32xf32, #tpu.memory_space<vmem>>, vector<1x32xf32>
    %5 = vector.broadcast %4 : vector<1x32xf32> to vector<32x32xf32>
    %6 = arith.addf %3, %5 : vector<32x32xf32>
    %cst = arith.constant 0.000000e+00 : f32
    %7 = vector.broadcast %cst : f32 to vector<32x32xf32>
    %8 = arith.maximumf %6, %7 : vector<32x32xf32>
    %c0_5 = arith.constant 0 : index
    %c0_6 = arith.constant 0 : index
    %9 = vector.load %arg4[%c0_5, %c0_6] : memref<32x32xf32, #tpu.memory_space<vmem>>, vector<32x32xf32>
    tpu.vector_store %arg4[%c0_5, %c0_6], %8 {strides = array<i32>} : memref<32x32xf32, #tpu.memory_space<vmem>>, vector<32x32xf32>,
    return
  }
  func.func @transform_0(%arg0: i32) -> (i32, i32) {
    %c0_i32 = arith.constant 0 : i32
    %c0_i32_0 = arith.constant 0 : i32
    %c0_i32_1 = arith.constant 0 : i32
    return %c0_i32, %c0_i32_0 : i32, i32
  }
  func.func @transform_1(%arg0: i32) -> (i32, i32) {
    %c0_i32 = arith.constant 0 : i32
    %c0_i32_0 = arith.constant 0 : i32
    %c0_i32_1 = arith.constant 0 : i32
    return %c0_i32, %c0_i32_0 : i32, i32
  }
  func.func @transform_2(%arg0: i32) -> (i32, i32) {
    %c0_i32 = arith.constant 0 : i32
    %c0_i32_0 = arith.constant 0 : i32
    return %arg0, %c0_i32 : i32, i32
  }
  func.func @transform_3(%arg0: i32) -> (i32, i32) {
    %c0_i32 = arith.constant 0 : i32
    %c0_i32_0 = arith.constant 0 : i32
    return %arg0, %c0_i32 : i32, i32
  }
}

module attributes {stable_mosaic.version = 11 : i64} {
  func.func @_fused_mm_kernel(%arg0: i32, %arg1: memref<32x288xf32, #tpu.memory_space<vmem>>, %arg2: memref<288x8xbf16, #tpu.memory_space<vmem>>, %arg3: memref<32x8xf32, #tpu.memory_space<vmem>>, %arg4: memref<1x8xf32, #tpu.memory_space<vmem>>, %arg5: memref<1x8xf32, #tpu.memory_space<vmem>>) attributes {dimension_semantics = [#tpu.dimension_semantics<arbitrary>], iteration_bounds = array<i64: 1>, scalar_prefetch = 0 : i64, scratch_operands = 0 : i64, tpu.core_type = #tpu.core_type<tc>, window_params = [{transform_indices = @transform_0, window_bounds = array<i64: 32, 288>}, {pipeline_mode = #tpu.pipeline_mode<synchronous>, transform_indices = @transform_1, window_bounds = array<i64: 288, 8>}, {transform_indices = @transform_2, window_bounds = array<i64: 32, 8>}, {pipeline_mode = #tpu.pipeline_mode<synchronous>, transform_indices = @transform_3, window_bounds = array<i64: 1, 8>}, {pipeline_mode = #tpu.pipeline_mode<synchronous>, transform_indices = @transform_4, window_bounds = array<i64: 1, 8>}]} {
    %c0 = arith.constant 0 : index
    %c0_0 = arith.constant 0 : index
    %0 = vector.load %arg1[%c0, %c0_0] : memref<32x288xf32, #tpu.memory_space<vmem>>, vector<32x288xf32>
    %1 = arith.truncf %0 : vector<32x288xf32> to vector<32x288xbf16>
    %c0_1 = arith.constant 0 : index
    %c0_2 = arith.constant 0 : index
    %2 = vector.load %arg2[%c0_1, %c0_2] : memref<288x8xbf16, #tpu.memory_space<vmem>>, vector<288x8xbf16>
    %cst = arith.constant dense<0.000000e+00> : vector<32x8xf32>
    %3 = tpu.matmul %1, %2, %cst {dimension_numbers = #tpu.dot_dimension_numbers<[1], [0], [0], [1], [0, 0, 1, 1], [], []>} : vector<32x288xbf16>, vector<288x8xbf16>, vector<32x8xf32> -> vector<32x8xf32>
    %c0_3 = arith.constant 0 : index
    %c0_4 = arith.constant 0 : index
    %4 = vector.load %arg3[%c0_3, %c0_4] : memref<32x8xf32, #tpu.memory_space<vmem>>, vector<32x8xf32>
    tpu.vector_store %arg3[%c0_3, %c0_4], %3 {strides = array<i32>} : memref<32x8xf32, #tpu.memory_space<vmem>>, vector<32x8xf32>,
    %c0_i32 = arith.constant 0 : i32
    %5 = arith.cmpi eq, %arg0, %c0_i32 : i32
    %6 = arith.extui %5 : i1 to i32
    %c0_i32_5 = arith.constant 0 : i32
    %7 = arith.cmpi ne, %6, %c0_i32_5 : i32
    scf.if %7 {
      %cst_16 = arith.constant 0.000000e+00 : f32
      %19 = vector.broadcast %cst_16 : f32 to vector<1x8xf32>
      %c0_17 = arith.constant 0 : index
      %c0_18 = arith.constant 0 : index
      %20 = vector.load %arg4[%c0_17, %c0_18] : memref<1x8xf32, #tpu.memory_space<vmem>>, vector<1x8xf32>
      tpu.vector_store %arg4[%c0_17, %c0_18], %19 {strides = array<i32>} : memref<1x8xf32, #tpu.memory_space<vmem>>, vector<1x8xf32>,
      %cst_19 = arith.constant 0.000000e+00 : f32
      %21 = vector.broadcast %cst_19 : f32 to vector<1x8xf32>
      %c0_20 = arith.constant 0 : index
      %c0_21 = arith.constant 0 : index
      %22 = vector.load %arg5[%c0_20, %c0_21] : memref<1x8xf32, #tpu.memory_space<vmem>>, vector<1x8xf32>
      tpu.vector_store %arg5[%c0_20, %c0_21], %21 {strides = array<i32>} : memref<1x8xf32, #tpu.memory_space<vmem>>, vector<1x8xf32>,
    } else {
    }
    %c0_6 = arith.constant 0 : index
    %c0_7 = arith.constant 0 : index
    %8 = vector.load %arg4[%c0_6, %c0_7] : memref<1x8xf32, #tpu.memory_space<vmem>>, vector<1x8xf32>
    %cst_8 = arith.constant dense<0.000000e+00> : vector<8xf32>
    %9 = vector.multi_reduction <add>, %3, %cst_8 [0] : vector<32x8xf32> to vector<8xf32>
    %10 = vector.shape_cast %9 : vector<8xf32> to vector<1x8xf32>
    %11 = arith.addf %8, %10 : vector<1x8xf32>
    %c0_9 = arith.constant 0 : index
    %c0_10 = arith.constant 0 : index
    %12 = vector.load %arg4[%c0_9, %c0_10] : memref<1x8xf32, #tpu.memory_space<vmem>>, vector<1x8xf32>
    tpu.vector_store %arg4[%c0_9, %c0_10], %11 {strides = array<i32>} : memref<1x8xf32, #tpu.memory_space<vmem>>, vector<1x8xf32>,
    %c0_11 = arith.constant 0 : index
    %c0_12 = arith.constant 0 : index
    %13 = vector.load %arg5[%c0_11, %c0_12] : memref<1x8xf32, #tpu.memory_space<vmem>>, vector<1x8xf32>
    %14 = arith.mulf %3, %3 : vector<32x8xf32>
    %cst_13 = arith.constant dense<0.000000e+00> : vector<8xf32>
    %15 = vector.multi_reduction <add>, %14, %cst_13 [0] : vector<32x8xf32> to vector<8xf32>
    %16 = vector.shape_cast %15 : vector<8xf32> to vector<1x8xf32>
    %17 = arith.addf %13, %16 : vector<1x8xf32>
    %c0_14 = arith.constant 0 : index
    %c0_15 = arith.constant 0 : index
    %18 = vector.load %arg5[%c0_14, %c0_15] : memref<1x8xf32, #tpu.memory_space<vmem>>, vector<1x8xf32>
    tpu.vector_store %arg5[%c0_14, %c0_15], %17 {strides = array<i32>} : memref<1x8xf32, #tpu.memory_space<vmem>>, vector<1x8xf32>,
    return
  }
  func.func @transform_0(%arg0: i32) -> (i32, i32) {
    %c0_i32 = arith.constant 0 : i32
    %c0_i32_0 = arith.constant 0 : i32
    return %arg0, %c0_i32 : i32, i32
  }
  func.func @transform_1(%arg0: i32) -> (i32, i32) {
    %c0_i32 = arith.constant 0 : i32
    %c0_i32_0 = arith.constant 0 : i32
    %c0_i32_1 = arith.constant 0 : i32
    return %c0_i32, %c0_i32_0 : i32, i32
  }
  func.func @transform_2(%arg0: i32) -> (i32, i32) {
    %c0_i32 = arith.constant 0 : i32
    %c0_i32_0 = arith.constant 0 : i32
    return %arg0, %c0_i32 : i32, i32
  }
  func.func @transform_3(%arg0: i32) -> (i32, i32) {
    %c0_i32 = arith.constant 0 : i32
    %c0_i32_0 = arith.constant 0 : i32
    %c0_i32_1 = arith.constant 0 : i32
    return %c0_i32, %c0_i32_0 : i32, i32
  }
  func.func @transform_4(%arg0: i32) -> (i32, i32) {
    %c0_i32 = arith.constant 0 : i32
    %c0_i32_0 = arith.constant 0 : i32
    %c0_i32_1 = arith.constant 0 : i32
    return %c0_i32, %c0_i32_0 : i32, i32
  }
}

module attributes {stable_mosaic.version = 11 : i64} {
  func.func @_fused_mm_kernel(%arg0: i32, %arg1: memref<1x24xf32, #tpu.memory_space<vmem>>, %arg2: memref<1x24xf32, #tpu.memory_space<vmem>>, %arg3: memref<32x24xf32, #tpu.memory_space<vmem>>, %arg4: memref<24x32xbf16, #tpu.memory_space<vmem>>, %arg5: memref<32x32xf32, #tpu.memory_space<vmem>>, %arg6: memref<1x32xf32, #tpu.memory_space<vmem>>, %arg7: memref<1x32xf32, #tpu.memory_space<vmem>>) attributes {dimension_semantics = [#tpu.dimension_semantics<arbitrary>], iteration_bounds = array<i64: 1>, scalar_prefetch = 0 : i64, scratch_operands = 0 : i64, tpu.core_type = #tpu.core_type<tc>, window_params = [{pipeline_mode = #tpu.pipeline_mode<synchronous>, transform_indices = @transform_0, window_bounds = array<i64: 1, 24>}, {pipeline_mode = #tpu.pipeline_mode<synchronous>, transform_indices = @transform_1, window_bounds = array<i64: 1, 24>}, {transform_indices = @transform_2, window_bounds = array<i64: 32, 24>}, {pipeline_mode = #tpu.pipeline_mode<synchronous>, transform_indices = @transform_3, window_bounds = array<i64: 24, 32>}, {transform_indices = @transform_4, window_bounds = array<i64: 32, 32>}, {pipeline_mode = #tpu.pipeline_mode<synchronous>, transform_indices = @transform_5, window_bounds = array<i64: 1, 32>}, {pipeline_mode = #tpu.pipeline_mode<synchronous>, transform_indices = @transform_6, window_bounds = array<i64: 1, 32>}]} {
    %c0 = arith.constant 0 : index
    %c0_0 = arith.constant 0 : index
    %0 = vector.load %arg3[%c0, %c0_0] : memref<32x24xf32, #tpu.memory_space<vmem>>, vector<32x24xf32>
    %c0_1 = arith.constant 0 : index
    %c0_2 = arith.constant 0 : index
    %1 = vector.load %arg1[%c0_1, %c0_2] : memref<1x24xf32, #tpu.memory_space<vmem>>, vector<1x24xf32>
    %2 = vector.broadcast %1 : vector<1x24xf32> to vector<32x24xf32>
    %3 = arith.mulf %0, %2 : vector<32x24xf32>
    %c0_3 = arith.constant 0 : index
    %c0_4 = arith.constant 0 : index
    %4 = vector.load %arg2[%c0_3, %c0_4] : memref<1x24xf32, #tpu.memory_space<vmem>>, vector<1x24xf32>
    %5 = vector.broadcast %4 : vector<1x24xf32> to vector<32x24xf32>
    %6 = arith.addf %3, %5 : vector<32x24xf32>
    %cst = arith.constant 0.000000e+00 : f32
    %7 = vector.broadcast %cst : f32 to vector<32x24xf32>
    %8 = arith.maximumf %6, %7 : vector<32x24xf32>
    %9 = arith.truncf %8 : vector<32x24xf32> to vector<32x24xbf16>
    %c0_5 = arith.constant 0 : index
    %c0_6 = arith.constant 0 : index
    %10 = vector.load %arg4[%c0_5, %c0_6] : memref<24x32xbf16, #tpu.memory_space<vmem>>, vector<24x32xbf16>
    %cst_7 = arith.constant dense<0.000000e+00> : vector<32x32xf32>
    %11 = tpu.matmul %9, %10, %cst_7 {dimension_numbers = #tpu.dot_dimension_numbers<[1], [0], [0], [1], [0, 0, 1, 1], [], []>} : vector<32x24xbf16>, vector<24x32xbf16>, vector<32x32xf32> -> vector<32x32xf32>
    %c0_8 = arith.constant 0 : index
    %c0_9 = arith.constant 0 : index
    %12 = vector.load %arg5[%c0_8, %c0_9] : memref<32x32xf32, #tpu.memory_space<vmem>>, vector<32x32xf32>
    tpu.vector_store %arg5[%c0_8, %c0_9], %11 {strides = array<i32>} : memref<32x32xf32, #tpu.memory_space<vmem>>, vector<32x32xf32>,
    %c0_i32 = arith.constant 0 : i32
    %13 = arith.cmpi eq, %arg0, %c0_i32 : i32
    %14 = arith.extui %13 : i1 to i32
    %c0_i32_10 = arith.constant 0 : i32
    %15 = arith.cmpi ne, %14, %c0_i32_10 : i32
    scf.if %15 {
      %cst_21 = arith.constant 0.000000e+00 : f32
      %27 = vector.broadcast %cst_21 : f32 to vector<1x32xf32>
      %c0_22 = arith.constant 0 : index
      %c0_23 = arith.constant 0 : index
      %28 = vector.load %arg6[%c0_22, %c0_23] : memref<1x32xf32, #tpu.memory_space<vmem>>, vector<1x32xf32>
      tpu.vector_store %arg6[%c0_22, %c0_23], %27 {strides = array<i32>} : memref<1x32xf32, #tpu.memory_space<vmem>>, vector<1x32xf32>,
      %cst_24 = arith.constant 0.000000e+00 : f32
      %29 = vector.broadcast %cst_24 : f32 to vector<1x32xf32>
      %c0_25 = arith.constant 0 : index
      %c0_26 = arith.constant 0 : index
      %30 = vector.load %arg7[%c0_25, %c0_26] : memref<1x32xf32, #tpu.memory_space<vmem>>, vector<1x32xf32>
      tpu.vector_store %arg7[%c0_25, %c0_26], %29 {strides = array<i32>} : memref<1x32xf32, #tpu.memory_space<vmem>>, vector<1x32xf32>,
    } else {
    }
    %c0_11 = arith.constant 0 : index
    %c0_12 = arith.constant 0 : index
    %16 = vector.load %arg6[%c0_11, %c0_12] : memref<1x32xf32, #tpu.memory_space<vmem>>, vector<1x32xf32>
    %cst_13 = arith.constant dense<0.000000e+00> : vector<32xf32>
    %17 = vector.multi_reduction <add>, %11, %cst_13 [0] : vector<32x32xf32> to vector<32xf32>
    %18 = vector.shape_cast %17 : vector<32xf32> to vector<1x32xf32>
    %19 = arith.addf %16, %18 : vector<1x32xf32>
    %c0_14 = arith.constant 0 : index
    %c0_15 = arith.constant 0 : index
    %20 = vector.load %arg6[%c0_14, %c0_15] : memref<1x32xf32, #tpu.memory_space<vmem>>, vector<1x32xf32>
    tpu.vector_store %arg6[%c0_14, %c0_15], %19 {strides = array<i32>} : memref<1x32xf32, #tpu.memory_space<vmem>>, vector<1x32xf32>,
    %c0_16 = arith.constant 0 : index
    %c0_17 = arith.constant 0 : index
    %21 = vector.load %arg7[%c0_16, %c0_17] : memref<1x32xf32, #tpu.memory_space<vmem>>, vector<1x32xf32>
    %22 = arith.mulf %11, %11 : vector<32x32xf32>
    %cst_18 = arith.constant dense<0.000000e+00> : vector<32xf32>
    %23 = vector.multi_reduction <add>, %22, %cst_18 [0] : vector<32x32xf32> to vector<32xf32>
    %24 = vector.shape_cast %23 : vector<32xf32> to vector<1x32xf32>
    %25 = arith.addf %21, %24 : vector<1x32xf32>
    %c0_19 = arith.constant 0 : index
    %c0_20 = arith.constant 0 : index
    %26 = vector.load %arg7[%c0_19, %c0_20] : memref<1x32xf32, #tpu.memory_space<vmem>>, vector<1x32xf32>
    tpu.vector_store %arg7[%c0_19, %c0_20], %25 {strides = array<i32>} : memref<1x32xf32, #tpu.memory_space<vmem>>, vector<1x32xf32>,
    return
  }
  func.func @transform_0(%arg0: i32) -> (i32, i32) {
    %c0_i32 = arith.constant 0 : i32
    %c0_i32_0 = arith.constant 0 : i32
    %c0_i32_1 = arith.constant 0 : i32
    return %c0_i32, %c0_i32_0 : i32, i32
  }
  func.func @transform_1(%arg0: i32) -> (i32, i32) {
    %c0_i32 = arith.constant 0 : i32
    %c0_i32_0 = arith.constant 0 : i32
    %c0_i32_1 = arith.constant 0 : i32
    return %c0_i32, %c0_i32_0 : i32, i32
  }
  func.func @transform_2(%arg0: i32) -> (i32, i32) {
    %c0_i32 = arith.constant 0 : i32
    %c0_i32_0 = arith.constant 0 : i32
    return %arg0, %c0_i32 : i32, i32
  }
  func.func @transform_3(%arg0: i32) -> (i32, i32) {
    %c0_i32 = arith.constant 0 : i32
    %c0_i32_0 = arith.constant 0 : i32
    %c0_i32_1 = arith.constant 0 : i32
    return %c0_i32, %c0_i32_0 : i32, i32
  }
  func.func @transform_4(%arg0: i32) -> (i32, i32) {
    %c0_i32 = arith.constant 0 : i32
    %c0_i32_0 = arith.constant 0 : i32
    return %arg0, %c0_i32 : i32, i32
  }
  func.func @transform_5(%arg0: i32) -> (i32, i32) {
    %c0_i32 = arith.constant 0 : i32
    %c0_i32_0 = arith.constant 0 : i32
    %c0_i32_1 = arith.constant 0 : i32
    return %c0_i32, %c0_i32_0 : i32, i32
  }
  func.func @transform_6(%arg0: i32) -> (i32, i32) {
    %c0_i32 = arith.constant 0 : i32
    %c0_i32_0 = arith.constant 0 : i32
    %c0_i32_1 = arith.constant 0 : i32
    return %c0_i32, %c0_i32_0 : i32, i32
  }
}

module attributes {stable_mosaic.version = 11 : i64} {
  func.func @_window_reduce_kernel(%arg0: i32, %arg1: memref<1x1x32xf32, #tpu.memory_space<vmem>>, %arg2: memref<1x1x32xf32, #tpu.memory_space<vmem>>, %arg3: memref<16x2x32xf32, #tpu.memory_space<vmem>>, %arg4: memref<2x32xf32, #tpu.memory_space<vmem>>) attributes {dimension_semantics = [#tpu.dimension_semantics<parallel>], iteration_bounds = array<i64: 1>, scalar_prefetch = 0 : i64, scratch_operands = 0 : i64, tpu.core_type = #tpu.core_type<tc>, window_params = [{pipeline_mode = #tpu.pipeline_mode<synchronous>, transform_indices = @transform_0, window_bounds = array<i64: 1, 1, 32>}, {pipeline_mode = #tpu.pipeline_mode<synchronous>, transform_indices = @transform_1, window_bounds = array<i64: 1, 1, 32>}, {transform_indices = @transform_2, window_bounds = array<i64: 16, 2, 32>}, {transform_indices = @transform_3, window_bounds = array<i64: 2, 32>}]} {
    %c0 = arith.constant 0 : index
    %c0_0 = arith.constant 0 : index
    %c0_1 = arith.constant 0 : index
    %0 = vector.load %arg3[%c0, %c0_0, %c0_1] : memref<16x2x32xf32, #tpu.memory_space<vmem>>, vector<16x2x32xf32>
    %c0_2 = arith.constant 0 : index
    %c0_3 = arith.constant 0 : index
    %c0_4 = arith.constant 0 : index
    %1 = vector.load %arg1[%c0_2, %c0_3, %c0_4] : memref<1x1x32xf32, #tpu.memory_space<vmem>>, vector<1x1x32xf32>
    %2 = vector.broadcast %1 : vector<1x1x32xf32> to vector<16x2x32xf32>
    %3 = arith.mulf %0, %2 : vector<16x2x32xf32>
    %c0_5 = arith.constant 0 : index
    %c0_6 = arith.constant 0 : index
    %c0_7 = arith.constant 0 : index
    %4 = vector.load %arg2[%c0_5, %c0_6, %c0_7] : memref<1x1x32xf32, #tpu.memory_space<vmem>>, vector<1x1x32xf32>
    %5 = vector.broadcast %4 : vector<1x1x32xf32> to vector<16x2x32xf32>
    %6 = arith.addf %3, %5 : vector<16x2x32xf32>
    %cst = arith.constant 0.000000e+00 : f32
    %7 = vector.broadcast %cst : f32 to vector<16x2x32xf32>
    %8 = arith.maximumf %6, %7 : vector<16x2x32xf32>
    %cst_8 = arith.constant dense<0.000000e+00> : vector<2x32xf32>
    %9 = vector.multi_reduction <add>, %8, %cst_8 [0] : vector<16x2x32xf32> to vector<2x32xf32>
    %cst_9 = arith.constant 1.600000e+01 : f32
    %10 = vector.broadcast %cst_9 : f32 to vector<2x32xf32>
    %11 = arith.divf %9, %10 : vector<2x32xf32>
    %c0_10 = arith.constant 0 : index
    %c0_11 = arith.constant 0 : index
    %12 = vector.load %arg4[%c0_10, %c0_11] : memref<2x32xf32, #tpu.memory_space<vmem>>, vector<2x32xf32>
    tpu.vector_store %arg4[%c0_10, %c0_11], %11 {strides = array<i32>} : memref<2x32xf32, #tpu.memory_space<vmem>>, vector<2x32xf32>,
    return
  }
  func.func @transform_0(%arg0: i32) -> (i32, i32, i32) {
    %c0_i32 = arith.constant 0 : i32
    %c0_i32_0 = arith.constant 0 : i32
    %c0_i32_1 = arith.constant 0 : i32
    %c0_i32_2 = arith.constant 0 : i32
    return %c0_i32, %c0_i32_0, %c0_i32_1 : i32, i32, i32
  }
  func.func @transform_1(%arg0: i32) -> (i32, i32, i32) {
    %c0_i32 = arith.constant 0 : i32
    %c0_i32_0 = arith.constant 0 : i32
    %c0_i32_1 = arith.constant 0 : i32
    %c0_i32_2 = arith.constant 0 : i32
    return %c0_i32, %c0_i32_0, %c0_i32_1 : i32, i32, i32
  }
  func.func @transform_2(%arg0: i32) -> (i32, i32, i32) {
    %c0_i32 = arith.constant 0 : i32
    %c0_i32_0 = arith.constant 0 : i32
    %c0_i32_1 = arith.constant 0 : i32
    return %c0_i32, %arg0, %c0_i32_0 : i32, i32, i32
  }
  func.func @transform_3(%arg0: i32) -> (i32, i32) {
    %c0_i32 = arith.constant 0 : i32
    %c0_i32_0 = arith.constant 0 : i32
    return %arg0, %c0_i32 : i32, i32
  }
}

module attributes {stable_mosaic.version = 11 : i64} {
  func.func @_fused_mm_kernel(%arg0: i32, %arg1: memref<2x32xf32, #tpu.memory_space<vmem>>, %arg2: memref<32x10xbf16, #tpu.memory_space<vmem>>, %arg3: memref<1x10xf32, #tpu.memory_space<vmem>>, %arg4: memref<2x10xf32, #tpu.memory_space<vmem>>) attributes {dimension_semantics = [#tpu.dimension_semantics<parallel>], iteration_bounds = array<i64: 1>, scalar_prefetch = 0 : i64, scratch_operands = 0 : i64, tpu.core_type = #tpu.core_type<tc>, window_params = [{transform_indices = @transform_0, window_bounds = array<i64: 2, 32>}, {pipeline_mode = #tpu.pipeline_mode<synchronous>, transform_indices = @transform_1, window_bounds = array<i64: 32, 10>}, {pipeline_mode = #tpu.pipeline_mode<synchronous>, transform_indices = @transform_2, window_bounds = array<i64: 1, 10>}, {transform_indices = @transform_3, window_bounds = array<i64: 2, 10>}]} {
    %c0 = arith.constant 0 : index
    %c0_0 = arith.constant 0 : index
    %0 = vector.load %arg1[%c0, %c0_0] : memref<2x32xf32, #tpu.memory_space<vmem>>, vector<2x32xf32>
    %1 = arith.truncf %0 : vector<2x32xf32> to vector<2x32xbf16>
    %c0_1 = arith.constant 0 : index
    %c0_2 = arith.constant 0 : index
    %2 = vector.load %arg2[%c0_1, %c0_2] : memref<32x10xbf16, #tpu.memory_space<vmem>>, vector<32x10xbf16>
    %cst = arith.constant dense<0.000000e+00> : vector<2x10xf32>
    %3 = tpu.matmul %1, %2, %cst {dimension_numbers = #tpu.dot_dimension_numbers<[1], [0], [0], [1], [0, 0, 1, 1], [], []>} : vector<2x32xbf16>, vector<32x10xbf16>, vector<2x10xf32> -> vector<2x10xf32>
    %c0_3 = arith.constant 0 : index
    %c0_4 = arith.constant 0 : index
    %4 = vector.load %arg3[%c0_3, %c0_4] : memref<1x10xf32, #tpu.memory_space<vmem>>, vector<1x10xf32>
    %5 = vector.broadcast %4 : vector<1x10xf32> to vector<2x10xf32>
    %6 = arith.addf %3, %5 : vector<2x10xf32>
    %c0_5 = arith.constant 0 : index
    %c0_6 = arith.constant 0 : index
    %7 = vector.load %arg4[%c0_5, %c0_6] : memref<2x10xf32, #tpu.memory_space<vmem>>, vector<2x10xf32>
    tpu.vector_store %arg4[%c0_5, %c0_6], %6 {strides = array<i32>} : memref<2x10xf32, #tpu.memory_space<vmem>>, vector<2x10xf32>,
    return
  }
  func.func @transform_0(%arg0: i32) -> (i32, i32) {
    %c0_i32 = arith.constant 0 : i32
    %c0_i32_0 = arith.constant 0 : i32
    return %arg0, %c0_i32 : i32, i32
  }
  func.func @transform_1(%arg0: i32) -> (i32, i32) {
    %c0_i32 = arith.constant 0 : i32
    %c0_i32_0 = arith.constant 0 : i32
    %c0_i32_1 = arith.constant 0 : i32
    return %c0_i32, %c0_i32_0 : i32, i32
  }
  func.func @transform_2(%arg0: i32) -> (i32, i32) {
    %c0_i32 = arith.constant 0 : i32
    %c0_i32_0 = arith.constant 0 : i32
    %c0_i32_1 = arith.constant 0 : i32
    return %c0_i32, %c0_i32_0 : i32, i32
  }
  func.func @transform_3(%arg0: i32) -> (i32, i32) {
    %c0_i32 = arith.constant 0 : i32
    %c0_i32_0 = arith.constant 0 : i32
    return %arg0, %c0_i32 : i32, i32
  }
}

</mosaic_0001>

<bundles_post_ra>
// kernel: densenet_forward.20
= control target key start
LH: loop header
LB: loop body
LE: loop exit
PB: predicated region body
PF: predicated region fallthrough
CT: control target
= control target key end

     0   :  { %vm284_vm0 = vcmask 130048   ;;  %s961_s0 = inlined_call_operand.vmem [shape: f32[1,16], index: 0, kind: input, shape index: {}]   ;;  %s962_s1 = inlined_call_operand.vmem [shape: f32[1,16], index: 1, kind: input, shape index: {}]   ;;  %s963_s2 = inlined_call_operand.vmem [shape: f32[512,16], index: 2, kind: input, shape index: {}]   ;;  %s964_s3 = inlined_call_operand.vmem [shape: f32[512,16], index: 3, kind: output, shape index: {}]  }
   0x1   :  { %v14_v0 = vld [vmem:[%s963_s2] sm:$0xff]  ;;  %v15_v4 = vld [vmem:[%s963_s2 + $0x8] sm:$0xff]  ;;  %v16_v5 = vld [vmem:[%s963_s2 + $0x10] sm:$0xff] }
   0x2   :  { %v381_v1 = vld [vmem:[%s961_s0] ss:$0 sm:$0xff]  ;;  %v17_v6 = vld [vmem:[%s963_s2 + $0x18] sm:$0xff]  ;;  %v19_v11 = vld [vmem:[%s963_s2 + $0x28] sm:$0xff] }
   0x3   :  { %v386_v2 = vld [vmem:[%s962_s1] ss:$0 sm:$0xff]  ;;  %v85_v3 = vmul.f32 %v381_v1, %v14_v0  ;;  %v86_v7 = vmul.f32 %v381_v1, %v15_v4  ;;  %v87_v8 = vmul.f32 %v381_v1, %v16_v5  ;;  %v88_v9 = vmul.f32 %v381_v1, %v17_v6  ;;  %v20_v12 = vld [vmem:[%s963_s2 + $0x30] sm:$0xff]  ;;  %v21_v17 = vld [vmem:[%s963_s2 + $0x38] sm:$0xff] }
   0x4   :  { %v18_v10 = vld [vmem:[%s963_s2 + $0x20] sm:$0xff]  ;;  %v90_v15 = vmul.f32 %v381_v1, %v19_v11  ;;  %v91_v16 = vmul.f32 %v381_v1, %v20_v12  ;;  %v92_v21 = vmul.f32 %v381_v1, %v21_v17  ;;  %v23_v27 = vld [vmem:[%s963_s2 + $0x48] sm:$0xff]  ;;  %v24_v28 = vld [vmem:[%s963_s2 + $0x50] sm:$0xff] }
   0x5   :  { %v156_v13 = vadd.f32 %v386_v2, %v85_v3  ;;  %v89_v14 = vmul.f32 %v381_v1, %v18_v10  ;;  %v157_v18 = vadd.f32 %v386_v2, %v86_v7  ;;  %v158_v19 = vadd.f32 %v386_v2, %v87_v8  ;;  %v22_v22 = vld [vmem:[%s963_s2 + $0x40] sm:$0xff]  ;;  %v25_v29 = vld [vmem:[%s963_s2 + $0x58] sm:$0xff]  ;;  %v27_v35 = vld [vmem:[%s963_s2 + $0x68] sm:$0xff] }
   0x6   :  { %v159_v20 = vadd.f32 %v386_v2, %v88_v9  ;;  %v161_v25 = vadd.f32 %v386_v2, %v90_v15  ;;  %v162_v26 = vadd.f32 %v386_v2, %v91_v16  ;;  %v163_v33 = vadd.f32 %v386_v2, %v92_v21  ;;  %v26_v34 = vld [vmem:[%s963_s2 + $0x60] sm:$0xff]  ;;  %v28_v36 = vld [vmem:[%s963_s2 + $0x70] sm:$0xff]  ;;  %v29_v41 = vld [vmem:[%s963_s2 + $0x78] sm:$0xff] }
   0x7   :  { %v220_v23 = vmax.f32 %v156_v13, 0.0  ;;  %v160_v24 = vadd.f32 %v386_v2, %v89_v14  ;;  %v221_v30 = vmax.f32 %v157_v18, 0.0  ;;  %v222_v31 = vmax.f32 %v158_v19, 0.0  ;;  %v30_v54 = vld [vmem:[%s963_s2 + $0x80] sm:$0xff]  ;;  %v31_v59 = vld [vmem:[%s963_s2 + $0x88] sm:$0xff]  ;;  %v32_v60 = vld [vmem:[%s963_s2 + $0x90] sm:$0xff] }
   0x8   :  { %v223_v32 = vmax.f32 %v159_v20, 0.0  ;;  %v225_v38 = vmax.f32 %v161_v25, 0.0  ;;  %v226_v39 = vmax.f32 %v162_v26, 0.0  ;;  %v93_v40 = vmul.f32 %v381_v1, %v22_v22  ;;  %v33_v61 = vld [vmem:[%s963_s2 + $0x98] sm:$0xff]  ;;  %v34_v4 = vld [vmem:[%s963_s2 + $0xa0] sm:$0xff]  ;;  %v35_v5 = vld [vmem:[%s963_s2 + $0xa8] sm:$0xff] }
   0x9   :  { %285 = vst.msk [vmem:[%s964_s3] sm:$0xff] %vm284_vm0, %v220_v23  ;;  %v224_v37 = vmax.f32 %v160_v24, 0.0  ;;  %286 = vst.msk [vmem:[%s964_s3 + $0x8] sm:$0xff] %vm284_vm0, %v221_v30  ;;  %v227_v42 = vmax.f32 %v163_v33, 0.0  ;;  %v94_v43 = vmul.f32 %v381_v1, %v23_v27  ;;  %v95_v44 = vmul.f32 %v381_v1, %v24_v28  ;;  %v36_v6 = vld [vmem:[%s963_s2 + $0xb0] sm:$0xff]  ;;  %v37_v11 = vld [vmem:[%s963_s2 + $0xb8] sm:$0xff] }
   0xa   :  { %287 = vst.msk [vmem:[%s964_s3 + $0x10] sm:$0xff] %vm284_vm0, %v222_v31  ;;  %288 = vst.msk [vmem:[%s964_s3 + $0x18] sm:$0xff] %vm284_vm0, %v223_v32  ;;  %v96_v45 = vmul.f32 %v381_v1, %v25_v29  ;;  %v164_v46 = vadd.f32 %v386_v2, %v93_v40  ;;  %v97_v47 = vmul.f32 %v381_v1, %v26_v34  ;;  %v38_v24 = vld [vmem:[%s963_s2 + $0xc0] sm:$0xff]  ;;  %v39_v29 = vld [vmem:[%s963_s2 + $0xc8] sm:$0xff] }
   0xb   :  { %289 = vst.msk [vmem:[%s964_s3 + $0x20] sm:$0xff] %vm284_vm0, %v224_v37  ;;  %290 = vst.msk [vmem:[%s964_s3 + $0x28] sm:$0xff] %vm284_vm0, %v225_v38  ;;  %v98_v48 = vmul.f32 %v381_v1, %v27_v35  ;;  %v99_v49 = vmul.f32 %v381_v1, %v28_v36  ;;  %v165_v50 = vadd.f32 %v386_v2, %v94_v43  ;;  %v40_v30 = vld [vmem:[%s963_s2 + $0xd0] sm:$0xff]  ;;  %v41_v31 = vld [vmem:[%s963_s2 + $0xd8] sm:$0xff] }
   0xc   :  { %291 = vst.msk [vmem:[%s964_s3 + $0x30] sm:$0xff] %vm284_vm0, %v226_v39  ;;  %292 = vst.msk [vmem:[%s964_s3 + $0x38] sm:$0xff] %vm284_vm0, %v227_v42  ;;  %v166_v51 = vadd.f32 %v386_v2, %v95_v44  ;;  %v167_v52 = vadd.f32 %v386_v2, %v96_v45  ;;  %v100_v53 = vmul.f32 %v381_v1, %v29_v41  ;;  %v228_v55 = vmax.f32 %v164_v46, 0.0  ;;  %v42_v36 = vld [vmem:[%s963_s2 + $0xe0] sm:$0xff]  ;;  %v43_v37 = vld [vmem:[%s963_s2 + $0xe8] sm:$0xff] }
   0xd   :  { %v168_v56 = vadd.f32 %v386_v2, %v97_v47  ;;  %v169_v57 = vadd.f32 %v386_v2, %v98_v48  ;;  %v170_v58 = vadd.f32 %v386_v2, %v99_v49  ;;  %v229_v62 = vmax.f32 %v165_v50, 0.0  ;;  %v44_v38 = vld [vmem:[%s963_s2 + $0xf0] sm:$0xff]  ;;  %v45_v43 = vld [vmem:[%s963_s2 + $0xf8] sm:$0xff] }
   0xe   :  { %v230_v63 = vmax.f32 %v166_v51, 0.0  ;;  %v231_v0 = vmax.f32 %v167_v52, 0.0  ;;  %v171_v3 = vadd.f32 %v386_v2, %v100_v53  ;;  %293 = vst.msk [vmem:[%s964_s3 + $0x40] sm:$0xff] %vm284_vm0, %v228_v55  ;;  %v101_v10 = vmul.f32 %v381_v1, %v30_v54 }
   0xf   :  { %v232_v7 = vmax.f32 %v168_v56, 0.0  ;;  %v233_v8 = vmax.f32 %v169_v57, 0.0  ;;  %v234_v9 = vmax.f32 %v170_v58, 0.0  ;;  %294 = vst.msk [vmem:[%s964_s3 + $0x48] sm:$0xff] %vm284_vm0, %v229_v62  ;;  %v102_v13 = vmul.f32 %v381_v1, %v31_v59  ;;  %v46_v56 = vld [vmem:[%s963_s2 + $0x100] sm:$0xff]  ;;  %v48_v62 = vld [vmem:[%s963_s2 + $0x110] sm:$0xff] }
  0x10   :  { %295 = vst.msk [vmem:[%s964_s3 + $0x50] sm:$0xff] %vm284_vm0, %v230_v63  ;;  %296 = vst.msk [vmem:[%s964_s3 + $0x58] sm:$0xff] %vm284_vm0, %v231_v0  ;;  %v235_v12 = vmax.f32 %v171_v3, 0.0  ;;  %v103_v14 = vmul.f32 %v381_v1, %v32_v60  ;;  %v104_v15 = vmul.f32 %v381_v1, %v33_v61  ;;  %v172_v16 = vadd.f32 %v386_v2, %v101_v10  ;;  %v47_v61 = vld [vmem:[%s963_s2 + $0x108] sm:$0xff]  ;;  %v49_v63 = vld [vmem:[%s963_s2 + $0x118] sm:$0xff] }
  0x11   :  { %297 = vst.msk [vmem:[%s964_s3 + $0x60] sm:$0xff] %vm284_vm0, %v232_v7  ;;  %298 = vst.msk [vmem:[%s964_s3 + $0x68] sm:$0xff] %vm284_vm0, %v233_v8  ;;  %v105_v17 = vmul.f32 %v381_v1, %v34_v4  ;;  %v106_v18 = vmul.f32 %v381_v1, %v35_v5  ;;  %v107_v19 = vmul.f32 %v381_v1, %v36_v6  ;;  %v50_v6 = vld [vmem:[%s963_s2 + $0x120] sm:$0xff]  ;;  %v51_v7 = vld [vmem:[%s963_s2 + $0x128] sm:$0xff] }
  0x12   :  { %299 = vst.msk [vmem:[%s964_s3 + $0x70] sm:$0xff] %vm284_vm0, %v234_v9  ;;  %300 = vst.msk [vmem:[%s964_s3 + $0x78] sm:$0xff] %vm284_vm0, %v235_v12  ;;  %v173_v20 = vadd.f32 %v386_v2, %v102_v13  ;;  %v174_v21 = vadd.f32 %v386_v2, %v103_v14  ;;  %v175_v22 = vadd.f32 %v386_v2, %v104_v15  ;;  %v236_v25 = vmax.f32 %v172_v16, 0.0  ;;  %v52_v8 = vld [vmem:[%s963_s2 + $0x130] sm:$0xff]  ;;  %v53_v13 = vld [vmem:[%s963_s2 + $0x138] sm:$0xff] }
  0x13   :  { %v108_v23 = vmul.f32 %v381_v1, %v37_v11  ;;  %v176_v26 = vadd.f32 %v386_v2, %v105_v17  ;;  %v177_v27 = vadd.f32 %v386_v2, %v106_v18  ;;  %v178_v28 = vadd.f32 %v386_v2, %v107_v19 }
  0x14   :  { %v237_v32 = vmax.f32 %v173_v20, 0.0  ;;  %v238_v33 = vmax.f32 %v174_v21, 0.0  ;;  %v239_v34 = vmax.f32 %v175_v22, 0.0  ;;  %301 = vst.msk [vmem:[%s964_s3 + $0x80] sm:$0xff] %vm284_vm0, %v236_v25  ;;  %v109_v42 = vmul.f32 %v381_v1, %v38_v24 }
  0x15   :  { %v179_v35 = vadd.f32 %v386_v2, %v108_v23  ;;  %v240_v39 = vmax.f32 %v176_v26, 0.0  ;;  %v241_v40 = vmax.f32 %v177_v27, 0.0  ;;  %v242_v41 = vmax.f32 %v178_v28, 0.0  ;;  %v54_v26 = vld [vmem:[%s963_s2 + $0x140] sm:$0xff] }
  0x16   :  { %302 = vst.msk [vmem:[%s964_s3 + $0x88] sm:$0xff] %vm284_vm0, %v237_v32  ;;  %303 = vst.msk [vmem:[%s964_s3 + $0x90] sm:$0xff] %vm284_vm0, %v238_v33  ;;  %v110_v45 = vmul.f32 %v381_v1, %v39_v29  ;;  %v111_v46 = vmul.f32 %v381_v1, %v40_v30  ;;  %v112_v47 = vmul.f32 %v381_v1, %v41_v31  ;;  %v55_v31 = vld [vmem:[%s963_s2 + $0x148] sm:$0xff]  ;;  %v56_v32 = vld [vmem:[%s963_s2 + $0x150] sm:$0xff] }
  0x17   :  { %304 = vst.msk [vmem:[%s964_s3 + $0x98] sm:$0xff] %vm284_vm0, %v239_v34  ;;  %v243_v44 = vmax.f32 %v179_v35, 0.0  ;;  %305 = vst.msk [vmem:[%s964_s3 + $0xa0] sm:$0xff] %vm284_vm0, %v240_v39  ;;  %v180_v48 = vadd.f32 %v386_v2, %v109_v42  ;;  %v113_v49 = vmul.f32 %v381_v1, %v42_v36  ;;  %v114_v50 = vmul.f32 %v381_v1, %v43_v37  ;;  %v57_v33 = vld [vmem:[%s963_s2 + $0x158] sm:$0xff]  ;;  %v59_v39 = vld [vmem:[%s963_s2 + $0x168] sm:$0xff] }
  0x18   :  { %306 = vst.msk [vmem:[%s964_s3 + $0xa8] sm:$0xff] %vm284_vm0, %v241_v40  ;;  %307 = vst.msk [vmem:[%s964_s3 + $0xb0] sm:$0xff] %vm284_vm0, %v242_v41  ;;  %v115_v51 = vmul.f32 %v381_v1, %v44_v38  ;;  %v181_v52 = vadd.f32 %v386_v2, %v110_v45  ;;  %v182_v53 = vadd.f32 %v386_v2, %v111_v46  ;;  %v58_v38 = vld [vmem:[%s963_s2 + $0x160] sm:$0xff]  ;;  %v60_v40 = vld [vmem:[%s963_s2 + $0x170] sm:$0xff] }
  0x19   :  { %308 = vst.msk [vmem:[%s964_s3 + $0xb8] sm:$0xff] %vm284_vm0, %v243_v44  ;;  %v183_v54 = vadd.f32 %v386_v2, %v112_v47  ;;  %v116_v55 = vmul.f32 %v381_v1, %v45_v43  ;;  %v244_v57 = vmax.f32 %v180_v48, 0.0  ;;  %v184_v58 = vadd.f32 %v386_v2, %v113_v49  ;;  %v61_v45 = vld [vmem:[%s963_s2 + $0x178] sm:$0xff] }
  0x1a   :  { %v185_v59 = vadd.f32 %v386_v2, %v114_v50  ;;  %v186_v60 = vadd.f32 %v386_v2, %v115_v51  ;;  %v245_v0 = vmax.f32 %v181_v52, 0.0  ;;  %v246_v3 = vmax.f32 %v182_v53, 0.0 }
  0x1b   :  { %v247_v4 = vmax.f32 %v183_v54, 0.0  ;;  %v187_v5 = vadd.f32 %v386_v2, %v116_v55  ;;  %309 = vst.msk [vmem:[%s964_s3 + $0xc0] sm:$0xff] %vm284_vm0, %v244_v57  ;;  %v248_v9 = vmax.f32 %v184_v58, 0.0  ;;  %v117_v12 = vmul.f32 %v381_v1, %v46_v56  ;;  %v62_v58 = vld [vmem:[%s963_s2 + $0x180] sm:$0xff] }
  0x1c   :  { %v249_v10 = vmax.f32 %v185_v59, 0.0  ;;  %v250_v11 = vmax.f32 %v186_v60, 0.0  ;;  %310 = vst.msk [vmem:[%s964_s3 + $0xc8] sm:$0xff] %vm284_vm0, %v245_v0  ;;  %311 = vst.msk [vmem:[%s964_s3 + $0xd0] sm:$0xff] %vm284_vm0, %v246_v3  ;;  %v118_v15 = vmul.f32 %v381_v1, %v47_v61  ;;  %v119_v16 = vmul.f32 %v381_v1, %v48_v62  ;;  %v64_v0 = vld [vmem:[%s963_s2 + $0x190] sm:$0xff]  ;;  %v65_v3 = vld [vmem:[%s963_s2 + $0x198] sm:$0xff] }
  0x1d   :  { %312 = vst.msk [vmem:[%s964_s3 + $0xd8] sm:$0xff] %vm284_vm0, %v247_v4  ;;  %v251_v14 = vmax.f32 %v187_v5, 0.0  ;;  %v120_v17 = vmul.f32 %v381_v1, %v49_v63  ;;  %313 = vst.msk [vmem:[%s964_s3 + $0xe0] sm:$0xff] %vm284_vm0, %v248_v9  ;;  %v188_v18 = vadd.f32 %v386_v2, %v117_v12  ;;  %v121_v19 = vmul.f32 %v381_v1, %v50_v6  ;;  %v63_v63 = vld [vmem:[%s963_s2 + $0x188] sm:$0xff] }
  0x1e   :  { %314 = vst.msk [vmem:[%s964_s3 + $0xe8] sm:$0xff] %vm284_vm0, %v249_v10  ;;  %315 = vst.msk [vmem:[%s964_s3 + $0xf0] sm:$0xff] %vm284_vm0, %v250_v11  ;;  %v122_v20 = vmul.f32 %v381_v1, %v51_v7  ;;  %v123_v21 = vmul.f32 %v381_v1, %v52_v8  ;;  %v189_v22 = vadd.f32 %v386_v2, %v118_v15  ;;  %v66_v8 = vld [vmem:[%s963_s2 + $0x1a0] sm:$0xff]  ;;  %v67_v9 = vld [vmem:[%s963_s2 + $0x1a8] sm:$0xff] }
  0x1f   :  { %316 = vst.msk [vmem:[%s964_s3 + $0xf8] sm:$0xff] %vm284_vm0, %v251_v14  ;;  %v190_v23 = vadd.f32 %v386_v2, %v119_v16  ;;  %v191_v24 = vadd.f32 %v386_v2, %v120_v17  ;;  %v124_v25 = vmul.f32 %v381_v1, %v53_v13  ;;  %v252_v27 = vmax.f32 %v188_v18, 0.0  ;;  %v68_v10 = vld [vmem:[%s963_s2 + $0x1b0] sm:$0xff]  ;;  %v69_v15 = vld [vmem:[%s963_s2 + $0x1b8] sm:$0xff] }
  0x20   :  { %v192_v28 = vadd.f32 %v386_v2, %v121_v19  ;;  %v193_v29 = vadd.f32 %v386_v2, %v122_v20  ;;  %v194_v30 = vadd.f32 %v386_v2, %v123_v21  ;;  %v253_v34 = vmax.f32 %v189_v22, 0.0 }
  0x21   :  { %v254_v35 = vmax.f32 %v190_v23, 0.0  ;;  %v255_v36 = vmax.f32 %v191_v24, 0.0  ;;  %v195_v37 = vadd.f32 %v386_v2, %v124_v25  ;;  %317 = vst.msk [vmem:[%s964_s3 + $0x100] sm:$0xff] %vm284_vm0, %v252_v27  ;;  %v125_v44 = vmul.f32 %v381_v1, %v54_v26 }
  0x22   :  { %v256_v41 = vmax.f32 %v192_v28, 0.0  ;;  %v257_v42 = vmax.f32 %v193_v29, 0.0  ;;  %v258_v43 = vmax.f32 %v194_v30, 0.0  ;;  %318 = vst.msk [vmem:[%s964_s3 + $0x108] sm:$0xff] %vm284_vm0, %v253_v34  ;;  %v126_v47 = vmul.f32 %v381_v1, %v55_v31  ;;  %v70_v28 = vld [vmem:[%s963_s2 + $0x1c0] sm:$0xff]  ;;  %v72_v34 = vld [vmem:[%s963_s2 + $0x1d0] sm:$0xff] }
  0x23   :  { %319 = vst.msk [vmem:[%s964_s3 + $0x110] sm:$0xff] %vm284_vm0, %v254_v35  ;;  %320 = vst.msk [vmem:[%s964_s3 + $0x118] sm:$0xff] %vm284_vm0, %v255_v36  ;;  %v259_v46 = vmax.f32 %v195_v37, 0.0  ;;  %v127_v48 = vmul.f32 %v381_v1, %v56_v32  ;;  %v128_v49 = vmul.f32 %v381_v1, %v57_v33  ;;  %v196_v50 = vadd.f32 %v386_v2, %v125_v44  ;;  %v71_v33 = vld [vmem:[%s963_s2 + $0x1c8] sm:$0xff]  ;;  %v73_v35 = vld [vmem:[%s963_s2 + $0x1d8] sm:$0xff] }
  0x24   :  { %321 = vst.msk [vmem:[%s964_s3 + $0x120] sm:$0xff] %vm284_vm0, %v256_v41  ;;  %322 = vst.msk [vmem:[%s964_s3 + $0x128] sm:$0xff] %vm284_vm0, %v257_v42  ;;  %v129_v51 = vmul.f32 %v381_v1, %v58_v38  ;;  %v130_v52 = vmul.f32 %v381_v1, %v59_v39  ;;  %v131_v53 = vmul.f32 %v381_v1, %v60_v40  ;;  %v74_v40 = vld [vmem:[%s963_s2 + $0x1e0] sm:$0xff]  ;;  %v75_v41 = vld [vmem:[%s963_s2 + $0x1e8] sm:$0xff] }
  0x25   :  { %323 = vst.msk [vmem:[%s964_s3 + $0x130] sm:$0xff] %vm284_vm0, %v258_v43  ;;  %324 = vst.msk [vmem:[%s964_s3 + $0x138] sm:$0xff] %vm284_vm0, %v259_v46  ;;  %v197_v54 = vadd.f32 %v386_v2, %v126_v47  ;;  %v198_v55 = vadd.f32 %v386_v2, %v127_v48  ;;  %v199_v56 = vadd.f32 %v386_v2, %v128_v49  ;;  %v260_v59 = vmax.f32 %v196_v50, 0.0  ;;  %v76_v42 = vld [vmem:[%s963_s2 + $0x1f0] sm:$0xff]  ;;  %v77_v47 = vld [vmem:[%s963_s2 + $0x1f8] sm:$0xff] }
  0x26   :  { %v132_v57 = vmul.f32 %v381_v1, %v61_v45  ;;  %v200_v60 = vadd.f32 %v386_v2, %v129_v51  ;;  %v201_v61 = vadd.f32 %v386_v2, %v130_v52  ;;  %v202_v62 = vadd.f32 %v386_v2, %v131_v53 }
  0x27   :  { %v261_v4 = vmax.f32 %v197_v54, 0.0  ;;  %v262_v5 = vmax.f32 %v198_v55, 0.0  ;;  %v263_v6 = vmax.f32 %v199_v56, 0.0  ;;  %325 = vst.msk [vmem:[%s964_s3 + $0x140] sm:$0xff] %vm284_vm0, %v260_v59  ;;  %v133_v14 = vmul.f32 %v381_v1, %v62_v58 }
  0x28   :  { %v203_v7 = vadd.f32 %v386_v2, %v132_v57  ;;  %v264_v11 = vmax.f32 %v200_v60, 0.0  ;;  %v265_v12 = vmax.f32 %v201_v61, 0.0  ;;  %v266_v13 = vmax.f32 %v202_v62, 0.0 }
  0x29   :  { %326 = vst.msk [vmem:[%s964_s3 + $0x148] sm:$0xff] %vm284_vm0, %v261_v4  ;;  %327 = vst.msk [vmem:[%s964_s3 + $0x150] sm:$0xff] %vm284_vm0, %v262_v5  ;;  %v134_v17 = vmul.f32 %v381_v1, %v63_v63  ;;  %v135_v18 = vmul.f32 %v381_v1, %v64_v0  ;;  %v136_v19 = vmul.f32 %v381_v1, %v65_v3 }
  0x2a   :  { %328 = vst.msk [vmem:[%s964_s3 + $0x158] sm:$0xff] %vm284_vm0, %v263_v6  ;;  %v267_v16 = vmax.f32 %v203_v7, 0.0  ;;  %329 = vst.msk [vmem:[%s964_s3 + $0x160] sm:$0xff] %vm284_vm0, %v264_v11  ;;  %v204_v20 = vadd.f32 %v386_v2, %v133_v14  ;;  %v137_v21 = vmul.f32 %v381_v1, %v66_v8  ;;  %v138_v22 = vmul.f32 %v381_v1, %v67_v9 }
  0x2b   :  { %330 = vst.msk [vmem:[%s964_s3 + $0x168] sm:$0xff] %vm284_vm0, %v265_v12  ;;  %331 = vst.msk [vmem:[%s964_s3 + $0x170] sm:$0xff] %vm284_vm0, %v266_v13  ;;  %v139_v23 = vmul.f32 %v381_v1, %v68_v10  ;;  %v205_v24 = vadd.f32 %v386_v2, %v134_v17  ;;  %v206_v25 = vadd.f32 %v386_v2, %v135_v18 }
  0x2c   :  { %332 = vst.msk [vmem:[%s964_s3 + $0x178] sm:$0xff] %vm284_vm0, %v267_v16  ;;  %v207_v26 = vadd.f32 %v386_v2, %v136_v19  ;;  %v140_v27 = vmul.f32 %v381_v1, %v69_v15  ;;  %v268_v29 = vmax.f32 %v204_v20, 0.0  ;;  %v208_v30 = vadd.f32 %v386_v2, %v137_v21 }
  0x2d   :  { %v209_v31 = vadd.f32 %v386_v2, %v138_v22  ;;  %v210_v32 = vadd.f32 %v386_v2, %v139_v23  ;;  %v269_v36 = vmax.f32 %v205_v24, 0.0  ;;  %v270_v37 = vmax.f32 %v206_v25, 0.0 }
  0x2e   :  { %v271_v38 = vmax.f32 %v207_v26, 0.0  ;;  %v211_v39 = vadd.f32 %v386_v2, %v140_v27  ;;  %333 = vst.msk [vmem:[%s964_s3 + $0x180] sm:$0xff] %vm284_vm0, %v268_v29  ;;  %v272_v43 = vmax.f32 %v208_v30, 0.0  ;;  %v141_v46 = vmul.f32 %v381_v1, %v70_v28 }
  0x2f   :  { %v273_v44 = vmax.f32 %v209_v31, 0.0  ;;  %v274_v45 = vmax.f32 %v210_v32, 0.0  ;;  %334 = vst.msk [vmem:[%s964_s3 + $0x188] sm:$0xff] %vm284_vm0, %v269_v36  ;;  %335 = vst.msk [vmem:[%s964_s3 + $0x190] sm:$0xff] %vm284_vm0, %v270_v37  ;;  %v142_v49 = vmul.f32 %v381_v1, %v71_v33  ;;  %v143_v50 = vmul.f32 %v381_v1, %v72_v34 }
  0x30   :  { %336 = vst.msk [vmem:[%s964_s3 + $0x198] sm:$0xff] %vm284_vm0, %v271_v38  ;;  %v275_v48 = vmax.f32 %v211_v39, 0.0  ;;  %v144_v51 = vmul.f32 %v381_v1, %v73_v35  ;;  %337 = vst.msk [vmem:[%s964_s3 + $0x1a0] sm:$0xff] %vm284_vm0, %v272_v43  ;;  %v212_v52 = vadd.f32 %v386_v2, %v141_v46  ;;  %v145_v53 = vmul.f32 %v381_v1, %v74_v40 }
  0x31   :  { %338 = vst.msk [vmem:[%s964_s3 + $0x1a8] sm:$0xff] %vm284_vm0, %v273_v44  ;;  %339 = vst.msk [vmem:[%s964_s3 + $0x1b0] sm:$0xff] %vm284_vm0, %v274_v45  ;;  %v146_v54 = vmul.f32 %v381_v1, %v75_v41  ;;  %v147_v55 = vmul.f32 %v381_v1, %v76_v42  ;;  %v213_v56 = vadd.f32 %v386_v2, %v142_v49 }
  0x32   :  { %340 = vst.msk [vmem:[%s964_s3 + $0x1b8] sm:$0xff] %vm284_vm0, %v275_v48  ;;  %v214_v57 = vadd.f32 %v386_v2, %v143_v50  ;;  %v215_v58 = vadd.f32 %v386_v2, %v144_v51  ;;  %v148_v59 = vmul.f32 %v381_v1, %v77_v47  ;;  %v276_v60 = vmax.f32 %v212_v52, 0.0 }
  0x33   :  { %v216_v61 = vadd.f32 %v386_v2, %v145_v53  ;;  %v217_v62 = vadd.f32 %v386_v2, %v146_v54  ;;  %v218_v63 = vadd.f32 %v386_v2, %v147_v55  ;;  %v277_v0 = vmax.f32 %v213_v56, 0.0 }
  0x34   :  { %v278_v3 = vmax.f32 %v214_v57, 0.0  ;;  %v279_v4 = vmax.f32 %v215_v58, 0.0  ;;  %v219_v5 = vadd.f32 %v386_v2, %v148_v59  ;;  %341 = vst.msk [vmem:[%s964_s3 + $0x1c0] sm:$0xff] %vm284_vm0, %v276_v60 }
  0x35   :  { %v280_v6 = vmax.f32 %v216_v61, 0.0  ;;  %v281_v7 = vmax.f32 %v217_v62, 0.0  ;;  %v282_v1 = vmax.f32 %v218_v63, 0.0  ;;  %342 = vst.msk [vmem:[%s964_s3 + $0x1c8] sm:$0xff] %vm284_vm0, %v277_v0 }
  0x36   :  { %343 = vst.msk [vmem:[%s964_s3 + $0x1d0] sm:$0xff] %vm284_vm0, %v278_v3  ;;  %344 = vst.msk [vmem:[%s964_s3 + $0x1d8] sm:$0xff] %vm284_vm0, %v279_v4  ;;  %v283_v2 = vmax.f32 %v219_v5, 0.0 }
  0x37   :  { %345 = vst.msk [vmem:[%s964_s3 + $0x1e0] sm:$0xff] %vm284_vm0, %v280_v6  ;;  %346 = vst.msk [vmem:[%s964_s3 + $0x1e8] sm:$0xff] %vm284_vm0, %v281_v7 }
  0x38   :  { %347 = vst.msk [vmem:[%s964_s3 + $0x1f0] sm:$0xff] %vm284_vm0, %v282_v1  ;;  %348 = vst.msk [vmem:[%s964_s3 + $0x1f8] sm:$0xff] %vm284_vm0, %v283_v2 }

// kernel: densenet_forward.19
= control target key start
LH: loop header
LB: loop body
LE: loop exit
PB: predicated region body
PF: predicated region fallthrough
CT: control target
= control target key end

     0   :  { %v1172_v0 = vmov 0   ;;  %vm283_vm0 = vcmask 154624   ;;  %vm380_vm1 = vcmask 1040384   ;;  %vm381_vm2 = vcmask 1041408   ;;  %s2264_s1 = inlined_call_operand.vmem [shape: bf16[147,16], index: 1, kind: input, shape index: {}]   ;;  %s2265_s0 = inlined_call_operand.vmem [shape: f32[512,147], index: 0, kind: input, shape index: {}]   ;;  %s2266_s2 = inlined_call_operand.vmem [shape: f32[512,16], index: 2, kind: output, shape index: {0}]   ;;  %s2267_s3 = inlined_call_operand.vmem [shape: f32[1,16], index: 3, kind: output, shape index: {1}]   ;;  %s2268_s4 = inlined_call_operand.vmem [shape: f32[1,16], index: 4, kind: output, shape index: {2}]  }
   0x1   :  { %387 = vmatprep.subr.bf16.mxu0 %v1172_v0  ;;  %v1162_v1 = vld [vmem:[%s2264_s1] sm:$0xff]   ;;  %1139 = vmatprep.subr.bf16.mxu1 %v1172_v0  ;;  %v1163_v2 = vld [vmem:[%s2264_s1 + $0x8] sm:$0xff]   ;;  %v1164_v3 = vld [vmem:[%s2264_s1 + $0x10] sm:$0xff]   ;;  %v1173_v15 = vmov 65535   ;;  %vm676_vm3 = vcmask 130048   ;;  %vm745_vm4 = vcmask 122880  }
   0x2   :  { %388 = vmatpush1.bf16.msra.mxu0 %v1162_v1  ;;  %1149 = vmatpush1.bf16.msra.mxu1 %v1162_v1  ;;  %v16_v4 = vld [vmem:[%s2265_s0 + $0x8] sm:$0xff]  ;;  %v1165_v5 = vld [vmem:[%s2264_s1 + $0x18] sm:$0xff]   ;;  %v1166_v8 = vld [vmem:[%s2264_s1 + $0x20] sm:$0xff]   ;;  %v382_v16 = vsel %vm380_vm1, 4294967295, %v1173_v15 }
   0x3   :  { %389 = vmatprep.subr.bf16.mxu0 %v1172_v0  ;;  %1140 = vmatprep.subr.bf16.mxu1 %v1172_v0  ;;  %v18_v6 = vld [vmem:[%s2265_s0 + $0x18] sm:$0xff]  ;;  %v1167_v9 = vld [vmem:[%s2264_s1 + $0x28] sm:$0xff]   ;;  %v1168_v13 = vld [vmem:[%s2264_s1 + $0x30] sm:$0xff]   ;;  %v383_v19 = vsel %vm381_vm2, %v382_v16, 0 }
   0x4   :  { %v144_v7 = vpack.c.bf16 %v18_v6, %v16_v4  ;;  %v80_v10 = vld [vmem:[%s2265_s0 + $0x208] sm:$0xff]  ;;  %v82_v11 = vld [vmem:[%s2265_s0 + $0x218] sm:$0xff]  ;;  %v1170_v17 = vld [vmem:[%s2264_s1 + $0x40] sm:$0xff]  }
   0x5   :  { %v176_v12 = vpack.c.bf16 %v82_v11, %v80_v10  ;;  %v1169_v14 = vld [vmem:[%s2264_s1 + $0x38] sm:$0xff]   ;;  %v1171_v18 = vld [vmem:[%s2264_s1 + $0x48] ss:$0 sps:$4 sm:$0x33]   ;;  %v15_v20 = vld [vmem:[%s2265_s0] sm:$0xff] }
   0x6   :  { %390 = vmatpush1.bf16.msra.mxu0 %v1163_v2  ;;  %1150 = vmatpush1.bf16.msra.mxu1 %v1163_v2  ;;  %v17_v21 = vld [vmem:[%s2265_s0 + $0x10] sm:$0xff]  ;;  %v385_v22 = vand.u32 %v1171_v18, %v383_v19  ;;  %v20_v23 = vld [vmem:[%s2265_s0 + $0x28] sm:$0xff]  ;;  %v79_v24 = vld [vmem:[%s2265_s0 + $0x200] sm:$0xff] }
   0x7   :  { %391 = vmatprep.subr.bf16.mxu0 %v1172_v0  ;;  %1141 = vmatprep.subr.bf16.mxu1 %v1172_v0  ;;  %v81_v25 = vld [vmem:[%s2265_s0 + $0x210] sm:$0xff]  ;;  %v22_v26 = vld [vmem:[%s2265_s0 + $0x38] sm:$0xff]  ;;  %v84_v27 = vld [vmem:[%s2265_s0 + $0x228] sm:$0xff]  ;;  %v143_v29 = vpack.c.bf16 %v17_v21, %v15_v20 }
   0x8   :  { %1107 = vmatprep.mubr.msk.bf16.mxu0 %vm283_vm0, %v144_v7  ;;  %1123 = vmatprep.mubr.msk.bf16.mxu1 %vm283_vm0, %v176_v12  ;;  %v86_v28 = vld [vmem:[%s2265_s0 + $0x238] sm:$0xff]  ;;  %v175_v30 = vpack.c.bf16 %v81_v25, %v79_v24  ;;  %v146_v31 = vpack.c.bf16 %v22_v26, %v20_v23  ;;  %v19_v33 = vld [vmem:[%s2265_s0 + $0x20] sm:$0xff]  ;;  %v21_v34 = vld [vmem:[%s2265_s0 + $0x30] sm:$0xff] }
   0x9   :  { %v178_v32 = vpack.c.bf16 %v86_v28, %v84_v27  ;;  %v24_v35 = vld [vmem:[%s2265_s0 + $0x48] sm:$0xff]  ;;  %v83_v36 = vld [vmem:[%s2265_s0 + $0x220] sm:$0xff]  ;;  %v85_v37 = vld [vmem:[%s2265_s0 + $0x230] sm:$0xff]  ;;  %v145_v41 = vpack.c.bf16 %v21_v34, %v19_v33 }
   0xa   :  { %392 = vmatpush1.bf16.msra.mxu0 %v1164_v3  ;;  %1151 = vmatpush1.bf16.msra.mxu1 %v1164_v3  ;;  %v26_v38 = vld [vmem:[%s2265_s0 + $0x58] sm:$0xff]  ;;  %v88_v39 = vld [vmem:[%s2265_s0 + $0x248] sm:$0xff]  ;;  %v177_v42 = vpack.c.bf16 %v85_v37, %v83_v36  ;;  %v23_v45 = vld [vmem:[%s2265_s0 + $0x40] sm:$0xff] }
   0xb   :  { %393 = vmatprep.subr.bf16.mxu0 %v1172_v0  ;;  %1142 = vmatprep.subr.bf16.mxu1 %v1172_v0  ;;  %v90_v40 = vld [vmem:[%s2265_s0 + $0x258] sm:$0xff]  ;;  %v148_v43 = vpack.c.bf16 %v26_v38, %v24_v35  ;;  %v25_v46 = vld [vmem:[%s2265_s0 + $0x50] sm:$0xff]  ;;  %v28_v47 = vld [vmem:[%s2265_s0 + $0x68] sm:$0xff] }
   0xc   :  { %v180_v44 = vpack.c.bf16 %v90_v40, %v88_v39  ;;  %v87_v48 = vld [vmem:[%s2265_s0 + $0x240] sm:$0xff]  ;;  %v89_v49 = vld [vmem:[%s2265_s0 + $0x250] sm:$0xff]  ;;  %v30_v50 = vld [vmem:[%s2265_s0 + $0x78] sm:$0xff]  ;;  %v147_v53 = vpack.c.bf16 %v25_v46, %v23_v45 }
   0xd   :  { %v92_v51 = vld [vmem:[%s2265_s0 + $0x268] sm:$0xff]  ;;  %v94_v52 = vld [vmem:[%s2265_s0 + $0x278] sm:$0xff]  ;;  %v179_v54 = vpack.c.bf16 %v89_v49, %v87_v48  ;;  %v150_v55 = vpack.c.bf16 %v30_v50, %v28_v47  ;;  %v27_v57 = vld [vmem:[%s2265_s0 + $0x60] sm:$0xff] }
   0xe   :  { %394 = vmatpush1.bf16.msra.mxu0 %v1165_v5  ;;  %1152 = vmatpush1.bf16.msra.mxu1 %v1165_v5  ;;  %v182_v56 = vpack.c.bf16 %v94_v52, %v92_v51  ;;  %v29_v58 = vld [vmem:[%s2265_s0 + $0x70] sm:$0xff]  ;;  %v32_v59 = vld [vmem:[%s2265_s0 + $0x88] sm:$0xff]  ;;  %v91_v60 = vld [vmem:[%s2265_s0 + $0x260] sm:$0xff] }
   0xf   :  { %395 = vmatprep.subr.bf16.mxu0 %v1172_v0  ;;  %1143 = vmatprep.subr.bf16.mxu1 %v1172_v0  ;;  %v93_v61 = vld [vmem:[%s2265_s0 + $0x270] sm:$0xff]  ;;  %v34_v62 = vld [vmem:[%s2265_s0 + $0x98] sm:$0xff]  ;;  %v96_v63 = vld [vmem:[%s2265_s0 + $0x288] sm:$0xff]  ;;  %v149_v1 = vpack.c.bf16 %v29_v58, %v27_v57 }
  0x10   :  { %v181_v2 = vpack.c.bf16 %v93_v61, %v91_v60  ;;  %v152_v3 = vpack.c.bf16 %v34_v62, %v32_v59  ;;  %v31_v5 = vld [vmem:[%s2265_s0 + $0x80] sm:$0xff]  ;;  %v33_v6 = vld [vmem:[%s2265_s0 + $0x90] sm:$0xff]  ;;  %v36_v7 = vld [vmem:[%s2265_s0 + $0xa8] sm:$0xff] }
  0x11   :  { %v38_v10 = vld [vmem:[%s2265_s0 + $0xb8] sm:$0xff]  ;;  %v100_v11 = vld [vmem:[%s2265_s0 + $0x2a8] sm:$0xff]  ;;  %v37_v18 = vld [vmem:[%s2265_s0 + $0xb0] sm:$0xff] }
  0x12   :  { %396 = vmatpush1.bf16.msra.mxu0 %v1166_v8  ;;  %1153 = vmatpush1.bf16.msra.mxu1 %v1166_v8  ;;  %v95_v8 = vld [vmem:[%s2265_s0 + $0x280] sm:$0xff]  ;;  %v102_v12 = vld [vmem:[%s2265_s0 + $0x2b8] sm:$0xff]  ;;  %v154_v15 = vpack.c.bf16 %v38_v10, %v36_v7  ;;  %v40_v19 = vld [vmem:[%s2265_s0 + $0xc8] sm:$0xff] }
  0x13   :  { %397 = vmatprep.subr.bf16.mxu0 %v1172_v0  ;;  %1144 = vmatprep.subr.bf16.mxu1 %v1172_v0  ;;  %v186_v16 = vpack.c.bf16 %v102_v12, %v100_v11  ;;  %v99_v20 = vld [vmem:[%s2265_s0 + $0x2a0] sm:$0xff]  ;;  %v101_v21 = vld [vmem:[%s2265_s0 + $0x2b0] sm:$0xff]  ;;  %v104_v23 = vld [vmem:[%s2265_s0 + $0x2c8] sm:$0xff] }
  0x14   :  { %v106_v24 = vld [vmem:[%s2265_s0 + $0x2d8] sm:$0xff]  ;;  %v185_v26 = vpack.c.bf16 %v101_v21, %v99_v20  ;;  %v105_v33 = vld [vmem:[%s2265_s0 + $0x2d0] sm:$0xff]  ;;  %v108_v35 = vld [vmem:[%s2265_s0 + $0x2e8] sm:$0xff] }
  0x15   :  { %v188_v28 = vpack.c.bf16 %v106_v24, %v104_v23  ;;  %v46_v34 = vld [vmem:[%s2265_s0 + $0xf8] sm:$0xff]  ;;  %v109_v45 = vld [vmem:[%s2265_s0 + $0x2f0] sm:$0xff]  ;;  %v112_v47 = vld [vmem:[%s2265_s0 + $0x308] sm:$0xff] }
  0x16   :  { %398 = vmatpush1.bf16.msra.mxu0 %v1167_v9  ;;  %1154 = vmatpush1.bf16.msra.mxu1 %v1167_v9  ;;  %v97_v9 = vld [vmem:[%s2265_s0 + $0x290] sm:$0xff]  ;;  %v110_v36 = vld [vmem:[%s2265_s0 + $0x2f8] sm:$0xff]  ;;  %v116_v59 = vld [vmem:[%s2265_s0 + $0x328] sm:$0xff] }
  0x17   :  { %399 = vmatprep.subr.bf16.mxu0 %v1172_v0  ;;  %1145 = vmatprep.subr.bf16.mxu1 %v1172_v0  ;;  %v190_v40 = vpack.c.bf16 %v110_v36, %v108_v35  ;;  %v50_v46 = vld [vmem:[%s2265_s0 + $0x118] sm:$0xff]  ;;  %v113_v57 = vld [vmem:[%s2265_s0 + $0x310] sm:$0xff]  ;;  %v120_v7 = vld [vmem:[%s2265_s0 + $0x348] sm:$0xff] }
  0x18   :  { %v114_v48 = vld [vmem:[%s2265_s0 + $0x318] sm:$0xff] }
  0x19   :  { %v192_v52 = vpack.c.bf16 %v114_v48, %v112_v47  ;;  %v54_v58 = vld [vmem:[%s2265_s0 + $0x138] sm:$0xff] }
  0x1a   :  { %400 = vmatpush1.bf16.msra.mxu0 %v1168_v13  ;;  %1155 = vmatpush1.bf16.msra.mxu1 %v1168_v13  ;;  %v151_v13 = vpack.c.bf16 %v33_v6, %v31_v5  ;;  %v118_v60 = vld [vmem:[%s2265_s0 + $0x338] sm:$0xff]  ;;  %v117_v5 = vld [vmem:[%s2265_s0 + $0x330] sm:$0xff] }
  0x1b   :  { %401 = vmatprep.subr.bf16.mxu0 %v1172_v0  ;;  %1146 = vmatprep.subr.bf16.mxu1 %v1172_v0  ;;  %v58_v6 = vld [vmem:[%s2265_s0 + $0x158] sm:$0xff] }
  0x1c   :  { %v126_v20 = vld [vmem:[%s2265_s0 + $0x378] sm:$0xff] }
  0x1e   :  { %402 = vmatpush1.bf16.msra.mxu0 %v1169_v14  ;;  %1156 = vmatpush1.bf16.msra.mxu1 %v1169_v14  ;;  %v183_v14 = vpack.c.bf16 %v97_v9, %v95_v8  ;;  %v122_v8 = vld [vmem:[%s2265_s0 + $0x358] sm:$0xff] }
  0x1f   :  { %403 = vmatprep.subr.bf16.mxu0 %v1172_v0  ;;  %1147 = vmatprep.subr.bf16.mxu1 %v1172_v0  ;;  %v196_v12 = vpack.c.bf16 %v122_v8, %v120_v7 }
  0x22   :  { %404 = vmatpush1.bf16.msra.mxu0 %v1170_v17  ;;  %1157 = vmatpush1.bf16.msra.mxu1 %v1170_v17  ;;  %v35_v17 = vld [vmem:[%s2265_s0 + $0xa0] sm:$0xff] }
  0x23   :  { %405 = vmatprep.subr.bf16.mxu0 %v1172_v0  ;;  %1148 = vmatprep.subr.bf16.mxu1 %v1172_v0  ;;  %v98_v0 = vld [vmem:[%s2265_s0 + $0x298] sm:$0xff]  ;;  %v153_v25 = vpack.c.bf16 %v37_v18, %v35_v17  ;;  %v121_v17 = vld [vmem:[%s2265_s0 + $0x350] sm:$0xff] }
  0x24   :  { %v184_v4 = vpack.c.bf16 %v98_v0, %v96_v63  ;;  %v194_v0 = vpack.c.bf16 %v118_v60, %v116_v59  ;;  %v62_v18 = vld [vmem:[%s2265_s0 + $0x178] sm:$0xff] }
  0x26   :  { %406 = vmatpush1.bf16.msra.mxu0 %v385_v22  ;;  %1158 = vmatpush1.bf16.msra.mxu1 %v385_v22  ;;  %v42_v22 = vld [vmem:[%s2265_s0 + $0xd8] sm:$0xff] }
  0x27   :  { %v156_v27 = vpack.c.bf16 %v42_v22, %v40_v19  ;;  %v124_v19 = vld [vmem:[%s2265_s0 + $0x368] sm:$0xff] }
  0x28   :  { %v198_v24 = vpack.c.bf16 %v126_v20, %v124_v19 }
  0x29   :  { %420 = vmatmul.mubr.bf16.vlgmr.msra.gmra.mrb[0].mxu0 %v143_v29  ;;  %548 = vmatmul.mubr.bf16.vlgmr.msra.gmra.mrb[0].mxu1 %v175_v30  ;;  %v39_v29 = vld [vmem:[%s2265_s0 + $0xc0] sm:$0xff]  ;;  %v41_v30 = vld [vmem:[%s2265_s0 + $0xd0] sm:$0xff] }
  0x2a   :  { %1108 = vmatprep.mubr.msk.bf16.mxu0 %vm283_vm0, %v146_v31  ;;  %1124 = vmatprep.mubr.msk.bf16.mxu1 %vm283_vm0, %v178_v32  ;;  %v44_v31 = vld [vmem:[%s2265_s0 + $0xe8] sm:$0xff]  ;;  %v103_v32 = vld [vmem:[%s2265_s0 + $0x2c0] sm:$0xff]  ;;  %v155_v37 = vpack.c.bf16 %v41_v30, %v39_v29  ;;  %v125_v29 = vld [vmem:[%s2265_s0 + $0x370] sm:$0xff] }
  0x2b   :  { %v187_v38 = vpack.c.bf16 %v105_v33, %v103_v32  ;;  %v158_v39 = vpack.c.bf16 %v46_v34, %v44_v31  ;;  %v66_v30 = vld [vmem:[%s2265_s0 + $0x198] sm:$0xff]  ;;  %v128_v31 = vld [vmem:[%s2265_s0 + $0x388] sm:$0xff] }
  0x2c   :  { %v130_v32 = vld [vmem:[%s2265_s0 + $0x398] sm:$0xff] }
  0x2d   :  { %v200_v36 = vpack.c.bf16 %v130_v32, %v128_v31 }
  0x31   :  { %428 = vmatmul.mubr.bf16.gmra.mrb[4].mxu0 %v145_v41  ;;  %556 = vmatmul.mubr.bf16.gmra.mrb[4].mxu1 %v177_v42  ;;  %v43_v41 = vld [vmem:[%s2265_s0 + $0xe0] sm:$0xff]  ;;  %v45_v42 = vld [vmem:[%s2265_s0 + $0xf0] sm:$0xff] }
  0x32   :  { %1109 = vmatprep.mubr.msk.bf16.mxu0 %vm283_vm0, %v148_v43  ;;  %1125 = vmatprep.mubr.msk.bf16.mxu1 %vm283_vm0, %v180_v44  ;;  %v48_v43 = vld [vmem:[%s2265_s0 + $0x108] sm:$0xff]  ;;  %v107_v44 = vld [vmem:[%s2265_s0 + $0x2e0] sm:$0xff]  ;;  %v157_v49 = vpack.c.bf16 %v45_v42, %v43_v41  ;;  %v129_v41 = vld [vmem:[%s2265_s0 + $0x390] sm:$0xff] }
  0x33   :  { %v189_v50 = vpack.c.bf16 %v109_v45, %v107_v44  ;;  %v160_v51 = vpack.c.bf16 %v50_v46, %v48_v43  ;;  %v70_v42 = vld [vmem:[%s2265_s0 + $0x1b8] sm:$0xff]  ;;  %v132_v43 = vld [vmem:[%s2265_s0 + $0x3a8] sm:$0xff] }
  0x34   :  { %v134_v44 = vld [vmem:[%s2265_s0 + $0x3b8] sm:$0xff] }
  0x35   :  { %v202_v48 = vpack.c.bf16 %v134_v44, %v132_v43 }
  0x39   :  { %436 = vmatmul.mubr.bf16.gmra.mrb[8].mxu0 %v147_v53  ;;  %564 = vmatmul.mubr.bf16.gmra.mrb[8].mxu1 %v179_v54  ;;  %v47_v53 = vld [vmem:[%s2265_s0 + $0x100] sm:$0xff]  ;;  %v49_v54 = vld [vmem:[%s2265_s0 + $0x110] sm:$0xff] }
  0x3a   :  { %1110 = vmatprep.mubr.msk.bf16.mxu0 %vm283_vm0, %v150_v55  ;;  %1126 = vmatprep.mubr.msk.bf16.mxu1 %vm283_vm0, %v182_v56  ;;  %v52_v55 = vld [vmem:[%s2265_s0 + $0x128] sm:$0xff]  ;;  %v111_v56 = vld [vmem:[%s2265_s0 + $0x300] sm:$0xff]  ;;  %v159_v61 = vpack.c.bf16 %v49_v54, %v47_v53  ;;  %v133_v53 = vld [vmem:[%s2265_s0 + $0x3b0] sm:$0xff] }
  0x3b   :  { %v191_v62 = vpack.c.bf16 %v113_v57, %v111_v56  ;;  %v162_v63 = vpack.c.bf16 %v54_v58, %v52_v55  ;;  %v74_v54 = vld [vmem:[%s2265_s0 + $0x1d8] sm:$0xff]  ;;  %v136_v55 = vld [vmem:[%s2265_s0 + $0x3c8] sm:$0xff] }
  0x3c   :  { %v138_v56 = vld [vmem:[%s2265_s0 + $0x3d8] sm:$0xff] }
  0x3d   :  { %v204_v60 = vpack.c.bf16 %v138_v56, %v136_v55 }
  0x41   :  { %444 = vmatmul.mubr.bf16.gmra.mrb[12].mxu0 %v149_v1  ;;  %572 = vmatmul.mubr.bf16.gmra.mrb[12].mxu1 %v181_v2  ;;  %v51_v1 = vld [vmem:[%s2265_s0 + $0x120] sm:$0xff]  ;;  %v53_v2 = vld [vmem:[%s2265_s0 + $0x130] sm:$0xff] }
  0x42   :  { %1111 = vmatprep.mubr.msk.bf16.mxu0 %vm283_vm0, %v152_v3  ;;  %1127 = vmatprep.mubr.msk.bf16.mxu1 %vm283_vm0, %v184_v4  ;;  %v56_v3 = vld [vmem:[%s2265_s0 + $0x148] sm:$0xff]  ;;  %v115_v4 = vld [vmem:[%s2265_s0 + $0x320] sm:$0xff]  ;;  %v161_v9 = vpack.c.bf16 %v53_v2, %v51_v1  ;;  %v137_v1 = vld [vmem:[%s2265_s0 + $0x3d0] sm:$0xff] }
  0x43   :  { %v193_v10 = vpack.c.bf16 %v117_v5, %v115_v4  ;;  %v164_v11 = vpack.c.bf16 %v58_v6, %v56_v3  ;;  %v78_v2 = vld [vmem:[%s2265_s0 + $0x1f8] sm:$0xff]  ;;  %v140_v3 = vld [vmem:[%s2265_s0 + $0x3e8] sm:$0xff] }
  0x44   :  { %v142_v4 = vld [vmem:[%s2265_s0 + $0x3f8] sm:$0xff] }
  0x45   :  { %v206_v8 = vpack.c.bf16 %v142_v4, %v140_v3 }
  0x49   :  { %452 = vmatmul.mubr.bf16.gmra.mrb[16].mxu0 %v151_v13  ;;  %580 = vmatmul.mubr.bf16.gmra.mrb[16].mxu1 %v183_v14  ;;  %v55_v13 = vld [vmem:[%s2265_s0 + $0x140] sm:$0xff]  ;;  %v57_v14 = vld [vmem:[%s2265_s0 + $0x150] sm:$0xff] }
  0x4a   :  { %1112 = vmatprep.mubr.msk.bf16.mxu0 %vm283_vm0, %v154_v15  ;;  %1128 = vmatprep.mubr.msk.bf16.mxu1 %vm283_vm0, %v186_v16  ;;  %v60_v15 = vld [vmem:[%s2265_s0 + $0x168] sm:$0xff]  ;;  %v119_v16 = vld [vmem:[%s2265_s0 + $0x340] sm:$0xff]  ;;  %v163_v21 = vpack.c.bf16 %v57_v14, %v55_v13 }
  0x4b   :  { %v195_v22 = vpack.c.bf16 %v121_v17, %v119_v16  ;;  %v166_v23 = vpack.c.bf16 %v62_v18, %v60_v15 }
  0x51   :  { %460 = vmatmul.mubr.bf16.gmra.mrb[20].mxu0 %v153_v25  ;;  %588 = vmatmul.mubr.bf16.gmra.mrb[20].mxu1 %v185_v26  ;;  %v59_v25 = vld [vmem:[%s2265_s0 + $0x160] sm:$0xff]  ;;  %v61_v26 = vld [vmem:[%s2265_s0 + $0x170] sm:$0xff] }
  0x52   :  { %1113 = vmatprep.mubr.msk.bf16.mxu0 %vm283_vm0, %v156_v27  ;;  %1129 = vmatprep.mubr.msk.bf16.mxu1 %vm283_vm0, %v188_v28  ;;  %v64_v27 = vld [vmem:[%s2265_s0 + $0x188] sm:$0xff]  ;;  %v123_v28 = vld [vmem:[%s2265_s0 + $0x360] sm:$0xff]  ;;  %v165_v33 = vpack.c.bf16 %v61_v26, %v59_v25 }
  0x53   :  { %v197_v34 = vpack.c.bf16 %v125_v29, %v123_v28  ;;  %v168_v35 = vpack.c.bf16 %v66_v30, %v64_v27 }
  0x59   :  { %468 = vmatmul.mubr.bf16.gmra.mrb[24].mxu0 %v155_v37  ;;  %596 = vmatmul.mubr.bf16.gmra.mrb[24].mxu1 %v187_v38  ;;  %v63_v37 = vld [vmem:[%s2265_s0 + $0x180] sm:$0xff]  ;;  %v65_v38 = vld [vmem:[%s2265_s0 + $0x190] sm:$0xff] }
  0x5a   :  { %1114 = vmatprep.mubr.msk.bf16.mxu0 %vm283_vm0, %v158_v39  ;;  %1130 = vmatprep.mubr.msk.bf16.mxu1 %vm283_vm0, %v190_v40  ;;  %v68_v39 = vld [vmem:[%s2265_s0 + $0x1a8] sm:$0xff]  ;;  %v127_v40 = vld [vmem:[%s2265_s0 + $0x380] sm:$0xff]  ;;  %v167_v45 = vpack.c.bf16 %v65_v38, %v63_v37 }
  0x5b   :  { %v199_v46 = vpack.c.bf16 %v129_v41, %v127_v40  ;;  %v170_v47 = vpack.c.bf16 %v70_v42, %v68_v39 }
  0x61   :  { %476 = vmatmul.mubr.bf16.gmra.mrb[28].mxu0 %v157_v49  ;;  %604 = vmatmul.mubr.bf16.gmra.mrb[28].mxu1 %v189_v50  ;;  %v67_v49 = vld [vmem:[%s2265_s0 + $0x1a0] sm:$0xff]  ;;  %v69_v50 = vld [vmem:[%s2265_s0 + $0x1b0] sm:$0xff] }
  0x62   :  { %1115 = vmatprep.mubr.msk.bf16.mxu0 %vm283_vm0, %v160_v51  ;;  %1131 = vmatprep.mubr.msk.bf16.mxu1 %vm283_vm0, %v192_v52  ;;  %v72_v51 = vld [vmem:[%s2265_s0 + $0x1c8] sm:$0xff]  ;;  %v131_v52 = vld [vmem:[%s2265_s0 + $0x3a0] sm:$0xff]  ;;  %v169_v57 = vpack.c.bf16 %v69_v50, %v67_v49 }
  0x63   :  { %v201_v58 = vpack.c.bf16 %v133_v53, %v131_v52  ;;  %v172_v59 = vpack.c.bf16 %v74_v54, %v72_v51 }
  0x69   :  { %484 = vmatmul.mubr.bf16.gmra.mrb[32].mxu0 %v159_v61  ;;  %612 = vmatmul.mubr.bf16.gmra.mrb[32].mxu1 %v191_v62  ;;  %v71_v61 = vld [vmem:[%s2265_s0 + $0x1c0] sm:$0xff]  ;;  %v73_v62 = vld [vmem:[%s2265_s0 + $0x1d0] sm:$0xff] }
  0x6a   :  { %1116 = vmatprep.mubr.msk.bf16.mxu0 %vm283_vm0, %v162_v63  ;;  %1132 = vmatprep.mubr.msk.bf16.mxu1 %vm283_vm0, %v194_v0  ;;  %v76_v63 = vld [vmem:[%s2265_s0 + $0x1e8] sm:$0xff]  ;;  %v135_v0 = vld [vmem:[%s2265_s0 + $0x3c0] sm:$0xff]  ;;  %v171_v5 = vpack.c.bf16 %v73_v62, %v71_v61 }
  0x6b   :  { %v203_v6 = vpack.c.bf16 %v137_v1, %v135_v0  ;;  %v174_v7 = vpack.c.bf16 %v78_v2, %v76_v63 }
  0x71   :  { %492 = vmatmul.mubr.bf16.gmra.mrb[36].mxu0 %v161_v9  ;;  %620 = vmatmul.mubr.bf16.gmra.mrb[36].mxu1 %v193_v10  ;;  %v75_v9 = vld [vmem:[%s2265_s0 + $0x1e0] sm:$0xff]  ;;  %v77_v10 = vld [vmem:[%s2265_s0 + $0x1f0] sm:$0xff] }
  0x72   :  { %1117 = vmatprep.mubr.msk.bf16.mxu0 %vm283_vm0, %v164_v11  ;;  %1133 = vmatprep.mubr.msk.bf16.mxu1 %vm283_vm0, %v196_v12  ;;  %v139_v11 = vld [vmem:[%s2265_s0 + $0x3e0] sm:$0xff]  ;;  %v141_v12 = vld [vmem:[%s2265_s0 + $0x3f0] sm:$0xff]  ;;  %v173_v13 = vpack.c.bf16 %v77_v10, %v75_v9 }
  0x73   :  { %v205_v14 = vpack.c.bf16 %v141_v12, %v139_v11 }
  0x79   :  { %500 = vmatmul.mubr.bf16.gmra.mrb[40].mxu0 %v163_v21  ;;  %628 = vmatmul.mubr.bf16.gmra.mrb[40].mxu1 %v195_v22 }
  0x7a   :  { %1118 = vmatprep.mubr.msk.bf16.mxu0 %vm283_vm0, %v166_v23  ;;  %1134 = vmatprep.mubr.msk.bf16.mxu1 %vm283_vm0, %v198_v24 }
  0x81   :  { %508 = vmatmul.mubr.bf16.gmra.mrb[44].mxu0 %v165_v33  ;;  %636 = vmatmul.mubr.bf16.gmra.mrb[44].mxu1 %v197_v34 }
  0x82   :  { %1119 = vmatprep.mubr.msk.bf16.mxu0 %vm283_vm0, %v168_v35  ;;  %1135 = vmatprep.mubr.msk.bf16.mxu1 %vm283_vm0, %v200_v36 }
  0x89   :  { %516 = vmatmul.mubr.bf16.gmra.mrb[48].mxu0 %v167_v45  ;;  %644 = vmatmul.mubr.bf16.gmra.mrb[48].mxu1 %v199_v46 }
  0x8a   :  { %1120 = vmatprep.mubr.msk.bf16.mxu0 %vm283_vm0, %v170_v47  ;;  %1136 = vmatprep.mubr.msk.bf16.mxu1 %vm283_vm0, %v202_v48 }
  0x91   :  { %524 = vmatmul.mubr.bf16.gmra.mrb[52].mxu0 %v169_v57  ;;  %652 = vmatmul.mubr.bf16.gmra.mrb[52].mxu1 %v201_v58 }
  0x92   :  { %1121 = vmatprep.mubr.msk.bf16.mxu0 %vm283_vm0, %v172_v59  ;;  %1137 = vmatprep.mubr.msk.bf16.mxu1 %vm283_vm0, %v204_v60 }
  0x99   :  { %532 = vmatmul.mubr.bf16.gmra.mrb[56].mxu0 %v171_v5  ;;  %660 = vmatmul.mubr.bf16.gmra.mrb[56].mxu1 %v203_v6 }
  0x9a   :  { %1122 = vmatprep.mubr.msk.bf16.mxu0 %vm283_vm0, %v174_v7  ;;  %1138 = vmatprep.mubr.msk.bf16.mxu1 %vm283_vm0, %v206_v8 }
  0xa1   :  { %540 = vmatmul.mubr.bf16.gmra.mrb[60].mxu0 %v173_v13  ;;  %668 = vmatmul.mubr.bf16.gmra.mrb[60].mxu1 %v205_v14 }
  0xfc   :  { %v421_v15 = vpop.f32.mrb[0].mxu0  ;;  %v1666_v16 = vpop.f32.mrb[0].mxu1 }
  0xfd   :  { %677 = vst.msk [vmem:[%s2266_s2] sm:$0xff] %vm676_vm3, %v421_v15  ;;  %v886_v17 = vmul.f32 %v421_v15, %v421_v15  ;;  %v423_v18 = vpop.f32.mrb[1].mxu0  ;;  %709 = vst.msk [vmem:[%s2266_s2 + $0x100] sm:$0xff] %vm676_vm3, %v1666_v16  ;;  %v551_v19 = vpop.f32.mrb[1].mxu1  ;;  %v749_v22 = vsel %vm676_vm3, %v421_v15, 0.0 }
  0xfe   :  { %v424_v20 = vpop.f32.mrb[2].mxu0  ;;  %v1677_v21 = vpop.f32.mrb[2].mxu1 }
  0xff   :  { %678 = vst.msk [vmem:[%s2266_s2 + $0x8] sm:$0xff] %vm676_vm3, %v424_v20  ;;  %v750_v23 = vsel %vm676_vm3, %v424_v20, 0.0  ;;  %v887_v24 = vmul.f32 %v424_v20, %v424_v20  ;;  %v426_v25 = vpop.f32.mrb[3].mxu0  ;;  %710 = vst.msk [vmem:[%s2266_s2 + $0x108] sm:$0xff] %vm676_vm3, %v1677_v21  ;;  %v554_v26 = vpop.f32.mrb[3].mxu1  ;;  %v950_v28 = vsel %vm676_vm3, %v886_v17, 0.0 }
 0x100   :  { %v751_v27 = vadd.f32 %v750_v23, %v749_v22 }
 0x101   :  { %v951_v29 = vsel %vm676_vm3, %v887_v24, 0.0 }
 0x102   :  { %v952_v30 = vadd.f32 %v951_v29, %v950_v28 }
 0x104   :  { %v429_v31 = vpop.f32.mrb[4].mxu0  ;;  %v1692_v32 = vpop.f32.mrb[4].mxu1 }
 0x105   :  { %679 = vst.msk [vmem:[%s2266_s2 + $0x10] sm:$0xff] %vm676_vm3, %v429_v31  ;;  %v752_v33 = vsel %vm676_vm3, %v429_v31, 0.0  ;;  %v888_v34 = vmul.f32 %v429_v31, %v429_v31  ;;  %v431_v35 = vpop.f32.mrb[5].mxu0  ;;  %711 = vst.msk [vmem:[%s2266_s2 + $0x110] sm:$0xff] %vm676_vm3, %v1692_v32  ;;  %v559_v36 = vpop.f32.mrb[5].mxu1 }
 0x106   :  { %v753_v37 = vadd.f32 %v752_v33, %v751_v27  ;;  %v432_v38 = vpop.f32.mrb[6].mxu0  ;;  %v1704_v39 = vpop.f32.mrb[6].mxu1 }
 0x107   :  { %v953_v40 = vsel %vm676_vm3, %v888_v34, 0.0  ;;  %680 = vst.msk [vmem:[%s2266_s2 + $0x18] sm:$0xff] %vm676_vm3, %v432_v38  ;;  %v754_v41 = vsel %vm676_vm3, %v432_v38, 0.0  ;;  %v889_v42 = vmul.f32 %v432_v38, %v432_v38  ;;  %v434_v43 = vpop.f32.mrb[7].mxu0  ;;  %712 = vst.msk [vmem:[%s2266_s2 + $0x118] sm:$0xff] %vm676_vm3, %v1704_v39  ;;  %v562_v44 = vpop.f32.mrb[7].mxu1 }
 0x108   :  { %v954_v45 = vadd.f32 %v953_v40, %v952_v30  ;;  %v755_v46 = vadd.f32 %v754_v41, %v753_v37 }
 0x109   :  { %v955_v47 = vsel %vm676_vm3, %v889_v42, 0.0 }
 0x10a   :  { %v956_v48 = vadd.f32 %v955_v47, %v954_v45 }
 0x10c   :  { %v437_v49 = vpop.f32.mrb[8].mxu0  ;;  %v1718_v50 = vpop.f32.mrb[8].mxu1 }
 0x10d   :  { %681 = vst.msk [vmem:[%s2266_s2 + $0x20] sm:$0xff] %vm676_vm3, %v437_v49  ;;  %v756_v51 = vsel %vm676_vm3, %v437_v49, 0.0  ;;  %v890_v52 = vmul.f32 %v437_v49, %v437_v49  ;;  %v439_v53 = vpop.f32.mrb[9].mxu0  ;;  %713 = vst.msk [vmem:[%s2266_s2 + $0x120] sm:$0xff] %vm676_vm3, %v1718_v50  ;;  %v567_v54 = vpop.f32.mrb[9].mxu1 }
 0x10e   :  { %v757_v55 = vadd.f32 %v756_v51, %v755_v46  ;;  %v440_v56 = vpop.f32.mrb[10].mxu0  ;;  %v1730_v57 = vpop.f32.mrb[10].mxu1 }
 0x10f   :  { %v957_v58 = vsel %vm676_vm3, %v890_v52, 0.0  ;;  %682 = vst.msk [vmem:[%s2266_s2 + $0x28] sm:$0xff] %vm676_vm3, %v440_v56  ;;  %v758_v59 = vsel %vm676_vm3, %v440_v56, 0.0  ;;  %v891_v60 = vmul.f32 %v440_v56, %v440_v56  ;;  %v442_v61 = vpop.f32.mrb[11].mxu0  ;;  %714 = vst.msk [vmem:[%s2266_s2 + $0x128] sm:$0xff] %vm676_vm3, %v1730_v57  ;;  %v570_v62 = vpop.f32.mrb[11].mxu1 }
 0x110   :  { %v958_v63 = vadd.f32 %v957_v58, %v956_v48  ;;  %v759_v0 = vadd.f32 %v758_v59, %v757_v55 }
 0x111   :  { %v959_v1 = vsel %vm676_vm3, %v891_v60, 0.0 }
 0x112   :  { %v960_v2 = vadd.f32 %v959_v1, %v958_v63 }
 0x114   :  { %v445_v3 = vpop.f32.mrb[12].mxu0  ;;  %v1744_v4 = vpop.f32.mrb[12].mxu1 }
 0x115   :  { %683 = vst.msk [vmem:[%s2266_s2 + $0x30] sm:$0xff] %vm676_vm3, %v445_v3  ;;  %v760_v5 = vsel %vm676_vm3, %v445_v3, 0.0  ;;  %v892_v6 = vmul.f32 %v445_v3, %v445_v3  ;;  %v447_v7 = vpop.f32.mrb[13].mxu0  ;;  %715 = vst.msk [vmem:[%s2266_s2 + $0x130] sm:$0xff] %vm676_vm3, %v1744_v4  ;;  %v575_v8 = vpop.f32.mrb[13].mxu1 }
 0x116   :  { %v761_v9 = vadd.f32 %v760_v5, %v759_v0  ;;  %v448_v10 = vpop.f32.mrb[14].mxu0  ;;  %v1756_v11 = vpop.f32.mrb[14].mxu1 }
 0x117   :  { %v961_v12 = vsel %vm676_vm3, %v892_v6, 0.0  ;;  %684 = vst.msk [vmem:[%s2266_s2 + $0x38] sm:$0xff] %vm676_vm3, %v448_v10  ;;  %v762_v13 = vsel %vm676_vm3, %v448_v10, 0.0  ;;  %v893_v14 = vmul.f32 %v448_v10, %v448_v10  ;;  %v450_v15 = vpop.f32.mrb[15].mxu0  ;;  %716 = vst.msk [vmem:[%s2266_s2 + $0x138] sm:$0xff] %vm676_vm3, %v1756_v11  ;;  %v578_v17 = vpop.f32.mrb[15].mxu1 }
 0x118   :  { %v962_v18 = vadd.f32 %v961_v12, %v960_v2  ;;  %v763_v19 = vadd.f32 %v762_v13, %v761_v9 }
 0x119   :  { %v963_v20 = vsel %vm676_vm3, %v893_v14, 0.0 }
 0x11a   :  { %v964_v22 = vadd.f32 %v963_v20, %v962_v18 }
 0x11c   :  { %v453_v23 = vpop.f32.mrb[16].mxu0  ;;  %v1770_v24 = vpop.f32.mrb[16].mxu1 }
 0x11d   :  { %685 = vst.msk [vmem:[%s2266_s2 + $0x40] sm:$0xff] %vm676_vm3, %v453_v23  ;;  %v764_v25 = vsel %vm676_vm3, %v453_v23, 0.0  ;;  %v894_v26 = vmul.f32 %v453_v23, %v453_v23  ;;  %v455_v27 = vpop.f32.mrb[17].mxu0  ;;  %717 = vst.msk [vmem:[%s2266_s2 + $0x140] sm:$0xff] %vm676_vm3, %v1770_v24  ;;  %v583_v28 = vpop.f32.mrb[17].mxu1 }
 0x11e   :  { %v765_v29 = vadd.f32 %v764_v25, %v763_v19  ;;  %v456_v30 = vpop.f32.mrb[18].mxu0  ;;  %v1782_v31 = vpop.f32.mrb[18].mxu1 }
 0x11f   :  { %v965_v33 = vsel %vm676_vm3, %v894_v26, 0.0  ;;  %686 = vst.msk [vmem:[%s2266_s2 + $0x48] sm:$0xff] %vm676_vm3, %v456_v30  ;;  %v766_v34 = vsel %vm676_vm3, %v456_v30, 0.0  ;;  %v895_v35 = vmul.f32 %v456_v30, %v456_v30  ;;  %v458_v36 = vpop.f32.mrb[19].mxu0  ;;  %718 = vst.msk [vmem:[%s2266_s2 + $0x148] sm:$0xff] %vm676_vm3, %v1782_v31  ;;  %v586_v37 = vpop.f32.mrb[19].mxu1 }
 0x120   :  { %v966_v38 = vadd.f32 %v965_v33, %v964_v22  ;;  %v767_v40 = vadd.f32 %v766_v34, %v765_v29 }
 0x121   :  { %v967_v41 = vsel %vm676_vm3, %v895_v35, 0.0 }
 0x122   :  { %v968_v42 = vadd.f32 %v967_v41, %v966_v38 }
 0x124   :  { %v461_v43 = vpop.f32.mrb[20].mxu0  ;;  %v1796_v44 = vpop.f32.mrb[20].mxu1 }
 0x125   :  { %687 = vst.msk [vmem:[%s2266_s2 + $0x50] sm:$0xff] %vm676_vm3, %v461_v43  ;;  %v768_v45 = vsel %vm676_vm3, %v461_v43, 0.0  ;;  %v896_v46 = vmul.f32 %v461_v43, %v461_v43  ;;  %v463_v47 = vpop.f32.mrb[21].mxu0  ;;  %719 = vst.msk [vmem:[%s2266_s2 + $0x150] sm:$0xff] %vm676_vm3, %v1796_v44  ;;  %v591_v48 = vpop.f32.mrb[21].mxu1  ;;  %v1174_v43 = vmov 0.0  }
 0x126   :  { %v769_v49 = vadd.f32 %v768_v45, %v767_v40  ;;  %v464_v51 = vpop.f32.mrb[22].mxu0  ;;  %v1808_v52 = vpop.f32.mrb[22].mxu1  ;;  %746 = vst.msk [vmem:[%s2267_s3] sm:$0x1] %vm745_vm4, %v1174_v43  ;;  %747 = vst.msk [vmem:[%s2268_s4] sm:$0x1] %vm745_vm4, %v1174_v43 }
 0x127   :  { %v969_v53 = vsel %vm676_vm3, %v896_v46, 0.0  ;;  %688 = vst.msk [vmem:[%s2266_s2 + $0x58] sm:$0xff] %vm676_vm3, %v464_v51  ;;  %v770_v54 = vsel %vm676_vm3, %v464_v51, 0.0  ;;  %v897_v55 = vmul.f32 %v464_v51, %v464_v51  ;;  %v466_v56 = vpop.f32.mrb[23].mxu0  ;;  %720 = vst.msk [vmem:[%s2266_s2 + $0x158] sm:$0xff] %vm676_vm3, %v1808_v52  ;;  %v594_v58 = vpop.f32.mrb[23].mxu1 }
 0x128   :  { %v970_v59 = vadd.f32 %v969_v53, %v968_v42  ;;  %v771_v60 = vadd.f32 %v770_v54, %v769_v49 }
 0x129   :  { %v971_v61 = vsel %vm676_vm3, %v897_v55, 0.0 }
 0x12a   :  { %v972_v62 = vadd.f32 %v971_v61, %v970_v59 }
 0x12c   :  { %v469_v63 = vpop.f32.mrb[24].mxu0  ;;  %v1822_v0 = vpop.f32.mrb[24].mxu1 }
 0x12d   :  { %689 = vst.msk [vmem:[%s2266_s2 + $0x60] sm:$0xff] %vm676_vm3, %v469_v63  ;;  %v772_v1 = vsel %vm676_vm3, %v469_v63, 0.0  ;;  %v898_v2 = vmul.f32 %v469_v63, %v469_v63  ;;  %v471_v3 = vpop.f32.mrb[25].mxu0  ;;  %721 = vst.msk [vmem:[%s2266_s2 + $0x160] sm:$0xff] %vm676_vm3, %v1822_v0  ;;  %v599_v5 = vpop.f32.mrb[25].mxu1 }
 0x12e   :  { %v773_v6 = vadd.f32 %v772_v1, %v771_v60  ;;  %v472_v7 = vpop.f32.mrb[26].mxu0  ;;  %v1834_v8 = vpop.f32.mrb[26].mxu1 }
 0x12f   :  { %v973_v9 = vsel %vm676_vm3, %v898_v2, 0.0  ;;  %690 = vst.msk [vmem:[%s2266_s2 + $0x68] sm:$0xff] %vm676_vm3, %v472_v7  ;;  %v774_v10 = vsel %vm676_vm3, %v472_v7, 0.0  ;;  %v899_v12 = vmul.f32 %v472_v7, %v472_v7  ;;  %v474_v13 = vpop.f32.mrb[27].mxu0  ;;  %722 = vst.msk [vmem:[%s2266_s2 + $0x168] sm:$0xff] %vm676_vm3, %v1834_v8  ;;  %v602_v14 = vpop.f32.mrb[27].mxu1 }
 0x130   :  { %v974_v15 = vadd.f32 %v973_v9, %v972_v62  ;;  %v775_v17 = vadd.f32 %v774_v10, %v773_v6 }
 0x131   :  { %v975_v18 = vsel %vm676_vm3, %v899_v12, 0.0 }
 0x132   :  { %v976_v19 = vadd.f32 %v975_v18, %v974_v15 }
 0x134   :  { %v477_v20 = vpop.f32.mrb[28].mxu0  ;;  %v1848_v22 = vpop.f32.mrb[28].mxu1 }
 0x135   :  { %691 = vst.msk [vmem:[%s2266_s2 + $0x70] sm:$0xff] %vm676_vm3, %v477_v20  ;;  %v776_v23 = vsel %vm676_vm3, %v477_v20, 0.0  ;;  %v900_v25 = vmul.f32 %v477_v20, %v477_v20  ;;  %v479_v26 = vpop.f32.mrb[29].mxu0  ;;  %723 = vst.msk [vmem:[%s2266_s2 + $0x170] sm:$0xff] %vm676_vm3, %v1848_v22  ;;  %v607_v27 = vpop.f32.mrb[29].mxu1 }
 0x136   :  { %v777_v28 = vadd.f32 %v776_v23, %v775_v17  ;;  %v480_v29 = vpop.f32.mrb[30].mxu0  ;;  %v1860_v30 = vpop.f32.mrb[30].mxu1 }
 0x137   :  { %v977_v33 = vsel %vm676_vm3, %v900_v25, 0.0  ;;  %692 = vst.msk [vmem:[%s2266_s2 + $0x78] sm:$0xff] %vm676_vm3, %v480_v29  ;;  %v778_v34 = vsel %vm676_vm3, %v480_v29, 0.0  ;;  %v901_v35 = vmul.f32 %v480_v29, %v480_v29  ;;  %v482_v36 = vpop.f32.mrb[31].mxu0  ;;  %724 = vst.msk [vmem:[%s2266_s2 + $0x178] sm:$0xff] %vm676_vm3, %v1860_v30  ;;  %v610_v37 = vpop.f32.mrb[31].mxu1 }
 0x138   :  { %v978_v38 = vadd.f32 %v977_v33, %v976_v19  ;;  %v779_v40 = vadd.f32 %v778_v34, %v777_v28 }
 0x139   :  { %v979_v41 = vsel %vm676_vm3, %v901_v35, 0.0 }
 0x13a   :  { %v980_v42 = vadd.f32 %v979_v41, %v978_v38 }
 0x13c   :  { %v485_v45 = vpop.f32.mrb[32].mxu0  ;;  %v1882_v46 = vpop.f32.mrb[32].mxu1 }
 0x13d   :  { %693 = vst.msk [vmem:[%s2266_s2 + $0x80] sm:$0xff] %vm676_vm3, %v485_v45  ;;  %v780_v47 = vsel %vm676_vm3, %v485_v45, 0.0  ;;  %v902_v48 = vmul.f32 %v485_v45, %v485_v45  ;;  %v487_v49 = vpop.f32.mrb[33].mxu0  ;;  %725 = vst.msk [vmem:[%s2266_s2 + $0x180] sm:$0xff] %vm676_vm3, %v1882_v46  ;;  %v615_v51 = vpop.f32.mrb[33].mxu1 }
 0x13e   :  { %v781_v53 = vadd.f32 %v780_v47, %v779_v40  ;;  %v488_v54 = vpop.f32.mrb[34].mxu0  ;;  %v1894_v55 = vpop.f32.mrb[34].mxu1 }
 0x13f   :  { %v981_v56 = vsel %vm676_vm3, %v902_v48, 0.0  ;;  %694 = vst.msk [vmem:[%s2266_s2 + $0x88] sm:$0xff] %vm676_vm3, %v488_v54  ;;  %v782_v58 = vsel %vm676_vm3, %v488_v54, 0.0  ;;  %v903_v59 = vmul.f32 %v488_v54, %v488_v54  ;;  %v490_v60 = vpop.f32.mrb[35].mxu0  ;;  %726 = vst.msk [vmem:[%s2266_s2 + $0x188] sm:$0xff] %vm676_vm3, %v1894_v55  ;;  %v618_v61 = vpop.f32.mrb[35].mxu1 }
 0x140   :  { %v982_v62 = vadd.f32 %v981_v56, %v980_v42  ;;  %v783_v63 = vadd.f32 %v782_v58, %v781_v53 }
 0x141   :  { %v983_v1 = vsel %vm676_vm3, %v903_v59, 0.0 }
 0x142   :  { %v984_v2 = vadd.f32 %v983_v1, %v982_v62 }
 0x144   :  { %v493_v3 = vpop.f32.mrb[36].mxu0  ;;  %v1908_v5 = vpop.f32.mrb[36].mxu1 }
 0x145   :  { %695 = vst.msk [vmem:[%s2266_s2 + $0x90] sm:$0xff] %vm676_vm3, %v493_v3  ;;  %v784_v6 = vsel %vm676_vm3, %v493_v3, 0.0  ;;  %v904_v7 = vmul.f32 %v493_v3, %v493_v3  ;;  %v495_v9 = vpop.f32.mrb[37].mxu0  ;;  %727 = vst.msk [vmem:[%s2266_s2 + $0x190] sm:$0xff] %vm676_vm3, %v1908_v5  ;;  %v623_v10 = vpop.f32.mrb[37].mxu1 }
 0x146   :  { %v785_v12 = vadd.f32 %v784_v6, %v783_v63  ;;  %v496_v13 = vpop.f32.mrb[38].mxu0  ;;  %v1920_v14 = vpop.f32.mrb[38].mxu1 }
 0x147   :  { %v985_v15 = vsel %vm676_vm3, %v904_v7, 0.0  ;;  %696 = vst.msk [vmem:[%s2266_s2 + $0x98] sm:$0xff] %vm676_vm3, %v496_v13  ;;  %v786_v17 = vsel %vm676_vm3, %v496_v13, 0.0  ;;  %v905_v18 = vmul.f32 %v496_v13, %v496_v13  ;;  %v498_v19 = vpop.f32.mrb[39].mxu0  ;;  %728 = vst.msk [vmem:[%s2266_s2 + $0x198] sm:$0xff] %vm676_vm3, %v1920_v14  ;;  %v626_v20 = vpop.f32.mrb[39].mxu1 }
 0x148   :  { %v986_v23 = vadd.f32 %v985_v15, %v984_v2  ;;  %v787_v25 = vadd.f32 %v786_v17, %v785_v12 }
 0x149   :  { %v987_v26 = vsel %vm676_vm3, %v905_v18, 0.0 }
 0x14a   :  { %v988_v27 = vadd.f32 %v987_v26, %v986_v23 }
 0x14c   :  { %v501_v28 = vpop.f32.mrb[40].mxu0  ;;  %v1934_v29 = vpop.f32.mrb[40].mxu1 }
 0x14d   :  { %697 = vst.msk [vmem:[%s2266_s2 + $0xa0] sm:$0xff] %vm676_vm3, %v501_v28  ;;  %v788_v33 = vsel %vm676_vm3, %v501_v28, 0.0  ;;  %v906_v34 = vmul.f32 %v501_v28, %v501_v28  ;;  %v503_v35 = vpop.f32.mrb[41].mxu0  ;;  %729 = vst.msk [vmem:[%s2266_s2 + $0x1a0] sm:$0xff] %vm676_vm3, %v1934_v29  ;;  %v631_v36 = vpop.f32.mrb[41].mxu1 }
 0x14e   :  { %v789_v37 = vadd.f32 %v788_v33, %v787_v25  ;;  %v504_v38 = vpop.f32.mrb[42].mxu0  ;;  %v1946_v40 = vpop.f32.mrb[42].mxu1 }
 0x14f   :  { %v989_v41 = vsel %vm676_vm3, %v906_v34, 0.0  ;;  %698 = vst.msk [vmem:[%s2266_s2 + $0xa8] sm:$0xff] %vm676_vm3, %v504_v38  ;;  %v790_v42 = vsel %vm676_vm3, %v504_v38, 0.0  ;;  %v907_v43 = vmul.f32 %v504_v38, %v504_v38  ;;  %v506_v45 = vpop.f32.mrb[43].mxu0  ;;  %730 = vst.msk [vmem:[%s2266_s2 + $0x1a8] sm:$0xff] %vm676_vm3, %v1946_v40  ;;  %v634_v47 = vpop.f32.mrb[43].mxu1 }
 0x150   :  { %v990_v48 = vadd.f32 %v989_v41, %v988_v27  ;;  %v791_v49 = vadd.f32 %v790_v42, %v789_v37 }
 0x151   :  { %v991_v51 = vsel %vm676_vm3, %v907_v43, 0.0 }
 0x152   :  { %v992_v53 = vadd.f32 %v991_v51, %v990_v48 }
 0x154   :  { %v509_v54 = vpop.f32.mrb[44].mxu0  ;;  %v1960_v56 = vpop.f32.mrb[44].mxu1 }
 0x155   :  { %699 = vst.msk [vmem:[%s2266_s2 + $0xb0] sm:$0xff] %vm676_vm3, %v509_v54  ;;  %v792_v58 = vsel %vm676_vm3, %v509_v54, 0.0  ;;  %v908_v59 = vmul.f32 %v509_v54, %v509_v54  ;;  %v511_v60 = vpop.f32.mrb[45].mxu0  ;;  %731 = vst.msk [vmem:[%s2266_s2 + $0x1b0] sm:$0xff] %vm676_vm3, %v1960_v56  ;;  %v639_v61 = vpop.f32.mrb[45].mxu1 }
 0x156   :  { %v793_v62 = vadd.f32 %v792_v58, %v791_v49  ;;  %v512_v63 = vpop.f32.mrb[46].mxu0  ;;  %v1972_v1 = vpop.f32.mrb[46].mxu1 }
 0x157   :  { %v993_v2 = vsel %vm676_vm3, %v908_v59, 0.0  ;;  %700 = vst.msk [vmem:[%s2266_s2 + $0xb8] sm:$0xff] %vm676_vm3, %v512_v63  ;;  %v794_v3 = vsel %vm676_vm3, %v512_v63, 0.0  ;;  %v909_v6 = vmul.f32 %v512_v63, %v512_v63  ;;  %v514_v7 = vpop.f32.mrb[47].mxu0  ;;  %732 = vst.msk [vmem:[%s2266_s2 + $0x1b8] sm:$0xff] %vm676_vm3, %v1972_v1  ;;  %v642_v9 = vpop.f32.mrb[47].mxu1 }
 0x158   :  { %v994_v10 = vadd.f32 %v993_v2, %v992_v53  ;;  %v795_v12 = vadd.f32 %v794_v3, %v793_v62 }
 0x159   :  { %v995_v13 = vsel %vm676_vm3, %v909_v6, 0.0 }
 0x15a   :  { %v996_v15 = vadd.f32 %v995_v13, %v994_v10 }
 0x15c   :  { %v517_v17 = vpop.f32.mrb[48].mxu0  ;;  %v1986_v18 = vpop.f32.mrb[48].mxu1 }
 0x15d   :  { %701 = vst.msk [vmem:[%s2266_s2 + $0xc0] sm:$0xff] %vm676_vm3, %v517_v17  ;;  %v796_v19 = vsel %vm676_vm3, %v517_v17, 0.0  ;;  %v910_v20 = vmul.f32 %v517_v17, %v517_v17  ;;  %v519_v23 = vpop.f32.mrb[49].mxu0  ;;  %733 = vst.msk [vmem:[%s2266_s2 + $0x1c0] sm:$0xff] %vm676_vm3, %v1986_v18  ;;  %v647_v25 = vpop.f32.mrb[49].mxu1 }
 0x15e   :  { %v797_v26 = vadd.f32 %v796_v19, %v795_v12  ;;  %v520_v27 = vpop.f32.mrb[50].mxu0  ;;  %v1998_v28 = vpop.f32.mrb[50].mxu1 }
 0x15f   :  { %v997_v33 = vsel %vm676_vm3, %v910_v20, 0.0  ;;  %702 = vst.msk [vmem:[%s2266_s2 + $0xc8] sm:$0xff] %vm676_vm3, %v520_v27  ;;  %v798_v34 = vsel %vm676_vm3, %v520_v27, 0.0  ;;  %v911_v35 = vmul.f32 %v520_v27, %v520_v27  ;;  %v522_v36 = vpop.f32.mrb[51].mxu0  ;;  %734 = vst.msk [vmem:[%s2266_s2 + $0x1c8] sm:$0xff] %vm676_vm3, %v1998_v28  ;;  %v650_v37 = vpop.f32.mrb[51].mxu1 }
 0x160   :  { %v998_v38 = vadd.f32 %v997_v33, %v996_v15  ;;  %v799_v41 = vadd.f32 %v798_v34, %v797_v26 }
 0x161   :  { %v999_v42 = vsel %vm676_vm3, %v911_v35, 0.0 }
 0x162   :  { %v1000_v43 = vadd.f32 %v999_v42, %v998_v38 }
 0x164   :  { %v525_v45 = vpop.f32.mrb[52].mxu0  ;;  %v2012_v47 = vpop.f32.mrb[52].mxu1 }
 0x165   :  { %703 = vst.msk [vmem:[%s2266_s2 + $0xd0] sm:$0xff] %vm676_vm3, %v525_v45  ;;  %v800_v48 = vsel %vm676_vm3, %v525_v45, 0.0  ;;  %v912_v49 = vmul.f32 %v525_v45, %v525_v45  ;;  %v527_v51 = vpop.f32.mrb[53].mxu0  ;;  %735 = vst.msk [vmem:[%s2266_s2 + $0x1d0] sm:$0xff] %vm676_vm3, %v2012_v47  ;;  %v655_v53 = vpop.f32.mrb[53].mxu1 }
 0x166   :  { %v801_v54 = vadd.f32 %v800_v48, %v799_v41  ;;  %v528_v58 = vpop.f32.mrb[54].mxu0  ;;  %v2024_v59 = vpop.f32.mrb[54].mxu1 }
 0x167   :  { %v1001_v60 = vsel %vm676_vm3, %v912_v49, 0.0  ;;  %704 = vst.msk [vmem:[%s2266_s2 + $0xd8] sm:$0xff] %vm676_vm3, %v528_v58  ;;  %v802_v61 = vsel %vm676_vm3, %v528_v58, 0.0  ;;  %v913_v62 = vmul.f32 %v528_v58, %v528_v58  ;;  %v530_v63 = vpop.f32.mrb[55].mxu0  ;;  %736 = vst.msk [vmem:[%s2266_s2 + $0x1d8] sm:$0xff] %vm676_vm3, %v2024_v59  ;;  %v658_v2 = vpop.f32.mrb[55].mxu1 }
 0x168   :  { %v1002_v3 = vadd.f32 %v1001_v60, %v1000_v43  ;;  %v803_v6 = vadd.f32 %v802_v61, %v801_v54  ;;  %v918_v60 = vmul.f32 %v1666_v16, %v1666_v16 }
 0x169   :  { %v1003_v7 = vsel %vm676_vm3, %v913_v62, 0.0 }
 0x16a   :  { %v1004_v9 = vadd.f32 %v1003_v7, %v1002_v3 }
 0x16c   :  { %v533_v10 = vpop.f32.mrb[56].mxu0  ;;  %v2038_v12 = vpop.f32.mrb[56].mxu1 }
 0x16d   :  { %705 = vst.msk [vmem:[%s2266_s2 + $0xe0] sm:$0xff] %vm676_vm3, %v533_v10  ;;  %v804_v13 = vsel %vm676_vm3, %v533_v10, 0.0  ;;  %v914_v15 = vmul.f32 %v533_v10, %v533_v10  ;;  %v535_v17 = vpop.f32.mrb[57].mxu0  ;;  %737 = vst.msk [vmem:[%s2266_s2 + $0x1e0] sm:$0xff] %vm676_vm3, %v2038_v12  ;;  %v663_v19 = vpop.f32.mrb[57].mxu1  ;;  %v919_v10 = vmul.f32 %v1677_v21, %v1677_v21 }
 0x16e   :  { %v805_v20 = vadd.f32 %v804_v13, %v803_v6  ;;  %v536_v23 = vpop.f32.mrb[58].mxu0  ;;  %v2050_v25 = vpop.f32.mrb[58].mxu1  ;;  %v1013_v19 = vsel %vm676_vm3, %v918_v60, 0.0 }
 0x16f   :  { %v1005_v26 = vsel %vm676_vm3, %v914_v15, 0.0  ;;  %706 = vst.msk [vmem:[%s2266_s2 + $0xe8] sm:$0xff] %vm676_vm3, %v536_v23  ;;  %v806_v27 = vsel %vm676_vm3, %v536_v23, 0.0  ;;  %v915_v33 = vmul.f32 %v536_v23, %v536_v23  ;;  %v538_v34 = vpop.f32.mrb[59].mxu0  ;;  %738 = vst.msk [vmem:[%s2266_s2 + $0x1e8] sm:$0xff] %vm676_vm3, %v2050_v25  ;;  %v666_v35 = vpop.f32.mrb[59].mxu1  ;;  %v920_v23 = vmul.f32 %v1692_v32, %v1692_v32 }
 0x170   :  { %v1006_v36 = vadd.f32 %v1005_v26, %v1004_v9  ;;  %v807_v37 = vadd.f32 %v806_v27, %v805_v20  ;;  %v812_v9 = vsel %vm676_vm3, %v1666_v16, 0.0  ;;  %v814_v20 = vsel %vm676_vm3, %v1677_v21, 0.0 }
 0x171   :  { %v1007_v38 = vsel %vm676_vm3, %v915_v33, 0.0  ;;  %v1015_v33 = vsel %vm676_vm3, %v919_v10, 0.0  ;;  %v816_v16 = vsel %vm676_vm3, %v1692_v32, 0.0  ;;  %v921_v34 = vmul.f32 %v1704_v39, %v1704_v39 }
 0x172   :  { %v1008_v41 = vadd.f32 %v1007_v38, %v1006_v36  ;;  %v818_v21 = vsel %vm676_vm3, %v1704_v39, 0.0  ;;  %v922_v38 = vmul.f32 %v1718_v50, %v1718_v50  ;;  %v820_v32 = vsel %vm676_vm3, %v1718_v50, 0.0 }
 0x173   :  { %v822_v39 = vsel %vm676_vm3, %v1730_v57, 0.0  ;;  %v824_v50 = vsel %vm676_vm3, %v1744_v4, 0.0 }
 0x174   :  { %v541_v42 = vpop.f32.mrb[60].mxu0  ;;  %v2064_v43 = vpop.f32.mrb[60].mxu1 }
 0x175   :  { %707 = vst.msk [vmem:[%s2266_s2 + $0xf0] sm:$0xff] %vm676_vm3, %v541_v42  ;;  %v808_v45 = vsel %vm676_vm3, %v541_v42, 0.0  ;;  %v916_v48 = vmul.f32 %v541_v42, %v541_v42  ;;  %v543_v49 = vpop.f32.mrb[61].mxu0  ;;  %739 = vst.msk [vmem:[%s2266_s2 + $0x1f0] sm:$0xff] %vm676_vm3, %v2064_v43  ;;  %v671_v51 = vpop.f32.mrb[61].mxu1 }
 0x176   :  { %v809_v53 = vadd.f32 %v808_v45, %v807_v37  ;;  %v544_v54 = vpop.f32.mrb[62].mxu0  ;;  %v2076_v58 = vpop.f32.mrb[62].mxu1  ;;  %v1017_v37 = vsel %vm676_vm3, %v920_v23, 0.0  ;;  %v1019_v45 = vsel %vm676_vm3, %v921_v34, 0.0  ;;  %v928_v23 = vmul.f32 %v1796_v44, %v1796_v44 }
 0x177   :  { %v1009_v61 = vsel %vm676_vm3, %v916_v48, 0.0  ;;  %708 = vst.msk [vmem:[%s2266_s2 + $0xf8] sm:$0xff] %vm676_vm3, %v544_v54  ;;  %v810_v62 = vsel %vm676_vm3, %v544_v54, 0.0  ;;  %v917_v63 = vmul.f32 %v544_v54, %v544_v54  ;;  %v546_v2 = vpop.f32.mrb[63].mxu0  ;;  %740 = vst.msk [vmem:[%s2266_s2 + $0x1f8] sm:$0xff] %vm676_vm3, %v2076_v58  ;;  %v674_v3 = vpop.f32.mrb[63].mxu1  ;;  %v923_v48 = vmul.f32 %v1730_v57, %v1730_v57 }
 0x178   :  { %v1010_v6 = vadd.f32 %v1009_v61, %v1008_v41  ;;  %v811_v7 = vadd.f32 %v810_v62, %v809_v53  ;;  %v1021_v53 = vsel %vm676_vm3, %v922_v38, 0.0  ;;  %v924_v54 = vmul.f32 %v1744_v4, %v1744_v4 }
 0x179   :  { %v1011_v13 = vsel %vm676_vm3, %v917_v63, 0.0  ;;  %v1023_v62 = vsel %vm676_vm3, %v923_v48, 0.0  ;;  %v925_v63 = vmul.f32 %v1756_v11, %v1756_v11  ;;  %v826_v57 = vsel %vm676_vm3, %v1756_v11, 0.0 }
 0x17a   :  { %v813_v15 = vadd.f32 %v812_v9, %v811_v7  ;;  %v1012_v17 = vadd.f32 %v1011_v13, %v1010_v6  ;;  %v1025_v6 = vsel %vm676_vm3, %v924_v54, 0.0  ;;  %v926_v7 = vmul.f32 %v1770_v24, %v1770_v24 }
 0x17b   :  { %v1027_v13 = vsel %vm676_vm3, %v925_v63, 0.0  ;;  %v828_v4 = vsel %vm676_vm3, %v1770_v24, 0.0  ;;  %v830_v11 = vsel %vm676_vm3, %v1782_v31, 0.0  ;;  %v832_v24 = vsel %vm676_vm3, %v1796_v44, 0.0 }
 0x17c   :  { %v815_v26 = vadd.f32 %v814_v20, %v813_v15  ;;  %v1014_v27 = vadd.f32 %v1013_v19, %v1012_v17  ;;  %v927_v15 = vmul.f32 %v1782_v31, %v1782_v31  ;;  %v1029_v20 = vsel %vm676_vm3, %v926_v7, 0.0 }
 0x17d   :  { %v834_v31 = vsel %vm676_vm3, %v1808_v52, 0.0  ;;  %v836_v44 = vsel %vm676_vm3, %v1822_v0, 0.0  ;;  %v933_v54 = vmul.f32 %v1860_v30, %v1860_v30 }
 0x17e   :  { %v817_v35 = vadd.f32 %v816_v16, %v815_v26  ;;  %v1016_v36 = vadd.f32 %v1015_v33, %v1014_v27  ;;  %v1031_v33 = vsel %vm676_vm3, %v927_v15, 0.0  ;;  %v929_v16 = vmul.f32 %v1808_v52, %v1808_v52 }
 0x17f   :  { %v838_v52 = vsel %vm676_vm3, %v1834_v8, 0.0 }
 0x180   :  { %v819_v41 = vadd.f32 %v818_v21, %v817_v35  ;;  %v1018_v42 = vadd.f32 %v1017_v37, %v1016_v36  ;;  %v1033_v36 = vsel %vm676_vm3, %v928_v23, 0.0  ;;  %v930_v37 = vmul.f32 %v1822_v0, %v1822_v0 }
 0x181   :  { %v840_v0 = vsel %vm676_vm3, %v1848_v22, 0.0  ;;  %v938_v23 = vmul.f32 %v1934_v29, %v1934_v29 }
 0x182   :  { %v821_v49 = vadd.f32 %v820_v32, %v819_v41  ;;  %v1020_v51 = vadd.f32 %v1019_v45, %v1018_v42  ;;  %v1035_v41 = vsel %vm676_vm3, %v929_v16, 0.0  ;;  %v931_v42 = vmul.f32 %v1834_v8, %v1834_v8 }
 0x183   :  { %v1037_v48 = vsel %vm676_vm3, %v930_v37, 0.0  ;;  %v842_v8 = vsel %vm676_vm3, %v1860_v30, 0.0  ;;  %v846_v30 = vsel %vm676_vm3, %v1894_v55, 0.0 }
 0x184   :  { %v823_v60 = vadd.f32 %v822_v39, %v821_v49  ;;  %v1022_v61 = vadd.f32 %v1021_v53, %v1020_v51  ;;  %v932_v49 = vmul.f32 %v1848_v22, %v1848_v22  ;;  %v1039_v39 = vsel %vm676_vm3, %v931_v42, 0.0 }
 0x185   :  { %v844_v22 = vsel %vm676_vm3, %v1882_v46, 0.0 }
 0x186   :  { %v825_v2 = vadd.f32 %v824_v50, %v823_v60  ;;  %v1024_v3 = vadd.f32 %v1023_v62, %v1022_v61  ;;  %v1041_v62 = vsel %vm676_vm3, %v932_v49, 0.0  ;;  %v934_v50 = vmul.f32 %v1882_v46, %v1882_v46 }
 0x187   :  { %v848_v46 = vsel %vm676_vm3, %v1908_v5, 0.0  ;;  %v943_v49 = vmul.f32 %v1998_v28, %v1998_v28 }
 0x188   :  { %v827_v9 = vadd.f32 %v826_v57, %v825_v2  ;;  %v1026_v10 = vadd.f32 %v1025_v6, %v1024_v3  ;;  %v1043_v3 = vsel %vm676_vm3, %v933_v54, 0.0  ;;  %v935_v6 = vmul.f32 %v1894_v55, %v1894_v55 }
 0x189   :  { %v850_v55 = vsel %vm676_vm3, %v1920_v14, 0.0 }
 0x18a   :  { %v1028_v17 = vadd.f32 %v1027_v13, %v1026_v10  ;;  %v829_v19 = vadd.f32 %v828_v4, %v827_v9  ;;  %v1045_v9 = vsel %vm676_vm3, %v934_v50, 0.0  ;;  %v936_v10 = vmul.f32 %v1908_v5, %v1908_v5 }
 0x18b   :  { %v1047_v15 = vsel %vm676_vm3, %v935_v6, 0.0  ;;  %v852_v5 = vsel %vm676_vm3, %v1934_v29, 0.0  ;;  %v856_v29 = vsel %vm676_vm3, %v1960_v56, 0.0 }
 0x18c   :  { %v831_v26 = vadd.f32 %v830_v11, %v829_v19  ;;  %v1030_v27 = vadd.f32 %v1029_v20, %v1028_v17  ;;  %v937_v17 = vmul.f32 %v1920_v14, %v1920_v14  ;;  %v1049_v11 = vsel %vm676_vm3, %v936_v10, 0.0 }
 0x18d   :  { %v854_v14 = vsel %vm676_vm3, %v1946_v40, 0.0  ;;  %v870_v10 = vsel %vm676_vm3, %v2050_v25, 0.0 }
 0x18e   :  { %v833_v34 = vadd.f32 %v832_v24, %v831_v26  ;;  %v1032_v35 = vadd.f32 %v1031_v33, %v1030_v27  ;;  %v1051_v33 = vsel %vm676_vm3, %v937_v17, 0.0  ;;  %v939_v24 = vmul.f32 %v1946_v40, %v1946_v40 }
 0x18f   :  { %v858_v40 = vsel %vm676_vm3, %v1972_v1, 0.0  ;;  %v949_v17 = vmul.f32 %v2076_v58, %v2076_v58 }
 0x190   :  { %v835_v21 = vadd.f32 %v834_v31, %v833_v34  ;;  %v1034_v38 = vadd.f32 %v1033_v36, %v1032_v35  ;;  %v1053_v35 = vsel %vm676_vm3, %v938_v23, 0.0  ;;  %v940_v36 = vmul.f32 %v1960_v56, %v1960_v56 }
 0x191   :  { %v860_v56 = vsel %vm676_vm3, %v1986_v18, 0.0 }
 0x192   :  { %v837_v45 = vadd.f32 %v836_v44, %v835_v21  ;;  %v1036_v32 = vadd.f32 %v1035_v41, %v1034_v38  ;;  %v1055_v21 = vsel %vm676_vm3, %v939_v24, 0.0  ;;  %v941_v38 = vmul.f32 %v1972_v1, %v1972_v1 }
 0x193   :  { %v1057_v42 = vsel %vm676_vm3, %v940_v36, 0.0  ;;  %v862_v1 = vsel %vm676_vm3, %v1998_v28, 0.0  ;;  %v866_v28 = vsel %vm676_vm3, %v2024_v59, 0.0  ;;  %v748_v36 = vld [vmem:[%s2267_s3] sm:$0x1] }
 0x194   :  { %v839_v51 = vadd.f32 %v838_v52, %v837_v45  ;;  %v1038_v53 = vadd.f32 %v1037_v48, %v1036_v32  ;;  %v942_v45 = vmul.f32 %v1986_v18, %v1986_v18  ;;  %v1059_v52 = vsel %vm676_vm3, %v941_v38, 0.0 }
 0x195   :  { %v864_v18 = vsel %vm676_vm3, %v2012_v47, 0.0 }
 0x196   :  { %v841_v60 = vadd.f32 %v840_v0, %v839_v51  ;;  %v1040_v61 = vadd.f32 %v1039_v39, %v1038_v53  ;;  %v1061_v39 = vsel %vm676_vm3, %v942_v45, 0.0  ;;  %v944_v0 = vmul.f32 %v2012_v47, %v2012_v47 }
 0x197   :  { %v868_v47 = vsel %vm676_vm3, %v2038_v12, 0.0 }
 0x198   :  { %v843_v63 = vadd.f32 %v842_v8, %v841_v60  ;;  %v1042_v2 = vadd.f32 %v1041_v62, %v1040_v61  ;;  %v1063_v61 = vsel %vm676_vm3, %v943_v49, 0.0  ;;  %v945_v62 = vmul.f32 %v2024_v59, %v2024_v59 }
 0x19a   :  { %v845_v57 = vadd.f32 %v844_v22, %v843_v63  ;;  %v1044_v7 = vadd.f32 %v1043_v3, %v1042_v2  ;;  %v1065_v63 = vsel %vm676_vm3, %v944_v0, 0.0  ;;  %v946_v2 = vmul.f32 %v2038_v12, %v2038_v12 }
 0x19b   :  { %v1067_v6 = vsel %vm676_vm3, %v945_v62, 0.0 }
 0x19c   :  { %v1046_v13 = vadd.f32 %v1045_v9, %v1044_v7  ;;  %v847_v4 = vadd.f32 %v846_v30, %v845_v57  ;;  %v947_v57 = vmul.f32 %v2050_v25, %v2050_v25  ;;  %v948_v7 = vmul.f32 %v2064_v43, %v2064_v43 }
 0x19d   :  { %v1069_v59 = vsel %vm676_vm3, %v946_v2, 0.0  ;;  %v1075_v25 = vsel %vm676_vm3, %v949_v17, 0.0 }
 0x19e   :  { %v1048_v19 = vadd.f32 %v1047_v15, %v1046_v13  ;;  %v849_v20 = vadd.f32 %v848_v46, %v847_v4  ;;  %v872_v13 = vsel %vm676_vm3, %v2064_v43, 0.0  ;;  %v1071_v12 = vsel %vm676_vm3, %v947_v57, 0.0 }
 0x19f   :  { %v1073_v46 = vsel %vm676_vm3, %v948_v7, 0.0 }
 0x1a0   :  { %v1050_v26 = vadd.f32 %v1049_v11, %v1048_v19  ;;  %v851_v27 = vadd.f32 %v850_v55, %v849_v20  ;;  %v874_v11 = vsel %vm676_vm3, %v2076_v58, 0.0 }
 0x1a2   :  { %v1052_v16 = vadd.f32 %v1051_v33, %v1050_v26  ;;  %v853_v34 = vadd.f32 %v852_v5, %v851_v27 }
 0x1a4   :  { %v1054_v31 = vadd.f32 %v1053_v35, %v1052_v16  ;;  %v855_v37 = vadd.f32 %v854_v14, %v853_v34 }
 0x1a6   :  { %v1056_v41 = vadd.f32 %v1055_v21, %v1054_v31  ;;  %v857_v44 = vadd.f32 %v856_v29, %v855_v37  ;;  %v885_v37 = vld [vmem:[%s2268_s4] sm:$0x1] }
 0x1a8   :  { %v1058_v32 = vadd.f32 %v1057_v42, %v1056_v41  ;;  %v859_v48 = vadd.f32 %v858_v40, %v857_v44 }
 0x1aa   :  { %v1060_v51 = vadd.f32 %v1059_v52, %v1058_v32  ;;  %v861_v53 = vadd.f32 %v860_v56, %v859_v48 }
 0x1ac   :  { %v1062_v54 = vadd.f32 %v1061_v39, %v1060_v51  ;;  %v863_v60 = vadd.f32 %v862_v1, %v861_v53 }
 0x1ae   :  { %v1064_v8 = vadd.f32 %v1063_v61, %v1062_v54  ;;  %v865_v50 = vadd.f32 %v864_v18, %v863_v60 }
 0x1b0   :  { %v1066_v3 = vadd.f32 %v1065_v63, %v1064_v8  ;;  %v867_v22 = vadd.f32 %v866_v28, %v865_v50 }
 0x1b2   :  { %v1068_v9 = vadd.f32 %v1067_v6, %v1066_v3  ;;  %v869_v30 = vadd.f32 %v868_v47, %v867_v22 }
 0x1b4   :  { %v1070_v4 = vadd.f32 %v1069_v59, %v1068_v9  ;;  %v871_v15 = vadd.f32 %v870_v10, %v869_v30 }
 0x1b6   :  { %v1072_v19 = vadd.f32 %v1071_v12, %v1070_v4  ;;  %v873_v20 = vadd.f32 %v872_v13, %v871_v15 }
 0x1b8   :  { %v1074_v55 = vadd.f32 %v1073_v46, %v1072_v19  ;;  %v875_v23 = vadd.f32 %v874_v11, %v873_v20 }
 0x1ba   :  { %v876_v26 = vrot.slane %v875_v23, 4  ;;  %v1076_v43 = vadd.f32 %v1075_v25, %v1074_v55 }
 0x1bc   :  { %v877_v27 = vadd.f32 %v876_v26, %v875_v23  ;;  %v1077_v33 = vrot.slane %v1076_v43, 4 }
 0x1be   :  { %v878_v5 = vrot.slane %v877_v27, 2  ;;  %v1078_v24 = vadd.f32 %v1077_v33, %v1076_v43 }
 0x1c0   :  { %v879_v16 = vadd.f32 %v878_v5, %v877_v27  ;;  %v1079_v34 = vrot.slane %v1078_v24, 2 }
 0x1c2   :  { %v880_v35 = vrot.slane %v879_v16, 1  ;;  %v1080_v14 = vadd.f32 %v1079_v34, %v1078_v24 }
 0x1c4   :  { %v881_v31 = vadd.f32 %v880_v35, %v879_v16  ;;  %v1081_v58 = vrot.slane %v1080_v14, 1 }
 0x1c6   :  { %v882_v21 = vadd.f32 %v881_v31, %v748_v36  ;;  %v1082_v29 = vadd.f32 %v1081_v58, %v1080_v14 }
 0x1c8   :  { %884 = vst.msk [vmem:[%s2267_s3] sm:$0x1] %vm745_vm4, %v882_v21  ;;  %v1083_v38 = vadd.f32 %v1082_v29, %v885_v37 }
 0x1ca   :  { %1084 = vst.msk [vmem:[%s2268_s4] sm:$0x1] %vm745_vm4, %v1083_v38 }

// kernel: densenet_forward.22
= control target key start
LH: loop header
LB: loop body
LE: loop exit
PB: predicated region body
PF: predicated region fallthrough
CT: control target
= control target key end

     0   :  { %vm115_vm0 = vcmask 130048   ;;  %vm258_vm1 = vcmask 253952   ;;  %vm237_vm2 = vcmask 261120   ;;  %s667_s3 = inlined_call_operand.vmem [shape: bf16[16,32], index: 3, kind: input, shape index: {}]   ;;  %s668_s0 = inlined_call_operand.vmem [shape: f32[1,16], index: 0, kind: input, shape index: {}]   ;;  %s669_s1 = inlined_call_operand.vmem [shape: f32[1,16], index: 1, kind: input, shape index: {}]   ;;  %s670_s2 = inlined_call_operand.vmem [shape: f32[128,16], index: 2, kind: input, shape index: {}]   ;;  %s671_s5 = inlined_call_operand.vmem [shape: f32[1,32], index: 5, kind: output, shape index: {1}]   ;;  %s672_s6 = inlined_call_operand.vmem [shape: f32[1,32], index: 6, kind: output, shape index: {2}]   ;;  %s673_s4 = inlined_call_operand.vmem [shape: f32[128,32], index: 4, kind: output, shape index: {0}]  }
   0x1   :  { %v411_v0 = vld [vmem:[%s667_s3] sm:$0xff]   ;;  %v22_v2 = vld [vmem:[%s670_s2 + $0x8] sm:$0xff]  ;;  %v23_v7 = vld [vmem:[%s670_s2 + $0x10] sm:$0xff] }
   0x2   :  { %v21_v1 = vld [vmem:[%s670_s2] sm:$0xff]  ;;  %390 = vmatprep.subr.bf16.mxu0 %v411_v0  ;;  %v24_v8 = vld [vmem:[%s670_s2 + $0x18] sm:$0xff]  ;;  %408 = vmatprep.subr.bf16.mxu1 %v411_v0  ;;  %v26_v12 = vld [vmem:[%s670_s2 + $0x28] sm:$0xff] }
   0x3   :  { %v460_v3 = vld [vmem:[%s668_s0] ss:$0 sm:$0xff]  ;;  %391 = vmatpush3.bf16.msra.mxu0 %v411_v0  ;;  %v27_v13 = vld [vmem:[%s670_s2 + $0x30] sm:$0xff]  ;;  %409 = vmatpush3.bf16.msra.mxu1 %v411_v0  ;;  %v28_v18 = vld [vmem:[%s670_s2 + $0x38] sm:$0xff] }
   0x4   :  { %v44_v4 = vmul.f32 %v460_v3, %v21_v1  ;;  %v45_v5 = vmul.f32 %v460_v3, %v22_v2  ;;  %v467_v6 = vld [vmem:[%s669_s1] ss:$0 sm:$0xff]  ;;  %v46_v9 = vmul.f32 %v460_v3, %v23_v7  ;;  %v47_v10 = vmul.f32 %v460_v3, %v24_v8  ;;  %v30_v28 = vld [vmem:[%s670_s2 + $0x48] sm:$0xff]  ;;  %v31_v33 = vld [vmem:[%s670_s2 + $0x50] sm:$0xff] }
   0x5   :  { %v25_v11 = vld [vmem:[%s670_s2 + $0x20] sm:$0xff]  ;;  %v49_v17 = vmul.f32 %v460_v3, %v26_v12  ;;  %v50_v21 = vmul.f32 %v460_v3, %v27_v13  ;;  %v51_v22 = vmul.f32 %v460_v3, %v28_v18  ;;  %v32_v34 = vld [vmem:[%s670_s2 + $0x58] sm:$0xff]  ;;  %v34_v40 = vld [vmem:[%s670_s2 + $0x68] sm:$0xff]  ;;  %v53_v44 = vmul.f32 %v460_v3, %v30_v28 }
   0x6   :  { %v67_v14 = vadd.f32 %v467_v6, %v44_v4  ;;  %v68_v15 = vadd.f32 %v467_v6, %v45_v5  ;;  %v48_v16 = vmul.f32 %v460_v3, %v25_v11  ;;  %v69_v19 = vadd.f32 %v467_v6, %v46_v9  ;;  %v29_v23 = vld [vmem:[%s670_s2 + $0x40] sm:$0xff]  ;;  %v35_v45 = vld [vmem:[%s670_s2 + $0x70] sm:$0xff]  ;;  %v36_v50 = vld [vmem:[%s670_s2 + $0x78] sm:$0xff] }
   0x7   :  { %v70_v20 = vadd.f32 %v467_v6, %v47_v10  ;;  %v72_v27 = vadd.f32 %v467_v6, %v49_v17  ;;  %v73_v31 = vadd.f32 %v467_v6, %v50_v21  ;;  %v74_v32 = vadd.f32 %v467_v6, %v51_v22  ;;  %v33_v39 = vld [vmem:[%s670_s2 + $0x60] sm:$0xff] }
   0x8   :  { %v83_v24 = vmax.f32 %v67_v14, 0.0  ;;  %v84_v25 = vmax.f32 %v68_v15, 0.0  ;;  %v71_v26 = vadd.f32 %v467_v6, %v48_v16  ;;  %v85_v29 = vmax.f32 %v69_v19, 0.0 }
   0x9   :  { %v86_v30 = vmax.f32 %v70_v20, 0.0  ;;  %v88_v37 = vmax.f32 %v72_v27, 0.0  ;;  %v52_v38 = vmul.f32 %v460_v3, %v29_v23  ;;  %v89_v42 = vmax.f32 %v73_v31, 0.0 }
   0xa   :  { %v99_v35 = vpack.c.bf16 %v84_v25, %v83_v24  ;;  %v87_v36 = vmax.f32 %v71_v26, 0.0  ;;  %v90_v43 = vmax.f32 %v74_v32, 0.0  ;;  %v54_v48 = vmul.f32 %v460_v3, %v31_v33 }
   0xb   :  { %v100_v41 = vpack.c.bf16 %v86_v30, %v85_v29  ;;  %v75_v47 = vadd.f32 %v467_v6, %v52_v38  ;;  %v55_v49 = vmul.f32 %v460_v3, %v32_v34  ;;  %v76_v51 = vadd.f32 %v467_v6, %v53_v44 }
   0xc   :  { %392 = vmatprep.mubr.msk.bf16.mxu0 %vm115_vm0, %v99_v35  ;;  %v101_v46 = vpack.c.bf16 %v88_v37, %v87_v36  ;;  %v56_v52 = vmul.f32 %v460_v3, %v33_v39  ;;  %v57_v53 = vmul.f32 %v460_v3, %v34_v40  ;;  %v77_v55 = vadd.f32 %v467_v6, %v54_v48 }
   0xd   :  { %393 = vmatmul.mubr.msk.bf16.vlgmr.msra.gmra.mrb[0].mxu0 %vm115_vm0, %v100_v41  ;;  %v91_v54 = vmax.f32 %v75_v47, 0.0  ;;  %v78_v56 = vadd.f32 %v467_v6, %v55_v49  ;;  %v58_v57 = vmul.f32 %v460_v3, %v35_v45  ;;  %v92_v58 = vmax.f32 %v76_v51, 0.0 }
   0xe   :  { %396 = vmatprep.mubr.msk.bf16.mxu0 %vm115_vm0, %v101_v46  ;;  %v79_v59 = vadd.f32 %v467_v6, %v56_v52  ;;  %v80_v60 = vadd.f32 %v467_v6, %v57_v53  ;;  %v59_v61 = vmul.f32 %v460_v3, %v36_v50  ;;  %v102_v62 = vpack.c.bf16 %v90_v43, %v89_v42 }
   0xf   :  { %v93_v63 = vmax.f32 %v77_v55, 0.0  ;;  %v94_v0 = vmax.f32 %v78_v56, 0.0  ;;  %v81_v1 = vadd.f32 %v467_v6, %v58_v57  ;;  %v103_v2 = vpack.c.bf16 %v92_v58, %v91_v54 }
  0x10   :  { %v95_v4 = vmax.f32 %v79_v59, 0.0  ;;  %v96_v5 = vmax.f32 %v80_v60, 0.0  ;;  %v82_v7 = vadd.f32 %v467_v6, %v59_v61  ;;  %v412_v12 = vmov 0.0  }
  0x11   :  { %v104_v8 = vpack.c.bf16 %v94_v0, %v93_v63  ;;  %400 = vmatprep.mubr.msk.bf16.mxu1 %vm115_vm0, %v103_v2  ;;  %v97_v10 = vmax.f32 %v81_v1, 0.0  ;;  %259 = vst.msk [vmem:[%s671_s5] sm:$0x1] %vm258_vm1, %v412_v12  ;;  %260 = vst.msk [vmem:[%s672_s6] sm:$0x1] %vm258_vm1, %v412_v12 }
  0x12   :  { %v105_v9 = vpack.c.bf16 %v96_v5, %v95_v4  ;;  %v98_v11 = vmax.f32 %v82_v7, 0.0 }
  0x13   :  { %401 = vmatmul.mubr.msk.bf16.vlgmr.msra.gmra.mrb[0].mxu1 %vm115_vm0, %v104_v8 }
  0x14   :  { %404 = vmatprep.mubr.msk.bf16.mxu1 %vm115_vm0, %v105_v9  ;;  %v106_v3 = vpack.c.bf16 %v98_v11, %v97_v10 }
  0x15   :  { %397 = vmatmul.mubr.msk.bf16.gmra.mrb[4].mxu0 %vm115_vm0, %v102_v62 }
  0x1b   :  { %405 = vmatmul.mubr.msk.bf16.gmra.mrb[4].mxu1 %vm115_vm0, %v106_v3 }
  0xe0   :  { %v394_v6 = vpop.f32.mrb[0].mxu0 }
  0xe1   :  { %240 = vst.msk [vmem:[%s673_s4 + $0x10] sm:$0xff] %vm237_vm2, %v394_v6  ;;  %v174_v13 = vpop.f32.mrb[1].mxu0  ;;  %v305_v17 = vmul.f32 %v394_v6, %v394_v6  ;;  %v265_v22 = vsel %vm237_vm2, %v394_v6, 0.0 }
  0xe2   :  { %238 = vst.msk [vmem:[%s673_s4] sm:$0xff] %vm237_vm2, %v174_v13  ;;  %v303_v14 = vmul.f32 %v174_v13, %v174_v13  ;;  %v395_v15 = vpop.f32.mrb[2].mxu0  ;;  %v262_v18 = vsel %vm237_vm2, %v174_v13, 0.0 }
  0xe3   :  { %241 = vst.msk [vmem:[%s673_s4 + $0x18] sm:$0xff] %vm237_vm2, %v395_v15  ;;  %v177_v16 = vpop.f32.mrb[3].mxu0  ;;  %v306_v24 = vmul.f32 %v395_v15, %v395_v15  ;;  %v322_v29 = vsel %vm237_vm2, %v305_v17, 0.0  ;;  %v267_v30 = vsel %vm237_vm2, %v395_v15, 0.0 }
  0xe4   :  { %239 = vst.msk [vmem:[%s673_s4 + $0x8] sm:$0xff] %vm237_vm2, %v177_v16  ;;  %v263_v19 = vsel %vm237_vm2, %v177_v16, 0.0  ;;  %v304_v20 = vmul.f32 %v177_v16, %v177_v16  ;;  %v319_v23 = vsel %vm237_vm2, %v303_v14, 0.0 }
  0xe5   :  { %v264_v21 = vadd.f32 %v263_v19, %v262_v18  ;;  %v324_v37 = vsel %vm237_vm2, %v306_v24, 0.0 }
  0xe6   :  { %v320_v25 = vsel %vm237_vm2, %v304_v20, 0.0  ;;  %v402_v28 = vpop.f32.mrb[0].mxu1 }
  0xe7   :  { %v266_v26 = vadd.f32 %v265_v22, %v264_v21  ;;  %v321_v27 = vadd.f32 %v320_v25, %v319_v23  ;;  %248 = vst.msk [vmem:[%s673_s4 + $0x50] sm:$0xff] %vm237_vm2, %v402_v28  ;;  %v206_v32 = vpop.f32.mrb[1].mxu1  ;;  %v313_v9 = vmul.f32 %v402_v28, %v402_v28  ;;  %v281_v12 = vsel %vm237_vm2, %v402_v28, 0.0 }
  0xe8   :  { %v398_v31 = vpop.f32.mrb[4].mxu0  ;;  %246 = vst.msk [vmem:[%s673_s4 + $0x40] sm:$0xff] %vm237_vm2, %v206_v32  ;;  %v403_v36 = vpop.f32.mrb[2].mxu1  ;;  %v311_v54 = vmul.f32 %v206_v32, %v206_v32  ;;  %v277_v60 = vsel %vm237_vm2, %v206_v32, 0.0 }
  0xe9   :  { %v323_v33 = vadd.f32 %v322_v29, %v321_v27  ;;  %244 = vst.msk [vmem:[%s673_s4 + $0x30] sm:$0xff] %vm237_vm2, %v398_v31  ;;  %v190_v34 = vpop.f32.mrb[5].mxu0  ;;  %v268_v35 = vadd.f32 %v267_v30, %v266_v26  ;;  %249 = vst.msk [vmem:[%s673_s4 + $0x58] sm:$0xff] %vm237_vm2, %v403_v36  ;;  %v209_v41 = vpop.f32.mrb[3].mxu1  ;;  %v309_v45 = vmul.f32 %v398_v31, %v398_v31  ;;  %v273_v51 = vsel %vm237_vm2, %v398_v31, 0.0 }
  0xea   :  { %242 = vst.msk [vmem:[%s673_s4 + $0x20] sm:$0xff] %vm237_vm2, %v190_v34  ;;  %v269_v38 = vsel %vm237_vm2, %v190_v34, 0.0  ;;  %v307_v39 = vmul.f32 %v190_v34, %v190_v34  ;;  %v399_v40 = vpop.f32.mrb[6].mxu0  ;;  %247 = vst.msk [vmem:[%s673_s4 + $0x48] sm:$0xff] %vm237_vm2, %v209_v41  ;;  %v334_v2 = vsel %vm237_vm2, %v311_v54, 0.0  ;;  %v312_v4 = vmul.f32 %v209_v41, %v209_v41 }
  0xeb   :  { %v270_v42 = vadd.f32 %v269_v38, %v268_v35  ;;  %v325_v43 = vadd.f32 %v324_v37, %v323_v33  ;;  %245 = vst.msk [vmem:[%s673_s4 + $0x38] sm:$0xff] %vm237_vm2, %v399_v40  ;;  %v193_v44 = vpop.f32.mrb[7].mxu0  ;;  %v310_v52 = vmul.f32 %v399_v40, %v399_v40  ;;  %v330_v58 = vsel %vm237_vm2, %v309_v45, 0.0  ;;  %v302_v54 = vld [vmem:[%s672_s6] sm:$0x1] }
  0xec   :  { %v326_v46 = vsel %vm237_vm2, %v307_v39, 0.0  ;;  %243 = vst.msk [vmem:[%s673_s4 + $0x28] sm:$0xff] %vm237_vm2, %v193_v44  ;;  %v271_v47 = vsel %vm237_vm2, %v193_v44, 0.0  ;;  %v308_v48 = vmul.f32 %v193_v44, %v193_v44  ;;  %v275_v59 = vsel %vm237_vm2, %v399_v40, 0.0 }
  0xed   :  { %v327_v49 = vadd.f32 %v326_v46, %v325_v43  ;;  %v272_v50 = vadd.f32 %v271_v47, %v270_v42  ;;  %v332_v1 = vsel %vm237_vm2, %v310_v52, 0.0  ;;  %v279_v10 = vsel %vm237_vm2, %v209_v41, 0.0 }
  0xee   :  { %v328_v53 = vsel %vm237_vm2, %v308_v48, 0.0  ;;  %v406_v57 = vpop.f32.mrb[4].mxu1  ;;  %v314_v6 = vmul.f32 %v403_v36, %v403_v36  ;;  %v336_v13 = vsel %vm237_vm2, %v312_v4, 0.0  ;;  %v338_v17 = vsel %vm237_vm2, %v313_v9, 0.0 }
  0xef   :  { %v274_v55 = vadd.f32 %v273_v51, %v272_v50  ;;  %v329_v56 = vadd.f32 %v328_v53, %v327_v49  ;;  %252 = vst.msk [vmem:[%s673_s4 + $0x70] sm:$0xff] %vm237_vm2, %v406_v57  ;;  %v222_v61 = vpop.f32.mrb[5].mxu1  ;;  %v283_v18 = vsel %vm237_vm2, %v403_v36, 0.0  ;;  %v317_v27 = vmul.f32 %v406_v57, %v406_v57  ;;  %v261_v51 = vld [vmem:[%s671_s5] sm:$0x1] }
  0xf0   :  { %250 = vst.msk [vmem:[%s673_s4 + $0x60] sm:$0xff] %vm237_vm2, %v222_v61  ;;  %v407_v0 = vpop.f32.mrb[6].mxu1  ;;  %v315_v14 = vmul.f32 %v222_v61, %v222_v61  ;;  %v285_v19 = vsel %vm237_vm2, %v222_v61, 0.0  ;;  %v340_v22 = vsel %vm237_vm2, %v314_v6, 0.0  ;;  %v289_v31 = vsel %vm237_vm2, %v406_v57, 0.0 }
  0xf1   :  { %v331_v62 = vadd.f32 %v330_v58, %v329_v56  ;;  %v276_v63 = vadd.f32 %v275_v59, %v274_v55  ;;  %253 = vst.msk [vmem:[%s673_s4 + $0x78] sm:$0xff] %vm237_vm2, %v407_v0  ;;  %v225_v5 = vpop.f32.mrb[7].mxu1  ;;  %v318_v32 = vmul.f32 %v407_v0, %v407_v0  ;;  %v346_v36 = vsel %vm237_vm2, %v317_v27, 0.0 }
  0xf2   :  { %251 = vst.msk [vmem:[%s673_s4 + $0x68] sm:$0xff] %vm237_vm2, %v225_v5  ;;  %v342_v23 = vsel %vm237_vm2, %v315_v14, 0.0  ;;  %v316_v24 = vmul.f32 %v225_v5, %v225_v5  ;;  %v287_v28 = vsel %vm237_vm2, %v225_v5, 0.0  ;;  %v291_v37 = vsel %vm237_vm2, %v407_v0, 0.0 }
  0xf3   :  { %v278_v7 = vadd.f32 %v277_v60, %v276_v63  ;;  %v333_v8 = vadd.f32 %v332_v1, %v331_v62  ;;  %v348_v40 = vsel %vm237_vm2, %v318_v32, 0.0 }
  0xf4   :  { %v344_v33 = vsel %vm237_vm2, %v316_v24, 0.0 }
  0xf5   :  { %v335_v11 = vadd.f32 %v334_v2, %v333_v8  ;;  %v280_v3 = vadd.f32 %v279_v10, %v278_v7 }
  0xf7   :  { %v282_v15 = vadd.f32 %v281_v12, %v280_v3  ;;  %v337_v16 = vadd.f32 %v336_v13, %v335_v11 }
  0xf9   :  { %v339_v20 = vadd.f32 %v338_v17, %v337_v16  ;;  %v284_v21 = vadd.f32 %v283_v18, %v282_v15 }
  0xfb   :  { %v286_v25 = vadd.f32 %v285_v19, %v284_v21  ;;  %v341_v26 = vadd.f32 %v340_v22, %v339_v20 }
  0xfd   :  { %v343_v29 = vadd.f32 %v342_v23, %v341_v26  ;;  %v288_v30 = vadd.f32 %v287_v28, %v286_v25 }
  0xff   :  { %v290_v34 = vadd.f32 %v289_v31, %v288_v30  ;;  %v345_v35 = vadd.f32 %v344_v33, %v343_v29 }
 0x101   :  { %v292_v38 = vadd.f32 %v291_v37, %v290_v34  ;;  %v347_v39 = vadd.f32 %v346_v36, %v345_v35 }
 0x103   :  { %v293_v41 = vrot.slane %v292_v38, 4  ;;  %v349_v42 = vadd.f32 %v348_v40, %v347_v39 }
 0x105   :  { %v294_v43 = vadd.f32 %v293_v41, %v292_v38  ;;  %v350_v44 = vrot.slane %v349_v42, 4 }
 0x107   :  { %v295_v45 = vrot.slane %v294_v43, 2  ;;  %v351_v46 = vadd.f32 %v350_v44, %v349_v42 }
 0x109   :  { %v296_v47 = vadd.f32 %v295_v45, %v294_v43  ;;  %v352_v48 = vrot.slane %v351_v46, 2 }
 0x10b   :  { %v297_v49 = vrot.slane %v296_v47, 1  ;;  %v353_v50 = vadd.f32 %v352_v48, %v351_v46 }
 0x10d   :  { %v298_v52 = vadd.f32 %v297_v49, %v296_v47  ;;  %v354_v53 = vrot.slane %v353_v50, 1 }
 0x10f   :  { %v299_v55 = vadd.f32 %v298_v52, %v261_v51  ;;  %v355_v56 = vadd.f32 %v354_v53, %v353_v50 }
 0x111   :  { %301 = vst.msk [vmem:[%s671_s5] sm:$0x1] %vm258_vm1, %v299_v55  ;;  %v356_v57 = vadd.f32 %v355_v56, %v302_v54 }
 0x113   :  { %357 = vst.msk [vmem:[%s672_s6] sm:$0x1] %vm258_vm1, %v356_v57 }

// kernel: densenet_forward.23
= control target key start
LH: loop header
LB: loop body
LE: loop exit
PB: predicated region body
PF: predicated region fallthrough
CT: control target
= control target key end

     0   :  { %vm92_vm0 = vcmask 261120   ;;  %s271_s0 = inlined_call_operand.vmem [shape: f32[1,32], index: 0, kind: input, shape index: {}]   ;;  %s272_s1 = inlined_call_operand.vmem [shape: f32[1,32], index: 1, kind: input, shape index: {}]   ;;  %s273_s2 = inlined_call_operand.vmem [shape: f32[128,32], index: 2, kind: input, shape index: {}]   ;;  %s274_s3 = inlined_call_operand.vmem [shape: f32[128,32], index: 3, kind: output, shape index: {}]  }
   0x1   :  { %v14_v0 = vld [vmem:[%s273_s2] sm:$0xff]  ;;  %v15_v4 = vld [vmem:[%s273_s2 + $0x8] sm:$0xff]  ;;  %v16_v5 = vld [vmem:[%s273_s2 + $0x10] sm:$0xff] }
   0x2   :  { %v113_v1 = vld [vmem:[%s271_s0] ss:$0 sm:$0xff]  ;;  %v17_v6 = vld [vmem:[%s273_s2 + $0x18] sm:$0xff]  ;;  %v19_v11 = vld [vmem:[%s273_s2 + $0x28] sm:$0xff] }
   0x3   :  { %v144_v2 = vld [vmem:[%s272_s1] ss:$0 sm:$0xff]  ;;  %v37_v3 = vmul.f32 %v113_v1, %v14_v0  ;;  %v38_v7 = vmul.f32 %v113_v1, %v15_v4  ;;  %v39_v8 = vmul.f32 %v113_v1, %v16_v5  ;;  %v40_v9 = vmul.f32 %v113_v1, %v17_v6  ;;  %v20_v12 = vld [vmem:[%s273_s2 + $0x30] sm:$0xff]  ;;  %v21_v17 = vld [vmem:[%s273_s2 + $0x38] sm:$0xff] }
   0x4   :  { %v18_v10 = vld [vmem:[%s273_s2 + $0x20] sm:$0xff]  ;;  %v42_v15 = vmul.f32 %v113_v1, %v19_v11  ;;  %v43_v16 = vmul.f32 %v113_v1, %v20_v12  ;;  %v44_v21 = vmul.f32 %v113_v1, %v21_v17  ;;  %v23_v27 = vld [vmem:[%s273_s2 + $0x48] sm:$0xff]  ;;  %v24_v28 = vld [vmem:[%s273_s2 + $0x50] sm:$0xff] }
   0x5   :  { %v60_v13 = vadd.f32 %v144_v2, %v37_v3  ;;  %v41_v14 = vmul.f32 %v113_v1, %v18_v10  ;;  %v61_v18 = vadd.f32 %v144_v2, %v38_v7  ;;  %v62_v19 = vadd.f32 %v144_v2, %v39_v8  ;;  %v22_v22 = vld [vmem:[%s273_s2 + $0x40] sm:$0xff]  ;;  %v25_v29 = vld [vmem:[%s273_s2 + $0x58] sm:$0xff]  ;;  %v27_v35 = vld [vmem:[%s273_s2 + $0x68] sm:$0xff] }
   0x6   :  { %v63_v20 = vadd.f32 %v144_v2, %v40_v9  ;;  %v65_v25 = vadd.f32 %v144_v2, %v42_v15  ;;  %v66_v26 = vadd.f32 %v144_v2, %v43_v16  ;;  %v67_v33 = vadd.f32 %v144_v2, %v44_v21  ;;  %v26_v34 = vld [vmem:[%s273_s2 + $0x60] sm:$0xff]  ;;  %v28_v36 = vld [vmem:[%s273_s2 + $0x70] sm:$0xff]  ;;  %v29_v41 = vld [vmem:[%s273_s2 + $0x78] sm:$0xff] }
   0x7   :  { %v76_v23 = vmax.f32 %v60_v13, 0.0  ;;  %v64_v24 = vadd.f32 %v144_v2, %v41_v14  ;;  %v77_v30 = vmax.f32 %v61_v18, 0.0  ;;  %v78_v31 = vmax.f32 %v62_v19, 0.0 }
   0x8   :  { %v79_v32 = vmax.f32 %v63_v20, 0.0  ;;  %v81_v38 = vmax.f32 %v65_v25, 0.0  ;;  %v82_v39 = vmax.f32 %v66_v26, 0.0  ;;  %v45_v40 = vmul.f32 %v113_v1, %v22_v22 }
   0x9   :  { %93 = vst.msk [vmem:[%s274_s3] sm:$0xff] %vm92_vm0, %v76_v23  ;;  %v80_v37 = vmax.f32 %v64_v24, 0.0  ;;  %94 = vst.msk [vmem:[%s274_s3 + $0x8] sm:$0xff] %vm92_vm0, %v77_v30  ;;  %v83_v42 = vmax.f32 %v67_v33, 0.0  ;;  %v46_v43 = vmul.f32 %v113_v1, %v23_v27  ;;  %v47_v44 = vmul.f32 %v113_v1, %v24_v28 }
   0xa   :  { %95 = vst.msk [vmem:[%s274_s3 + $0x10] sm:$0xff] %vm92_vm0, %v78_v31  ;;  %96 = vst.msk [vmem:[%s274_s3 + $0x18] sm:$0xff] %vm92_vm0, %v79_v32  ;;  %v48_v45 = vmul.f32 %v113_v1, %v25_v29  ;;  %v68_v46 = vadd.f32 %v144_v2, %v45_v40  ;;  %v49_v47 = vmul.f32 %v113_v1, %v26_v34 }
   0xb   :  { %97 = vst.msk [vmem:[%s274_s3 + $0x20] sm:$0xff] %vm92_vm0, %v80_v37  ;;  %98 = vst.msk [vmem:[%s274_s3 + $0x28] sm:$0xff] %vm92_vm0, %v81_v38  ;;  %v50_v48 = vmul.f32 %v113_v1, %v27_v35  ;;  %v51_v49 = vmul.f32 %v113_v1, %v28_v36  ;;  %v69_v50 = vadd.f32 %v144_v2, %v46_v43 }
   0xc   :  { %99 = vst.msk [vmem:[%s274_s3 + $0x30] sm:$0xff] %vm92_vm0, %v82_v39  ;;  %100 = vst.msk [vmem:[%s274_s3 + $0x38] sm:$0xff] %vm92_vm0, %v83_v42  ;;  %v70_v51 = vadd.f32 %v144_v2, %v47_v44  ;;  %v71_v52 = vadd.f32 %v144_v2, %v48_v45  ;;  %v52_v53 = vmul.f32 %v113_v1, %v29_v41  ;;  %v84_v54 = vmax.f32 %v68_v46, 0.0 }
   0xd   :  { %v72_v55 = vadd.f32 %v144_v2, %v49_v47  ;;  %v73_v56 = vadd.f32 %v144_v2, %v50_v48  ;;  %v74_v57 = vadd.f32 %v144_v2, %v51_v49  ;;  %v85_v58 = vmax.f32 %v69_v50, 0.0 }
   0xe   :  { %v86_v59 = vmax.f32 %v70_v51, 0.0  ;;  %v87_v60 = vmax.f32 %v71_v52, 0.0  ;;  %v75_v61 = vadd.f32 %v144_v2, %v52_v53  ;;  %101 = vst.msk [vmem:[%s274_s3 + $0x40] sm:$0xff] %vm92_vm0, %v84_v54 }
   0xf   :  { %v88_v62 = vmax.f32 %v72_v55, 0.0  ;;  %v89_v63 = vmax.f32 %v73_v56, 0.0  ;;  %v90_v0 = vmax.f32 %v74_v57, 0.0  ;;  %102 = vst.msk [vmem:[%s274_s3 + $0x48] sm:$0xff] %vm92_vm0, %v85_v58 }
  0x10   :  { %103 = vst.msk [vmem:[%s274_s3 + $0x50] sm:$0xff] %vm92_vm0, %v86_v59  ;;  %104 = vst.msk [vmem:[%s274_s3 + $0x58] sm:$0xff] %vm92_vm0, %v87_v60  ;;  %v91_v1 = vmax.f32 %v75_v61, 0.0 }
  0x11   :  { %105 = vst.msk [vmem:[%s274_s3 + $0x60] sm:$0xff] %vm92_vm0, %v88_v62  ;;  %106 = vst.msk [vmem:[%s274_s3 + $0x68] sm:$0xff] %vm92_vm0, %v89_v63 }
  0x12   :  { %107 = vst.msk [vmem:[%s274_s3 + $0x70] sm:$0xff] %vm92_vm0, %v90_v0  ;;  %108 = vst.msk [vmem:[%s274_s3 + $0x78] sm:$0xff] %vm92_vm0, %v91_v1 }

// kernel: densenet_forward.21
= control target key start
LH: loop header
LB: loop body
LE: loop exit
PB: predicated region body
PF: predicated region fallthrough
CT: control target
= control target key end

     0   :  { %vm448_vm0 = vcmask 122880   ;;  %vm155_vm1 = vcmask 130048   ;;  %v561_v0 = vmov 0.0   ;;  %s1276_s2 = inlined_call_operand.vmem [shape: f32[1,16], index: 2, kind: output, shape index: {1}]   ;;  %s1277_s3 = inlined_call_operand.vmem [shape: f32[1,16], index: 3, kind: output, shape index: {2}]   ;;  %s1278_s0 = inlined_call_operand.vmem [shape: f32[9,128,16], index: 0, kind: input, shape index: {}]   ;;  %s1279_s1 = inlined_call_operand.vmem [shape: f32[128,16], index: 1, kind: output, shape index: {0}]  }
   0x1   :  { %449 = vst.msk [vmem:[%s1276_s2] sm:$0x1] %vm448_vm0, %v561_v0  ;;  %450 = vst.msk [vmem:[%s1277_s3] sm:$0x1] %vm448_vm0, %v561_v0  ;;  %v11_v1 = vld [vmem:[%s1278_s0] sm:$0xff]  ;;  %v12_v15 = vld [vmem:[%s1278_s0 + $0x8] sm:$0xff] }
   0x2   :  { %v27_v2 = vld [vmem:[%s1278_s0 + $0x80] sm:$0xff]  ;;  %v156_v7 = vsel %vm155_vm1, %v11_v1, -inf  ;;  %v28_v16 = vld [vmem:[%s1278_s0 + $0x88] sm:$0xff]  ;;  %v173_v22 = vsel %vm155_vm1, %v12_v15, -inf  ;;  %v13_v36 = vld [vmem:[%s1278_s0 + $0x10] sm:$0xff] }
   0x3   :  { %v43_v3 = vld [vmem:[%s1278_s0 + $0x100] sm:$0xff]  ;;  %v157_v8 = vsel %vm155_vm1, %v27_v2, -inf  ;;  %v44_v17 = vld [vmem:[%s1278_s0 + $0x108] sm:$0xff]  ;;  %v174_v23 = vsel %vm155_vm1, %v28_v16, -inf  ;;  %v29_v37 = vld [vmem:[%s1278_s0 + $0x90] sm:$0xff]  ;;  %v190_v43 = vsel %vm155_vm1, %v13_v36, -inf }
   0x4   :  { %v59_v4 = vld [vmem:[%s1278_s0 + $0x180] sm:$0xff]  ;;  %v159_v9 = vsel %vm155_vm1, %v43_v3, -inf  ;;  %v158_v13 = vmax.f32 %v156_v7, %v157_v8  ;;  %v60_v19 = vld [vmem:[%s1278_s0 + $0x188] sm:$0xff]  ;;  %v176_v24 = vsel %vm155_vm1, %v44_v17, -inf  ;;  %v175_v31 = vmax.f32 %v173_v22, %v174_v23  ;;  %v45_v38 = vld [vmem:[%s1278_s0 + $0x110] sm:$0xff] }
   0x5   :  { %v75_v5 = vld [vmem:[%s1278_s0 + $0x200] sm:$0xff]  ;;  %v161_v14 = vsel %vm155_vm1, %v59_v4, -inf  ;;  %v76_v20 = vld [vmem:[%s1278_s0 + $0x208] sm:$0xff]  ;;  %v178_v35 = vsel %vm155_vm1, %v60_v19, -inf  ;;  %v61_v42 = vld [vmem:[%s1278_s0 + $0x190] sm:$0xff]  ;;  %v191_v48 = vsel %vm155_vm1, %v29_v37, -inf }
   0x6   :  { %v91_v6 = vld [vmem:[%s1278_s0 + $0x280] sm:$0xff]  ;;  %v160_v18 = vmax.f32 %v158_v13, %v159_v9  ;;  %v92_v21 = vld [vmem:[%s1278_s0 + $0x288] sm:$0xff]  ;;  %v163_v25 = vsel %vm155_vm1, %v75_v5, -inf  ;;  %v177_v39 = vmax.f32 %v175_v31, %v176_v24  ;;  %v180_v40 = vsel %vm155_vm1, %v76_v20, -inf  ;;  %v77_v46 = vld [vmem:[%s1278_s0 + $0x210] sm:$0xff] }
   0x7   :  { %v107_v10 = vld [vmem:[%s1278_s0 + $0x300] sm:$0xff]  ;;  %v165_v26 = vsel %vm155_vm1, %v91_v6, -inf  ;;  %v108_v28 = vld [vmem:[%s1278_s0 + $0x308] sm:$0xff]  ;;  %v182_v41 = vsel %vm155_vm1, %v92_v21, -inf  ;;  %v93_v47 = vld [vmem:[%s1278_s0 + $0x290] sm:$0xff]  ;;  %v193_v49 = vsel %vm155_vm1, %v45_v38, -inf  ;;  %v192_v55 = vmax.f32 %v190_v43, %v191_v48 }
   0x8   :  { %v123_v11 = vld [vmem:[%s1278_s0 + $0x380] sm:$0xff]  ;;  %v167_v27 = vsel %vm155_vm1, %v107_v10, -inf  ;;  %v124_v29 = vld [vmem:[%s1278_s0 + $0x388] sm:$0xff]  ;;  %v162_v32 = vmax.f32 %v160_v18, %v161_v14  ;;  %v184_v45 = vsel %vm155_vm1, %v108_v28, -inf  ;;  %v179_v50 = vmax.f32 %v177_v39, %v178_v35  ;;  %v109_v53 = vld [vmem:[%s1278_s0 + $0x310] sm:$0xff] }
   0x9   :  { %v139_v12 = vld [vmem:[%s1278_s0 + $0x400] sm:$0xff]  ;;  %v140_v30 = vld [vmem:[%s1278_s0 + $0x408] sm:$0xff]  ;;  %v169_v33 = vsel %vm155_vm1, %v123_v11, -inf  ;;  %v186_v51 = vsel %vm155_vm1, %v124_v29, -inf  ;;  %v125_v54 = vld [vmem:[%s1278_s0 + $0x390] sm:$0xff]  ;;  %v195_v58 = vsel %vm155_vm1, %v61_v42, -inf  ;;  %v194_v2 = vmax.f32 %v192_v55, %v193_v49 }
   0xa   :  { %v171_v34 = vsel %vm155_vm1, %v139_v12, -inf  ;;  %v164_v44 = vmax.f32 %v162_v32, %v163_v25  ;;  %v188_v52 = vsel %vm155_vm1, %v140_v30, -inf  ;;  %v14_v56 = vld [vmem:[%s1278_s0 + $0x18] sm:$0xff]  ;;  %v197_v59 = vsel %vm155_vm1, %v77_v46, -inf  ;;  %v141_v1 = vld [vmem:[%s1278_s0 + $0x410] sm:$0xff]  ;;  %v15_v11 = vld [vmem:[%s1278_s0 + $0x20] sm:$0xff] }
   0xb   :  { %v199_v60 = vsel %vm155_vm1, %v93_v47, -inf  ;;  %v30_v61 = vld [vmem:[%s1278_s0 + $0x98] sm:$0xff]  ;;  %v181_v0 = vmax.f32 %v179_v50, %v180_v40  ;;  %v207_v4 = vsel %vm155_vm1, %v14_v56, -inf  ;;  %v201_v7 = vsel %vm155_vm1, %v109_v53, -inf  ;;  %v31_v16 = vld [vmem:[%s1278_s0 + $0xa0] sm:$0xff]  ;;  %v16_v49 = vld [vmem:[%s1278_s0 + $0x28] sm:$0xff] }
   0xc   :  { %v166_v57 = vmax.f32 %v164_v44, %v165_v26  ;;  %v46_v62 = vld [vmem:[%s1278_s0 + $0x118] sm:$0xff]  ;;  %v208_v5 = vsel %vm155_vm1, %v30_v61, -inf  ;;  %v196_v13 = vmax.f32 %v194_v2, %v195_v58  ;;  %v203_v14 = vsel %vm155_vm1, %v125_v54, -inf  ;;  %v47_v17 = vld [vmem:[%s1278_s0 + $0x120] sm:$0xff] }
   0xd   :  { %v62_v63 = vld [vmem:[%s1278_s0 + $0x198] sm:$0xff]  ;;  %v209_v9 = vmax.f32 %v207_v4, %v208_v5  ;;  %v210_v10 = vsel %vm155_vm1, %v46_v62, -inf  ;;  %v183_v12 = vmax.f32 %v181_v0, %v182_v41  ;;  %v205_v19 = vsel %vm155_vm1, %v141_v1, -inf  ;;  %v79_v38 = vld [vmem:[%s1278_s0 + $0x220] sm:$0xff] }
   0xe   :  { %v78_v3 = vld [vmem:[%s1278_s0 + $0x218] sm:$0xff]  ;;  %v168_v6 = vmax.f32 %v166_v57, %v167_v27  ;;  %v212_v15 = vsel %vm155_vm1, %v62_v63, -inf  ;;  %v198_v24 = vmax.f32 %v196_v13, %v197_v59  ;;  %v63_v27 = vld [vmem:[%s1278_s0 + $0x1a0] sm:$0xff]  ;;  %v224_v28 = vsel %vm155_vm1, %v15_v11, -inf  ;;  %v48_v59 = vld [vmem:[%s1278_s0 + $0x128] sm:$0xff] }
   0xf   :  { %v94_v8 = vld [vmem:[%s1278_s0 + $0x298] sm:$0xff]  ;;  %v211_v21 = vmax.f32 %v209_v9, %v210_v10  ;;  %v214_v22 = vsel %vm155_vm1, %v78_v3, -inf  ;;  %v185_v23 = vmax.f32 %v183_v12, %v184_v45  ;;  %v225_v32 = vsel %vm155_vm1, %v31_v16, -inf  ;;  %v111_v47 = vld [vmem:[%s1278_s0 + $0x320] sm:$0xff]  ;;  %v64_v63 = vld [vmem:[%s1278_s0 + $0x1a8] sm:$0xff] }
  0x10   :  { %v170_v18 = vmax.f32 %v168_v6, %v169_v33  ;;  %v110_v20 = vld [vmem:[%s1278_s0 + $0x318] sm:$0xff]  ;;  %v216_v26 = vsel %vm155_vm1, %v94_v8, -inf  ;;  %v227_v33 = vsel %vm155_vm1, %v47_v17, -inf  ;;  %v200_v36 = vmax.f32 %v198_v24, %v199_v60  ;;  %v127_v3 = vld [vmem:[%s1278_s0 + $0x3a0] sm:$0xff]  ;;  %v80_v8 = vld [vmem:[%s1278_s0 + $0x228] sm:$0xff] }
  0x11   :  { %v126_v25 = vld [vmem:[%s1278_s0 + $0x398] sm:$0xff]  ;;  %v213_v31 = vmax.f32 %v211_v21, %v212_v15  ;;  %v187_v35 = vmax.f32 %v185_v23, %v186_v51  ;;  %v218_v37 = vsel %vm155_vm1, %v110_v20, -inf  ;;  %v226_v39 = vmax.f32 %v224_v28, %v225_v32  ;;  %v143_v13 = vld [vmem:[%s1278_s0 + $0x420] sm:$0xff]  ;;  %v33_v23 = vld [vmem:[%s1278_s0 + $0xb0] sm:$0xff] }
  0x12   :  { %v172_v29 = vmax.f32 %v170_v18, %v171_v34  ;;  %v142_v30 = vld [vmem:[%s1278_s0 + $0x418] sm:$0xff]  ;;  %v95_v34 = vld [vmem:[%s1278_s0 + $0x2a0] sm:$0xff]  ;;  %v220_v42 = vsel %vm155_vm1, %v126_v25, -inf  ;;  %v229_v43 = vsel %vm155_vm1, %v63_v27, -inf  ;;  %v202_v45 = vmax.f32 %v200_v36, %v201_v7  ;;  %v96_v18 = vld [vmem:[%s1278_s0 + $0x2a8] sm:$0xff] }
  0x13   :  { %v215_v41 = vmax.f32 %v213_v31, %v214_v22  ;;  %v189_v44 = vmax.f32 %v187_v35, %v188_v52  ;;  %v222_v46 = vsel %vm155_vm1, %v142_v30, -inf  ;;  %v228_v48 = vmax.f32 %v226_v39, %v227_v33  ;;  %v32_v52 = vld [vmem:[%s1278_s0 + $0xa8] sm:$0xff]  ;;  %v17_v22 = vld [vmem:[%s1278_s0 + $0x30] sm:$0xff] }
  0x14   :  { %428 = vst.msk [vmem:[%s1279_s1] sm:$0xff] %vm155_vm1, %v172_v29  ;;  %v493_v40 = vmul.f32 %v172_v29, %v172_v29  ;;  %v452_v50 = vsel %vm155_vm1, %v172_v29, 0.0  ;;  %v231_v53 = vsel %vm155_vm1, %v79_v38, -inf  ;;  %v233_v54 = vsel %vm155_vm1, %v95_v34, -inf  ;;  %v112_v27 = vld [vmem:[%s1278_s0 + $0x328] sm:$0xff]  ;;  %v49_v29 = vld [vmem:[%s1278_s0 + $0x130] sm:$0xff] }
  0x15   :  { %v217_v51 = vmax.f32 %v215_v41, %v216_v26  ;;  %429 = vst.msk [vmem:[%s1279_s1 + $0x8] sm:$0xff] %vm155_vm1, %v189_v44  ;;  %v453_v55 = vsel %vm155_vm1, %v189_v44, 0.0  ;;  %v494_v56 = vmul.f32 %v189_v44, %v189_v44  ;;  %v204_v57 = vmax.f32 %v202_v45, %v203_v14  ;;  %v65_v35 = vld [vmem:[%s1278_s0 + $0x1b0] sm:$0xff]  ;;  %v144_v38 = vld [vmem:[%s1278_s0 + $0x428] sm:$0xff] }
  0x16   :  { %v230_v58 = vmax.f32 %v228_v48, %v229_v43  ;;  %v509_v60 = vsel %vm155_vm1, %v493_v40, 0.0  ;;  %v235_v62 = vsel %vm155_vm1, %v111_v47, -inf  ;;  %v241_v0 = vsel %vm155_vm1, %v16_v49, -inf  ;;  %v81_v43 = vld [vmem:[%s1278_s0 + $0x230] sm:$0xff]  ;;  %v18_v49 = vld [vmem:[%s1278_s0 + $0x38] sm:$0xff] }
  0x17   :  { %v219_v61 = vmax.f32 %v217_v51, %v218_v37  ;;  %v454_v1 = vadd.f32 %v453_v55, %v452_v50  ;;  %v206_v2 = vmax.f32 %v204_v57, %v205_v19  ;;  %v242_v5 = vsel %vm155_vm1, %v32_v52, -inf  ;;  %v128_v37 = vld [vmem:[%s1278_s0 + $0x3a8] sm:$0xff]  ;;  %v34_v50 = vld [vmem:[%s1278_s0 + $0xb8] sm:$0xff]  ;;  %v97_v52 = vld [vmem:[%s1278_s0 + $0x2b0] sm:$0xff] }
  0x18   :  { %v232_v4 = vmax.f32 %v230_v58, %v231_v53  ;;  %v510_v6 = vsel %vm155_vm1, %v494_v56, 0.0  ;;  %v243_v9 = vmax.f32 %v241_v0, %v242_v5  ;;  %v244_v10 = vsel %vm155_vm1, %v48_v59, -inf  ;;  %v50_v56 = vld [vmem:[%s1278_s0 + $0x138] sm:$0xff] }
  0x19   :  { %v221_v7 = vmax.f32 %v219_v61, %v220_v42  ;;  %430 = vst.msk [vmem:[%s1279_s1 + $0x10] sm:$0xff] %vm155_vm1, %v206_v2  ;;  %v455_v11 = vsel %vm155_vm1, %v206_v2, 0.0  ;;  %v495_v12 = vmul.f32 %v206_v2, %v206_v2  ;;  %v246_v15 = vsel %vm155_vm1, %v64_v63, -inf  ;;  %v82_v5 = vld [vmem:[%s1278_s0 + $0x238] sm:$0xff] }
  0x1a   :  { %v234_v14 = vmax.f32 %v232_v4, %v233_v54  ;;  %v237_v17 = vsel %vm155_vm1, %v127_v3, -inf  ;;  %v245_v19 = vmax.f32 %v243_v9, %v244_v10  ;;  %v248_v21 = vsel %vm155_vm1, %v80_v8, -inf  ;;  %v19_v8 = vld [vmem:[%s1278_s0 + $0x40] sm:$0xff] }
  0x1b   :  { %v223_v16 = vmax.f32 %v221_v7, %v222_v46  ;;  %v511_v24 = vadd.f32 %v510_v6, %v509_v60  ;;  %v456_v25 = vadd.f32 %v455_v11, %v454_v1  ;;  %v239_v26 = vsel %vm155_vm1, %v143_v13, -inf  ;;  %v113_v60 = vld [vmem:[%s1278_s0 + $0x330] sm:$0xff]  ;;  %v35_v9 = vld [vmem:[%s1278_s0 + $0xc0] sm:$0xff] }
  0x1c   :  { %v236_v20 = vmax.f32 %v234_v14, %v235_v62  ;;  %v247_v28 = vmax.f32 %v245_v19, %v246_v15  ;;  %v512_v30 = vsel %vm155_vm1, %v495_v12, 0.0  ;;  %v250_v33 = vsel %vm155_vm1, %v96_v18, -inf  ;;  %v66_v62 = vld [vmem:[%s1278_s0 + $0x1b8] sm:$0xff]  ;;  %v129_v11 = vld [vmem:[%s1278_s0 + $0x3b0] sm:$0xff] }
  0x1d   :  { %431 = vst.msk [vmem:[%s1279_s1 + $0x18] sm:$0xff] %vm155_vm1, %v223_v16  ;;  %v457_v31 = vsel %vm155_vm1, %v223_v16, 0.0  ;;  %v496_v36 = vmul.f32 %v223_v16, %v223_v16  ;;  %v258_v39 = vsel %vm155_vm1, %v17_v22, -inf  ;;  %v259_v40 = vsel %vm155_vm1, %v33_v23, -inf  ;;  %v145_v12 = vld [vmem:[%s1278_s0 + $0x430] sm:$0xff]  ;;  %v98_v19 = vld [vmem:[%s1278_s0 + $0x2b8] sm:$0xff] }
  0x1e   :  { %v238_v32 = vmax.f32 %v236_v20, %v237_v17  ;;  %v249_v34 = vmax.f32 %v247_v28, %v248_v21  ;;  %v252_v42 = vsel %vm155_vm1, %v112_v27, -inf  ;;  %v260_v44 = vmax.f32 %v258_v39, %v259_v40  ;;  %v51_v21 = vld [vmem:[%s1278_s0 + $0x140] sm:$0xff] }
  0x1f   :  { %v261_v45 = vsel %vm155_vm1, %v49_v29, -inf  ;;  %v513_v46 = vadd.f32 %v512_v30, %v511_v24  ;;  %v263_v48 = vsel %vm155_vm1, %v65_v35, -inf  ;;  %v458_v51 = vadd.f32 %v457_v31, %v456_v25  ;;  %v67_v22 = vld [vmem:[%s1278_s0 + $0x1c0] sm:$0xff]  ;;  %v114_v29 = vld [vmem:[%s1278_s0 + $0x338] sm:$0xff] }
  0x20   :  { %v240_v41 = vmax.f32 %v238_v32, %v239_v26  ;;  %v251_v47 = vmax.f32 %v249_v34, %v250_v33  ;;  %v254_v53 = vsel %vm155_vm1, %v128_v37, -inf  ;;  %v256_v54 = vsel %vm155_vm1, %v144_v38, -inf  ;;  %v130_v30 = vld [vmem:[%s1278_s0 + $0x3b8] sm:$0xff]  ;;  %v83_v32 = vld [vmem:[%s1278_s0 + $0x240] sm:$0xff] }
  0x21   :  { %v262_v55 = vmax.f32 %v260_v44, %v261_v45  ;;  %v514_v57 = vsel %vm155_vm1, %v496_v36, 0.0  ;;  %v265_v61 = vsel %vm155_vm1, %v81_v43, -inf  ;;  %v275_v1 = vsel %vm155_vm1, %v18_v49, -inf  ;;  %v99_v37 = vld [vmem:[%s1278_s0 + $0x2c0] sm:$0xff]  ;;  %v20_v43 = vld [vmem:[%s1278_s0 + $0x48] sm:$0xff] }
  0x22   :  { %432 = vst.msk [vmem:[%s1279_s1 + $0x20] sm:$0xff] %vm155_vm1, %v240_v41  ;;  %v497_v58 = vmul.f32 %v240_v41, %v240_v41  ;;  %v253_v59 = vmax.f32 %v251_v47, %v252_v42  ;;  %v459_v63 = vsel %vm155_vm1, %v240_v41, 0.0  ;;  %v276_v2 = vsel %vm155_vm1, %v34_v50, -inf  ;;  %v36_v44 = vld [vmem:[%s1278_s0 + $0xc8] sm:$0xff] }
  0x23   :  { %v264_v0 = vmax.f32 %v262_v55, %v263_v48  ;;  %v267_v4 = vsel %vm155_vm1, %v97_v52, -inf  ;;  %v277_v6 = vmax.f32 %v275_v1, %v276_v2  ;;  %v278_v7 = vsel %vm155_vm1, %v50_v56, -inf  ;;  %v52_v45 = vld [vmem:[%s1278_s0 + $0x148] sm:$0xff] }
  0x24   :  { %v255_v3 = vmax.f32 %v253_v59, %v254_v53  ;;  %v515_v10 = vadd.f32 %v514_v57, %v513_v46  ;;  %v269_v14 = vsel %vm155_vm1, %v113_v60, -inf  ;;  %v280_v15 = vsel %vm155_vm1, %v66_v62, -inf  ;;  %v68_v56 = vld [vmem:[%s1278_s0 + $0x1c8] sm:$0xff] }
  0x25   :  { %v266_v13 = vmax.f32 %v264_v0, %v265_v61  ;;  %v460_v16 = vadd.f32 %v459_v63, %v458_v51  ;;  %v516_v17 = vsel %vm155_vm1, %v497_v58, 0.0  ;;  %v279_v20 = vmax.f32 %v277_v6, %v278_v7  ;;  %v146_v51 = vld [vmem:[%s1278_s0 + $0x438] sm:$0xff]  ;;  %v131_v63 = vld [vmem:[%s1278_s0 + $0x3c0] sm:$0xff]  ;;  %v84_v2 = vld [vmem:[%s1278_s0 + $0x248] sm:$0xff] }
  0x26   :  { %v257_v18 = vmax.f32 %v255_v3, %v256_v54  ;;  %v282_v24 = vsel %vm155_vm1, %v82_v5, -inf  ;;  %v292_v25 = vsel %vm155_vm1, %v19_v8, -inf  ;;  %v293_v26 = vsel %vm155_vm1, %v35_v9, -inf  ;;  %v115_v54 = vld [vmem:[%s1278_s0 + $0x340] sm:$0xff] }
  0x27   :  { %v268_v23 = vmax.f32 %v266_v13, %v267_v4  ;;  %v271_v27 = vsel %vm155_vm1, %v129_v11, -inf  ;;  %v273_v28 = vsel %vm155_vm1, %v145_v12, -inf  ;;  %v281_v31 = vmax.f32 %v279_v20, %v280_v15  ;;  %v147_v0 = vld [vmem:[%s1278_s0 + $0x440] sm:$0xff]  ;;  %v100_v11 = vld [vmem:[%s1278_s0 + $0x2c8] sm:$0xff]  ;;  %v21_v13 = vld [vmem:[%s1278_s0 + $0x50] sm:$0xff] }
  0x28   :  { %433 = vst.msk [vmem:[%s1279_s1 + $0x28] sm:$0xff] %vm155_vm1, %v257_v18  ;;  %v294_v33 = vmax.f32 %v292_v25, %v293_v26  ;;  %v284_v36 = vsel %vm155_vm1, %v98_v19, -inf  ;;  %v295_v38 = vsel %vm155_vm1, %v51_v21, -inf  ;;  %v297_v34 = vsel %vm155_vm1, %v67_v22, -inf  ;;  %v53_v19 = vld [vmem:[%s1278_s0 + $0x150] sm:$0xff] }
  0x29   :  { %v270_v35 = vmax.f32 %v268_v23, %v269_v14  ;;  %v517_v39 = vadd.f32 %v516_v17, %v515_v10  ;;  %v498_v40 = vmul.f32 %v257_v18, %v257_v18  ;;  %v283_v41 = vmax.f32 %v281_v31, %v282_v24  ;;  %v37_v14 = vld [vmem:[%s1278_s0 + $0xd0] sm:$0xff]  ;;  %v116_v23 = vld [vmem:[%s1278_s0 + $0x348] sm:$0xff] }
  0x2a   :  { %v296_v42 = vmax.f32 %v294_v33, %v295_v38  ;;  %v286_v47 = vsel %vm155_vm1, %v114_v29, -inf  ;;  %v288_v48 = vsel %vm155_vm1, %v130_v30, -inf  ;;  %v299_v49 = vsel %vm155_vm1, %v83_v32, -inf  ;;  %v132_v24 = vld [vmem:[%s1278_s0 + $0x3c8] sm:$0xff] }
  0x2b   :  { %v272_v46 = vmax.f32 %v270_v35, %v271_v27  ;;  %v461_v50 = vsel %vm155_vm1, %v257_v18, 0.0  ;;  %v285_v53 = vmax.f32 %v283_v41, %v284_v36  ;;  %v301_v55 = vsel %vm155_vm1, %v99_v37, -inf  ;;  %v148_v33 = vld [vmem:[%s1278_s0 + $0x448] sm:$0xff]  ;;  %v85_v36 = vld [vmem:[%s1278_s0 + $0x250] sm:$0xff]  ;;  %v22_v41 = vld [vmem:[%s1278_s0 + $0x58] sm:$0xff] }
  0x2c   :  { %v298_v52 = vmax.f32 %v296_v42, %v297_v34  ;;  %v309_v58 = vsel %vm155_vm1, %v20_v43, -inf  ;;  %v310_v59 = vsel %vm155_vm1, %v36_v44, -inf  ;;  %v312_v60 = vsel %vm155_vm1, %v52_v45, -inf }
  0x2d   :  { %v274_v57 = vmax.f32 %v272_v46, %v273_v28  ;;  %v518_v61 = vsel %vm155_vm1, %v498_v40, 0.0  ;;  %v287_v62 = vmax.f32 %v285_v53, %v286_v47  ;;  %v311_v3 = vmax.f32 %v309_v58, %v310_v59  ;;  %v69_v28 = vld [vmem:[%s1278_s0 + $0x1d0] sm:$0xff]  ;;  %v38_v46 = vld [vmem:[%s1278_s0 + $0xd8] sm:$0xff] }
  0x2e   :  { %v300_v1 = vmax.f32 %v298_v52, %v299_v49  ;;  %v290_v5 = vsel %vm155_vm1, %v146_v51, -inf  ;;  %v303_v6 = vsel %vm155_vm1, %v115_v54, -inf  ;;  %v314_v7 = vsel %vm155_vm1, %v68_v56, -inf  ;;  %v54_v47 = vld [vmem:[%s1278_s0 + $0x158] sm:$0xff]  ;;  %v117_v51 = vld [vmem:[%s1278_s0 + $0x350] sm:$0xff] }
  0x2f   :  { %434 = vst.msk [vmem:[%s1279_s1 + $0x30] sm:$0xff] %vm155_vm1, %v274_v57  ;;  %v499_v4 = vmul.f32 %v274_v57, %v274_v57  ;;  %v462_v8 = vadd.f32 %v461_v50, %v460_v16  ;;  %v289_v9 = vmax.f32 %v287_v62, %v288_v48  ;;  %v313_v12 = vmax.f32 %v311_v3, %v312_v60  ;;  %v101_v50 = vld [vmem:[%s1278_s0 + $0x2d0] sm:$0xff]  ;;  %v86_v3 = vld [vmem:[%s1278_s0 + $0x258] sm:$0xff] }
  0x30   :  { %v302_v10 = vmax.f32 %v300_v1, %v301_v55  ;;  %v519_v15 = vadd.f32 %v518_v61, %v517_v39  ;;  %v305_v17 = vsel %vm155_vm1, %v131_v63, -inf  ;;  %v307_v16 = vsel %vm155_vm1, %v147_v0, -inf  ;;  %v133_v60 = vld [vmem:[%s1278_s0 + $0x3d0] sm:$0xff] }
  0x31   :  { %v316_v18 = vsel %vm155_vm1, %v84_v2, -inf  ;;  %v463_v20 = vsel %vm155_vm1, %v274_v57, 0.0  ;;  %v291_v21 = vmax.f32 %v289_v9, %v290_v5  ;;  %v315_v25 = vmax.f32 %v313_v12, %v314_v7  ;;  %v70_v57 = vld [vmem:[%s1278_s0 + $0x1d8] sm:$0xff]  ;;  %v23_v5 = vld [vmem:[%s1278_s0 + $0x60] sm:$0xff]  ;;  %v149_v9 = vld [vmem:[%s1278_s0 + $0x450] sm:$0xff] }
  0x32   :  { %v304_v22 = vmax.f32 %v302_v10, %v303_v6  ;;  %v520_v26 = vsel %vm155_vm1, %v499_v4, 0.0  ;;  %v318_v27 = vsel %vm155_vm1, %v100_v11, -inf  ;;  %v326_v29 = vsel %vm155_vm1, %v21_v13, -inf  ;;  %v39_v6 = vld [vmem:[%s1278_s0 + $0xe0] sm:$0xff] }
  0x33   :  { %v327_v30 = vsel %vm155_vm1, %v37_v14, -inf  ;;  %435 = vst.msk [vmem:[%s1279_s1 + $0x38] sm:$0xff] %vm155_vm1, %v291_v21  ;;  %v500_v31 = vmul.f32 %v291_v21, %v291_v21  ;;  %v317_v35 = vmax.f32 %v315_v25, %v316_v18  ;;  %v329_v37 = vsel %vm155_vm1, %v53_v19, -inf  ;;  %v71_v18 = vld [vmem:[%s1278_s0 + $0x1e0] sm:$0xff]  ;;  %v118_v25 = vld [vmem:[%s1278_s0 + $0x358] sm:$0xff] }
  0x34   :  { %v306_v32 = vmax.f32 %v304_v22, %v305_v17  ;;  %v464_v38 = vadd.f32 %v463_v20, %v462_v8  ;;  %v320_v34 = vsel %vm155_vm1, %v116_v23, -inf  ;;  %v322_v39 = vsel %vm155_vm1, %v132_v24, -inf }
  0x35   :  { %v328_v40 = vmax.f32 %v326_v29, %v327_v30  ;;  %v465_v42 = vsel %vm155_vm1, %v291_v21, 0.0  ;;  %v319_v44 = vmax.f32 %v317_v35, %v318_v27  ;;  %v331_v45 = vsel %vm155_vm1, %v69_v28, -inf  ;;  %v87_v28 = vld [vmem:[%s1278_s0 + $0x260] sm:$0xff] }
  0x36   :  { %v308_v43 = vmax.f32 %v306_v32, %v307_v16  ;;  %v521_v48 = vadd.f32 %v520_v26, %v519_v15  ;;  %v324_v49 = vsel %vm155_vm1, %v148_v33, -inf  ;;  %v333_v54 = vsel %vm155_vm1, %v85_v36, -inf  ;;  %v102_v15 = vld [vmem:[%s1278_s0 + $0x2d8] sm:$0xff]  ;;  %v55_v16 = vld [vmem:[%s1278_s0 + $0x160] sm:$0xff] }
  0x37   :  { %v330_v53 = vmax.f32 %v328_v40, %v329_v37  ;;  %v522_v52 = vsel %vm155_vm1, %v500_v31, 0.0  ;;  %v321_v56 = vmax.f32 %v319_v44, %v320_v34  ;;  %v343_v58 = vsel %vm155_vm1, %v22_v41, -inf  ;;  %v134_v26 = vld [vmem:[%s1278_s0 + $0x3d8] sm:$0xff]  ;;  %v103_v32 = vld [vmem:[%s1278_s0 + $0x2e0] sm:$0xff]  ;;  %v40_v40 = vld [vmem:[%s1278_s0 + $0xe8] sm:$0xff] }
  0x38   :  { %436 = vst.msk [vmem:[%s1279_s1 + $0x40] sm:$0xff] %vm155_vm1, %v308_v43  ;;  %v501_v55 = vmul.f32 %v308_v43, %v308_v43  ;;  %v466_v59 = vadd.f32 %v465_v42, %v464_v38  ;;  %v344_v62 = vsel %vm155_vm1, %v38_v46, -inf  ;;  %v346_v63 = vsel %vm155_vm1, %v54_v47, -inf  ;;  %v56_v41 = vld [vmem:[%s1278_s0 + $0x168] sm:$0xff]  ;;  %v150_v47 = vld [vmem:[%s1278_s0 + $0x458] sm:$0xff] }
  0x39   :  { %v332_v61 = vmax.f32 %v330_v53, %v331_v45  ;;  %v323_v0 = vmax.f32 %v321_v56, %v322_v39  ;;  %v335_v1 = vsel %vm155_vm1, %v101_v50, -inf  ;;  %v337_v2 = vsel %vm155_vm1, %v117_v51, -inf  ;;  %v24_v39 = vld [vmem:[%s1278_s0 + $0x68] sm:$0xff] }
  0x3a   :  { %v345_v4 = vmax.f32 %v343_v58, %v344_v62  ;;  %v523_v7 = vadd.f32 %v522_v52, %v521_v48  ;;  %v467_v8 = vsel %vm155_vm1, %v308_v43, 0.0  ;;  %v348_v11 = vsel %vm155_vm1, %v70_v57, -inf  ;;  %v72_v53 = vld [vmem:[%s1278_s0 + $0x1e8] sm:$0xff] }
  0x3b   :  { %v334_v10 = vmax.f32 %v332_v61, %v333_v54  ;;  %v524_v12 = vsel %vm155_vm1, %v501_v55, 0.0  ;;  %v325_v13 = vmax.f32 %v323_v0, %v324_v49  ;;  %v339_v14 = vsel %vm155_vm1, %v133_v60, -inf  ;;  %v119_v49 = vld [vmem:[%s1278_s0 + $0x360] sm:$0xff]  ;;  %v88_v61 = vld [vmem:[%s1278_s0 + $0x268] sm:$0xff] }
  0x3c   :  { %v347_v17 = vmax.f32 %v345_v4, %v346_v63  ;;  %v350_v20 = vsel %vm155_vm1, %v86_v3, -inf  ;;  %v360_v21 = vsel %vm155_vm1, %v23_v5, -inf  ;;  %v361_v22 = vsel %vm155_vm1, %v39_v6, -inf  ;;  %v151_v0 = vld [vmem:[%s1278_s0 + $0x460] sm:$0xff]  ;;  %v104_v6 = vld [vmem:[%s1278_s0 + $0x2e8] sm:$0xff] }
  0x3d   :  { %v336_v19 = vmax.f32 %v334_v10, %v335_v1  ;;  %v468_v23 = vadd.f32 %v467_v8, %v466_v59  ;;  %437 = vst.msk [vmem:[%s1279_s1 + $0x48] sm:$0xff] %vm155_vm1, %v325_v13  ;;  %v341_v24 = vsel %vm155_vm1, %v149_v9, -inf  ;;  %v362_v29 = vmax.f32 %v360_v21, %v361_v22  ;;  %v135_v59 = vld [vmem:[%s1278_s0 + $0x3e0] sm:$0xff]  ;;  %v25_v8 = vld [vmem:[%s1278_s0 + $0x70] sm:$0xff] }
  0x3e   :  { %v349_v27 = vmax.f32 %v347_v17, %v348_v11  ;;  %v352_v31 = vsel %vm155_vm1, %v102_v15, -inf  ;;  %v363_v33 = vsel %vm155_vm1, %v55_v16, -inf  ;;  %v365_v35 = vsel %vm155_vm1, %v71_v18, -inf  ;;  %v41_v9 = vld [vmem:[%s1278_s0 + $0xf0] sm:$0xff]  ;;  %v120_v18 = vld [vmem:[%s1278_s0 + $0x368] sm:$0xff] }
  0x3f   :  { %v338_v30 = vmax.f32 %v336_v19, %v337_v2  ;;  %v525_v36 = vadd.f32 %v524_v12, %v523_v7  ;;  %v502_v37 = vmul.f32 %v325_v13, %v325_v13  ;;  %v364_v34 = vmax.f32 %v362_v29, %v363_v33  ;;  %v73_v22 = vld [vmem:[%s1278_s0 + $0x1f0] sm:$0xff] }
  0x40   :  { %v351_v38 = vmax.f32 %v349_v27, %v350_v20  ;;  %v354_v43 = vsel %vm155_vm1, %v118_v25, -inf  ;;  %v356_v44 = vsel %vm155_vm1, %v134_v26, -inf  ;;  %v367_v45 = vsel %vm155_vm1, %v87_v28, -inf  ;;  %v136_v27 = vld [vmem:[%s1278_s0 + $0x3e8] sm:$0xff]  ;;  %v89_v33 = vld [vmem:[%s1278_s0 + $0x270] sm:$0xff] }
  0x41   :  { %v340_v42 = vmax.f32 %v338_v30, %v339_v14  ;;  %v469_v46 = vsel %vm155_vm1, %v325_v13, 0.0  ;;  %v366_v50 = vmax.f32 %v364_v34, %v365_v35  ;;  %v369_v51 = vsel %vm155_vm1, %v103_v32, -inf  ;;  %v57_v14 = vld [vmem:[%s1278_s0 + $0x170] sm:$0xff]  ;;  %v152_v28 = vld [vmem:[%s1278_s0 + $0x468] sm:$0xff] }
  0x42   :  { %v353_v48 = vmax.f32 %v351_v38, %v352_v31  ;;  %v377_v52 = vsel %vm155_vm1, %v24_v39, -inf  ;;  %v378_v55 = vsel %vm155_vm1, %v40_v40, -inf  ;;  %v380_v56 = vsel %vm155_vm1, %v56_v41, -inf  ;;  %v105_v39 = vld [vmem:[%s1278_s0 + $0x2f0] sm:$0xff]  ;;  %v42_v41 = vld [vmem:[%s1278_s0 + $0xf8] sm:$0xff] }
  0x43   :  { %v342_v54 = vmax.f32 %v340_v42, %v341_v24  ;;  %v526_v57 = vsel %vm155_vm1, %v502_v37, 0.0  ;;  %v368_v60 = vmax.f32 %v366_v50, %v367_v45  ;;  %v379_v62 = vmax.f32 %v377_v52, %v378_v55  ;;  %v58_v42 = vld [vmem:[%s1278_s0 + $0x178] sm:$0xff] }
  0x44   :  { %v355_v58 = vmax.f32 %v353_v48, %v354_v43  ;;  %v358_v63 = vsel %vm155_vm1, %v150_v47, -inf  ;;  %v371_v1 = vsel %vm155_vm1, %v119_v49, -inf  ;;  %v382_v2 = vsel %vm155_vm1, %v72_v53, -inf  ;;  %v74_v50 = vld [vmem:[%s1278_s0 + $0x1f8] sm:$0xff]  ;;  %v121_v53 = vld [vmem:[%s1278_s0 + $0x370] sm:$0xff] }
  0x45   :  { %438 = vst.msk [vmem:[%s1279_s1 + $0x50] sm:$0xff] %vm155_vm1, %v342_v54  ;;  %v503_v3 = vmul.f32 %v342_v54, %v342_v54  ;;  %v370_v5 = vmax.f32 %v368_v60, %v369_v51  ;;  %v381_v7 = vmax.f32 %v379_v62, %v380_v56  ;;  %v470_v10 = vadd.f32 %v469_v46, %v468_v23  ;;  %v90_v60 = vld [vmem:[%s1278_s0 + $0x278] sm:$0xff] }
  0x46   :  { %v357_v4 = vmax.f32 %v355_v58, %v356_v44  ;;  %v527_v11 = vadd.f32 %v526_v57, %v525_v36  ;;  %v373_v12 = vsel %vm155_vm1, %v135_v59, -inf  ;;  %v384_v13 = vsel %vm155_vm1, %v88_v61, -inf  ;;  %v26_v36 = vld [vmem:[%s1278_s0 + $0x78] sm:$0xff] }
  0x47   :  { %v471_v15 = vsel %vm155_vm1, %v342_v54, 0.0  ;;  %v372_v16 = vmax.f32 %v370_v5, %v371_v1  ;;  %v383_v19 = vmax.f32 %v381_v7, %v382_v2  ;;  %v375_v20 = vsel %vm155_vm1, %v151_v0, -inf  ;;  %v106_v5 = vld [vmem:[%s1278_s0 + $0x2f8] sm:$0xff] }
  0x48   :  { %v359_v17 = vmax.f32 %v357_v4, %v358_v63  ;;  %v386_v21 = vsel %vm155_vm1, %v104_v6, -inf  ;;  %v394_v23 = vsel %vm155_vm1, %v25_v8, -inf  ;;  %v395_v24 = vsel %vm155_vm1, %v41_v9, -inf  ;;  %v137_v63 = vld [vmem:[%s1278_s0 + $0x3f0] sm:$0xff] }
  0x49   :  { %v528_v25 = vsel %vm155_vm1, %v503_v3, 0.0  ;;  %v374_v26 = vmax.f32 %v372_v16, %v373_v12  ;;  %v385_v29 = vmax.f32 %v383_v19, %v384_v13  ;;  %v397_v30 = vsel %vm155_vm1, %v57_v14, -inf  ;;  %v153_v8 = vld [vmem:[%s1278_s0 + $0x470] sm:$0xff]  ;;  %v122_v14 = vld [vmem:[%s1278_s0 + $0x378] sm:$0xff] }
  0x4a   :  { %439 = vst.msk [vmem:[%s1279_s1 + $0x58] sm:$0xff] %vm155_vm1, %v359_v17  ;;  %v472_v31 = vadd.f32 %v471_v15, %v470_v10  ;;  %v388_v32 = vsel %vm155_vm1, %v120_v18, -inf  ;;  %v396_v35 = vmax.f32 %v394_v23, %v395_v24  ;;  %v504_v37 = vmul.f32 %v359_v17, %v359_v17 }
  0x4b   :  { %v376_v38 = vmax.f32 %v374_v26, %v375_v20  ;;  %v387_v34 = vmax.f32 %v385_v29, %v386_v21  ;;  %v399_v40 = vsel %vm155_vm1, %v73_v22, -inf  ;;  %v529_v43 = vadd.f32 %v528_v25, %v527_v11  ;;  %v138_v21 = vld [vmem:[%s1278_s0 + $0x3f8] sm:$0xff] }
  0x4c   :  { %v390_v44 = vsel %vm155_vm1, %v136_v27, -inf  ;;  %v392_v45 = vsel %vm155_vm1, %v152_v28, -inf  ;;  %v398_v46 = vmax.f32 %v396_v35, %v397_v30  ;;  %v473_v47 = vsel %vm155_vm1, %v359_v17, 0.0  ;;  %v154_v27 = vld [vmem:[%s1278_s0 + $0x478] sm:$0xff] }
  0x4d   :  { %440 = vst.msk [vmem:[%s1279_s1 + $0x60] sm:$0xff] %vm155_vm1, %v376_v38  ;;  %v389_v48 = vmax.f32 %v387_v34, %v388_v32  ;;  %v401_v49 = vsel %vm155_vm1, %v89_v33, -inf  ;;  %v411_v51 = vsel %vm155_vm1, %v26_v36, -inf  ;;  %v403_v52 = vsel %vm155_vm1, %v105_v39, -inf }
  0x4e   :  { %v400_v54 = vmax.f32 %v398_v46, %v399_v40  ;;  %v412_v55 = vsel %vm155_vm1, %v42_v41, -inf  ;;  %v414_v56 = vsel %vm155_vm1, %v58_v42, -inf  ;;  %v530_v57 = vsel %vm155_vm1, %v504_v37, 0.0 }
  0x4f   :  { %v505_v58 = vmul.f32 %v376_v38, %v376_v38  ;;  %v391_v59 = vmax.f32 %v389_v48, %v390_v44  ;;  %v413_v61 = vmax.f32 %v411_v51, %v412_v55  ;;  %v474_v62 = vadd.f32 %v473_v47, %v472_v31 }
  0x50   :  { %v402_v0 = vmax.f32 %v400_v54, %v401_v49  ;;  %v416_v1 = vsel %vm155_vm1, %v74_v50, -inf  ;;  %v475_v2 = vsel %vm155_vm1, %v376_v38, 0.0  ;;  %v405_v4 = vsel %vm155_vm1, %v121_v53, -inf }
  0x51   :  { %v393_v3 = vmax.f32 %v391_v59, %v392_v45  ;;  %v415_v6 = vmax.f32 %v413_v61, %v414_v56  ;;  %v531_v7 = vadd.f32 %v530_v57, %v529_v43  ;;  %v418_v10 = vsel %vm155_vm1, %v90_v60, -inf  ;;  %v451_v56 = vld [vmem:[%s1276_s2] sm:$0x1] }
  0x52   :  { %v404_v9 = vmax.f32 %v402_v0, %v403_v52  ;;  %v532_v11 = vsel %vm155_vm1, %v505_v58, 0.0  ;;  %v407_v13 = vsel %vm155_vm1, %v137_v63, -inf  ;;  %v476_v17 = vadd.f32 %v475_v2, %v474_v62  ;;  %v492_v59 = vld [vmem:[%s1277_s3] sm:$0x1] }
  0x53   :  { %441 = vst.msk [vmem:[%s1279_s1 + $0x68] sm:$0xff] %vm155_vm1, %v393_v3  ;;  %v506_v12 = vmul.f32 %v393_v3, %v393_v3  ;;  %v417_v15 = vmax.f32 %v415_v6, %v416_v1  ;;  %v420_v18 = vsel %vm155_vm1, %v106_v5, -inf  ;;  %v477_v19 = vsel %vm155_vm1, %v393_v3, 0.0 }
  0x54   :  { %v406_v16 = vmax.f32 %v404_v9, %v405_v4  ;;  %v409_v20 = vsel %vm155_vm1, %v153_v8, -inf  ;;  %v533_v23 = vadd.f32 %v532_v11, %v531_v7  ;;  %v422_v25 = vsel %vm155_vm1, %v122_v14, -inf }
  0x55   :  { %v419_v22 = vmax.f32 %v417_v15, %v418_v10  ;;  %v534_v26 = vsel %vm155_vm1, %v506_v12, 0.0  ;;  %v478_v29 = vadd.f32 %v477_v19, %v476_v17  ;;  %v424_v31 = vsel %vm155_vm1, %v138_v21, -inf }
  0x56   :  { %v408_v24 = vmax.f32 %v406_v16, %v407_v13  ;;  %v535_v33 = vadd.f32 %v534_v26, %v533_v23  ;;  %v426_v37 = vsel %vm155_vm1, %v154_v27, -inf }
  0x57   :  { %v421_v28 = vmax.f32 %v419_v22, %v420_v18 }
  0x58   :  { %v410_v30 = vmax.f32 %v408_v24, %v409_v20 }
  0x59   :  { %v423_v32 = vmax.f32 %v421_v28, %v422_v25 }
  0x5a   :  { %442 = vst.msk [vmem:[%s1279_s1 + $0x70] sm:$0xff] %vm155_vm1, %v410_v30  ;;  %v479_v35 = vsel %vm155_vm1, %v410_v30, 0.0  ;;  %v507_v36 = vmul.f32 %v410_v30, %v410_v30 }
  0x5b   :  { %v425_v38 = vmax.f32 %v423_v32, %v424_v31  ;;  %v480_v34 = vadd.f32 %v479_v35, %v478_v29 }
  0x5c   :  { %v536_v39 = vsel %vm155_vm1, %v507_v36, 0.0 }
  0x5d   :  { %v427_v40 = vmax.f32 %v425_v38, %v426_v37  ;;  %v537_v41 = vadd.f32 %v536_v39, %v535_v33 }
  0x5f   :  { %443 = vst.msk [vmem:[%s1279_s1 + $0x78] sm:$0xff] %vm155_vm1, %v427_v40  ;;  %v481_v42 = vsel %vm155_vm1, %v427_v40, 0.0  ;;  %v508_v43 = vmul.f32 %v427_v40, %v427_v40 }
  0x60   :  { %v482_v44 = vadd.f32 %v481_v42, %v480_v34 }
  0x61   :  { %v538_v45 = vsel %vm155_vm1, %v508_v43, 0.0 }
  0x62   :  { %v483_v46 = vrot.slane %v482_v44, 4  ;;  %v539_v47 = vadd.f32 %v538_v45, %v537_v41 }
  0x64   :  { %v484_v48 = vadd.f32 %v483_v46, %v482_v44  ;;  %v540_v49 = vrot.slane %v539_v47, 4 }
  0x66   :  { %v485_v50 = vrot.slane %v484_v48, 2  ;;  %v541_v51 = vadd.f32 %v540_v49, %v539_v47 }
  0x68   :  { %v486_v53 = vadd.f32 %v485_v50, %v484_v48  ;;  %v542_v54 = vrot.slane %v541_v51, 2 }
  0x6a   :  { %v487_v52 = vrot.slane %v486_v53, 1  ;;  %v543_v55 = vadd.f32 %v542_v54, %v541_v51 }
  0x6c   :  { %v488_v57 = vadd.f32 %v487_v52, %v486_v53  ;;  %v544_v58 = vrot.slane %v543_v55, 1 }
  0x6e   :  { %v489_v60 = vadd.f32 %v488_v57, %v451_v56  ;;  %v545_v61 = vadd.f32 %v544_v58, %v543_v55 }
  0x70   :  { %491 = vst.msk [vmem:[%s1276_s2] sm:$0x1] %vm448_vm0, %v489_v60  ;;  %v546_v62 = vadd.f32 %v545_v61, %v492_v59 }
  0x72   :  { %547 = vst.msk [vmem:[%s1277_s3] sm:$0x1] %vm448_vm0, %v546_v62 }

// kernel: densenet_forward.24
= control target key start
LH: loop header
LB: loop body
LE: loop exit
PB: predicated region body
PF: predicated region fallthrough
CT: control target
= control target key end

     0   :  { %vm231_vm0 = vcmask 261120   ;;  %vm471_vm1 = vcmask 57344   ;;  %vm450_vm2 = vcmask 64512   ;;  %s1100_s1 = inlined_call_operand.vmem [shape: bf16[288,8], index: 1, kind: input, shape index: {}]   ;;  %s1101_s0 = inlined_call_operand.vmem [shape: f32[128,288], index: 0, kind: input, shape index: {}]   ;;  %s1102_s3 = inlined_call_operand.vmem [shape: f32[1,8], index: 3, kind: output, shape index: {1}]   ;;  %s1103_s4 = inlined_call_operand.vmem [shape: f32[1,8], index: 4, kind: output, shape index: {2}]   ;;  %s1104_s2 = inlined_call_operand.vmem [shape: f32[128,8], index: 2, kind: output, shape index: {0}]  }
   0x1   :  { %v720_v0 = vld [vmem:[%s1100_s1 + $0x40] sm:$0xff]   ;;  %v722_v2 = vld [vmem:[%s1100_s1 + $0x48] sm:$0xff]   ;;  %v724_v4 = vld [vmem:[%s1100_s1 + $0x50] sm:$0xff]  }
   0x2   :  { %v721_v1 = vld [vmem:[%s1100_s1] sm:$0xff]   ;;  %609 = vmatprep.subr.bf16.mxu0 %v720_v0  ;;  %703 = vmatprep.subr.bf16.mxu1 %v720_v0  ;;  %v723_v3 = vld [vmem:[%s1100_s1 + $0x8] sm:$0xff]   ;;  %v725_v5 = vld [vmem:[%s1100_s1 + $0x10] sm:$0xff]  }
   0x3   :  { %610 = vmatpush3.bf16.msra.mxu0 %v721_v1  ;;  %711 = vmatpush3.bf16.msra.mxu1 %v721_v1  ;;  %v726_v6 = vld [vmem:[%s1100_s1 + $0x58] sm:$0xff]   ;;  %v728_v8 = vld [vmem:[%s1100_s1 + $0x60] sm:$0xff]   ;;  %v730_v10 = vld [vmem:[%s1100_s1 + $0x68] sm:$0xff]  }
   0x4   :  { %611 = vmatprep.subr.bf16.mxu0 %v722_v2  ;;  %704 = vmatprep.subr.bf16.mxu1 %v722_v2  ;;  %v727_v7 = vld [vmem:[%s1100_s1 + $0x18] sm:$0xff]   ;;  %v729_v9 = vld [vmem:[%s1100_s1 + $0x20] sm:$0xff]   ;;  %v16_v11 = vld [vmem:[%s1101_s0 + $0x8] sm:$0xff] }
   0x5   :  { %v19_v12 = vld [vmem:[%s1101_s0 + $0x20] sm:$0xff]  ;;  %v52_v13 = vld [vmem:[%s1101_s0 + $0x128] sm:$0xff]  ;;  %v732_v18 = vld [vmem:[%s1100_s1 + $0x70] sm:$0xff]  }
   0x6   :  { %v64_v14 = vpack.c.bf16 %v19_v12, %v16_v11  ;;  %v55_v15 = vld [vmem:[%s1101_s0 + $0x140] sm:$0xff]  ;;  %v731_v17 = vld [vmem:[%s1100_s1 + $0x28] sm:$0xff]   ;;  %v733_v19 = vld [vmem:[%s1100_s1 + $0x30] sm:$0xff]  }
   0x7   :  { %612 = vmatpush3.bf16.msra.mxu0 %v723_v3  ;;  %712 = vmatpush3.bf16.msra.mxu1 %v723_v3  ;;  %v82_v16 = vpack.c.bf16 %v55_v15, %v52_v13  ;;  %v734_v20 = vld [vmem:[%s1100_s1 + $0x78] sm:$0xff]   ;;  %v15_v22 = vld [vmem:[%s1101_s0] sm:$0xff]  ;;  %v25_v28 = vld [vmem:[%s1101_s0 + $0x50] sm:$0xff] }
   0x8   :  { %613 = vmatprep.subr.bf16.mxu0 %v724_v4  ;;  %705 = vmatprep.subr.bf16.mxu1 %v724_v4  ;;  %v735_v21 = vld [vmem:[%s1100_s1 + $0x38] sm:$0xff]   ;;  %v51_v24 = vld [vmem:[%s1101_s0 + $0x120] sm:$0xff]  ;;  %v61_v30 = vld [vmem:[%s1101_s0 + $0x170] sm:$0xff] }
   0x9   :  { %288 = vmatprep.mubr.bf16.mxu0 %v64_v14  ;;  %336 = vmatprep.mubr.bf16.mxu1 %v82_v16  ;;  %v18_v23 = vld [vmem:[%s1101_s0 + $0x18] sm:$0xff]  ;;  %v736_v26 = vld [vmem:[%s1100_s1 + $0x80] sm:$0xff]   ;;  %v737_v35 = vld [vmem:[%s1100_s1 + $0x88] sm:$0xff]  }
   0xa   :  { %v54_v25 = vld [vmem:[%s1101_s0 + $0x138] sm:$0xff]  ;;  %v63_v31 = vpack.c.bf16 %v18_v23, %v15_v22  ;;  %v21_v36 = vld [vmem:[%s1101_s0 + $0x30] sm:$0xff]  ;;  %v24_v37 = vld [vmem:[%s1101_s0 + $0x48] sm:$0xff] }
   0xb   :  { %614 = vmatpush3.bf16.msra.mxu0 %v725_v5  ;;  %713 = vmatpush3.bf16.msra.mxu1 %v725_v5  ;;  %v22_v27 = vld [vmem:[%s1101_s0 + $0x38] sm:$0xff]  ;;  %v81_v32 = vpack.c.bf16 %v54_v25, %v51_v24  ;;  %v57_v38 = vld [vmem:[%s1101_s0 + $0x150] sm:$0xff]  ;;  %v60_v39 = vld [vmem:[%s1101_s0 + $0x168] sm:$0xff]  ;;  %v66_v44 = vpack.c.bf16 %v24_v37, %v21_v36 }
   0xc   :  { %615 = vmatprep.subr.bf16.mxu0 %v726_v6  ;;  %706 = vmatprep.subr.bf16.mxu1 %v726_v6  ;;  %v58_v29 = vld [vmem:[%s1101_s0 + $0x158] sm:$0xff]  ;;  %v67_v33 = vpack.c.bf16 %v25_v28, %v22_v27  ;;  %v28_v40 = vld [vmem:[%s1101_s0 + $0x68] sm:$0xff]  ;;  %v31_v41 = vld [vmem:[%s1101_s0 + $0x80] sm:$0xff]  ;;  %v84_v45 = vpack.c.bf16 %v60_v39, %v57_v38 }
   0xd   :  { %v85_v34 = vpack.c.bf16 %v61_v30, %v58_v29  ;;  %v17_v42 = vld [vmem:[%s1101_s0 + $0x10] sm:$0xff]  ;;  %v20_v43 = vld [vmem:[%s1101_s0 + $0x28] sm:$0xff]  ;;  %v70_v46 = vpack.c.bf16 %v31_v41, %v28_v40  ;;  %v27_v48 = vld [vmem:[%s1101_s0 + $0x60] sm:$0xff] }
   0xe   :  { %v65_v47 = vpack.c.bf16 %v20_v43, %v17_v42  ;;  %v30_v49 = vld [vmem:[%s1101_s0 + $0x78] sm:$0xff]  ;;  %v23_v50 = vld [vmem:[%s1101_s0 + $0x40] sm:$0xff]  ;;  %v37_v53 = vld [vmem:[%s1101_s0 + $0xb0] sm:$0xff] }
   0xf   :  { %616 = vmatpush3.bf16.msra.mxu0 %v727_v7  ;;  %714 = vmatpush3.bf16.msra.mxu1 %v727_v7  ;;  %v26_v51 = vld [vmem:[%s1101_s0 + $0x58] sm:$0xff]  ;;  %v29_v54 = vld [vmem:[%s1101_s0 + $0x70] sm:$0xff]  ;;  %v32_v55 = vld [vmem:[%s1101_s0 + $0x88] sm:$0xff]  ;;  %v69_v56 = vpack.c.bf16 %v30_v49, %v27_v48 }
  0x10   :  { %617 = vmatprep.subr.bf16.mxu0 %v728_v8  ;;  %707 = vmatprep.subr.bf16.mxu1 %v728_v8  ;;  %v34_v52 = vld [vmem:[%s1101_s0 + $0x98] sm:$0xff]  ;;  %v68_v57 = vpack.c.bf16 %v26_v51, %v23_v50  ;;  %v71_v59 = vpack.c.bf16 %v32_v55, %v29_v54  ;;  %v33_v60 = vld [vmem:[%s1101_s0 + $0x90] sm:$0xff]  ;;  %v36_v61 = vld [vmem:[%s1101_s0 + $0xa8] sm:$0xff] }
  0x11   :  { %v73_v58 = vpack.c.bf16 %v37_v53, %v34_v52  ;;  %v35_v62 = vld [vmem:[%s1101_s0 + $0xa0] sm:$0xff]  ;;  %v38_v63 = vld [vmem:[%s1101_s0 + $0xb8] sm:$0xff]  ;;  %v40_v0 = vld [vmem:[%s1101_s0 + $0xc8] sm:$0xff]  ;;  %v72_v4 = vpack.c.bf16 %v36_v61, %v33_v60 }
  0x12   :  { %v43_v1 = vld [vmem:[%s1101_s0 + $0xe0] sm:$0xff]  ;;  %v41_v2 = vld [vmem:[%s1101_s0 + $0xd0] sm:$0xff]  ;;  %v44_v3 = vld [vmem:[%s1101_s0 + $0xe8] sm:$0xff]  ;;  %v74_v5 = vpack.c.bf16 %v38_v63, %v35_v62 }
  0x13   :  { %618 = vmatpush3.bf16.msra.mxu0 %v729_v9  ;;  %715 = vmatpush3.bf16.msra.mxu1 %v729_v9  ;;  %v76_v6 = vpack.c.bf16 %v43_v1, %v40_v0  ;;  %v77_v7 = vpack.c.bf16 %v44_v3, %v41_v2  ;;  %v39_v8 = vld [vmem:[%s1101_s0 + $0xc0] sm:$0xff]  ;;  %v42_v9 = vld [vmem:[%s1101_s0 + $0xd8] sm:$0xff]  ;;  %v49_v13 = vld [vmem:[%s1101_s0 + $0x110] sm:$0xff] }
  0x14   :  { %619 = vmatprep.subr.bf16.mxu0 %v730_v10  ;;  %708 = vmatprep.subr.bf16.mxu1 %v730_v10  ;;  %v47_v10 = vld [vmem:[%s1101_s0 + $0x100] sm:$0xff]  ;;  %v50_v11 = vld [vmem:[%s1101_s0 + $0x118] sm:$0xff]  ;;  %v53_v14 = vld [vmem:[%s1101_s0 + $0x130] sm:$0xff]  ;;  %v75_v16 = vpack.c.bf16 %v42_v9, %v39_v8 }
  0x15   :  { %v46_v12 = vld [vmem:[%s1101_s0 + $0xf8] sm:$0xff]  ;;  %v56_v15 = vld [vmem:[%s1101_s0 + $0x148] sm:$0xff]  ;;  %v59_v22 = vld [vmem:[%s1101_s0 + $0x160] sm:$0xff] }
  0x16   :  { %v62_v23 = vld [vmem:[%s1101_s0 + $0x178] sm:$0xff] }
  0x17   :  { %620 = vmatpush3.bf16.msra.mxu0 %v731_v17  ;;  %716 = vmatpush3.bf16.msra.mxu1 %v731_v17  ;;  %v80_v17 = vpack.c.bf16 %v50_v11, %v47_v10  ;;  %v86_v25 = vpack.c.bf16 %v62_v23, %v59_v22 }
  0x18   :  { %621 = vmatprep.subr.bf16.mxu0 %v732_v18  ;;  %709 = vmatprep.subr.bf16.mxu1 %v732_v18  ;;  %v79_v18 = vpack.c.bf16 %v49_v13, %v46_v12 }
  0x1b   :  { %622 = vmatpush3.bf16.msra.mxu0 %v733_v19  ;;  %717 = vmatpush3.bf16.msra.mxu1 %v733_v19  ;;  %v83_v19 = vpack.c.bf16 %v56_v15, %v53_v14 }
  0x1c   :  { %623 = vmatprep.subr.bf16.mxu0 %v734_v20  ;;  %710 = vmatprep.subr.bf16.mxu1 %v734_v20  ;;  %v45_v20 = vld [vmem:[%s1101_s0 + $0xf0] sm:$0xff] }
  0x1f   :  { %624 = vmatpush3.bf16.msra.mxu0 %v735_v21  ;;  %718 = vmatpush3.bf16.msra.mxu1 %v735_v21  ;;  %v48_v21 = vld [vmem:[%s1101_s0 + $0x108] sm:$0xff] }
  0x20   :  { %683 = vmatprep.subr.bf16.mxu1 %v736_v26  ;;  %v78_v24 = vpack.c.bf16 %v48_v21, %v45_v20 }
  0x22   :  { %289 = vmatmul.mubr.bf16.vlgmr.msra.gmra.mrb[0].mxu0 %v63_v31  ;;  %337 = vmatmul.mubr.bf16.vlgmr.msra.gmra.mrb[0].mxu1 %v81_v32 }
  0x23   :  { %684 = vmatpush3.bf16.msra.mxu1 %v736_v26  ;;  %296 = vmatprep.mubr.bf16.mxu0 %v67_v33  ;;  %v738_v26 = vmov 0.0  }
  0x24   :  { %344 = vmatprep.mubr.bf16.mxu1 %v85_v34  ;;  %685 = vmatprep.subr.bf16.mxu1 %v737_v35  ;;  %472 = vst.msk [vmem:[%s1102_s3] sm:$0x1] %vm471_vm1, %v738_v26  ;;  %473 = vst.msk [vmem:[%s1103_s4] sm:$0x1] %vm471_vm1, %v738_v26 }
  0x27   :  { %686 = vmatpush3.bf16.msra.mxu1 %v737_v35 }
  0x2a   :  { %297 = vmatmul.mubr.bf16.gmra.mrb[4].mxu0 %v66_v44  ;;  %345 = vmatmul.mubr.bf16.gmra.mrb[4].mxu1 %v84_v45 }
  0x2b   :  { %304 = vmatprep.mubr.bf16.mxu0 %v70_v46  ;;  %687 = vmatprep.mubr.msk.bf16.mxu1 %vm231_vm0, %v65_v47 }
  0x32   :  { %305 = vmatmul.mubr.bf16.gmra.mrb[8].mxu0 %v69_v56  ;;  %688 = vmatmul.mubr.msk.bf16.vlgmr.msra.gmra.mrb[8].mxu1 %vm231_vm0, %v68_v57 }
  0x33   :  { %312 = vmatprep.mubr.bf16.mxu0 %v73_v58  ;;  %691 = vmatprep.mubr.msk.bf16.mxu1 %vm231_vm0, %v71_v59 }
  0x3a   :  { %313 = vmatmul.mubr.bf16.gmra.mrb[12].mxu0 %v72_v4  ;;  %692 = vmatmul.mubr.msk.bf16.gmra.mrb[12].mxu1 %vm231_vm0, %v74_v5 }
  0x3b   :  { %320 = vmatprep.mubr.bf16.mxu0 %v76_v6  ;;  %695 = vmatprep.mubr.msk.bf16.mxu1 %vm231_vm0, %v77_v7 }
  0x42   :  { %321 = vmatmul.mubr.bf16.gmra.mrb[16].mxu0 %v75_v16  ;;  %696 = vmatmul.mubr.msk.bf16.gmra.mrb[16].mxu1 %vm231_vm0, %v80_v17 }
  0x43   :  { %328 = vmatprep.mubr.bf16.mxu0 %v79_v18  ;;  %699 = vmatprep.mubr.msk.bf16.mxu1 %vm231_vm0, %v83_v19 }
  0x4a   :  { %329 = vmatmul.mubr.bf16.gmra.mrb[20].mxu0 %v78_v24  ;;  %700 = vmatmul.mubr.msk.bf16.gmra.mrb[20].mxu1 %vm231_vm0, %v86_v25 }
  0xf5   :  { %v625_v27 = vpop.f32.mrb[0].mxu0  ;;  %v661_v28 = vpop.f32.mrb[0].mxu1 }
  0xf6   :  { %v626_v29 = vpop.f32.mrb[1].mxu0  ;;  %v662_v30 = vpop.f32.mrb[1].mxu1 }
  0xf7   :  { %v627_v31 = vadd.f32 %v626_v29, %v625_v27  ;;  %v628_v32 = vpop.f32.mrb[2].mxu0  ;;  %v978_v33 = vadd.f32 %v662_v30, %v661_v28  ;;  %v664_v34 = vpop.f32.mrb[2].mxu1 }
  0xf8   :  { %v629_v35 = vpop.f32.mrb[3].mxu0  ;;  %v665_v36 = vpop.f32.mrb[3].mxu1 }
  0xf9   :  { %v630_v37 = vadd.f32 %v629_v35, %v628_v32  ;;  %v980_v38 = vadd.f32 %v665_v36, %v664_v34 }
  0xfd   :  { %v631_v39 = vpop.f32.mrb[4].mxu0  ;;  %v667_v40 = vpop.f32.mrb[4].mxu1 }
  0xfe   :  { %v632_v41 = vpop.f32.mrb[5].mxu0  ;;  %v668_v42 = vpop.f32.mrb[5].mxu1 }
  0xff   :  { %v633_v43 = vadd.f32 %v632_v41, %v631_v39  ;;  %v634_v44 = vpop.f32.mrb[6].mxu0  ;;  %v982_v45 = vadd.f32 %v668_v42, %v667_v40  ;;  %v670_v46 = vpop.f32.mrb[6].mxu1 }
 0x100   :  { %v635_v47 = vpop.f32.mrb[7].mxu0  ;;  %v671_v48 = vpop.f32.mrb[7].mxu1 }
 0x101   :  { %v636_v49 = vadd.f32 %v635_v47, %v634_v44  ;;  %v984_v50 = vadd.f32 %v671_v48, %v670_v46 }
 0x105   :  { %v637_v51 = vpop.f32.mrb[8].mxu0  ;;  %v689_v52 = vpop.f32.mrb[8].mxu1 }
 0x106   :  { %v396_v53 = vadd.f32 %v689_v52, %v633_v43  ;;  %v638_v54 = vpop.f32.mrb[9].mxu0  ;;  %v387_v55 = vpop.f32.mrb[9].mxu1 }
 0x107   :  { %v639_v56 = vadd.f32 %v638_v54, %v637_v51  ;;  %v388_v57 = vadd.f32 %v627_v31, %v387_v55  ;;  %v640_v58 = vpop.f32.mrb[10].mxu0  ;;  %v690_v59 = vpop.f32.mrb[10].mxu1 }
 0x108   :  { %453 = vst.msk [vmem:[%s1104_s2 + $0x10] sm:$0xff] %vm450_vm2, %v396_v53  ;;  %v399_v60 = vadd.f32 %v690_v59, %v636_v49  ;;  %v641_v61 = vpop.f32.mrb[11].mxu0  ;;  %v390_v62 = vpop.f32.mrb[11].mxu1  ;;  %v518_v2 = vmul.f32 %v396_v53, %v396_v53  ;;  %v478_v8 = vsel %vm450_vm2, %v396_v53, 0.0 }
 0x109   :  { %451 = vst.msk [vmem:[%s1104_s2] sm:$0xff] %vm450_vm2, %v388_v57  ;;  %v516_v63 = vmul.f32 %v388_v57, %v388_v57  ;;  %v642_v0 = vadd.f32 %v641_v61, %v640_v58  ;;  %v391_v1 = vadd.f32 %v630_v37, %v390_v62  ;;  %v475_v3 = vsel %vm450_vm2, %v388_v57, 0.0 }
 0x10a   :  { %454 = vst.msk [vmem:[%s1104_s2 + $0x18] sm:$0xff] %vm450_vm2, %v399_v60  ;;  %v519_v6 = vmul.f32 %v399_v60, %v399_v60  ;;  %v535_v17 = vsel %vm450_vm2, %v518_v2, 0.0  ;;  %v480_v18 = vsel %vm450_vm2, %v399_v60, 0.0 }
 0x10b   :  { %452 = vst.msk [vmem:[%s1104_s2 + $0x8] sm:$0xff] %vm450_vm2, %v391_v1  ;;  %v476_v4 = vsel %vm450_vm2, %v391_v1, 0.0  ;;  %v517_v5 = vmul.f32 %v391_v1, %v391_v1  ;;  %v532_v9 = vsel %vm450_vm2, %v516_v63, 0.0 }
 0x10c   :  { %v477_v7 = vadd.f32 %v476_v4, %v475_v3  ;;  %v537_v23 = vsel %vm450_vm2, %v519_v6, 0.0 }
 0x10d   :  { %v533_v10 = vsel %vm450_vm2, %v517_v5, 0.0  ;;  %v643_v11 = vpop.f32.mrb[12].mxu0  ;;  %v693_v12 = vpop.f32.mrb[12].mxu1 }
 0x10e   :  { %v479_v13 = vadd.f32 %v478_v8, %v477_v7  ;;  %v534_v14 = vadd.f32 %v533_v10, %v532_v9  ;;  %v644_v15 = vpop.f32.mrb[13].mxu0  ;;  %v403_v16 = vpop.f32.mrb[13].mxu1 }
 0x10f   :  { %v645_v19 = vadd.f32 %v644_v15, %v643_v11  ;;  %v404_v20 = vadd.f32 %v639_v56, %v403_v16  ;;  %v646_v21 = vpop.f32.mrb[14].mxu0  ;;  %v694_v22 = vpop.f32.mrb[14].mxu1 }
 0x110   :  { %v536_v24 = vadd.f32 %v535_v17, %v534_v14  ;;  %v481_v25 = vadd.f32 %v480_v18, %v479_v13  ;;  %v647_v26 = vpop.f32.mrb[15].mxu0  ;;  %v406_v27 = vpop.f32.mrb[15].mxu1 }
 0x111   :  { %v412_v28 = vadd.f32 %v693_v12, %v645_v19  ;;  %455 = vst.msk [vmem:[%s1104_s2 + $0x20] sm:$0xff] %vm450_vm2, %v404_v20  ;;  %v482_v29 = vsel %vm450_vm2, %v404_v20, 0.0  ;;  %v520_v30 = vmul.f32 %v404_v20, %v404_v20  ;;  %v648_v31 = vadd.f32 %v647_v26, %v646_v21 }
 0x112   :  { %v483_v32 = vadd.f32 %v482_v29, %v481_v25  ;;  %v538_v34 = vadd.f32 %v537_v23, %v536_v24  ;;  %v407_v35 = vadd.f32 %v642_v0, %v406_v27 }
 0x113   :  { %457 = vst.msk [vmem:[%s1104_s2 + $0x30] sm:$0xff] %vm450_vm2, %v412_v28  ;;  %v539_v36 = vsel %vm450_vm2, %v520_v30, 0.0  ;;  %v415_v37 = vadd.f32 %v694_v22, %v648_v31  ;;  %v522_v39 = vmul.f32 %v412_v28, %v412_v28  ;;  %v486_v47 = vsel %vm450_vm2, %v412_v28, 0.0 }
 0x114   :  { %v540_v40 = vadd.f32 %v539_v36, %v538_v34  ;;  %456 = vst.msk [vmem:[%s1104_s2 + $0x28] sm:$0xff] %vm450_vm2, %v407_v35  ;;  %v484_v41 = vsel %vm450_vm2, %v407_v35, 0.0  ;;  %v521_v42 = vmul.f32 %v407_v35, %v407_v35 }
 0x115   :  { %458 = vst.msk [vmem:[%s1104_s2 + $0x38] sm:$0xff] %vm450_vm2, %v415_v37  ;;  %v485_v43 = vadd.f32 %v484_v41, %v483_v32  ;;  %v649_v44 = vpop.f32.mrb[16].mxu0  ;;  %v697_v46 = vpop.f32.mrb[16].mxu1  ;;  %v523_v48 = vmul.f32 %v415_v37, %v415_v37  ;;  %v543_v58 = vsel %vm450_vm2, %v522_v39, 0.0  ;;  %v488_v59 = vsel %vm450_vm2, %v415_v37, 0.0 }
 0x116   :  { %v541_v49 = vsel %vm450_vm2, %v521_v42, 0.0  ;;  %v650_v51 = vpop.f32.mrb[17].mxu0  ;;  %v419_v52 = vpop.f32.mrb[17].mxu1 }
 0x117   :  { %v487_v53 = vadd.f32 %v486_v47, %v485_v43  ;;  %v542_v54 = vadd.f32 %v541_v49, %v540_v40  ;;  %v651_v55 = vadd.f32 %v650_v51, %v649_v44  ;;  %v652_v56 = vpop.f32.mrb[18].mxu0  ;;  %v698_v57 = vpop.f32.mrb[18].mxu1  ;;  %v545_v2 = vsel %vm450_vm2, %v523_v48, 0.0 }
 0x118   :  { %v653_v60 = vpop.f32.mrb[19].mxu0  ;;  %v422_v61 = vpop.f32.mrb[19].mxu1 }
 0x119   :  { %v544_v62 = vadd.f32 %v543_v58, %v542_v54  ;;  %v654_v63 = vadd.f32 %v653_v60, %v652_v56  ;;  %v420_v0 = vadd.f32 %v651_v55, %v419_v52  ;;  %v489_v1 = vadd.f32 %v488_v59, %v487_v53 }
 0x11b   :  { %459 = vst.msk [vmem:[%s1104_s2 + $0x40] sm:$0xff] %vm450_vm2, %v420_v0  ;;  %v490_v3 = vsel %vm450_vm2, %v420_v0, 0.0  ;;  %v524_v4 = vmul.f32 %v420_v0, %v420_v0  ;;  %v546_v5 = vadd.f32 %v545_v2, %v544_v62  ;;  %v423_v6 = vadd.f32 %v654_v63, %v422_v61 }
 0x11c   :  { %v491_v7 = vadd.f32 %v490_v3, %v489_v1 }
 0x11d   :  { %v547_v8 = vsel %vm450_vm2, %v524_v4, 0.0  ;;  %460 = vst.msk [vmem:[%s1104_s2 + $0x48] sm:$0xff] %vm450_vm2, %v423_v6  ;;  %v492_v9 = vsel %vm450_vm2, %v423_v6, 0.0  ;;  %v525_v10 = vmul.f32 %v423_v6, %v423_v6  ;;  %v655_v11 = vpop.f32.mrb[20].mxu0  ;;  %v701_v12 = vpop.f32.mrb[20].mxu1 }
 0x11e   :  { %v548_v13 = vadd.f32 %v547_v8, %v546_v5  ;;  %v493_v14 = vadd.f32 %v492_v9, %v491_v7  ;;  %v444_v15 = vadd.f32 %v701_v12, %v982_v45  ;;  %v656_v16 = vpop.f32.mrb[21].mxu0  ;;  %v435_v17 = vpop.f32.mrb[21].mxu1  ;;  %v474_v6 = vld [vmem:[%s1102_s3] sm:$0x1] }
 0x11f   :  { %v549_v18 = vsel %vm450_vm2, %v525_v10, 0.0  ;;  %v657_v19 = vadd.f32 %v656_v16, %v655_v11  ;;  %v436_v20 = vadd.f32 %v978_v33, %v435_v17  ;;  %v658_v21 = vpop.f32.mrb[22].mxu0  ;;  %v702_v22 = vpop.f32.mrb[22].mxu1  ;;  %v515_v9 = vld [vmem:[%s1103_s4] sm:$0x1] }
 0x120   :  { %v550_v23 = vadd.f32 %v549_v18, %v548_v13  ;;  %465 = vst.msk [vmem:[%s1104_s2 + $0x70] sm:$0xff] %vm450_vm2, %v444_v15  ;;  %v447_v24 = vadd.f32 %v702_v22, %v984_v50  ;;  %v659_v25 = vpop.f32.mrb[23].mxu0  ;;  %v438_v26 = vpop.f32.mrb[23].mxu1  ;;  %v530_v43 = vmul.f32 %v444_v15, %v444_v15  ;;  %v502_v49 = vsel %vm450_vm2, %v444_v15, 0.0 }
 0x121   :  { %v428_v45 = vadd.f32 %v697_v46, %v657_v19  ;;  %463 = vst.msk [vmem:[%s1104_s2 + $0x60] sm:$0xff] %vm450_vm2, %v436_v20  ;;  %v660_v27 = vadd.f32 %v659_v25, %v658_v21  ;;  %v439_v33 = vadd.f32 %v980_v38, %v438_v26  ;;  %v528_v32 = vmul.f32 %v436_v20, %v436_v20 }
 0x122   :  { %466 = vst.msk [vmem:[%s1104_s2 + $0x78] sm:$0xff] %vm450_vm2, %v447_v24  ;;  %v498_v37 = vsel %vm450_vm2, %v436_v20, 0.0  ;;  %v531_v51 = vmul.f32 %v447_v24, %v447_v24  ;;  %v559_v55 = vsel %vm450_vm2, %v530_v43, 0.0  ;;  %v504_v56 = vsel %vm450_vm2, %v447_v24, 0.0 }
 0x123   :  { %461 = vst.msk [vmem:[%s1104_s2 + $0x50] sm:$0xff] %vm450_vm2, %v428_v45  ;;  %v494_v50 = vsel %vm450_vm2, %v428_v45, 0.0  ;;  %v526_v28 = vmul.f32 %v428_v45, %v428_v45  ;;  %v431_v29 = vadd.f32 %v698_v57, %v660_v27  ;;  %464 = vst.msk [vmem:[%s1104_s2 + $0x68] sm:$0xff] %vm450_vm2, %v439_v33  ;;  %v529_v40 = vmul.f32 %v439_v33, %v439_v33 }
 0x124   :  { %v495_v30 = vadd.f32 %v494_v50, %v493_v14  ;;  %v555_v44 = vsel %vm450_vm2, %v528_v32, 0.0  ;;  %v500_v46 = vsel %vm450_vm2, %v439_v33, 0.0  ;;  %v561_v59 = vsel %vm450_vm2, %v531_v51, 0.0 }
 0x125   :  { %v551_v31 = vsel %vm450_vm2, %v526_v28, 0.0  ;;  %462 = vst.msk [vmem:[%s1104_s2 + $0x58] sm:$0xff] %vm450_vm2, %v431_v29  ;;  %v496_v38 = vsel %vm450_vm2, %v431_v29, 0.0  ;;  %v527_v34 = vmul.f32 %v431_v29, %v431_v29  ;;  %v557_v52 = vsel %vm450_vm2, %v529_v40, 0.0 }
 0x126   :  { %v552_v35 = vadd.f32 %v551_v31, %v550_v23  ;;  %v497_v36 = vadd.f32 %v496_v38, %v495_v30 }
 0x127   :  { %v553_v39 = vsel %vm450_vm2, %v527_v34, 0.0 }
 0x128   :  { %v554_v41 = vadd.f32 %v553_v39, %v552_v35  ;;  %v499_v42 = vadd.f32 %v498_v37, %v497_v36 }
 0x12a   :  { %v501_v47 = vadd.f32 %v500_v46, %v499_v42  ;;  %v556_v48 = vadd.f32 %v555_v44, %v554_v41 }
 0x12c   :  { %v503_v53 = vadd.f32 %v502_v49, %v501_v47  ;;  %v558_v54 = vadd.f32 %v557_v52, %v556_v48 }
 0x12e   :  { %v505_v57 = vadd.f32 %v504_v56, %v503_v53  ;;  %v560_v58 = vadd.f32 %v559_v55, %v558_v54 }
 0x130   :  { %v506_v60 = vrot.slane %v505_v57, 4  ;;  %v562_v61 = vadd.f32 %v561_v59, %v560_v58 }
 0x132   :  { %v507_v62 = vadd.f32 %v506_v60, %v505_v57  ;;  %v563_v63 = vrot.slane %v562_v61, 4 }
 0x134   :  { %v508_v0 = vrot.slane %v507_v62, 2  ;;  %v564_v1 = vadd.f32 %v563_v63, %v562_v61 }
 0x136   :  { %v509_v2 = vadd.f32 %v508_v0, %v507_v62  ;;  %v565_v3 = vrot.slane %v564_v1, 2 }
 0x138   :  { %v510_v4 = vrot.slane %v509_v2, 1  ;;  %v566_v5 = vadd.f32 %v565_v3, %v564_v1 }
 0x13a   :  { %v511_v7 = vadd.f32 %v510_v4, %v509_v2  ;;  %v567_v8 = vrot.slane %v566_v5, 1 }
 0x13c   :  { %v512_v10 = vadd.f32 %v511_v7, %v474_v6  ;;  %v568_v11 = vadd.f32 %v567_v8, %v566_v5 }
 0x13e   :  { %514 = vst.msk [vmem:[%s1102_s3] sm:$0x1] %vm471_vm1, %v512_v10  ;;  %v569_v12 = vadd.f32 %v568_v11, %v515_v9 }
 0x140   :  { %570 = vst.msk [vmem:[%s1103_s4] sm:$0x1] %vm471_vm1, %v569_v12 }

// kernel: densenet_forward.25
= control target key start
LH: loop header
LB: loop body
LE: loop exit
PB: predicated region body
PF: predicated region fallthrough
CT: control target
= control target key end

     0   :  { %vm144_vm0 = vcmask 1043456   ;;  %vm119_vm1 = vcmask 195584   ;;  %vm266_vm2 = vcmask 253952   ;;  %vm245_vm3 = vcmask 261120   ;;  %s690_s3 = inlined_call_operand.vmem [shape: bf16[24,32], index: 3, kind: input, shape index: {}]   ;;  %s691_s0 = inlined_call_operand.vmem [shape: f32[1,24], index: 0, kind: input, shape index: {}]   ;;  %s692_s1 = inlined_call_operand.vmem [shape: f32[1,24], index: 1, kind: input, shape index: {}]   ;;  %s693_s2 = inlined_call_operand.vmem [shape: f32[128,24], index: 2, kind: input, shape index: {}]   ;;  %s694_s5 = inlined_call_operand.vmem [shape: f32[1,32], index: 5, kind: output, shape index: {1}]   ;;  %s695_s6 = inlined_call_operand.vmem [shape: f32[1,32], index: 6, kind: output, shape index: {2}]   ;;  %s696_s4 = inlined_call_operand.vmem [shape: f32[128,32], index: 4, kind: output, shape index: {0}]  }
   0x1   :  { %v427_v0 = vld [vmem:[%s690_s3] sm:$0xff]   ;;  %v428_v1 = vld [vmem:[%s690_s3 + $0x8] ss:$0 sps:$4 sm:$0xff]   ;;  %v23_v8 = vld [vmem:[%s693_s2 + $0x10] sm:$0xff] }
   0x2   :  { %v21_v2 = vld [vmem:[%s693_s2] sm:$0xff]  ;;  %400 = vmatprep.subr.bf16.mxu0 %v427_v0  ;;  %v22_v3 = vld [vmem:[%s693_s2 + $0x8] sm:$0xff]  ;;  %420 = vmatprep.subr.bf16.mxu1 %v427_v0  ;;  %v24_v9 = vld [vmem:[%s693_s2 + $0x18] sm:$0xff]  ;;  %v146_v11 = vsel %vm144_vm0, %v428_v1, 0 }
   0x3   :  { %v480_v4 = vld [vmem:[%s691_s0] ss:$0 sm:$0xff]  ;;  %401 = vmatpush3.bf16.msra.mxu0 %v427_v0  ;;  %422 = vmatpush3.bf16.msra.mxu1 %v427_v0  ;;  %v26_v14 = vld [vmem:[%s693_s2 + $0x28] sm:$0xff]  ;;  %v27_v16 = vld [vmem:[%s693_s2 + $0x30] sm:$0xff] }
   0x4   :  { %v485_v5 = vld [vmem:[%s692_s1] ss:$0 sm:$0xff]  ;;  %v44_v6 = vmul.f32 %v480_v4, %v21_v2  ;;  %v45_v7 = vmul.f32 %v480_v4, %v22_v3  ;;  %424 = vmatprep.subr.msk.bf16.mxu0 %vm144_vm0, %v428_v1  ;;  %v46_v12 = vmul.f32 %v480_v4, %v23_v8  ;;  %v47_v13 = vmul.f32 %v480_v4, %v24_v9  ;;  %v28_v17 = vld [vmem:[%s693_s2 + $0x38] sm:$0xff]  ;;  %v30_v31 = vld [vmem:[%s693_s2 + $0x48] sm:$0xff] }
   0x5   :  { %v25_v10 = vld [vmem:[%s693_s2 + $0x20] sm:$0xff]  ;;  %425 = vmatprep.subr.msk.bf16.mxu1 %vm144_vm0, %v428_v1  ;;  %v49_v20 = vmul.f32 %v480_v4, %v26_v14  ;;  %v50_v21 = vmul.f32 %v480_v4, %v27_v16  ;;  %v51_v25 = vmul.f32 %v480_v4, %v28_v17  ;;  %v31_v32 = vld [vmem:[%s693_s2 + $0x50] sm:$0xff]  ;;  %v32_v37 = vld [vmem:[%s693_s2 + $0x58] sm:$0xff]  ;;  %v53_v45 = vmul.f32 %v480_v4, %v30_v31 }
   0x6   :  { %v48_v15 = vmul.f32 %v480_v4, %v25_v10  ;;  %v67_v18 = vadd.f32 %v485_v5, %v44_v6  ;;  %v68_v19 = vadd.f32 %v485_v5, %v45_v7  ;;  %v69_v22 = vadd.f32 %v485_v5, %v46_v12  ;;  %v29_v26 = vld [vmem:[%s693_s2 + $0x40] sm:$0xff]  ;;  %v34_v42 = vld [vmem:[%s693_s2 + $0x68] sm:$0xff]  ;;  %v35_v47 = vld [vmem:[%s693_s2 + $0x70] sm:$0xff] }
   0x7   :  { %v70_v23 = vadd.f32 %v485_v5, %v47_v13  ;;  %403 = vmatpush3.bf16.msra.mxu0 %v146_v11  ;;  %v72_v29 = vadd.f32 %v485_v5, %v49_v20  ;;  %v73_v30 = vadd.f32 %v485_v5, %v50_v21  ;;  %423 = vmatpush3.bf16.msra.mxu1 %v146_v11  ;;  %v33_v38 = vld [vmem:[%s693_s2 + $0x60] sm:$0xff]  ;;  %v36_v52 = vld [vmem:[%s693_s2 + $0x78] sm:$0xff]  ;;  %v429_v14 = vmov 0.0  }
   0x8   :  { %v71_v24 = vadd.f32 %v485_v5, %v48_v15  ;;  %v83_v27 = vmax.f32 %v67_v18, 0.0  ;;  %v84_v28 = vmax.f32 %v68_v19, 0.0  ;;  %v85_v33 = vmax.f32 %v69_v22, 0.0  ;;  %267 = vst.msk [vmem:[%s694_s5] sm:$0x1] %vm266_vm2, %v429_v14 }
   0x9   :  { %v86_v34 = vmax.f32 %v70_v23, 0.0  ;;  %v74_v36 = vadd.f32 %v485_v5, %v51_v25  ;;  %v88_v40 = vmax.f32 %v72_v29, 0.0  ;;  %v52_v41 = vmul.f32 %v480_v4, %v29_v26  ;;  %268 = vst.msk [vmem:[%s695_s6] sm:$0x1] %vm266_vm2, %v429_v14 }
   0xa   :  { %v87_v35 = vmax.f32 %v71_v24, 0.0  ;;  %v99_v39 = vpack.c.bf16 %v84_v28, %v83_v27  ;;  %v89_v44 = vmax.f32 %v73_v30, 0.0  ;;  %v54_v46 = vmul.f32 %v480_v4, %v31_v32 }
   0xb   :  { %v100_v43 = vpack.c.bf16 %v86_v34, %v85_v33  ;;  %v75_v49 = vadd.f32 %v485_v5, %v52_v41  ;;  %v55_v50 = vmul.f32 %v480_v4, %v32_v37  ;;  %v56_v51 = vmul.f32 %v480_v4, %v33_v38 }
   0xc   :  { %404 = vmatprep.mubr.msk.bf16.mxu0 %vm119_vm1, %v99_v39  ;;  %v101_v48 = vpack.c.bf16 %v88_v40, %v87_v35  ;;  %v90_v53 = vmax.f32 %v74_v36, 0.0  ;;  %v76_v54 = vadd.f32 %v485_v5, %v53_v45  ;;  %v77_v55 = vadd.f32 %v485_v5, %v54_v46 }
   0xd   :  { %405 = vmatmul.mubr.msk.bf16.vlgmr.msra.gmra.mrb[0].mxu0 %vm119_vm1, %v100_v43  ;;  %v57_v56 = vmul.f32 %v480_v4, %v34_v42  ;;  %v91_v57 = vmax.f32 %v75_v49, 0.0  ;;  %v78_v58 = vadd.f32 %v485_v5, %v55_v50  ;;  %v79_v59 = vadd.f32 %v485_v5, %v56_v51 }
   0xe   :  { %408 = vmatprep.mubr.msk.bf16.mxu0 %vm119_vm1, %v101_v48  ;;  %v58_v60 = vmul.f32 %v480_v4, %v35_v47  ;;  %v92_v61 = vmax.f32 %v76_v54, 0.0  ;;  %v93_v62 = vmax.f32 %v77_v55, 0.0  ;;  %v59_v0 = vmul.f32 %v480_v4, %v36_v52 }
   0xf   :  { %v80_v63 = vadd.f32 %v485_v5, %v57_v56  ;;  %v94_v1 = vmax.f32 %v78_v58, 0.0  ;;  %v95_v2 = vmax.f32 %v79_v59, 0.0  ;;  %v102_v6 = vpack.c.bf16 %v90_v53, %v89_v44 }
  0x10   :  { %v81_v3 = vadd.f32 %v485_v5, %v58_v60  ;;  %v103_v7 = vpack.c.bf16 %v92_v61, %v91_v57  ;;  %v82_v9 = vadd.f32 %v485_v5, %v59_v0 }
  0x11   :  { %v96_v8 = vmax.f32 %v80_v63, 0.0  ;;  %v104_v10 = vpack.c.bf16 %v94_v1, %v93_v62 }
  0x12   :  { %412 = vmatprep.mubr.msk.bf16.mxu1 %vm119_vm1, %v103_v7  ;;  %v97_v12 = vmax.f32 %v81_v3, 0.0  ;;  %v98_v13 = vmax.f32 %v82_v9, 0.0 }
  0x13   :  { %v105_v11 = vpack.c.bf16 %v96_v8, %v95_v2  ;;  %413 = vmatmul.mubr.msk.bf16.vlgmr.msra.gmra.mrb[0].mxu1 %vm119_vm1, %v104_v10 }
  0x14   :  { %v106_v4 = vpack.c.bf16 %v98_v13, %v97_v12 }
  0x15   :  { %409 = vmatmul.mubr.msk.bf16.gmra.mrb[4].mxu0 %vm119_vm1, %v102_v6  ;;  %416 = vmatprep.mubr.msk.bf16.mxu1 %vm119_vm1, %v105_v11 }
  0x1b   :  { %417 = vmatmul.mubr.msk.bf16.gmra.mrb[4].mxu1 %vm119_vm1, %v106_v4 }
  0xe0   :  { %v406_v5 = vpop.f32.mrb[0].mxu0 }
  0xe1   :  { %248 = vst.msk [vmem:[%s696_s4 + $0x10] sm:$0xff] %vm245_vm3, %v406_v5  ;;  %v182_v15 = vpop.f32.mrb[1].mxu0  ;;  %v313_v19 = vmul.f32 %v406_v5, %v406_v5  ;;  %v273_v24 = vsel %vm245_vm3, %v406_v5, 0.0 }
  0xe2   :  { %246 = vst.msk [vmem:[%s696_s4] sm:$0xff] %vm245_vm3, %v182_v15  ;;  %v311_v16 = vmul.f32 %v182_v15, %v182_v15  ;;  %v407_v17 = vpop.f32.mrb[2].mxu0  ;;  %v270_v20 = vsel %vm245_vm3, %v182_v15, 0.0 }
  0xe3   :  { %249 = vst.msk [vmem:[%s696_s4 + $0x18] sm:$0xff] %vm245_vm3, %v407_v17  ;;  %v185_v18 = vpop.f32.mrb[3].mxu0  ;;  %v314_v26 = vmul.f32 %v407_v17, %v407_v17  ;;  %v330_v31 = vsel %vm245_vm3, %v313_v19, 0.0  ;;  %v275_v32 = vsel %vm245_vm3, %v407_v17, 0.0 }
  0xe4   :  { %247 = vst.msk [vmem:[%s696_s4 + $0x8] sm:$0xff] %vm245_vm3, %v185_v18  ;;  %v271_v21 = vsel %vm245_vm3, %v185_v18, 0.0  ;;  %v312_v22 = vmul.f32 %v185_v18, %v185_v18  ;;  %v327_v25 = vsel %vm245_vm3, %v311_v16, 0.0 }
  0xe5   :  { %v272_v23 = vadd.f32 %v271_v21, %v270_v20  ;;  %v332_v39 = vsel %vm245_vm3, %v314_v26, 0.0 }
  0xe6   :  { %v328_v27 = vsel %vm245_vm3, %v312_v22, 0.0  ;;  %v414_v30 = vpop.f32.mrb[0].mxu1 }
  0xe7   :  { %v274_v28 = vadd.f32 %v273_v24, %v272_v23  ;;  %v329_v29 = vadd.f32 %v328_v27, %v327_v25  ;;  %256 = vst.msk [vmem:[%s696_s4 + $0x50] sm:$0xff] %vm245_vm3, %v414_v30  ;;  %v214_v34 = vpop.f32.mrb[1].mxu1  ;;  %v321_v11 = vmul.f32 %v414_v30, %v414_v30  ;;  %v289_v14 = vsel %vm245_vm3, %v414_v30, 0.0 }
  0xe8   :  { %v410_v33 = vpop.f32.mrb[4].mxu0  ;;  %254 = vst.msk [vmem:[%s696_s4 + $0x40] sm:$0xff] %vm245_vm3, %v214_v34  ;;  %v415_v38 = vpop.f32.mrb[2].mxu1  ;;  %v319_v56 = vmul.f32 %v214_v34, %v214_v34  ;;  %v285_v62 = vsel %vm245_vm3, %v214_v34, 0.0 }
  0xe9   :  { %v331_v35 = vadd.f32 %v330_v31, %v329_v29  ;;  %252 = vst.msk [vmem:[%s696_s4 + $0x30] sm:$0xff] %vm245_vm3, %v410_v33  ;;  %v198_v36 = vpop.f32.mrb[5].mxu0  ;;  %v276_v37 = vadd.f32 %v275_v32, %v274_v28  ;;  %257 = vst.msk [vmem:[%s696_s4 + $0x58] sm:$0xff] %vm245_vm3, %v415_v38  ;;  %v217_v43 = vpop.f32.mrb[3].mxu1  ;;  %v317_v47 = vmul.f32 %v410_v33, %v410_v33  ;;  %v281_v53 = vsel %vm245_vm3, %v410_v33, 0.0 }
  0xea   :  { %250 = vst.msk [vmem:[%s696_s4 + $0x20] sm:$0xff] %vm245_vm3, %v198_v36  ;;  %v277_v40 = vsel %vm245_vm3, %v198_v36, 0.0  ;;  %v315_v41 = vmul.f32 %v198_v36, %v198_v36  ;;  %v411_v42 = vpop.f32.mrb[6].mxu0  ;;  %255 = vst.msk [vmem:[%s696_s4 + $0x48] sm:$0xff] %vm245_vm3, %v217_v43  ;;  %v342_v6 = vsel %vm245_vm3, %v319_v56, 0.0  ;;  %v320_v7 = vmul.f32 %v217_v43, %v217_v43 }
  0xeb   :  { %v278_v44 = vadd.f32 %v277_v40, %v276_v37  ;;  %v333_v45 = vadd.f32 %v332_v39, %v331_v35  ;;  %253 = vst.msk [vmem:[%s696_s4 + $0x38] sm:$0xff] %vm245_vm3, %v411_v42  ;;  %v201_v46 = vpop.f32.mrb[7].mxu0  ;;  %v318_v54 = vmul.f32 %v411_v42, %v411_v42  ;;  %v338_v60 = vsel %vm245_vm3, %v317_v47, 0.0  ;;  %v310_v56 = vld [vmem:[%s695_s6] sm:$0x1] }
  0xec   :  { %v334_v48 = vsel %vm245_vm3, %v315_v41, 0.0  ;;  %251 = vst.msk [vmem:[%s696_s4 + $0x28] sm:$0xff] %vm245_vm3, %v201_v46  ;;  %v279_v49 = vsel %vm245_vm3, %v201_v46, 0.0  ;;  %v316_v50 = vmul.f32 %v201_v46, %v201_v46  ;;  %v283_v61 = vsel %vm245_vm3, %v411_v42, 0.0 }
  0xed   :  { %v335_v51 = vadd.f32 %v334_v48, %v333_v45  ;;  %v280_v52 = vadd.f32 %v279_v49, %v278_v44  ;;  %v340_v3 = vsel %vm245_vm3, %v318_v54, 0.0  ;;  %v287_v12 = vsel %vm245_vm3, %v217_v43, 0.0 }
  0xee   :  { %v336_v55 = vsel %vm245_vm3, %v316_v50, 0.0  ;;  %v418_v59 = vpop.f32.mrb[4].mxu1  ;;  %v322_v5 = vmul.f32 %v415_v38, %v415_v38  ;;  %v344_v15 = vsel %vm245_vm3, %v320_v7, 0.0  ;;  %v346_v19 = vsel %vm245_vm3, %v321_v11, 0.0 }
  0xef   :  { %v282_v57 = vadd.f32 %v281_v53, %v280_v52  ;;  %v337_v58 = vadd.f32 %v336_v55, %v335_v51  ;;  %260 = vst.msk [vmem:[%s696_s4 + $0x70] sm:$0xff] %vm245_vm3, %v418_v59  ;;  %v230_v63 = vpop.f32.mrb[5].mxu1  ;;  %v291_v20 = vsel %vm245_vm3, %v415_v38, 0.0  ;;  %v325_v29 = vmul.f32 %v418_v59, %v418_v59  ;;  %v269_v53 = vld [vmem:[%s694_s5] sm:$0x1] }
  0xf0   :  { %258 = vst.msk [vmem:[%s696_s4 + $0x60] sm:$0xff] %vm245_vm3, %v230_v63  ;;  %v419_v2 = vpop.f32.mrb[6].mxu1  ;;  %v323_v16 = vmul.f32 %v230_v63, %v230_v63  ;;  %v293_v21 = vsel %vm245_vm3, %v230_v63, 0.0  ;;  %v348_v24 = vsel %vm245_vm3, %v322_v5, 0.0  ;;  %v297_v33 = vsel %vm245_vm3, %v418_v59, 0.0 }
  0xf1   :  { %v339_v0 = vadd.f32 %v338_v60, %v337_v58  ;;  %v284_v1 = vadd.f32 %v283_v61, %v282_v57  ;;  %261 = vst.msk [vmem:[%s696_s4 + $0x78] sm:$0xff] %vm245_vm3, %v419_v2  ;;  %v233_v8 = vpop.f32.mrb[7].mxu1  ;;  %v326_v34 = vmul.f32 %v419_v2, %v419_v2  ;;  %v354_v38 = vsel %vm245_vm3, %v325_v29, 0.0 }
  0xf2   :  { %259 = vst.msk [vmem:[%s696_s4 + $0x68] sm:$0xff] %vm245_vm3, %v233_v8  ;;  %v350_v25 = vsel %vm245_vm3, %v323_v16, 0.0  ;;  %v324_v26 = vmul.f32 %v233_v8, %v233_v8  ;;  %v295_v30 = vsel %vm245_vm3, %v233_v8, 0.0  ;;  %v299_v39 = vsel %vm245_vm3, %v419_v2, 0.0 }
  0xf3   :  { %v286_v9 = vadd.f32 %v285_v62, %v284_v1  ;;  %v341_v10 = vadd.f32 %v340_v3, %v339_v0  ;;  %v356_v42 = vsel %vm245_vm3, %v326_v34, 0.0 }
  0xf4   :  { %v352_v35 = vsel %vm245_vm3, %v324_v26, 0.0 }
  0xf5   :  { %v343_v13 = vadd.f32 %v342_v6, %v341_v10  ;;  %v288_v4 = vadd.f32 %v287_v12, %v286_v9 }
  0xf7   :  { %v290_v17 = vadd.f32 %v289_v14, %v288_v4  ;;  %v345_v18 = vadd.f32 %v344_v15, %v343_v13 }
  0xf9   :  { %v347_v22 = vadd.f32 %v346_v19, %v345_v18  ;;  %v292_v23 = vadd.f32 %v291_v20, %v290_v17 }
  0xfb   :  { %v294_v27 = vadd.f32 %v293_v21, %v292_v23  ;;  %v349_v28 = vadd.f32 %v348_v24, %v347_v22 }
  0xfd   :  { %v351_v31 = vadd.f32 %v350_v25, %v349_v28  ;;  %v296_v32 = vadd.f32 %v295_v30, %v294_v27 }
  0xff   :  { %v298_v36 = vadd.f32 %v297_v33, %v296_v32  ;;  %v353_v37 = vadd.f32 %v352_v35, %v351_v31 }
 0x101   :  { %v300_v40 = vadd.f32 %v299_v39, %v298_v36  ;;  %v355_v41 = vadd.f32 %v354_v38, %v353_v37 }
 0x103   :  { %v301_v43 = vrot.slane %v300_v40, 4  ;;  %v357_v44 = vadd.f32 %v356_v42, %v355_v41 }
 0x105   :  { %v302_v45 = vadd.f32 %v301_v43, %v300_v40  ;;  %v358_v46 = vrot.slane %v357_v44, 4 }
 0x107   :  { %v303_v47 = vrot.slane %v302_v45, 2  ;;  %v359_v48 = vadd.f32 %v358_v46, %v357_v44 }
 0x109   :  { %v304_v49 = vadd.f32 %v303_v47, %v302_v45  ;;  %v360_v50 = vrot.slane %v359_v48, 2 }
 0x10b   :  { %v305_v51 = vrot.slane %v304_v49, 1  ;;  %v361_v52 = vadd.f32 %v360_v50, %v359_v48 }
 0x10d   :  { %v306_v54 = vadd.f32 %v305_v51, %v304_v49  ;;  %v362_v55 = vrot.slane %v361_v52, 1 }
 0x10f   :  { %v307_v57 = vadd.f32 %v306_v54, %v269_v53  ;;  %v363_v58 = vadd.f32 %v362_v55, %v361_v52 }
 0x111   :  { %309 = vst.msk [vmem:[%s694_s5] sm:$0x1] %vm266_vm2, %v307_v57  ;;  %v364_v59 = vadd.f32 %v363_v58, %v310_v56 }
 0x113   :  { %365 = vst.msk [vmem:[%s695_s6] sm:$0x1] %vm266_vm2, %v364_v59 }

// kernel: densenet_forward.28
= control target key start
LH: loop header
LB: loop body
LE: loop exit
PB: predicated region body
PF: predicated region fallthrough
CT: control target
= control target key end

     0   :  { %vm130_vm0 = vcmask 261120   ;;  %vm252_vm1 = vcmask 130048   ;;  %s523_s3 = inlined_call_operand.vmem [shape: bf16[32,16], index: 3, kind: input, shape index: {}]   ;;  %s524_s0 = inlined_call_operand.vmem [shape: f32[1,32], index: 0, kind: input, shape index: {}]   ;;  %s525_s2 = inlined_call_operand.vmem [shape: f32[128,32], index: 2, kind: input, shape index: {}]   ;;  %s526_s1 = inlined_call_operand.vmem [shape: f32[1,32], index: 1, kind: input, shape index: {}]   ;;  %s527_s4 = inlined_call_operand.vmem [shape: f32[1,16], index: 4, kind: input, shape index: {}]   ;;  %s528_s5 = inlined_call_operand.vmem [shape: f32[128,16], index: 5, kind: output, shape index: {}]  }
   0x1   :  { %v320_v0 = vld [vmem:[%s523_s3] sm:$0xff]   ;;  %v321_v1 = vld [vmem:[%s523_s3 + $0x8] sm:$0xff]   ;;  %v23_v12 = vld [vmem:[%s525_s2 + $0x10] sm:$0xff] }
   0x2   :  { %296 = vmatprep.subr.bf16.mxu0 %v320_v0  ;;  %316 = vmatprep.subr.bf16.mxu1 %v320_v0  ;;  %v21_v2 = vld [vmem:[%s525_s2] sm:$0xff]  ;;  %v22_v3 = vld [vmem:[%s525_s2 + $0x8] sm:$0xff]  ;;  %v24_v13 = vld [vmem:[%s525_s2 + $0x18] sm:$0xff] }
   0x3   :  { %v367_v4 = vld [vmem:[%s524_s0] ss:$0 sm:$0xff]  ;;  %297 = vmatpush3.bf16.msra.mxu0 %v320_v0  ;;  %318 = vmatpush3.bf16.msra.mxu1 %v320_v0  ;;  %v30_v9 = vld [vmem:[%s525_s2 + $0x48] sm:$0xff]  ;;  %v31_v14 = vld [vmem:[%s525_s2 + $0x50] sm:$0xff] }
   0x4   :  { %v44_v5 = vmul.f32 %v367_v4, %v21_v2  ;;  %v45_v6 = vmul.f32 %v367_v4, %v22_v3  ;;  %v374_v7 = vld [vmem:[%s526_s1] ss:$0 sm:$0xff]  ;;  %298 = vmatprep.subr.bf16.mxu0 %v321_v1  ;;  %317 = vmatprep.subr.bf16.mxu1 %v321_v1  ;;  %v53_v11 = vmul.f32 %v367_v4, %v30_v9  ;;  %v32_v19 = vld [vmem:[%s525_s2 + $0x58] sm:$0xff]  ;;  %v26_v29 = vld [vmem:[%s525_s2 + $0x28] sm:$0xff] }
   0x5   :  { %v29_v8 = vld [vmem:[%s525_s2 + $0x40] sm:$0xff]  ;;  %v46_v17 = vmul.f32 %v367_v4, %v23_v12  ;;  %v47_v18 = vmul.f32 %v367_v4, %v24_v13  ;;  %v54_v22 = vmul.f32 %v367_v4, %v31_v14  ;;  %v55_v23 = vmul.f32 %v367_v4, %v32_v19  ;;  %v34_v35 = vld [vmem:[%s525_s2 + $0x68] sm:$0xff]  ;;  %v27_v40 = vld [vmem:[%s525_s2 + $0x30] sm:$0xff] }
   0x6   :  { %v52_v10 = vmul.f32 %v367_v4, %v29_v8  ;;  %v67_v15 = vadd.f32 %v374_v7, %v44_v5  ;;  %v68_v16 = vadd.f32 %v374_v7, %v45_v6  ;;  %v76_v21 = vadd.f32 %v374_v7, %v53_v11  ;;  %v25_v24 = vld [vmem:[%s525_s2 + $0x20] sm:$0xff]  ;;  %v28_v41 = vld [vmem:[%s525_s2 + $0x38] sm:$0xff]  ;;  %v35_v46 = vld [vmem:[%s525_s2 + $0x70] sm:$0xff] }
   0x7   :  { %299 = vmatpush3.bf16.msra.mxu0 %v321_v1  ;;  %319 = vmatpush3.bf16.msra.mxu1 %v321_v1  ;;  %v69_v27 = vadd.f32 %v374_v7, %v46_v17  ;;  %v70_v28 = vadd.f32 %v374_v7, %v47_v18  ;;  %v77_v32 = vadd.f32 %v374_v7, %v54_v22  ;;  %v33_v34 = vld [vmem:[%s525_s2 + $0x60] sm:$0xff]  ;;  %v36_v51 = vld [vmem:[%s525_s2 + $0x78] sm:$0xff] }
   0x8   :  { %v75_v20 = vadd.f32 %v374_v7, %v52_v10  ;;  %v83_v25 = vmax.f32 %v67_v15, 0.0  ;;  %v84_v26 = vmax.f32 %v68_v16, 0.0  ;;  %v92_v31 = vmax.f32 %v76_v21, 0.0 }
   0x9   :  { %v78_v33 = vadd.f32 %v374_v7, %v55_v23  ;;  %v85_v37 = vmax.f32 %v69_v27, 0.0  ;;  %v86_v38 = vmax.f32 %v70_v28, 0.0  ;;  %v48_v39 = vmul.f32 %v367_v4, %v25_v24 }
   0xa   :  { %v91_v30 = vmax.f32 %v75_v20, 0.0  ;;  %v99_v36 = vpack.c.bf16 %v84_v26, %v83_v25  ;;  %v93_v43 = vmax.f32 %v77_v32, 0.0  ;;  %v49_v45 = vmul.f32 %v367_v4, %v26_v29 }
   0xb   :  { %v94_v44 = vmax.f32 %v78_v33, 0.0  ;;  %v100_v47 = vpack.c.bf16 %v86_v38, %v85_v37  ;;  %v71_v48 = vadd.f32 %v374_v7, %v48_v39  ;;  %v56_v49 = vmul.f32 %v367_v4, %v33_v34 }
   0xc   :  { %v103_v42 = vpack.c.bf16 %v92_v31, %v91_v30  ;;  %300 = vmatprep.mubr.msk.bf16.mxu0 %vm130_vm0, %v99_v36  ;;  %v57_v50 = vmul.f32 %v367_v4, %v34_v35  ;;  %v72_v53 = vadd.f32 %v374_v7, %v49_v45  ;;  %v50_v54 = vmul.f32 %v367_v4, %v27_v40 }
   0xd   :  { %v104_v52 = vpack.c.bf16 %v94_v44, %v93_v43  ;;  %v51_v55 = vmul.f32 %v367_v4, %v28_v41  ;;  %301 = vmatmul.mubr.msk.bf16.vlgmr.msra.gmra.mrb[0].mxu0 %vm130_vm0, %v100_v47  ;;  %v87_v56 = vmax.f32 %v71_v48, 0.0  ;;  %v79_v57 = vadd.f32 %v374_v7, %v56_v49 }
   0xe   :  { %308 = vmatprep.mubr.msk.bf16.mxu1 %vm130_vm0, %v103_v42  ;;  %v80_v58 = vadd.f32 %v374_v7, %v57_v50  ;;  %v58_v59 = vmul.f32 %v367_v4, %v35_v46  ;;  %v88_v60 = vmax.f32 %v72_v53, 0.0  ;;  %v73_v61 = vadd.f32 %v374_v7, %v50_v54 }
   0xf   :  { %309 = vmatmul.mubr.msk.bf16.vlgmr.msra.gmra.mrb[0].mxu1 %vm130_vm0, %v104_v52  ;;  %v74_v62 = vadd.f32 %v374_v7, %v51_v55  ;;  %v59_v63 = vmul.f32 %v367_v4, %v36_v51  ;;  %v95_v0 = vmax.f32 %v79_v57, 0.0  ;;  %v275_v4 = vld [vmem:[%s527_s4] ss:$0 sm:$0xff] }
  0x10   :  { %v96_v1 = vmax.f32 %v80_v58, 0.0  ;;  %v81_v2 = vadd.f32 %v374_v7, %v58_v59  ;;  %v101_v3 = vpack.c.bf16 %v88_v60, %v87_v56  ;;  %v89_v5 = vmax.f32 %v73_v61, 0.0 }
  0x11   :  { %v90_v6 = vmax.f32 %v74_v62, 0.0  ;;  %v82_v8 = vadd.f32 %v374_v7, %v59_v63 }
  0x12   :  { %v105_v9 = vpack.c.bf16 %v96_v1, %v95_v0  ;;  %v97_v10 = vmax.f32 %v81_v2, 0.0  ;;  %304 = vmatprep.mubr.msk.bf16.mxu0 %vm130_vm0, %v101_v3 }
  0x13   :  { %v102_v11 = vpack.c.bf16 %v90_v6, %v89_v5  ;;  %v98_v12 = vmax.f32 %v82_v8, 0.0 }
  0x14   :  { %312 = vmatprep.mubr.msk.bf16.mxu1 %vm130_vm0, %v105_v9 }
  0x15   :  { %v106_v13 = vpack.c.bf16 %v98_v12, %v97_v10  ;;  %305 = vmatmul.mubr.msk.bf16.gmra.mrb[4].mxu0 %vm130_vm0, %v102_v11 }
  0x17   :  { %313 = vmatmul.mubr.msk.bf16.gmra.mrb[4].mxu1 %vm130_vm0, %v106_v13 }
  0xe0   :  { %v302_v14 = vpop.f32.mrb[0].mxu0 }
  0xe1   :  { %v198_v7 = vadd.f32 %v302_v14, %v275_v4  ;;  %v189_v16 = vpop.f32.mrb[1].mxu0 }
  0xe2   :  { %v310_v15 = vpop.f32.mrb[0].mxu1  ;;  %v190_v18 = vadd.f32 %v275_v4, %v189_v16  ;;  %v303_v20 = vpop.f32.mrb[2].mxu0 }
  0xe3   :  { %v230_v17 = vadd.f32 %v310_v15, %v275_v4  ;;  %v221_v19 = vpop.f32.mrb[1].mxu1  ;;  %255 = vst.msk [vmem:[%s528_s5 + $0x10] sm:$0xff] %vm252_vm1, %v198_v7  ;;  %v201_v22 = vadd.f32 %v303_v20, %v275_v4  ;;  %v192_v24 = vpop.f32.mrb[3].mxu0 }
  0xe4   :  { %v222_v21 = vadd.f32 %v275_v4, %v221_v19  ;;  %v311_v23 = vpop.f32.mrb[2].mxu1  ;;  %253 = vst.msk [vmem:[%s528_s5] sm:$0xff] %vm252_vm1, %v190_v18  ;;  %v193_v26 = vadd.f32 %v275_v4, %v192_v24 }
  0xe5   :  { %263 = vst.msk [vmem:[%s528_s5 + $0x50] sm:$0xff] %vm252_vm1, %v230_v17  ;;  %v233_v25 = vadd.f32 %v311_v23, %v275_v4  ;;  %v224_v27 = vpop.f32.mrb[3].mxu1  ;;  %256 = vst.msk [vmem:[%s528_s5 + $0x18] sm:$0xff] %vm252_vm1, %v201_v22 }
  0xe6   :  { %261 = vst.msk [vmem:[%s528_s5 + $0x40] sm:$0xff] %vm252_vm1, %v222_v21  ;;  %v225_v28 = vadd.f32 %v275_v4, %v224_v27  ;;  %254 = vst.msk [vmem:[%s528_s5 + $0x8] sm:$0xff] %vm252_vm1, %v193_v26 }
  0xe7   :  { %264 = vst.msk [vmem:[%s528_s5 + $0x58] sm:$0xff] %vm252_vm1, %v233_v25 }
  0xe8   :  { %262 = vst.msk [vmem:[%s528_s5 + $0x48] sm:$0xff] %vm252_vm1, %v225_v28  ;;  %v306_v29 = vpop.f32.mrb[4].mxu0 }
  0xe9   :  { %v214_v30 = vadd.f32 %v306_v29, %v275_v4  ;;  %v205_v32 = vpop.f32.mrb[5].mxu0 }
  0xea   :  { %v314_v31 = vpop.f32.mrb[4].mxu1  ;;  %v206_v34 = vadd.f32 %v275_v4, %v205_v32  ;;  %v307_v36 = vpop.f32.mrb[6].mxu0 }
  0xeb   :  { %v246_v33 = vadd.f32 %v314_v31, %v275_v4  ;;  %v237_v35 = vpop.f32.mrb[5].mxu1  ;;  %259 = vst.msk [vmem:[%s528_s5 + $0x30] sm:$0xff] %vm252_vm1, %v214_v30  ;;  %v217_v38 = vadd.f32 %v307_v36, %v275_v4  ;;  %v208_v40 = vpop.f32.mrb[7].mxu0 }
  0xec   :  { %v238_v37 = vadd.f32 %v275_v4, %v237_v35  ;;  %v315_v39 = vpop.f32.mrb[6].mxu1  ;;  %257 = vst.msk [vmem:[%s528_s5 + $0x20] sm:$0xff] %vm252_vm1, %v206_v34  ;;  %v209_v42 = vadd.f32 %v275_v4, %v208_v40 }
  0xed   :  { %267 = vst.msk [vmem:[%s528_s5 + $0x70] sm:$0xff] %vm252_vm1, %v246_v33  ;;  %v249_v41 = vadd.f32 %v315_v39, %v275_v4  ;;  %v240_v43 = vpop.f32.mrb[7].mxu1  ;;  %260 = vst.msk [vmem:[%s528_s5 + $0x38] sm:$0xff] %vm252_vm1, %v217_v38 }
  0xee   :  { %265 = vst.msk [vmem:[%s528_s5 + $0x60] sm:$0xff] %vm252_vm1, %v238_v37  ;;  %v241_v44 = vadd.f32 %v275_v4, %v240_v43  ;;  %258 = vst.msk [vmem:[%s528_s5 + $0x28] sm:$0xff] %vm252_vm1, %v209_v42 }
  0xef   :  { %268 = vst.msk [vmem:[%s528_s5 + $0x78] sm:$0xff] %vm252_vm1, %v249_v41 }
  0xf0   :  { %266 = vst.msk [vmem:[%s528_s5 + $0x68] sm:$0xff] %vm252_vm1, %v241_v44 }

// kernel: densenet_forward.29
= control target key start
LH: loop header
LB: loop body
LE: loop exit
PB: predicated region body
PF: predicated region fallthrough
CT: control target
= control target key end

     0   :  { %vm69_vm0 = vcmask 122880   ;;  %vm27_vm1 = vcmask 130048   ;;  %v122_v0 = vmov 0.0   ;;  %s253_s2 = inlined_call_operand.vmem [shape: f32[1,16], index: 2, kind: output, shape index: {1}]   ;;  %s254_s3 = inlined_call_operand.vmem [shape: f32[1,16], index: 3, kind: output, shape index: {2}]   ;;  %s255_s0 = inlined_call_operand.vmem [shape: f32[4,32,16], index: 0, kind: input, shape index: {}]   ;;  %s256_s1 = inlined_call_operand.vmem [shape: f32[32,16], index: 1, kind: output, shape index: {0}]  }
   0x1   :  { %70 = vst.msk [vmem:[%s253_s2] sm:$0x1] %vm69_vm0, %v122_v0  ;;  %71 = vst.msk [vmem:[%s254_s3] sm:$0x1] %vm69_vm0, %v122_v0  ;;  %v11_v1 = vld [vmem:[%s255_s0] sm:$0xff]  ;;  %v12_v8 = vld [vmem:[%s255_s0 + $0x8] sm:$0xff] }
   0x2   :  { %v15_v2 = vld [vmem:[%s255_s0 + $0x20] sm:$0xff]  ;;  %v28_v5 = vsel %vm27_vm1, %v11_v1, 0.0  ;;  %v16_v9 = vld [vmem:[%s255_s0 + $0x28] sm:$0xff]  ;;  %v35_v13 = vsel %vm27_vm1, %v12_v8, 0.0  ;;  %v13_v15 = vld [vmem:[%s255_s0 + $0x10] sm:$0xff] }
   0x3   :  { %v19_v3 = vld [vmem:[%s255_s0 + $0x40] sm:$0xff]  ;;  %v29_v6 = vsel %vm27_vm1, %v15_v2, 0.0  ;;  %v20_v11 = vld [vmem:[%s255_s0 + $0x48] sm:$0xff]  ;;  %v36_v14 = vsel %vm27_vm1, %v16_v9, 0.0  ;;  %v17_v19 = vld [vmem:[%s255_s0 + $0x30] sm:$0xff]  ;;  %v42_v22 = vsel %vm27_vm1, %v13_v15, 0.0 }
   0x4   :  { %v23_v4 = vld [vmem:[%s255_s0 + $0x60] sm:$0xff]  ;;  %v31_v7 = vsel %vm27_vm1, %v19_v3, 0.0  ;;  %v30_v10 = vadd.f32 %v29_v6, %v28_v5  ;;  %v24_v12 = vld [vmem:[%s255_s0 + $0x68] sm:$0xff]  ;;  %v37_v17 = vadd.f32 %v36_v14, %v35_v13  ;;  %v38_v18 = vsel %vm27_vm1, %v20_v11, 0.0  ;;  %v21_v20 = vld [vmem:[%s255_s0 + $0x50] sm:$0xff] }
   0x5   :  { %v33_v16 = vsel %vm27_vm1, %v23_v4, 0.0  ;;  %v25_v21 = vld [vmem:[%s255_s0 + $0x70] sm:$0xff]  ;;  %v40_v24 = vsel %vm27_vm1, %v24_v12, 0.0  ;;  %v43_v25 = vsel %vm27_vm1, %v17_v19, 0.0  ;;  %v45_v26 = vsel %vm27_vm1, %v21_v20, 0.0  ;;  %v14_v27 = vld [vmem:[%s255_s0 + $0x18] sm:$0xff] }
   0x6   :  { %v32_v23 = vadd.f32 %v31_v7, %v30_v10  ;;  %v18_v28 = vld [vmem:[%s255_s0 + $0x38] sm:$0xff]  ;;  %v39_v30 = vadd.f32 %v38_v18, %v37_v17  ;;  %v44_v31 = vadd.f32 %v43_v25, %v42_v22  ;;  %v49_v33 = vsel %vm27_vm1, %v14_v27, 0.0 }
   0x7   :  { %v22_v29 = vld [vmem:[%s255_s0 + $0x58] sm:$0xff]  ;;  %v50_v34 = vsel %vm27_vm1, %v18_v28, 0.0  ;;  %v47_v36 = vsel %vm27_vm1, %v25_v21, 0.0 }
   0x8   :  { %v26_v32 = vld [vmem:[%s255_s0 + $0x78] sm:$0xff]  ;;  %v34_v35 = vadd.f32 %v33_v16, %v32_v23  ;;  %v51_v37 = vadd.f32 %v50_v34, %v49_v33  ;;  %v52_v38 = vsel %vm27_vm1, %v22_v29, 0.0  ;;  %v41_v39 = vadd.f32 %v40_v24, %v39_v30  ;;  %v72_v12 = vld [vmem:[%s253_s2] sm:$0x1] }
   0x9   :  { %v46_v40 = vadd.f32 %v45_v26, %v44_v31  ;;  %v54_v41 = vsel %vm27_vm1, %v26_v32, 0.0  ;;  %v89_v15 = vld [vmem:[%s254_s3] sm:$0x1] }
   0xa   :  { %v57_v42 = vmul.f32 0.25, %v34_v35  ;;  %v53_v43 = vadd.f32 %v52_v38, %v51_v37  ;;  %v58_v44 = vmul.f32 0.25, %v41_v39 }
   0xb   :  { %v48_v45 = vadd.f32 %v47_v36, %v46_v40 }
   0xc   :  { %61 = vst.msk [vmem:[%s256_s1] sm:$0xff] %vm27_vm1, %v57_v42  ;;  %v73_v46 = vsel %vm27_vm1, %v57_v42, 0.0  ;;  %v90_v47 = vmul.f32 %v57_v42, %v57_v42  ;;  %v55_v48 = vadd.f32 %v54_v41, %v53_v43  ;;  %62 = vst.msk [vmem:[%s256_s1 + $0x8] sm:$0xff] %vm27_vm1, %v58_v44  ;;  %v74_v49 = vsel %vm27_vm1, %v58_v44, 0.0 }
   0xd   :  { %v91_v50 = vmul.f32 %v58_v44, %v58_v44  ;;  %v59_v51 = vmul.f32 0.25, %v48_v45  ;;  %v75_v53 = vadd.f32 %v74_v49, %v73_v46 }
   0xe   :  { %v94_v52 = vsel %vm27_vm1, %v90_v47, 0.0  ;;  %v60_v54 = vmul.f32 0.25, %v55_v48 }
   0xf   :  { %v95_v55 = vsel %vm27_vm1, %v91_v50, 0.0  ;;  %63 = vst.msk [vmem:[%s256_s1 + $0x10] sm:$0xff] %vm27_vm1, %v59_v51  ;;  %v76_v56 = vsel %vm27_vm1, %v59_v51, 0.0  ;;  %v92_v57 = vmul.f32 %v59_v51, %v59_v51 }
  0x10   :  { %v96_v58 = vadd.f32 %v95_v55, %v94_v52  ;;  %v77_v59 = vadd.f32 %v76_v56, %v75_v53  ;;  %64 = vst.msk [vmem:[%s256_s1 + $0x18] sm:$0xff] %vm27_vm1, %v60_v54  ;;  %v78_v60 = vsel %vm27_vm1, %v60_v54, 0.0  ;;  %v93_v61 = vmul.f32 %v60_v54, %v60_v54 }
  0x11   :  { %v97_v62 = vsel %vm27_vm1, %v92_v57, 0.0 }
  0x12   :  { %v98_v63 = vadd.f32 %v97_v62, %v96_v58  ;;  %v79_v0 = vadd.f32 %v78_v60, %v77_v59  ;;  %v99_v1 = vsel %vm27_vm1, %v93_v61, 0.0 }
  0x14   :  { %v80_v2 = vrot.slane %v79_v0, 4  ;;  %v100_v3 = vadd.f32 %v99_v1, %v98_v63 }
  0x16   :  { %v81_v4 = vadd.f32 %v80_v2, %v79_v0  ;;  %v101_v5 = vrot.slane %v100_v3, 4 }
  0x18   :  { %v82_v6 = vrot.slane %v81_v4, 2  ;;  %v102_v7 = vadd.f32 %v101_v5, %v100_v3 }
  0x1a   :  { %v83_v8 = vadd.f32 %v82_v6, %v81_v4  ;;  %v103_v9 = vrot.slane %v102_v7, 2 }
  0x1c   :  { %v84_v10 = vrot.slane %v83_v8, 1  ;;  %v104_v11 = vadd.f32 %v103_v9, %v102_v7 }
  0x1e   :  { %v85_v13 = vadd.f32 %v84_v10, %v83_v8  ;;  %v105_v14 = vrot.slane %v104_v11, 1 }
  0x20   :  { %v86_v16 = vadd.f32 %v85_v13, %v72_v12  ;;  %v106_v17 = vadd.f32 %v105_v14, %v104_v11 }
  0x22   :  { %88 = vst.msk [vmem:[%s253_s2] sm:$0x1] %vm69_vm0, %v86_v16  ;;  %v107_v18 = vadd.f32 %v106_v17, %v89_v15 }
  0x24   :  { %108 = vst.msk [vmem:[%s254_s3] sm:$0x1] %vm69_vm0, %v107_v18 }

// kernel: densenet_forward.30
= control target key start
LH: loop header
LB: loop body
LE: loop exit
PB: predicated region body
PF: predicated region fallthrough
CT: control target
= control target key end

     0   :  { %vm61_vm0 = vcmask 130048   ;;  %vm126_vm1 = vcmask 253952   ;;  %v194_v21 = vmov 0.0   ;;  %vm117_vm2 = vcmask 261120   ;;  %s297_s3 = inlined_call_operand.vmem [shape: bf16[16,32], index: 3, kind: input, shape index: {}]   ;;  %s298_s0 = inlined_call_operand.vmem [shape: f32[1,16], index: 0, kind: input, shape index: {}]   ;;  %s299_s1 = inlined_call_operand.vmem [shape: f32[1,16], index: 1, kind: input, shape index: {}]   ;;  %s300_s2 = inlined_call_operand.vmem [shape: f32[32,16], index: 2, kind: input, shape index: {}]   ;;  %s301_s5 = inlined_call_operand.vmem [shape: f32[1,32], index: 5, kind: output, shape index: {1}]   ;;  %s302_s6 = inlined_call_operand.vmem [shape: f32[1,32], index: 6, kind: output, shape index: {2}]   ;;  %s303_s4 = inlined_call_operand.vmem [shape: f32[32,32], index: 4, kind: output, shape index: {0}]  }
   0x1   :  { %v193_v0 = vld [vmem:[%s297_s3] sm:$0xff]   ;;  %v22_v2 = vld [vmem:[%s300_s2 + $0x8] sm:$0xff]  ;;  %v23_v7 = vld [vmem:[%s300_s2 + $0x10] sm:$0xff]  ;;  %127 = vst.msk [vmem:[%s301_s5] sm:$0x1] %vm126_vm1, %v194_v21 }
   0x2   :  { %v21_v1 = vld [vmem:[%s300_s2] sm:$0xff]  ;;  %186 = vmatprep.subr.bf16.mxu0 %v193_v0  ;;  %v24_v8 = vld [vmem:[%s300_s2 + $0x18] sm:$0xff]  ;;  %128 = vst.msk [vmem:[%s302_s6] sm:$0x1] %vm126_vm1, %v194_v21 }
   0x3   :  { %v178_v3 = vld [vmem:[%s298_s0] ss:$0 sm:$0xff]  ;;  %187 = vmatpush3.bf16.msra.mxu0 %v193_v0 }
   0x4   :  { %v32_v4 = vmul.f32 %v178_v3, %v21_v1  ;;  %v33_v5 = vmul.f32 %v178_v3, %v22_v2  ;;  %v179_v6 = vld [vmem:[%s299_s1] ss:$0 sm:$0xff]  ;;  %v34_v9 = vmul.f32 %v178_v3, %v23_v7  ;;  %v35_v10 = vmul.f32 %v178_v3, %v24_v8 }
   0x6   :  { %v43_v11 = vadd.f32 %v179_v6, %v32_v4  ;;  %v44_v12 = vadd.f32 %v179_v6, %v33_v5  ;;  %v45_v13 = vadd.f32 %v179_v6, %v34_v9  ;;  %v46_v14 = vadd.f32 %v179_v6, %v35_v10 }
   0x8   :  { %v47_v15 = vmax.f32 %v43_v11, 0.0  ;;  %v48_v16 = vmax.f32 %v44_v12, 0.0  ;;  %v49_v17 = vmax.f32 %v45_v13, 0.0  ;;  %v50_v18 = vmax.f32 %v46_v14, 0.0  ;;  %v129_v53 = vld [vmem:[%s301_s5] sm:$0x1] }
   0x9   :  { %v146_v56 = vld [vmem:[%s302_s6] sm:$0x1] }
   0xa   :  { %v51_v19 = vpack.c.bf16 %v48_v16, %v47_v15  ;;  %v52_v20 = vpack.c.bf16 %v50_v18, %v49_v17 }
   0xc   :  { %188 = vmatprep.mubr.msk.bf16.mxu0 %vm61_vm0, %v51_v19 }
   0xd   :  { %189 = vmatmul.mubr.msk.bf16.vlgmr.msra.gmra.mrb[0].mxu0 %vm61_vm0, %v52_v20 }
  0xe0   :  { %v190_v22 = vpop.f32.mrb[0].mxu0 }
  0xe1   :  { %120 = vst.msk [vmem:[%s303_s4 + $0x10] sm:$0xff] %vm117_vm2, %v190_v22  ;;  %v102_v23 = vpop.f32.mrb[1].mxu0  ;;  %v149_v27 = vmul.f32 %v190_v22, %v190_v22  ;;  %v133_v32 = vsel %vm117_vm2, %v190_v22, 0.0 }
  0xe2   :  { %118 = vst.msk [vmem:[%s303_s4] sm:$0xff] %vm117_vm2, %v102_v23  ;;  %v147_v24 = vmul.f32 %v102_v23, %v102_v23  ;;  %v191_v25 = vpop.f32.mrb[2].mxu0  ;;  %v130_v28 = vsel %vm117_vm2, %v102_v23, 0.0 }
  0xe3   :  { %121 = vst.msk [vmem:[%s303_s4 + $0x18] sm:$0xff] %vm117_vm2, %v191_v25  ;;  %v105_v26 = vpop.f32.mrb[3].mxu0  ;;  %v150_v34 = vmul.f32 %v191_v25, %v191_v25  ;;  %v154_v38 = vsel %vm117_vm2, %v149_v27, 0.0  ;;  %v135_v39 = vsel %vm117_vm2, %v191_v25, 0.0 }
  0xe4   :  { %119 = vst.msk [vmem:[%s303_s4 + $0x8] sm:$0xff] %vm117_vm2, %v105_v26  ;;  %v131_v29 = vsel %vm117_vm2, %v105_v26, 0.0  ;;  %v148_v30 = vmul.f32 %v105_v26, %v105_v26  ;;  %v151_v33 = vsel %vm117_vm2, %v147_v24, 0.0 }
  0xe5   :  { %v132_v31 = vadd.f32 %v131_v29, %v130_v28  ;;  %v156_v42 = vsel %vm117_vm2, %v150_v34, 0.0 }
  0xe6   :  { %v152_v35 = vsel %vm117_vm2, %v148_v30, 0.0 }
  0xe7   :  { %v134_v36 = vadd.f32 %v133_v32, %v132_v31  ;;  %v153_v37 = vadd.f32 %v152_v35, %v151_v33 }
  0xe9   :  { %v136_v40 = vadd.f32 %v135_v39, %v134_v36  ;;  %v155_v41 = vadd.f32 %v154_v38, %v153_v37 }
  0xeb   :  { %v137_v43 = vrot.slane %v136_v40, 4  ;;  %v157_v44 = vadd.f32 %v156_v42, %v155_v41 }
  0xed   :  { %v138_v45 = vadd.f32 %v137_v43, %v136_v40  ;;  %v158_v46 = vrot.slane %v157_v44, 4 }
  0xef   :  { %v139_v47 = vrot.slane %v138_v45, 2  ;;  %v159_v48 = vadd.f32 %v158_v46, %v157_v44 }
  0xf1   :  { %v140_v49 = vadd.f32 %v139_v47, %v138_v45  ;;  %v160_v50 = vrot.slane %v159_v48, 2 }
  0xf3   :  { %v141_v51 = vrot.slane %v140_v49, 1  ;;  %v161_v52 = vadd.f32 %v160_v50, %v159_v48 }
  0xf5   :  { %v142_v54 = vadd.f32 %v141_v51, %v140_v49  ;;  %v162_v55 = vrot.slane %v161_v52, 1 }
  0xf7   :  { %v143_v57 = vadd.f32 %v142_v54, %v129_v53  ;;  %v163_v58 = vadd.f32 %v162_v55, %v161_v52 }
  0xf9   :  { %145 = vst.msk [vmem:[%s301_s5] sm:$0x1] %vm126_vm1, %v143_v57  ;;  %v164_v59 = vadd.f32 %v163_v58, %v146_v56 }
  0xfb   :  { %165 = vst.msk [vmem:[%s302_s6] sm:$0x1] %vm126_vm1, %v164_v59 }

// kernel: densenet_forward.31
= control target key start
LH: loop header
LB: loop body
LE: loop exit
PB: predicated region body
PF: predicated region fallthrough
CT: control target
= control target key end

     0   :  { %vm44_vm0 = vcmask 261120   ;;  %s105_s0 = inlined_call_operand.vmem [shape: f32[1,32], index: 0, kind: input, shape index: {}]   ;;  %s106_s1 = inlined_call_operand.vmem [shape: f32[1,32], index: 1, kind: input, shape index: {}]   ;;  %s107_s2 = inlined_call_operand.vmem [shape: f32[32,32], index: 2, kind: input, shape index: {}]   ;;  %s108_s3 = inlined_call_operand.vmem [shape: f32[32,32], index: 3, kind: output, shape index: {}]  }
   0x1   :  { %v14_v0 = vld [vmem:[%s107_s2] sm:$0xff]  ;;  %v15_v4 = vld [vmem:[%s107_s2 + $0x8] sm:$0xff]  ;;  %v16_v5 = vld [vmem:[%s107_s2 + $0x10] sm:$0xff] }
   0x2   :  { %v53_v1 = vld [vmem:[%s105_s0] ss:$0 sm:$0xff]  ;;  %v17_v6 = vld [vmem:[%s107_s2 + $0x18] sm:$0xff] }
   0x3   :  { %v54_v2 = vld [vmem:[%s106_s1] ss:$0 sm:$0xff]  ;;  %v25_v3 = vmul.f32 %v53_v1, %v14_v0  ;;  %v26_v7 = vmul.f32 %v53_v1, %v15_v4  ;;  %v27_v8 = vmul.f32 %v53_v1, %v16_v5  ;;  %v28_v9 = vmul.f32 %v53_v1, %v17_v6 }
   0x5   :  { %v36_v10 = vadd.f32 %v54_v2, %v25_v3  ;;  %v37_v11 = vadd.f32 %v54_v2, %v26_v7  ;;  %v38_v12 = vadd.f32 %v54_v2, %v27_v8  ;;  %v39_v13 = vadd.f32 %v54_v2, %v28_v9 }
   0x7   :  { %v40_v14 = vmax.f32 %v36_v10, 0.0  ;;  %v41_v15 = vmax.f32 %v37_v11, 0.0  ;;  %v42_v16 = vmax.f32 %v38_v12, 0.0  ;;  %v43_v17 = vmax.f32 %v39_v13, 0.0 }
   0x9   :  { %45 = vst.msk [vmem:[%s108_s3] sm:$0xff] %vm44_vm0, %v40_v14  ;;  %46 = vst.msk [vmem:[%s108_s3 + $0x8] sm:$0xff] %vm44_vm0, %v41_v15 }
   0xa   :  { %47 = vst.msk [vmem:[%s108_s3 + $0x10] sm:$0xff] %vm44_vm0, %v42_v16  ;;  %48 = vst.msk [vmem:[%s108_s3 + $0x18] sm:$0xff] %vm44_vm0, %v43_v17 }

// kernel: densenet_forward.32
= control target key start
LH: loop header
LB: loop body
LE: loop exit
PB: predicated region body
PF: predicated region fallthrough
CT: control target
= control target key end

     0   :  { %vm177_vm0 = vcmask 261120   ;;  %vm291_vm1 = vcmask 57344   ;;  %v422_v36 = vmov 0.0   ;;  %vm282_vm2 = vcmask 64512   ;;  %s584_s1 = inlined_call_operand.vmem [shape: bf16[288,8], index: 1, kind: input, shape index: {}]   ;;  %s585_s0 = inlined_call_operand.vmem [shape: f32[32,288], index: 0, kind: input, shape index: {}]   ;;  %s586_s3 = inlined_call_operand.vmem [shape: f32[1,8], index: 3, kind: output, shape index: {1}]   ;;  %s587_s4 = inlined_call_operand.vmem [shape: f32[1,8], index: 4, kind: output, shape index: {2}]   ;;  %s588_s2 = inlined_call_operand.vmem [shape: f32[32,8], index: 2, kind: output, shape index: {0}]  }
   0x1   :  { %v404_v0 = vld [vmem:[%s584_s1 + $0x40] sm:$0xff]   ;;  %v406_v2 = vld [vmem:[%s584_s1 + $0x48] sm:$0xff]   ;;  %v408_v4 = vld [vmem:[%s584_s1 + $0x50] sm:$0xff]   ;;  %292 = vst.msk [vmem:[%s586_s3] sm:$0x1] %vm291_vm1, %v422_v36 }
   0x2   :  { %v405_v1 = vld [vmem:[%s584_s1] sm:$0xff]   ;;  %363 = vmatprep.subr.bf16.mxu0 %v404_v0  ;;  %v407_v3 = vld [vmem:[%s584_s1 + $0x8] sm:$0xff]   ;;  %v409_v5 = vld [vmem:[%s584_s1 + $0x10] sm:$0xff]   ;;  %293 = vst.msk [vmem:[%s587_s4] sm:$0x1] %vm291_vm1, %v422_v36 }
   0x3   :  { %364 = vmatpush3.bf16.msra.mxu0 %v405_v1  ;;  %v410_v6 = vld [vmem:[%s584_s1 + $0x58] sm:$0xff]   ;;  %v412_v8 = vld [vmem:[%s584_s1 + $0x60] sm:$0xff]   ;;  %v414_v11 = vld [vmem:[%s584_s1 + $0x68] sm:$0xff]  }
   0x4   :  { %365 = vmatprep.subr.bf16.mxu0 %v406_v2  ;;  %v411_v7 = vld [vmem:[%s584_s1 + $0x18] sm:$0xff]   ;;  %v418_v9 = vld [vmem:[%s584_s1 + $0x80] sm:$0xff]   ;;  %v421_v12 = vld [vmem:[%s584_s1 + $0x88] sm:$0xff]  }
   0x5   :  { %v413_v10 = vld [vmem:[%s584_s1 + $0x20] sm:$0xff]   ;;  %395 = vmatprep.subr.bf16.mxu1 %v418_v9  ;;  %v16_v13 = vld [vmem:[%s585_s0 + $0x8] sm:$0xff]  ;;  %v17_v17 = vld [vmem:[%s585_s0 + $0x10] sm:$0xff] }
   0x6   :  { %396 = vmatpush3.bf16.msra.mxu1 %v418_v9  ;;  %v19_v14 = vld [vmem:[%s585_s0 + $0x20] sm:$0xff]  ;;  %v415_v15 = vld [vmem:[%s584_s1 + $0x28] sm:$0xff]   ;;  %v416_v19 = vld [vmem:[%s584_s1 + $0x70] sm:$0xff]  }
   0x7   :  { %366 = vmatpush3.bf16.msra.mxu0 %v407_v3  ;;  %397 = vmatprep.subr.bf16.mxu1 %v421_v12  ;;  %v28_v16 = vpack.c.bf16 %v19_v14, %v16_v13  ;;  %v20_v18 = vld [vmem:[%s585_s0 + $0x28] sm:$0xff]  ;;  %v23_v21 = vld [vmem:[%s585_s0 + $0x40] sm:$0xff]  ;;  %v26_v22 = vld [vmem:[%s585_s0 + $0x58] sm:$0xff] }
   0x8   :  { %367 = vmatprep.subr.bf16.mxu0 %v408_v4  ;;  %v29_v20 = vpack.c.bf16 %v20_v18, %v17_v17  ;;  %v32_v23 = vpack.c.bf16 %v26_v22, %v23_v21  ;;  %v417_v24 = vld [vmem:[%s584_s1 + $0x30] sm:$0xff]   ;;  %v419_v25 = vld [vmem:[%s584_s1 + $0x78] sm:$0xff]   ;;  %v15_v27 = vld [vmem:[%s585_s0] sm:$0xff] }
   0x9   :  { %216 = vmatprep.mubr.bf16.mxu0 %v28_v16  ;;  %v420_v26 = vld [vmem:[%s584_s1 + $0x38] sm:$0xff]   ;;  %v25_v30 = vld [vmem:[%s585_s0 + $0x50] sm:$0xff]  ;;  %v24_v34 = vld [vmem:[%s585_s0 + $0x48] sm:$0xff] }
   0xa   :  { %398 = vmatpush3.bf16.msra.mxu1 %v421_v12  ;;  %399 = vmatprep.mubr.msk.bf16.mxu1 %vm177_vm0, %v29_v20  ;;  %v18_v28 = vld [vmem:[%s585_s0 + $0x18] sm:$0xff]  ;;  %v21_v33 = vld [vmem:[%s585_s0 + $0x30] sm:$0xff]  ;;  %v294_v20 = vld [vmem:[%s586_s3] sm:$0x1] }
   0xb   :  { %368 = vmatpush3.bf16.msra.mxu0 %v409_v5  ;;  %v22_v29 = vld [vmem:[%s585_s0 + $0x38] sm:$0xff]  ;;  %v27_v31 = vpack.c.bf16 %v18_v28, %v15_v27  ;;  %v30_v35 = vpack.c.bf16 %v24_v34, %v21_v33 }
   0xc   :  { %369 = vmatprep.subr.bf16.mxu0 %v410_v6  ;;  %v31_v32 = vpack.c.bf16 %v25_v30, %v22_v29 }
   0xd   :  { %400 = vmatmul.mubr.msk.bf16.vlgmr.msra.gmra.mrb[0].mxu1 %vm177_vm0, %v32_v23  ;;  %v311_v23 = vld [vmem:[%s587_s4] sm:$0x1] }
   0xf   :  { %370 = vmatpush3.bf16.msra.mxu0 %v411_v7 }
  0x10   :  { %371 = vmatprep.subr.bf16.mxu0 %v412_v8 }
  0x13   :  { %372 = vmatpush3.bf16.msra.mxu0 %v413_v10 }
  0x14   :  { %373 = vmatprep.subr.bf16.mxu0 %v414_v11 }
  0x17   :  { %374 = vmatpush3.bf16.msra.mxu0 %v415_v15 }
  0x18   :  { %375 = vmatprep.subr.bf16.mxu0 %v416_v19 }
  0x1b   :  { %376 = vmatpush3.bf16.msra.mxu0 %v417_v24 }
  0x1c   :  { %377 = vmatprep.subr.bf16.mxu0 %v419_v25 }
  0x1f   :  { %378 = vmatpush3.bf16.msra.mxu0 %v420_v26 }
  0x22   :  { %217 = vmatmul.mubr.bf16.vlgmr.msra.gmra.mrb[0].mxu0 %v27_v31 }
  0x23   :  { %224 = vmatprep.mubr.bf16.mxu0 %v31_v32 }
  0x2a   :  { %225 = vmatmul.mubr.bf16.gmra.mrb[4].mxu0 %v30_v35 }
  0xe0   :  { %v401_v37 = vpop.f32.mrb[0].mxu1 }
  0xe1   :  { %v267_v38 = vpop.f32.mrb[1].mxu1 }
  0xe2   :  { %v402_v39 = vpop.f32.mrb[2].mxu1 }
  0xe3   :  { %v270_v40 = vpop.f32.mrb[3].mxu1 }
  0xf5   :  { %v379_v41 = vpop.f32.mrb[0].mxu0 }
  0xf6   :  { %v380_v42 = vpop.f32.mrb[1].mxu0 }
  0xf7   :  { %v381_v43 = vadd.f32 %v380_v42, %v379_v41  ;;  %v382_v44 = vpop.f32.mrb[2].mxu0 }
  0xf8   :  { %v383_v45 = vpop.f32.mrb[3].mxu0 }
  0xf9   :  { %v384_v46 = vadd.f32 %v383_v45, %v382_v44  ;;  %v268_v47 = vadd.f32 %v381_v43, %v267_v38 }
  0xfb   :  { %283 = vst.msk [vmem:[%s588_s2] sm:$0xff] %vm282_vm2, %v268_v47  ;;  %v312_v48 = vmul.f32 %v268_v47, %v268_v47  ;;  %v271_v49 = vadd.f32 %v384_v46, %v270_v40  ;;  %v295_v50 = vsel %vm282_vm2, %v268_v47, 0.0 }
  0xfd   :  { %284 = vst.msk [vmem:[%s588_s2 + $0x8] sm:$0xff] %vm282_vm2, %v271_v49  ;;  %v296_v51 = vsel %vm282_vm2, %v271_v49, 0.0  ;;  %v313_v52 = vmul.f32 %v271_v49, %v271_v49  ;;  %v385_v53 = vpop.f32.mrb[4].mxu0  ;;  %v316_v56 = vsel %vm282_vm2, %v312_v48, 0.0 }
  0xfe   :  { %v297_v54 = vadd.f32 %v296_v51, %v295_v50  ;;  %v386_v55 = vpop.f32.mrb[5].mxu0 }
  0xff   :  { %v317_v57 = vsel %vm282_vm2, %v313_v52, 0.0  ;;  %v387_v58 = vadd.f32 %v386_v55, %v385_v53  ;;  %v388_v59 = vpop.f32.mrb[6].mxu0 }
 0x100   :  { %v318_v60 = vadd.f32 %v317_v57, %v316_v56  ;;  %v389_v61 = vpop.f32.mrb[7].mxu0 }
 0x101   :  { %v276_v62 = vadd.f32 %v401_v37, %v387_v58  ;;  %v390_v63 = vadd.f32 %v389_v61, %v388_v59 }
 0x103   :  { %285 = vst.msk [vmem:[%s588_s2 + $0x10] sm:$0xff] %vm282_vm2, %v276_v62  ;;  %v298_v0 = vsel %vm282_vm2, %v276_v62, 0.0  ;;  %v314_v1 = vmul.f32 %v276_v62, %v276_v62  ;;  %v279_v2 = vadd.f32 %v402_v39, %v390_v63 }
 0x104   :  { %v299_v3 = vadd.f32 %v298_v0, %v297_v54 }
 0x105   :  { %v319_v4 = vsel %vm282_vm2, %v314_v1, 0.0  ;;  %286 = vst.msk [vmem:[%s588_s2 + $0x18] sm:$0xff] %vm282_vm2, %v279_v2  ;;  %v300_v5 = vsel %vm282_vm2, %v279_v2, 0.0  ;;  %v315_v6 = vmul.f32 %v279_v2, %v279_v2 }
 0x106   :  { %v320_v7 = vadd.f32 %v319_v4, %v318_v60  ;;  %v301_v8 = vadd.f32 %v300_v5, %v299_v3 }
 0x107   :  { %v321_v9 = vsel %vm282_vm2, %v315_v6, 0.0 }
 0x108   :  { %v302_v10 = vrot.slane %v301_v8, 4  ;;  %v322_v11 = vadd.f32 %v321_v9, %v320_v7 }
 0x10a   :  { %v303_v12 = vadd.f32 %v302_v10, %v301_v8  ;;  %v323_v13 = vrot.slane %v322_v11, 4 }
 0x10c   :  { %v304_v14 = vrot.slane %v303_v12, 2  ;;  %v324_v15 = vadd.f32 %v323_v13, %v322_v11 }
 0x10e   :  { %v305_v16 = vadd.f32 %v304_v14, %v303_v12  ;;  %v325_v17 = vrot.slane %v324_v15, 2 }
 0x110   :  { %v306_v18 = vrot.slane %v305_v16, 1  ;;  %v326_v19 = vadd.f32 %v325_v17, %v324_v15 }
 0x112   :  { %v307_v21 = vadd.f32 %v306_v18, %v305_v16  ;;  %v327_v22 = vrot.slane %v326_v19, 1 }
 0x114   :  { %v308_v24 = vadd.f32 %v307_v21, %v294_v20  ;;  %v328_v25 = vadd.f32 %v327_v22, %v326_v19 }
 0x116   :  { %310 = vst.msk [vmem:[%s586_s3] sm:$0x1] %vm291_vm1, %v308_v24  ;;  %v329_v26 = vadd.f32 %v328_v25, %v311_v23 }
 0x118   :  { %330 = vst.msk [vmem:[%s587_s4] sm:$0x1] %vm291_vm1, %v329_v26 }

// kernel: densenet_forward.33
= control target key start
LH: loop header
LB: loop body
LE: loop exit
PB: predicated region body
PF: predicated region fallthrough
CT: control target
= control target key end

     0   :  { %vm72_vm0 = vcmask 1043456   ;;  %vm65_vm1 = vcmask 195584   ;;  %vm134_vm2 = vcmask 253952   ;;  %v208_v23 = vmov 0.0   ;;  %s314_s3 = inlined_call_operand.vmem [shape: bf16[24,32], index: 3, kind: input, shape index: {}]   ;;  %s315_s0 = inlined_call_operand.vmem [shape: f32[1,24], index: 0, kind: input, shape index: {}]   ;;  %s316_s1 = inlined_call_operand.vmem [shape: f32[1,24], index: 1, kind: input, shape index: {}]   ;;  %s317_s2 = inlined_call_operand.vmem [shape: f32[32,24], index: 2, kind: input, shape index: {}]   ;;  %s318_s5 = inlined_call_operand.vmem [shape: f32[1,32], index: 5, kind: output, shape index: {1}]   ;;  %s319_s6 = inlined_call_operand.vmem [shape: f32[1,32], index: 6, kind: output, shape index: {2}]   ;;  %s320_s4 = inlined_call_operand.vmem [shape: f32[32,32], index: 4, kind: output, shape index: {0}]  }
   0x1   :  { %v206_v0 = vld [vmem:[%s314_s3] sm:$0xff]   ;;  %v207_v1 = vld [vmem:[%s314_s3 + $0x8] ss:$0 sps:$4 sm:$0xff]   ;;  %v23_v8 = vld [vmem:[%s317_s2 + $0x10] sm:$0xff]  ;;  %135 = vst.msk [vmem:[%s318_s5] sm:$0x1] %vm134_vm2, %v208_v23 }
   0x2   :  { %v21_v2 = vld [vmem:[%s317_s2] sm:$0xff]  ;;  %v22_v3 = vld [vmem:[%s317_s2 + $0x8] sm:$0xff]  ;;  %196 = vmatprep.subr.bf16.mxu0 %v206_v0  ;;  %v24_v9 = vld [vmem:[%s317_s2 + $0x18] sm:$0xff]  ;;  %v74_v12 = vsel %vm72_vm0, %v207_v1, 0  ;;  %136 = vst.msk [vmem:[%s319_s6] sm:$0x1] %vm134_vm2, %v208_v23 }
   0x3   :  { %v186_v4 = vld [vmem:[%s315_s0] ss:$0 sm:$0xff]  ;;  %197 = vmatpush3.bf16.msra.mxu0 %v206_v0  ;;  %vm125_vm3 = vcmask 261120  }
   0x4   :  { %v187_v5 = vld [vmem:[%s316_s1] ss:$0 sm:$0xff]  ;;  %v32_v6 = vmul.f32 %v186_v4, %v21_v2  ;;  %v33_v7 = vmul.f32 %v186_v4, %v22_v3  ;;  %v34_v10 = vmul.f32 %v186_v4, %v23_v8  ;;  %v35_v11 = vmul.f32 %v186_v4, %v24_v9  ;;  %204 = vmatprep.subr.msk.bf16.mxu0 %vm72_vm0, %v207_v1 }
   0x6   :  { %v43_v13 = vadd.f32 %v187_v5, %v32_v6  ;;  %v44_v14 = vadd.f32 %v187_v5, %v33_v7  ;;  %v45_v15 = vadd.f32 %v187_v5, %v34_v10  ;;  %v46_v16 = vadd.f32 %v187_v5, %v35_v11 }
   0x7   :  { %199 = vmatpush3.bf16.msra.mxu0 %v74_v12 }
   0x8   :  { %v47_v17 = vmax.f32 %v43_v13, 0.0  ;;  %v48_v18 = vmax.f32 %v44_v14, 0.0  ;;  %v49_v19 = vmax.f32 %v45_v15, 0.0  ;;  %v50_v20 = vmax.f32 %v46_v16, 0.0  ;;  %v137_v55 = vld [vmem:[%s318_s5] sm:$0x1] }
   0x9   :  { %v154_v58 = vld [vmem:[%s319_s6] sm:$0x1] }
   0xa   :  { %v51_v21 = vpack.c.bf16 %v48_v18, %v47_v17  ;;  %v52_v22 = vpack.c.bf16 %v50_v20, %v49_v19 }
   0xc   :  { %200 = vmatprep.mubr.msk.bf16.mxu0 %vm65_vm1, %v51_v21 }
   0xd   :  { %201 = vmatmul.mubr.msk.bf16.vlgmr.msra.gmra.mrb[0].mxu0 %vm65_vm1, %v52_v22 }
  0xe0   :  { %v202_v24 = vpop.f32.mrb[0].mxu0 }
  0xe1   :  { %128 = vst.msk [vmem:[%s320_s4 + $0x10] sm:$0xff] %vm125_vm3, %v202_v24  ;;  %v110_v25 = vpop.f32.mrb[1].mxu0  ;;  %v157_v29 = vmul.f32 %v202_v24, %v202_v24  ;;  %v141_v34 = vsel %vm125_vm3, %v202_v24, 0.0 }
  0xe2   :  { %126 = vst.msk [vmem:[%s320_s4] sm:$0xff] %vm125_vm3, %v110_v25  ;;  %v155_v26 = vmul.f32 %v110_v25, %v110_v25  ;;  %v203_v27 = vpop.f32.mrb[2].mxu0  ;;  %v138_v30 = vsel %vm125_vm3, %v110_v25, 0.0 }
  0xe3   :  { %129 = vst.msk [vmem:[%s320_s4 + $0x18] sm:$0xff] %vm125_vm3, %v203_v27  ;;  %v113_v28 = vpop.f32.mrb[3].mxu0  ;;  %v158_v36 = vmul.f32 %v203_v27, %v203_v27  ;;  %v162_v40 = vsel %vm125_vm3, %v157_v29, 0.0  ;;  %v143_v41 = vsel %vm125_vm3, %v203_v27, 0.0 }
  0xe4   :  { %127 = vst.msk [vmem:[%s320_s4 + $0x8] sm:$0xff] %vm125_vm3, %v113_v28  ;;  %v139_v31 = vsel %vm125_vm3, %v113_v28, 0.0  ;;  %v156_v32 = vmul.f32 %v113_v28, %v113_v28  ;;  %v159_v35 = vsel %vm125_vm3, %v155_v26, 0.0 }
  0xe5   :  { %v140_v33 = vadd.f32 %v139_v31, %v138_v30  ;;  %v164_v44 = vsel %vm125_vm3, %v158_v36, 0.0 }
  0xe6   :  { %v160_v37 = vsel %vm125_vm3, %v156_v32, 0.0 }
  0xe7   :  { %v142_v38 = vadd.f32 %v141_v34, %v140_v33  ;;  %v161_v39 = vadd.f32 %v160_v37, %v159_v35 }
  0xe9   :  { %v144_v42 = vadd.f32 %v143_v41, %v142_v38  ;;  %v163_v43 = vadd.f32 %v162_v40, %v161_v39 }
  0xeb   :  { %v145_v45 = vrot.slane %v144_v42, 4  ;;  %v165_v46 = vadd.f32 %v164_v44, %v163_v43 }
  0xed   :  { %v146_v47 = vadd.f32 %v145_v45, %v144_v42  ;;  %v166_v48 = vrot.slane %v165_v46, 4 }
  0xef   :  { %v147_v49 = vrot.slane %v146_v47, 2  ;;  %v167_v50 = vadd.f32 %v166_v48, %v165_v46 }
  0xf1   :  { %v148_v51 = vadd.f32 %v147_v49, %v146_v47  ;;  %v168_v52 = vrot.slane %v167_v50, 2 }
  0xf3   :  { %v149_v53 = vrot.slane %v148_v51, 1  ;;  %v169_v54 = vadd.f32 %v168_v52, %v167_v50 }
  0xf5   :  { %v150_v56 = vadd.f32 %v149_v53, %v148_v51  ;;  %v170_v57 = vrot.slane %v169_v54, 1 }
  0xf7   :  { %v151_v59 = vadd.f32 %v150_v56, %v137_v55  ;;  %v171_v60 = vadd.f32 %v170_v57, %v169_v54 }
  0xf9   :  { %153 = vst.msk [vmem:[%s318_s5] sm:$0x1] %vm134_vm2, %v151_v59  ;;  %v172_v61 = vadd.f32 %v171_v60, %v154_v58 }
  0xfb   :  { %173 = vst.msk [vmem:[%s319_s6] sm:$0x1] %vm134_vm2, %v172_v61 }

// kernel: densenet_forward.36
= control target key start
LH: loop header
LB: loop body
LE: loop exit
PB: predicated region body
PF: predicated region fallthrough
CT: control target
= control target key end

     0   :  { %vm92_vm0 = vcmask 254976   ;;  %s263_s2 = inlined_call_operand.vmem [shape: f32[16,2,32], index: 2, kind: input, shape index: {}]   ;;  %s264_s0 = inlined_call_operand.vmem [shape: f32[1,1,32], index: 0, kind: input, shape index: {}]   ;;  %s265_s1 = inlined_call_operand.vmem [shape: f32[1,1,32], index: 1, kind: input, shape index: {}]   ;;  %s266_s3 = inlined_call_operand.vmem [shape: f32[2,32], index: 3, kind: output, shape index: {}]  }
   0x1   :  { %v14_v0 = vld [vmem:[%s263_s2] sm:$0x3]  ;;  %v15_v1 = vld [vmem:[%s263_s2 + $0x2] sm:$0x3]  ;;  %v16_v2 = vld [vmem:[%s263_s2 + $0x4] sm:$0x3] }
   0x2   :  { %v17_v3 = vld [vmem:[%s263_s2 + $0x6] sm:$0x3]  ;;  %v168_v4 = vld [vmem:[%s264_s0] ss:$0 sm:$0xff]  ;;  %v18_v8 = vld [vmem:[%s263_s2 + $0x8] sm:$0x3] }
   0x3   :  { %v37_v5 = vmul.f32 %v168_v4, %v14_v0  ;;  %v38_v6 = vmul.f32 %v168_v4, %v15_v1  ;;  %v39_v7 = vmul.f32 %v168_v4, %v16_v2  ;;  %v179_v9 = vld [vmem:[%s265_s1] ss:$0 sm:$0xff]  ;;  %v40_v10 = vmul.f32 %v168_v4, %v17_v3  ;;  %v19_v11 = vld [vmem:[%s263_s2 + $0xa] sm:$0x3]  ;;  %v20_v12 = vld [vmem:[%s263_s2 + $0xc] sm:$0x3] }
   0x4   :  { %v41_v13 = vmul.f32 %v168_v4, %v18_v8  ;;  %v42_v17 = vmul.f32 %v168_v4, %v19_v11  ;;  %v21_v19 = vld [vmem:[%s263_s2 + $0xe] sm:$0x3]  ;;  %v43_v20 = vmul.f32 %v168_v4, %v20_v12  ;;  %v22_v21 = vld [vmem:[%s263_s2 + $0x10] sm:$0x3]  ;;  %v23_v29 = vld [vmem:[%s263_s2 + $0x12] sm:$0x3] }
   0x5   :  { %v60_v14 = vadd.f32 %v179_v9, %v37_v5  ;;  %v61_v15 = vadd.f32 %v179_v9, %v38_v6  ;;  %v62_v16 = vadd.f32 %v179_v9, %v39_v7  ;;  %v63_v18 = vadd.f32 %v179_v9, %v40_v10  ;;  %v24_v36 = vld [vmem:[%s263_s2 + $0x14] sm:$0x3]  ;;  %v25_v42 = vld [vmem:[%s263_s2 + $0x16] sm:$0x3]  ;;  %v26_v48 = vld [vmem:[%s263_s2 + $0x18] sm:$0x3] }
   0x6   :  { %v64_v22 = vadd.f32 %v179_v9, %v41_v13  ;;  %v44_v26 = vmul.f32 %v168_v4, %v21_v19  ;;  %v65_v27 = vadd.f32 %v179_v9, %v42_v17  ;;  %v45_v30 = vmul.f32 %v168_v4, %v22_v21  ;;  %v27_v54 = vld [vmem:[%s263_s2 + $0x1a] sm:$0x3]  ;;  %v28_v60 = vld [vmem:[%s263_s2 + $0x1c] sm:$0x3]  ;;  %v29_v2 = vld [vmem:[%s263_s2 + $0x1e] sm:$0x3] }
   0x7   :  { %v76_v23 = vmax.f32 %v60_v14, 0.0  ;;  %v77_v24 = vmax.f32 %v61_v15, 0.0  ;;  %v78_v25 = vmax.f32 %v62_v16, 0.0  ;;  %v79_v28 = vmax.f32 %v63_v18, 0.0 }
   0x8   :  { %v66_v31 = vadd.f32 %v179_v9, %v43_v20  ;;  %v80_v32 = vmax.f32 %v64_v22, 0.0  ;;  %v46_v38 = vmul.f32 %v168_v4, %v23_v29  ;;  %v67_v39 = vadd.f32 %v179_v9, %v44_v26 }
   0x9   :  { %v93_v33 = vsel %vm92_vm0, %v76_v23, 0.0  ;;  %v94_v34 = vsel %vm92_vm0, %v77_v24, 0.0  ;;  %v96_v35 = vsel %vm92_vm0, %v78_v25, 0.0  ;;  %v81_v40 = vmax.f32 %v65_v27, 0.0 }
   0xa   :  { %v95_v37 = vadd.f32 %v94_v34, %v93_v33  ;;  %v98_v41 = vsel %vm92_vm0, %v79_v28, 0.0  ;;  %v47_v44 = vmul.f32 %v168_v4, %v24_v36  ;;  %v68_v45 = vadd.f32 %v179_v9, %v45_v30 }
   0xb   :  { %v82_v46 = vmax.f32 %v66_v31, 0.0  ;;  %v100_v47 = vsel %vm92_vm0, %v80_v32, 0.0  ;;  %v48_v50 = vmul.f32 %v168_v4, %v25_v42  ;;  %v69_v51 = vadd.f32 %v179_v9, %v46_v38 }
   0xc   :  { %v97_v43 = vadd.f32 %v96_v35, %v95_v37  ;;  %v83_v52 = vmax.f32 %v67_v39, 0.0  ;;  %v102_v53 = vsel %vm92_vm0, %v81_v40, 0.0  ;;  %v49_v56 = vmul.f32 %v168_v4, %v26_v48 }
   0xd   :  { %v70_v57 = vadd.f32 %v179_v9, %v47_v44  ;;  %v84_v58 = vmax.f32 %v68_v45, 0.0  ;;  %v104_v59 = vsel %vm92_vm0, %v82_v46, 0.0  ;;  %v50_v62 = vmul.f32 %v168_v4, %v27_v54 }
   0xe   :  { %v99_v49 = vadd.f32 %v98_v41, %v97_v43  ;;  %v71_v63 = vadd.f32 %v179_v9, %v48_v50  ;;  %v85_v0 = vmax.f32 %v69_v51, 0.0  ;;  %v106_v1 = vsel %vm92_vm0, %v83_v52, 0.0 }
   0xf   :  { %v51_v5 = vmul.f32 %v168_v4, %v28_v60  ;;  %v72_v6 = vadd.f32 %v179_v9, %v49_v56  ;;  %v86_v7 = vmax.f32 %v70_v57, 0.0  ;;  %v108_v8 = vsel %vm92_vm0, %v84_v58, 0.0 }
  0x10   :  { %v101_v55 = vadd.f32 %v100_v47, %v99_v49  ;;  %v52_v11 = vmul.f32 %v168_v4, %v29_v2  ;;  %v73_v12 = vadd.f32 %v179_v9, %v50_v62  ;;  %v87_v13 = vmax.f32 %v71_v63, 0.0 }
  0x11   :  { %v110_v14 = vsel %vm92_vm0, %v85_v0, 0.0  ;;  %v74_v16 = vadd.f32 %v179_v9, %v51_v5  ;;  %v88_v17 = vmax.f32 %v72_v6, 0.0  ;;  %v112_v18 = vsel %vm92_vm0, %v86_v7, 0.0 }
  0x12   :  { %v103_v61 = vadd.f32 %v102_v53, %v101_v55  ;;  %v75_v20 = vadd.f32 %v179_v9, %v52_v11  ;;  %v89_v21 = vmax.f32 %v73_v12, 0.0  ;;  %v114_v22 = vsel %vm92_vm0, %v87_v13, 0.0 }
  0x13   :  { %v90_v24 = vmax.f32 %v74_v16, 0.0  ;;  %v116_v4 = vsel %vm92_vm0, %v88_v17, 0.0 }
  0x14   :  { %v105_v3 = vadd.f32 %v104_v59, %v103_v61  ;;  %v91_v26 = vmax.f32 %v75_v20, 0.0  ;;  %v118_v27 = vsel %vm92_vm0, %v89_v21, 0.0 }
  0x15   :  { %v120_v29 = vsel %vm92_vm0, %v90_v24, 0.0 }
  0x16   :  { %v107_v10 = vadd.f32 %v106_v1, %v105_v3  ;;  %v122_v31 = vsel %vm92_vm0, %v91_v26, 0.0 }
  0x18   :  { %v109_v15 = vadd.f32 %v108_v8, %v107_v10 }
  0x1a   :  { %v111_v19 = vadd.f32 %v110_v14, %v109_v15 }
  0x1c   :  { %v113_v23 = vadd.f32 %v112_v18, %v111_v19 }
  0x1e   :  { %v115_v25 = vadd.f32 %v114_v22, %v113_v23 }
  0x20   :  { %v117_v28 = vadd.f32 %v116_v4, %v115_v25 }
  0x22   :  { %v119_v30 = vadd.f32 %v118_v27, %v117_v28 }
  0x24   :  { %v121_v32 = vadd.f32 %v120_v29, %v119_v30 }
  0x26   :  { %v123_v33 = vadd.f32 %v122_v31, %v121_v32 }
  0x28   :  { %v125_v9 = vmul.f32 0.0625, %v123_v33 }
  0x2a   :  { %126 = vst.msk [vmem:[%s266_s3] sm:$0x3] %vm92_vm0, %v125_v9 }

// kernel: densenet_forward.37
= control target key start
LH: loop header
LB: loop body
LE: loop exit
PB: predicated region body
PF: predicated region fallthrough
CT: control target
= control target key end

     0   :  { %v145_v1 = vmov 0.0   ;;  %vm146_vm0 = vmmov 0   ;;  %s192_s0 = inlined_call_operand.vmem [shape: f32[2,32], index: 0, kind: input, shape index: {}]   ;;  %s193_s1 = inlined_call_operand.vmem [shape: bf16[32,10], index: 1, kind: input, shape index: {}]   ;;  %s194_s2 = inlined_call_operand.vmem [shape: f32[1,10], index: 2, kind: input, shape index: {}]   ;;  %s195_s3 = inlined_call_operand.hbm [shape: f32[2,10], index: 3, kind: output, shape index: {}]  }
   0x1   :  { %v119_v0 = vld [vmem:[%s193_s1] sm:$0xff]   ;;  %108 = vmatprep.subr.bf16.mxu0 %v145_v1  ;;  %v120_v2 = vld [vmem:[%s193_s1 + $0x8] sm:$0xff]   ;;  %112 = vmatprep.mubr.msk.bf16.mxu0 %vm146_vm0, %v145_v1 }
   0x2   :  { %109 = vmatpush3.bf16.msra.mxu0 %v119_v0  ;;  %v16_v3 = vld [vmem:[%s192_s0] sm:$0x3] }
   0x3   :  { %110 = vmatprep.subr.bf16.mxu0 %v145_v1 }
   0x4   :  { %8 = vsyncpa [#allocation3], 0  ;;  %v17_v4 = vpack.c.bf16 %v16_v3, %v16_v3  ;;  %vm41_vm1 = vcmask 261120   ;;  %v101_v5 = vld [vmem:[%s194_s2] ss:$0 sm:$0xff]  ;;  %s147_s20 = smov [#allocation2]  }
   0x5   :  { %s93_s21 = sshll.u32 %s147_s20, 4  ;;  %vm85_vm2 = vcmask 74752   ;;  %s94_s21 = int_to_ptr.vmem [resolvable:$true] %s93_s21 }
   0x6   :  { %111 = vmatpush3.bf16.msra.mxu0 %v120_v2  ;;  %s121_s0 = scalar_lea.vmem %s94_s21, 32  ;;  %p126_p1 = scmp.lt.s32.totalorder %s94_s21, %s94_s21 }
   0x7   :  { %p122_p0 = scmp.ne.s32.totalorder %s94_s21, %s121_s0  ;;  %p127_p2 = scmp.lt.s32.totalorder %s121_s0, %s121_s0 }
   0x9   :  { %113 = vmatmul.mubr.msk.bf16.vlgmr.msra.gmra.mrb[0].mxu0 %vm41_vm1, %v17_v4  ;;  %p128_p3 = por %p127_p2, %p126_p1 }
   0xb   :  { %p129_p4 = pnand %p128_p3, %p122_p0 }
  0xdc   :  { %v79_v6 = vpop.f32.mrb[0].mxu0 }
  0xdd   :  { %v80_v7 = vadd.f32 %v101_v5, %v79_v6  ;;  %v114_v8 = vpop.f32.mrb[1].mxu0 }
  0xde   :  { %v82_v9 = vpop.f32.mrb[2].mxu0 }
  0xdf   :  { %v115_v10 = vpop.f32.mrb[3].mxu0  ;;  %86 = vst.msk [vmem:[#allocation2] sm:$0x3] %vm85_vm2, %v80_v7 }
  0xe0   :  { %132 = shalt.err (!%p129_p4)
}
  0xe1   :  { %s133_s2 = scalar_lea.hbm %s195_s3, 32 }
  0xe2   :  { %p134_p5 = scmp.ne.s32.totalorder %s195_s3, %s133_s2  ;;  %p137_p6 = scmp.lt.u32.totalorder %s133_s2, %s195_s3 }
  0xe4   :  { %p139_p7 = pnand %p137_p6, %p134_p5 }
  0xe6   :  { %142 = shalt.err (!%p139_p7)
}
  0xe7   :  { %96 = dma.vmem_to_hbm [thread:$0]  %s94_s21, 32, %s195_s3, [#allocation3]  }
  0xe8   :  { %143 = dma.done.wait [#allocation3], 32  }
  0xe9   :  { %144 = vsyncadd [#allocation3], 4294967264 }
  0xea   :  { %100 = vsyncpa [#allocation3], 1 }

</bundles_post_ra>
